<compile_context>
chip_gen: v5e
topology: v5e:2x2
jax: 0.10.0
libtpu: 0.0.40
codegen_flags: <defaults>
</compile_context>

<pallas_src>
import functools

import jax
import jax.numpy as jnp
from jax import lax
from jax.experimental import pallas as pl
from jax.experimental.pallas import tpu as pltpu


HALO = 6  # rows of context needed per side: 3 chained k=5, s=1, p=2 max pools


def sppf_kernel(w_idx_ref, x_ref, w1_ref, b1_ref, w2_ref, b2_ref,
                o_ref, buf_ref, acc_ref, stage_ref, *, H, W, R, fuse_cv2):
    f32 = jnp.float32
    bf16 = jnp.bfloat16
    neg = jnp.float32(-jnp.inf)

    Cm = w1_ref.shape[1]
    T = R + 2 * HALO                  # rows in the halo'd window
    TW = T * W
    RW = R * W
    base = 2 * W                      # -inf guard rows above/below the window
    c0 = HALO * W                     # first flattened row of the stripe proper

    s = pl.program_id(1)              # stripe index

    # ---- masks (computed once, reused by all three pools) ------------------
    w_idx = w_idx_ref[...]                            # (TW, 1) int32: w coord
    m_fwd = {d: w_idx < (W - d) for d in (1, 2)}      # neighbour at w+d exists
    m_bwd = {d: w_idx >= d for d in (1, 2)}           # neighbour at w-d exists

    # Rows of the window that fall outside the image (first/last stripes only)
    # must act as -inf max-pool padding.  Derived in-kernel from the stripe id.
    flat = lax.broadcasted_iota(jnp.int32, (TW, 1), 0)
    top_cut = jnp.maximum(0, HALO - s * R) * W
    bot_cut = TW - jnp.maximum(0, (s + 1) * R + HALO - H) * W
    row_ok = (flat >= top_cut) & (flat < bot_cut)

    # -inf guard rows so the H-direction taps never need a mask.  Re-written
    # every grid step (NOT under pl.when(first step)): with core-split grids
    # each core owns its own scratch instance.
    buf_ref[0:base, :] = jnp.full((base, Cm), neg, f32)
    buf_ref[base + TW:base + TW + base, :] = jnp.full((base, Cm), neg, f32)

    def pool5(t):
        """5x5 / stride-1 / pad-2 max pool of t laid out as (T*W, C), separable:
        5-tap max along W (boundary-masked shifted reads), then 5-tap max along
        H (sublane-aligned +-W/+-2W reads landing in the -inf guard rows)."""
        buf_ref[base:base + TW, :] = t
        tw = t
        for d in (1, 2):
            tw = jnp.maximum(
                tw, jnp.where(m_fwd[d], buf_ref[base + d:base + d + TW, :], neg))
            tw = jnp.maximum(
                tw, jnp.where(m_bwd[d], buf_ref[base - d:base - d + TW, :], neg))
        buf_ref[base:base + TW, :] = tw
        out = tw
        for d in (W, 2 * W):
            out = jnp.maximum(out, buf_ref[base + d:base + d + TW, :])
            out = jnp.maximum(out, buf_ref[base - d:base - d + TW, :])
        return out

    # ---- cv1: 1x1 conv (BN folded) + SiLU over stripe + halo ----------------
    v = jnp.dot(x_ref[...], w1_ref[...], preferred_element_type=f32) + b1_ref[...]
    h = v / (1.0 + jnp.exp(-v))          # exact SiLU keeps cv2 inputs tight
    h = jnp.where(row_ok, h, neg)        # out-of-image rows become -inf pad

    # ---- chained pools + cv2, accumulated in a VMEM f32 scratch -------------
    if fuse_cv2:
        # Pair the branches -> contraction depth 2*Cm (=256): fills the
        # 256-deep MXU of v6e / v7x; staging stores overlap with pooling.
        stage_ref[:, 0:Cm] = h[c0:c0 + RW, :].astype(bf16)
        y1 = pool5(h)
        stage_ref[:, Cm:2 * Cm] = y1[c0:c0 + RW, :].astype(bf16)
        acc_ref[...] = jnp.dot(stage_ref[...], w2_ref[0:2 * Cm, :],
                               preferred_element_type=f32)
        y2 = pool5(y1)
        stage_ref[:, 0:Cm] = y2[c0:c0 + RW, :].astype(bf16)
        y3 = pool5(y2)
        stage_ref[:, Cm:2 * Cm] = y3[c0:c0 + RW, :].astype(bf16)
        acc_ref[...] += jnp.dot(stage_ref[...], w2_ref[2 * Cm:4 * Cm, :],
                                preferred_element_type=f32)
    else:
        # v5e: MXU is 128 deep, K=Cm already fills it -- keep 4 matmuls.
        acc_ref[...] = jnp.dot(h[c0:c0 + RW, :].astype(bf16), w2_ref[0:Cm, :],
                               preferred_element_type=f32)
        y = h
        for i in (1, 2, 3):
            y = pool5(y)
            acc_ref[...] += jnp.dot(y[c0:c0 + RW, :].astype(bf16),
                                    w2_ref[i * Cm:(i + 1) * Cm, :],
                                    preferred_element_type=f32)

    # ---- cv2 bias + SiLU (approx reciprocal -> EUP slot) and store ----------
    z = acc_ref[...] + b2_ref[...]
    o_ref[...] = (z * pl.reciprocal(1.0 + jnp.exp(-z), approx=True)
                  ).astype(o_ref.dtype)


def _pick_stripe_rows(H, W):
    """Rows per stripe: divides H, keeps R*W sublane-aligned, aims for 8-16."""
    for r in (16, 12, 10, 8, 6, 5, 4):
        if r < H and H % r == 0 and (r * W) % 8 == 0:
            return r
    return H


def _is_v5e():
    try:
        kind = jax.devices()[0].device_kind.lower()
    except Exception:
        return False
    return ("v5 lite" in kind) or ("v5e" in kind) or ("v5litepod" in kind)


def sppf_pallas(x_nchw, w1, b1, w2, b2):
    """x_nchw: (N, C1, H, W).  w1: (C1, Cm), b1: (Cm,), w2: (4*Cm, C2), b2: (C2,).
    BN is assumed already folded into w1/w2/b1/b2 (see make_params)."""
    N, C1, H, W = x_nchw.shape
    Cm = w1.shape[1]
    C2 = w2.shape[1]
    HW = H * W
    assert w2.shape[0] == 4 * Cm
    # Lane-density requirement of this implementation (holds for YOLO11 SPPF).
    assert Cm % 128 == 0 and C2 % 128 == 0, (Cm, C2)
    # TODO(synk): pad Cm/C2 to multiples of 128 and W to a multiple of 8
    # (then slice the result) instead of asserting, for arbitrary shapes.

    R = _pick_stripe_rows(H, W)     # rows per stripe
    S = H // R                      # number of stripes
    T = R + 2 * HALO                # rows per halo'd window
    TW, RW = T * W, R * W

    bf16, f32 = jnp.bfloat16, jnp.float32

    # NCHW -> NHWC, bf16 matmul operands; halo'd overlapping row windows.
    # Out-of-image rows are zero here and masked to -inf inside the kernel.
    xh = jnp.transpose(x_nchw, (0, 2, 3, 1)).astype(bf16)          # (N,H,W,C1)
    xp = jnp.pad(xh, ((0, 0), (HALO, HALO), (0, 0), (0, 0)))       # (N,H+12,W,C1)
    x_win = jnp.stack([xp[:, s * R: s * R + T] for s in range(S)], axis=1)
    x_win = x_win.reshape(N, S, TW, C1)

    w1_bf = w1.astype(bf16)
    w2_bf = w2.astype(bf16)
    b1r = b1.reshape(1, Cm).astype(f32)
    b2r = b2.reshape(1, C2).astype(f32)

    # w coordinate of every flattened window row (for the W-boundary masks).
    w_idx = jnp.tile(jnp.arange(W, dtype=jnp.int32), T).reshape(TW, 1)

    fuse_cv2 = not _is_v5e()
    kernel = functools.partial(sppf_kernel, H=H, W=W, R=R, fuse_cv2=fuse_cv2)

    # VMEM budget derived from actual blocks (double-buffered) + persistent
    # scratch + headroom for spills, instead of a blanket number.
    out_item = x_nchw.dtype.itemsize
    block_bytes = 2 * (TW * 4                        # w_idx
                       + TW * C1 * 2                 # x window
                       + C1 * Cm * 2 + Cm * 4        # w1, b1
                       + 4 * Cm * C2 * 2 + C2 * 4    # w2, b2
                       + RW * C2 * out_item)         # out
    scratch_bytes = (TW + 4 * W) * Cm * 4 + RW * C2 * 4 + RW * 2 * Cm * 2
    vmem_limit = min(block_bytes + scratch_bytes + (16 << 20), 64 << 20)

    out2d = pl.pallas_call(
        kernel,
        out_shape=jax.ShapeDtypeStruct((N, HW, C2), x_nchw.dtype),
        grid=(N, S),
        in_specs=[
            pl.BlockSpec((TW, 1), lambda n, s: (0, 0)),                      # w_idx
            pl.BlockSpec((pl.Squeezed(), pl.Squeezed(), TW, C1),
                         lambda n, s: (n, s, 0, 0)),                         # x windows
            pl.BlockSpec((C1, Cm), lambda n, s: (0, 0)),                     # w1 (BN folded)
            pl.BlockSpec((1, Cm), lambda n, s: (0, 0)),                      # b1
            pl.BlockSpec((4 * Cm, C2), lambda n, s: (0, 0)),                 # w2 (BN folded)
            pl.BlockSpec((1, C2), lambda n, s: (0, 0)),                      # b2
        ],
        out_specs=pl.BlockSpec((pl.Squeezed(), RW, C2), lambda n, s: (n, s, 0)),
        scratch_shapes=[
            pltpu.VMEM((TW + 4 * W, Cm), jnp.float32),   # pooling buffer + -inf guards
            pltpu.VMEM((RW, C2), jnp.float32),           # cv2 accumulator
            pltpu.VMEM((RW, 2 * Cm), jnp.bfloat16),      # cv2 staging slab (K=2*Cm)
        ],
        compiler_params=pltpu.CompilerParams(
            dimension_semantics=("parallel", "parallel"),
            vmem_limit_bytes=vmem_limit),
    )(w_idx, x_win, w1_bf, b1r, w2_bf, b2r)

    return jnp.transpose(out2d.reshape(N, H, W, C2), (0, 3, 1, 2))


def sppf_reference(x_nchw, w1, b1, w2, b2):
    """Pure-JAX reference (lax.reduce_window pooling).  Matmul operands are
    rounded to bf16 exactly as in the kernel so the comparison is tight."""
    f32 = jnp.float32
    bf16 = jnp.bfloat16

    x = jnp.transpose(x_nchw, (0, 2, 3, 1)).astype(bf16).astype(f32)
    w1q = w1.astype(bf16).astype(f32)
    w2q = w2.astype(bf16).astype(f32)

    h = jnp.einsum('nhwc,cd->nhwd', x, w1q,
                   precision=lax.Precision.HIGHEST) + b1
    h = h * jax.nn.sigmoid(h)

    def mp(t):
        return lax.reduce_window(t, -jnp.inf, lax.max, (1, 5, 5, 1),
                                 (1, 1, 1, 1), [(0, 0), (2, 2), (2, 2), (0, 0)])

    y1 = mp(h)
    y2 = mp(y1)
    y3 = mp(y2)
    cat = jnp.concatenate([h, y1, y2, y3], axis=-1).astype(bf16).astype(f32)
    z = jnp.einsum('nhwc,cd->nhwd', cat, w2q,
                   precision=lax.Precision.HIGHEST) + b2
    z = z * jax.nn.sigmoid(z)
    return jnp.transpose(z, (0, 3, 1, 2)).astype(x_nchw.dtype)


def make_params(key, c1, c2):
    """Deterministic synthetic Conv+BN params with BatchNorm (eps=1e-3) folded
    into the matmul weights (scale) and a per-channel bias."""
    c_ = c1 // 2
    eps = 1e-3
    ks = jax.random.split(key, 10)

    w1 = jax.random.normal(ks[0], (c1, c_), jnp.float32) * 0.1
    g1 = jax.random.uniform(ks[1], (c_,), jnp.float32, 0.5, 1.5)
    be1 = jax.random.normal(ks[2], (c_,), jnp.float32) * 0.1
    mu1 = jax.random.normal(ks[3], (c_,), jnp.float32) * 0.1
    var1 = jax.random.uniform(ks[4], (c_,), jnp.float32, 0.5, 1.5)
    s1 = g1 / jnp.sqrt(var1 + eps)
    w1f = w1 * s1[None, :]
    b1f = be1 - mu1 * s1

    w2 = jax.random.normal(ks[5], (4 * c_, c2), jnp.float32) * 0.1
    g2 = jax.random.uniform(ks[6], (c2,), jnp.float32, 0.5, 1.5)
    be2 = jax.random.normal(ks[7], (c2,), jnp.float32) * 0.1
    mu2 = jax.random.normal(ks[8], (c2,), jnp.float32) * 0.1
    var2 = jax.random.uniform(ks[9], (c2,), jnp.float32, 0.5, 1.5)
    s2 = g2 / jnp.sqrt(var2 + eps)
    w2f = w2 * s2[None, :]
    b2f = be2 - mu2 * s2

    return w1f, b1f, w2f, b2f


if __name__ == "__main__":
    key = jax.random.PRNGKey(0)
    k_x, k_p = jax.random.split(key)

    # Channels are multiples of 128 so the (rows, C) tiles are lane-dense; W is
    # a multiple of 8 so the H-direction pool taps stay sublane-aligned.
    # H=16 splits into two 8-row stripes -> grid=(2, 2), both axes parallel.
    N, C1, C2, H, W = 2, 256, 256, 16, 16
    x = jax.random.normal(k_x, (N, C1, H, W), jnp.float32)   # NCHW, like PyTorch
    params = make_params(k_p, C1, C2)

    out = jax.block_until_ready(sppf_pallas(x, *params))
    ref = jax.block_until_ready(sppf_reference(x, *params))

    assert out.shape == (N, C2, H, W), out.shape
    max_err = float(jnp.max(jnp.abs(out - ref)))
    assert jnp.allclose(out, ref, rtol=1e-2, atol=1e-2), max_err

    print("KERNEL_OK")
</pallas_src>

<mosaic_0001>
module attributes {stable_mosaic.version = 11 : i64} {
  func.func @sppf_kernel(%arg0: i32, %arg1: i32, %arg2: memref<320x1xi32, #tpu.memory_space<vmem>>, %arg3: memref<1x1x320x256xbf16, #tpu.memory_space<vmem>>, %arg4: memref<256x128xbf16, #tpu.memory_space<vmem>>, %arg5: memref<1x128xf32, #tpu.memory_space<vmem>>, %arg6: memref<512x256xbf16, #tpu.memory_space<vmem>>, %arg7: memref<1x256xf32, #tpu.memory_space<vmem>>, %arg8: memref<1x128x256xf32, #tpu.memory_space<vmem>>, %arg9: memref<384x128xf32, #tpu.memory_space<vmem>>, %arg10: memref<128x256xf32, #tpu.memory_space<vmem>>, %arg11: memref<128x256xbf16, #tpu.memory_space<vmem>>) attributes {dimension_semantics = [#tpu.dimension_semantics<parallel>, #tpu.dimension_semantics<parallel>], iteration_bounds = array<i64: 2, 2>, scalar_prefetch = 0 : i64, scratch_operands = 3 : i64, tpu.core_type = #tpu.core_type<tc>, window_params = [{pipeline_mode = #tpu.pipeline_mode<synchronous>, transform_indices = @transform_0, window_bounds = array<i64: 320, 1>}, {transform_indices = @transform_1, window_bounds = array<i64: 1, 1, 320, 256>}, {pipeline_mode = #tpu.pipeline_mode<synchronous>, transform_indices = @transform_2, window_bounds = array<i64: 256, 128>}, {pipeline_mode = #tpu.pipeline_mode<synchronous>, transform_indices = @transform_3, window_bounds = array<i64: 1, 128>}, {pipeline_mode = #tpu.pipeline_mode<synchronous>, transform_indices = @transform_4, window_bounds = array<i64: 512, 256>}, {pipeline_mode = #tpu.pipeline_mode<synchronous>, transform_indices = @transform_5, window_bounds = array<i64: 1, 256>}, {transform_indices = @transform_6, window_bounds = array<i64: 1, 128, 256>}]} {
    %c0 = arith.constant 0 : index
    %c0_0 = arith.constant 0 : index
    %0 = vector.load %arg2[%c0, %c0_0] : memref<320x1xi32, #tpu.memory_space<vmem>>, vector<320x1xi32>
    %c15_i32 = arith.constant 15 : i32
    %1 = vector.broadcast %c15_i32 : i32 to vector<320x1xi32>
    %2 = arith.cmpi slt, %0, %1 : vector<320x1xi32>
    %c14_i32 = arith.constant 14 : i32
    %3 = vector.broadcast %c14_i32 : i32 to vector<320x1xi32>
    %4 = arith.cmpi slt, %0, %3 : vector<320x1xi32>
    %c1_i32 = arith.constant 1 : i32
    %5 = vector.broadcast %c1_i32 : i32 to vector<320x1xi32>
    %6 = arith.cmpi sge, %0, %5 : vector<320x1xi32>
    %c2_i32 = arith.constant 2 : i32
    %7 = vector.broadcast %c2_i32 : i32 to vector<320x1xi32>
    %8 = arith.cmpi sge, %0, %7 : vector<320x1xi32>
    %9 = tpu.iota {dimensions = array<i32: 0>} : vector<320x1xi32>
    %c8_i32 = arith.constant 8 : i32
    %10 = arith.muli %arg1, %c8_i32 : i32
    %c6_i32 = arith.constant 6 : i32
    %11 = arith.subi %c6_i32, %10 : i32
    %c0_i32 = arith.constant 0 : i32
    %12 = arith.maxsi %c0_i32, %11 : i32
    %c16_i32 = arith.constant 16 : i32
    %13 = arith.muli %12, %c16_i32 : i32
    %c1_i32_1 = arith.constant 1 : i32
    %14 = arith.addi %arg1, %c1_i32_1 : i32
    %c8_i32_2 = arith.constant 8 : i32
    %15 = arith.muli %14, %c8_i32_2 : i32
    %c6_i32_3 = arith.constant 6 : i32
    %16 = arith.addi %15, %c6_i32_3 : i32
    %c16_i32_4 = arith.constant 16 : i32
    %17 = arith.subi %16, %c16_i32_4 : i32
    %c0_i32_5 = arith.constant 0 : i32
    %18 = arith.maxsi %c0_i32_5, %17 : i32
    %c16_i32_6 = arith.constant 16 : i32
    %19 = arith.muli %18, %c16_i32_6 : i32
    %c320_i32 = arith.constant 320 : i32
    %20 = arith.subi %c320_i32, %19 : i32
    %21 = vector.broadcast %13 : i32 to vector<320x1xi32>
    %22 = arith.cmpi sge, %9, %21 : vector<320x1xi32>
    %23 = vector.broadcast %20 : i32 to vector<320x1xi32>
    %24 = arith.cmpi slt, %9, %23 : vector<320x1xi32>
    %25 = arith.andi %22, %24 : vector<320x1xi1>
    %cst = arith.constant 0xFF800000 : f32
    %26 = vector.broadcast %cst : f32 to vector<32x128xf32>
    %c0_7 = arith.constant 0 : index
    %c0_8 = arith.constant 0 : index
    %27 = vector.load %arg9[%c0_7, %c0_8] : memref<384x128xf32, #tpu.memory_space<vmem>>, vector<32x128xf32>
    tpu.vector_store %arg9[%c0_7, %c0_8], %26 {strides = array<i32>} : memref<384x128xf32, #tpu.memory_space<vmem>>, vector<32x128xf32>,
    %cst_9 = arith.constant 0xFF800000 : f32
    %28 = vector.broadcast %cst_9 : f32 to vector<32x128xf32>
    %c352 = arith.constant 352 : index
    %c0_10 = arith.constant 0 : index
    %29 = vector.load %arg9[%c352, %c0_10] : memref<384x128xf32, #tpu.memory_space<vmem>>, vector<32x128xf32>
    tpu.vector_store %arg9[%c352, %c0_10], %28 {strides = array<i32>} : memref<384x128xf32, #tpu.memory_space<vmem>>, vector<32x128xf32>,
    %c0_11 = arith.constant 0 : index
    %c0_12 = arith.constant 0 : index
    %c0_13 = arith.constant 0 : index
    %c0_14 = arith.constant 0 : index
    %30 = vector.load %arg3[%c0_11, %c0_12, %c0_13, %c0_14] : memref<1x1x320x256xbf16, #tpu.memory_space<vmem>>, vector<1x1x320x256xbf16>
    %31 = vector.shape_cast %30 : vector<1x1x320x256xbf16> to vector<320x256xbf16>
    %c0_15 = arith.constant 0 : index
    %c0_16 = arith.constant 0 : index
    %32 = vector.load %arg4[%c0_15, %c0_16] : memref<256x128xbf16, #tpu.memory_space<vmem>>, vector<256x128xbf16>
    %cst_17 = arith.constant dense<0.000000e+00> : vector<320x128xf32>
    %33 = tpu.matmul %31, %32, %cst_17 {dimension_numbers = #tpu.dot_dimension_numbers<[1], [0], [0], [1], [0, 0, 1, 1], [], []>} : vector<320x256xbf16>, vector<256x128xbf16>, vector<320x128xf32> -> vector<320x128xf32>
    %c0_18 = arith.constant 0 : index
    %c0_19 = arith.constant 0 : index
    %34 = vector.load %arg5[%c0_18, %c0_19] : memref<1x128xf32, #tpu.memory_space<vmem>>, vector<1x128xf32>
    %35 = vector.broadcast %34 : vector<1x128xf32> to vector<320x128xf32>
    %36 = arith.addf %33, %35 : vector<320x128xf32>
    %cst_20 = arith.constant 0.000000e+00 : f32
    %37 = vector.broadcast %cst_20 : f32 to vector<320x128xf32>
    %38 = arith.subf %37, %36 : vector<320x128xf32>
    %39 = math.exp %38 : vector<320x128xf32>
    %cst_21 = arith.constant 1.000000e+00 : f32
    %40 = vector.broadcast %cst_21 : f32 to vector<320x128xf32>
    %41 = arith.addf %40, %39 : vector<320x128xf32>
    %42 = arith.divf %36, %41 : vector<320x128xf32>
    %cst_22 = arith.constant 0xFF800000 : f32
    %43 = vector.shape_cast %25 : vector<320x1xi1> to vector<320x1xi1>
    %44 = vector.broadcast %43 : vector<320x1xi1> to vector<320x128xi1>
    %45 = vector.broadcast %cst_22 : f32 to vector<320x128xf32>
    %46 = arith.select %44, %42, %45 : vector<320x128xi1>, vector<320x128xf32>
    %47 = vector.extract_strided_slice %46 {offsets = [96, 0], sizes = [128, 128], strides = [1, 1]} : vector<320x128xf32> to vector<128x128xf32>
    %48 = arith.truncf %47 : vector<128x128xf32> to vector<128x128xbf16>
    %c0_23 = arith.constant 0 : index
    %c0_24 = arith.constant 0 : index
    %49 = vector.load %arg11[%c0_23, %c0_24] : memref<128x256xbf16, #tpu.memory_space<vmem>>, vector<128x128xbf16>
    tpu.vector_store %arg11[%c0_23, %c0_24], %48 {strides = array<i32>} : memref<128x256xbf16, #tpu.memory_space<vmem>>, vector<128x128xbf16>,
    %c32 = arith.constant 32 : index
    %c0_25 = arith.constant 0 : index
    %50 = vector.load %arg9[%c32, %c0_25] : memref<384x128xf32, #tpu.memory_space<vmem>>, vector<320x128xf32>
    tpu.vector_store %arg9[%c32, %c0_25], %46 {strides = array<i32>} : memref<384x128xf32, #tpu.memory_space<vmem>>, vector<320x128xf32>,
    %c33 = arith.constant 33 : index
    %c0_26 = arith.constant 0 : index
    %51 = vector.load %arg9[%c33, %c0_26] : memref<384x128xf32, #tpu.memory_space<vmem>>, vector<320x128xf32>
    %cst_27 = arith.constant 0xFF800000 : f32
    %52 = vector.shape_cast %2 : vector<320x1xi1> to vector<320x1xi1>
    %53 = vector.broadcast %52 : vector<320x1xi1> to vector<320x128xi1>
    %54 = vector.broadcast %cst_27 : f32 to vector<320x128xf32>
    %55 = arith.select %53, %51, %54 : vector<320x128xi1>, vector<320x128xf32>
    %56 = arith.maximumf %46, %55 : vector<320x128xf32>
    %c31 = arith.constant 31 : index
    %c0_28 = arith.constant 0 : index
    %57 = vector.load %arg9[%c31, %c0_28] : memref<384x128xf32, #tpu.memory_space<vmem>>, vector<320x128xf32>
    %cst_29 = arith.constant 0xFF800000 : f32
    %58 = vector.shape_cast %6 : vector<320x1xi1> to vector<320x1xi1>
    %59 = vector.broadcast %58 : vector<320x1xi1> to vector<320x128xi1>
    %60 = vector.broadcast %cst_29 : f32 to vector<320x128xf32>
    %61 = arith.select %59, %57, %60 : vector<320x128xi1>, vector<320x128xf32>
    %62 = arith.maximumf %56, %61 : vector<320x128xf32>
    %c34 = arith.constant 34 : index
    %c0_30 = arith.constant 0 : index
    %63 = vector.load %arg9[%c34, %c0_30] : memref<384x128xf32, #tpu.memory_space<vmem>>, vector<320x128xf32>
    %cst_31 = arith.constant 0xFF800000 : f32
    %64 = vector.shape_cast %4 : vector<320x1xi1> to vector<320x1xi1>
    %65 = vector.broadcast %64 : vector<320x1xi1> to vector<320x128xi1>
    %66 = vector.broadcast %cst_31 : f32 to vector<320x128xf32>
    %67 = arith.select %65, %63, %66 : vector<320x128xi1>, vector<320x128xf32>
    %68 = arith.maximumf %62, %67 : vector<320x128xf32>
    %c30 = arith.constant 30 : index
    %c0_32 = arith.constant 0 : index
    %69 = vector.load %arg9[%c30, %c0_32] : memref<384x128xf32, #tpu.memory_space<vmem>>, vector<320x128xf32>
    %cst_33 = arith.constant 0xFF800000 : f32
    %70 = vector.shape_cast %8 : vector<320x1xi1> to vector<320x1xi1>
    %71 = vector.broadcast %70 : vector<320x1xi1> to vector<320x128xi1>
    %72 = vector.broadcast %cst_33 : f32 to vector<320x128xf32>
    %73 = arith.select %71, %69, %72 : vector<320x128xi1>, vector<320x128xf32>
    %74 = arith.maximumf %68, %73 : vector<320x128xf32>
    %c32_34 = arith.constant 32 : index
    %c0_35 = arith.constant 0 : index
    %75 = vector.load %arg9[%c32_34, %c0_35] : memref<384x128xf32, #tpu.memory_space<vmem>>, vector<320x128xf32>
    tpu.vector_store %arg9[%c32_34, %c0_35], %74 {strides = array<i32>} : memref<384x128xf32, #tpu.memory_space<vmem>>, vector<320x128xf32>,
    %c48 = arith.constant 48 : index
    %c0_36 = arith.constant 0 : index
    %76 = vector.load %arg9[%c48, %c0_36] : memref<384x128xf32, #tpu.memory_space<vmem>>, vector<320x128xf32>
    %77 = arith.maximumf %74, %76 : vector<320x128xf32>
    %c16 = arith.constant 16 : index
    %c0_37 = arith.constant 0 : index
    %78 = vector.load %arg9[%c16, %c0_37] : memref<384x128xf32, #tpu.memory_space<vmem>>, vector<320x128xf32>
    %79 = arith.maximumf %77, %78 : vector<320x128xf32>
    %c64 = arith.constant 64 : index
    %c0_38 = arith.constant 0 : index
    %80 = vector.load %arg9[%c64, %c0_38] : memref<384x128xf32, #tpu.memory_space<vmem>>, vector<320x128xf32>
    %81 = arith.maximumf %79, %80 : vector<320x128xf32>
    %c0_39 = arith.constant 0 : index
    %c0_40 = arith.constant 0 : index
    %82 = vector.load %arg9[%c0_39, %c0_40] : memref<384x128xf32, #tpu.memory_space<vmem>>, vector<320x128xf32>
    %83 = arith.maximumf %81, %82 : vector<320x128xf32>
    %84 = vector.extract_strided_slice %83 {offsets = [96, 0], sizes = [128, 128], strides = [1, 1]} : vector<320x128xf32> to vector<128x128xf32>
    %85 = arith.truncf %84 : vector<128x128xf32> to vector<128x128xbf16>
    %c0_41 = arith.constant 0 : index
    %c128 = arith.constant 128 : index
    %86 = vector.load %arg11[%c0_41, %c128] : memref<128x256xbf16, #tpu.memory_space<vmem>>, vector<128x128xbf16>
    tpu.vector_store %arg11[%c0_41, %c128], %85 {strides = array<i32>} : memref<128x256xbf16, #tpu.memory_space<vmem>>, vector<128x128xbf16>,
    %c0_42 = arith.constant 0 : index
    %c0_43 = arith.constant 0 : index
    %87 = vector.load %arg11[%c0_42, %c0_43] : memref<128x256xbf16, #tpu.memory_space<vmem>>, vector<128x256xbf16>
    %c0_44 = arith.constant 0 : index
    %c0_45 = arith.constant 0 : index
    %88 = vector.load %arg6[%c0_44, %c0_45] : memref<512x256xbf16, #tpu.memory_space<vmem>>, vector<256x256xbf16>
    %cst_46 = arith.constant dense<0.000000e+00> : vector<128x256xf32>
    %89 = tpu.matmul %87, %88, %cst_46 {dimension_numbers = #tpu.dot_dimension_numbers<[1], [0], [0], [1], [0, 0, 1, 1], [], []>} : vector<128x256xbf16>, vector<256x256xbf16>, vector<128x256xf32> -> vector<128x256xf32>
    %c0_47 = arith.constant 0 : index
    %c0_48 = arith.constant 0 : index
    %90 = vector.load %arg10[%c0_47, %c0_48] : memref<128x256xf32, #tpu.memory_space<vmem>>, vector<128x256xf32>
    tpu.vector_store %arg10[%c0_47, %c0_48], %89 {strides = array<i32>} : memref<128x256xf32, #tpu.memory_space<vmem>>, vector<128x256xf32>,
    %c32_49 = arith.constant 32 : index
    %c0_50 = arith.constant 0 : index
    %91 = vector.load %arg9[%c32_49, %c0_50] : memref<384x128xf32, #tpu.memory_space<vmem>>, vector<320x128xf32>
    tpu.vector_store %arg9[%c32_49, %c0_50], %83 {strides = array<i32>} : memref<384x128xf32, #tpu.memory_space<vmem>>, vector<320x128xf32>,
    %c33_51 = arith.constant 33 : index
    %c0_52 = arith.constant 0 : index
    %92 = vector.load %arg9[%c33_51, %c0_52] : memref<384x128xf32, #tpu.memory_space<vmem>>, vector<320x128xf32>
    %cst_53 = arith.constant 0xFF800000 : f32
    %93 = vector.shape_cast %2 : vector<320x1xi1> to vector<320x1xi1>
    %94 = vector.broadcast %93 : vector<320x1xi1> to vector<320x128xi1>
    %95 = vector.broadcast %cst_53 : f32 to vector<320x128xf32>
    %96 = arith.select %94, %92, %95 : vector<320x128xi1>, vector<320x128xf32>
    %97 = arith.maximumf %83, %96 : vector<320x128xf32>
    %c31_54 = arith.constant 31 : index
    %c0_55 = arith.constant 0 : index
    %98 = vector.load %arg9[%c31_54, %c0_55] : memref<384x128xf32, #tpu.memory_space<vmem>>, vector<320x128xf32>
    %cst_56 = arith.constant 0xFF800000 : f32
    %99 = vector.shape_cast %6 : vector<320x1xi1> to vector<320x1xi1>
    %100 = vector.broadcast %99 : vector<320x1xi1> to vector<320x128xi1>
    %101 = vector.broadcast %cst_56 : f32 to vector<320x128xf32>
    %102 = arith.select %100, %98, %101 : vector<320x128xi1>, vector<320x128xf32>
    %103 = arith.maximumf %97, %102 : vector<320x128xf32>
    %c34_57 = arith.constant 34 : index
    %c0_58 = arith.constant 0 : index
    %104 = vector.load %arg9[%c34_57, %c0_58] : memref<384x128xf32, #tpu.memory_space<vmem>>, vector<320x128xf32>
    %cst_59 = arith.constant 0xFF800000 : f32
    %105 = vector.shape_cast %4 : vector<320x1xi1> to vector<320x1xi1>
    %106 = vector.broadcast %105 : vector<320x1xi1> to vector<320x128xi1>
    %107 = vector.broadcast %cst_59 : f32 to vector<320x128xf32>
    %108 = arith.select %106, %104, %107 : vector<320x128xi1>, vector<320x128xf32>
    %109 = arith.maximumf %103, %108 : vector<320x128xf32>
    %c30_60 = arith.constant 30 : index
    %c0_61 = arith.constant 0 : index
    %110 = vector.load %arg9[%c30_60, %c0_61] : memref<384x128xf32, #tpu.memory_space<vmem>>, vector<320x128xf32>
    %cst_62 = arith.constant 0xFF800000 : f32
    %111 = vector.shape_cast %8 : vector<320x1xi1> to vector<320x1xi1>
    %112 = vector.broadcast %111 : vector<320x1xi1> to vector<320x128xi1>
    %113 = vector.broadcast %cst_62 : f32 to vector<320x128xf32>
    %114 = arith.select %112, %110, %113 : vector<320x128xi1>, vector<320x128xf32>
    %115 = arith.maximumf %109, %114 : vector<320x128xf32>
    %c32_63 = arith.constant 32 : index
    %c0_64 = arith.constant 0 : index
    %116 = vector.load %arg9[%c32_63, %c0_64] : memref<384x128xf32, #tpu.memory_space<vmem>>, vector<320x128xf32>
    tpu.vector_store %arg9[%c32_63, %c0_64], %115 {strides = array<i32>} : memref<384x128xf32, #tpu.memory_space<vmem>>, vector<320x128xf32>,
    %c48_65 = arith.constant 48 : index
    %c0_66 = arith.constant 0 : index
    %117 = vector.load %arg9[%c48_65, %c0_66] : memref<384x128xf32, #tpu.memory_space<vmem>>, vector<320x128xf32>
    %118 = arith.maximumf %115, %117 : vector<320x128xf32>
    %c16_67 = arith.constant 16 : index
    %c0_68 = arith.constant 0 : index
    %119 = vector.load %arg9[%c16_67, %c0_68] : memref<384x128xf32, #tpu.memory_space<vmem>>, vector<320x128xf32>
    %120 = arith.maximumf %118, %119 : vector<320x128xf32>
    %c64_69 = arith.constant 64 : index
    %c0_70 = arith.constant 0 : index
    %121 = vector.load %arg9[%c64_69, %c0_70] : memref<384x128xf32, #tpu.memory_space<vmem>>, vector<320x128xf32>
    %122 = arith.maximumf %120, %121 : vector<320x128xf32>
    %c0_71 = arith.constant 0 : index
    %c0_72 = arith.constant 0 : index
    %123 = vector.load %arg9[%c0_71, %c0_72] : memref<384x128xf32, #tpu.memory_space<vmem>>, vector<320x128xf32>
    %124 = arith.maximumf %122, %123 : vector<320x128xf32>
    %125 = vector.extract_strided_slice %124 {offsets = [96, 0], sizes = [128, 128], strides = [1, 1]} : vector<320x128xf32> to vector<128x128xf32>
    %126 = arith.truncf %125 : vector<128x128xf32> to vector<128x128xbf16>
    %c0_73 = arith.constant 0 : index
    %c0_74 = arith.constant 0 : index
    %127 = vector.load %arg11[%c0_73, %c0_74] : memref<128x256xbf16, #tpu.memory_space<vmem>>, vector<128x128xbf16>
    tpu.vector_store %arg11[%c0_73, %c0_74], %126 {strides = array<i32>} : memref<128x256xbf16, #tpu.memory_space<vmem>>, vector<128x128xbf16>,
    %c32_75 = arith.constant 32 : index
    %c0_76 = arith.constant 0 : index
    %128 = vector.load %arg9[%c32_75, %c0_76] : memref<384x128xf32, #tpu.memory_space<vmem>>, vector<320x128xf32>
    tpu.vector_store %arg9[%c32_75, %c0_76], %124 {strides = array<i32>} : memref<384x128xf32, #tpu.memory_space<vmem>>, vector<320x128xf32>,
    %c33_77 = arith.constant 33 : index
    %c0_78 = arith.constant 0 : index
    %129 = vector.load %arg9[%c33_77, %c0_78] : memref<384x128xf32, #tpu.memory_space<vmem>>, vector<320x128xf32>
    %cst_79 = arith.constant 0xFF800000 : f32
    %130 = vector.shape_cast %2 : vector<320x1xi1> to vector<320x1xi1>
    %131 = vector.broadcast %130 : vector<320x1xi1> to vector<320x128xi1>
    %132 = vector.broadcast %cst_79 : f32 to vector<320x128xf32>
    %133 = arith.select %131, %129, %132 : vector<320x128xi1>, vector<320x128xf32>
    %134 = arith.maximumf %124, %133 : vector<320x128xf32>
    %c31_80 = arith.constant 31 : index
    %c0_81 = arith.constant 0 : index
    %135 = vector.load %arg9[%c31_80, %c0_81] : memref<384x128xf32, #tpu.memory_space<vmem>>, vector<320x128xf32>
    %cst_82 = arith.constant 0xFF800000 : f32
    %136 = vector.shape_cast %6 : vector<320x1xi1> to vector<320x1xi1>
    %137 = vector.broadcast %136 : vector<320x1xi1> to vector<320x128xi1>
    %138 = vector.broadcast %cst_82 : f32 to vector<320x128xf32>
    %139 = arith.select %137, %135, %138 : vector<320x128xi1>, vector<320x128xf32>
    %140 = arith.maximumf %134, %139 : vector<320x128xf32>
    %c34_83 = arith.constant 34 : index
    %c0_84 = arith.constant 0 : index
    %141 = vector.load %arg9[%c34_83, %c0_84] : memref<384x128xf32, #tpu.memory_space<vmem>>, vector<320x128xf32>
    %cst_85 = arith.constant 0xFF800000 : f32
    %142 = vector.shape_cast %4 : vector<320x1xi1> to vector<320x1xi1>
    %143 = vector.broadcast %142 : vector<320x1xi1> to vector<320x128xi1>
    %144 = vector.broadcast %cst_85 : f32 to vector<320x128xf32>
    %145 = arith.select %143, %141, %144 : vector<320x128xi1>, vector<320x128xf32>
    %146 = arith.maximumf %140, %145 : vector<320x128xf32>
    %c30_86 = arith.constant 30 : index
    %c0_87 = arith.constant 0 : index
    %147 = vector.load %arg9[%c30_86, %c0_87] : memref<384x128xf32, #tpu.memory_space<vmem>>, vector<320x128xf32>
    %cst_88 = arith.constant 0xFF800000 : f32
    %148 = vector.shape_cast %8 : vector<320x1xi1> to vector<320x1xi1>
    %149 = vector.broadcast %148 : vector<320x1xi1> to vector<320x128xi1>
    %150 = vector.broadcast %cst_88 : f32 to vector<320x128xf32>
    %151 = arith.select %149, %147, %150 : vector<320x128xi1>, vector<320x128xf32>
    %152 = arith.maximumf %146, %151 : vector<320x128xf32>
    %c32_89 = arith.constant 32 : index
    %c0_90 = arith.constant 0 : index
    %153 = vector.load %arg9[%c32_89, %c0_90] : memref<384x128xf32, #tpu.memory_space<vmem>>, vector<320x128xf32>
    tpu.vector_store %arg9[%c32_89, %c0_90], %152 {strides = array<i32>} : memref<384x128xf32, #tpu.memory_space<vmem>>, vector<320x128xf32>,
    %c48_91 = arith.constant 48 : index
    %c0_92 = arith.constant 0 : index
    %154 = vector.load %arg9[%c48_91, %c0_92] : memref<384x128xf32, #tpu.memory_space<vmem>>, vector<320x128xf32>
    %155 = arith.maximumf %152, %154 : vector<320x128xf32>
    %c16_93 = arith.constant 16 : index
    %c0_94 = arith.constant 0 : index
    %156 = vector.load %arg9[%c16_93, %c0_94] : memref<384x128xf32, #tpu.memory_space<vmem>>, vector<320x128xf32>
    %157 = arith.maximumf %155, %156 : vector<320x128xf32>
    %c64_95 = arith.constant 64 : index
    %c0_96 = arith.constant 0 : index
    %158 = vector.load %arg9[%c64_95, %c0_96] : memref<384x128xf32, #tpu.memory_space<vmem>>, vector<320x128xf32>
    %159 = arith.maximumf %157, %158 : vector<320x128xf32>
    %c0_97 = arith.constant 0 : index
    %c0_98 = arith.constant 0 : index
    %160 = vector.load %arg9[%c0_97, %c0_98] : memref<384x128xf32, #tpu.memory_space<vmem>>, vector<320x128xf32>
    %161 = arith.maximumf %159, %160 : vector<320x128xf32>
    %162 = vector.extract_strided_slice %161 {offsets = [96, 0], sizes = [128, 128], strides = [1, 1]} : vector<320x128xf32> to vector<128x128xf32>
    %163 = arith.truncf %162 : vector<128x128xf32> to vector<128x128xbf16>
    %c0_99 = arith.constant 0 : index
    %c128_100 = arith.constant 128 : index
    %164 = vector.load %arg11[%c0_99, %c128_100] : memref<128x256xbf16, #tpu.memory_space<vmem>>, vector<128x128xbf16>
    tpu.vector_store %arg11[%c0_99, %c128_100], %163 {strides = array<i32>} : memref<128x256xbf16, #tpu.memory_space<vmem>>, vector<128x128xbf16>,
    %c0_101 = arith.constant 0 : index
    %c0_102 = arith.constant 0 : index
    %165 = vector.load %arg10[%c0_101, %c0_102] : memref<128x256xf32, #tpu.memory_space<vmem>>, vector<128x256xf32>
    %c0_103 = arith.constant 0 : index
    %c0_104 = arith.constant 0 : index
    %166 = vector.load %arg11[%c0_103, %c0_104] : memref<128x256xbf16, #tpu.memory_space<vmem>>, vector<128x256xbf16>
    %c256 = arith.constant 256 : index
    %c0_105 = arith.constant 0 : index
    %167 = vector.load %arg6[%c256, %c0_105] : memref<512x256xbf16, #tpu.memory_space<vmem>>, vector<256x256xbf16>
    %cst_106 = arith.constant dense<0.000000e+00> : vector<128x256xf32>
    %168 = tpu.matmul %166, %167, %cst_106 {dimension_numbers = #tpu.dot_dimension_numbers<[1], [0], [0], [1], [0, 0, 1, 1], [], []>} : vector<128x256xbf16>, vector<256x256xbf16>, vector<128x256xf32> -> vector<128x256xf32>
    %169 = arith.addf %165, %168 : vector<128x256xf32>
    %c0_107 = arith.constant 0 : index
    %c0_108 = arith.constant 0 : index
    %170 = vector.load %arg10[%c0_107, %c0_108] : memref<128x256xf32, #tpu.memory_space<vmem>>, vector<128x256xf32>
    tpu.vector_store %arg10[%c0_107, %c0_108], %169 {strides = array<i32>} : memref<128x256xf32, #tpu.memory_space<vmem>>, vector<128x256xf32>,
    %c0_109 = arith.constant 0 : index
    %c0_110 = arith.constant 0 : index
    %171 = vector.load %arg10[%c0_109, %c0_110] : memref<128x256xf32, #tpu.memory_space<vmem>>, vector<128x256xf32>
    %c0_111 = arith.constant 0 : index
    %c0_112 = arith.constant 0 : index
    %172 = vector.load %arg7[%c0_111, %c0_112] : memref<1x256xf32, #tpu.memory_space<vmem>>, vector<1x256xf32>
    %173 = vector.broadcast %172 : vector<1x256xf32> to vector<128x256xf32>
    %174 = arith.addf %171, %173 : vector<128x256xf32>
    %cst_113 = arith.constant 0.000000e+00 : f32
    %175 = vector.broadcast %cst_113 : f32 to vector<128x256xf32>
    %176 = arith.subf %175, %174 : vector<128x256xf32>
    %177 = math.exp %176 : vector<128x256xf32>
    %cst_114 = arith.constant 1.000000e+00 : f32
    %178 = vector.broadcast %cst_114 : f32 to vector<128x256xf32>
    %179 = arith.addf %178, %177 : vector<128x256xf32>
    %180 = tpu.reciprocal %179 {approx = true} : vector<128x256xf32> -> vector<128x256xf32>
    %181 = arith.mulf %174, %180 : vector<128x256xf32>
    %c0_115 = arith.constant 0 : index
    %c0_116 = arith.constant 0 : index
    %c0_117 = arith.constant 0 : index
    %182 = vector.load %arg8[%c0_115, %c0_116, %c0_117] : memref<1x128x256xf32, #tpu.memory_space<vmem>>, vector<1x128x256xf32>
    %183 = vector.shape_cast %182 : vector<1x128x256xf32> to vector<128x256xf32>
    %184 = vector.shape_cast %181 : vector<128x256xf32> to vector<1x128x256xf32>
    tpu.vector_store %arg8[%c0_115, %c0_116, %c0_117], %184 {strides = array<i32>} : memref<1x128x256xf32, #tpu.memory_space<vmem>>, vector<1x128x256xf32>,
    return
  }
  func.func @transform_0(%arg0: i32, %arg1: i32) -> (i32, i32) {
    %c0_i32 = arith.constant 0 : i32
    %c0_i32_0 = arith.constant 0 : i32
    %c0_i32_1 = arith.constant 0 : i32
    return %c0_i32, %c0_i32_0 : i32, i32
  }
  func.func @transform_1(%arg0: i32, %arg1: i32) -> (i32, i32, i32, i32) {
    %c0_i32 = arith.constant 0 : i32
    %c0_i32_0 = arith.constant 0 : i32
    %c0_i32_1 = arith.constant 0 : i32
    return %arg0, %arg1, %c0_i32, %c0_i32_0 : i32, i32, i32, i32
  }
  func.func @transform_2(%arg0: i32, %arg1: i32) -> (i32, i32) {
    %c0_i32 = arith.constant 0 : i32
    %c0_i32_0 = arith.constant 0 : i32
    %c0_i32_1 = arith.constant 0 : i32
    return %c0_i32, %c0_i32_0 : i32, i32
  }
  func.func @transform_3(%arg0: i32, %arg1: i32) -> (i32, i32) {
    %c0_i32 = arith.constant 0 : i32
    %c0_i32_0 = arith.constant 0 : i32
    %c0_i32_1 = arith.constant 0 : i32
    return %c0_i32, %c0_i32_0 : i32, i32
  }
  func.func @transform_4(%arg0: i32, %arg1: i32) -> (i32, i32) {
    %c0_i32 = arith.constant 0 : i32
    %c0_i32_0 = arith.constant 0 : i32
    %c0_i32_1 = arith.constant 0 : i32
    return %c0_i32, %c0_i32_0 : i32, i32
  }
  func.func @transform_5(%arg0: i32, %arg1: i32) -> (i32, i32) {
    %c0_i32 = arith.constant 0 : i32
    %c0_i32_0 = arith.constant 0 : i32
    %c0_i32_1 = arith.constant 0 : i32
    return %c0_i32, %c0_i32_0 : i32, i32
  }
  func.func @transform_6(%arg0: i32, %arg1: i32) -> (i32, i32, i32) {
    %c0_i32 = arith.constant 0 : i32
    %c0_i32_0 = arith.constant 0 : i32
    return %arg0, %arg1, %c0_i32 : i32, i32, i32
  }
}

</mosaic_0001>

<bundles_post_ra>
// kernel: tpu_custom_call.1
= control target key start
LH: loop header
LB: loop body
LE: loop exit
PB: predicated region body
PF: predicated region fallthrough
CT: control target
= control target key end

     0   :  { %s14557_s0 = inlined_call_operand.vmem [shape: s32[320,1], index: 0, kind: input, shape index: {}]   ;;  %s14558_s1 = inlined_call_operand.hbm [shape: bf16[2,2,320,256], index: 1, kind: input, shape index: {}]   ;;  %s14559_s2 = inlined_call_operand.vmem [shape: bf16[256,128], index: 2, kind: input, shape index: {}]   ;;  %s14560_s3 = inlined_call_operand.vmem [shape: f32[1,128], index: 3, kind: input, shape index: {}]   ;;  %s14561_s4 = inlined_call_operand.hbm [shape: bf16[512,256], index: 4, kind: input, shape index: {}]   ;;  %s14562_s5 = inlined_call_operand.vmem [shape: f32[1,256], index: 5, kind: input, shape index: {}]   ;;  %s14563_s6 = inlined_call_operand.hbm [shape: f32[2,256,256], index: 6, kind: output, shape index: {}]  }
   0x1   :  { %15119 = sst [smem:[#allocation185_spill]] %s14561_s4 }
   0x2   :  { %15120 = sst [smem:[#allocation186_spill]] %s14563_s6 }
   0x3   :  { %11 = vsyncpa [#allocation6], 0 }
   0x4   :  { %13 = vsyncpa [#allocation6 + $0x1], 0 }
   0x5   :  { %14 = vsyncpa [#allocation9], 0 }
   0x6   :  { %15 = vsyncpa [#allocation7], 0 }
   0x7   :  { %17 = vsyncpa [#allocation7 + $0x1], 0  ;;  %s8364_s21 = smov 0   ;;  %s8366_s22 = smov 0  }
   0x8   :  { %s8368_s23 = smov 0   ;;  %s8370_s24 = smov 0  }
   0x9   :  { %s8372_s25 = smov 0   ;;  %s8374_s26 = smov 0  }
   0xa   :  { %s8376_s27 = smov 0   ;;  %s8378_s28 = smov 0  }
   0xb LB: > { %15121 = sst [smem:[#allocation14_spill]] %s8292_s21  ;;  %s6872_s29 = sadd.s32 4294967295, %s8320_s28   ;;  %s8320_s28 = sphi %s8378_s28, %s23_s28   ;;  %s8316_s27 = sphi %s8376_s27, %s16281_s27   ;;  %s8312_s26 = sphi %s8374_s26, %s16275_s26   ;;  %s8308_s25 = sphi %s8372_s25, %s16280_s25   ;;  %s8304_s24 = sphi %s8370_s24, %s16274_s24   ;;  %s8300_s23 = sphi %s8368_s23, %s16279_s23   ;;  %s8296_s22 = sphi %s8366_s22, %s16278_s22   ;;  %s8292_s21 = sphi %s8364_s21, %s16277_s21  }
   0xc   : > { %15122 = sst [smem:[#allocation15_spill]] %s8308_s25  ;;  %s6873_s30 = sadd.s32 4294967294, %s8320_s28  }
   0xd   : > { %15123 = sst [smem:[#allocation16_spill]] %s8312_s26  ;;  %p78_p0 = scmp.ne.s32.totalorder %s8296_s22, %s8292_s21 }
   0xe   : > { %15124 = sst [smem:[#allocation17_spill]] %s8320_s28  ;;  %p8408_p1 = scmp.eq.s32.totalorder %s6872_s29, 0 }
   0xf   : > { %p8412_p2 = scmp.eq.s32.totalorder %s6872_s29, 3  ;;  %p194_p3 = scmp.eq.s32.totalorder %s6873_s30, 3 }
  0x10   : > { %p8418_p4 = por %p8408_p1, %p78_p0  ;;  %p6874_p5 = scmp.ge.s32.totalorder %s8320_s28, 1 }
  0x11   : > { %p8423_p6 = por %p194_p3, %p78_p0  ;;  %p201_p7 = scmp.lt.s32.totalorder %s8320_s28, 5 }
  0x12   : > { %s15130_s4 = sld [smem:[#allocation185_spill]]  ;;  %s8322_s15 = smov [#allocation8]  }
  0x13   : > { %s15128_s10 = scalar_select %p8423_p6, 1, 0 }
  0x14   : > { %p8431_p8 = pnand %p6874_p5, %p201_p7  ;;  %s223_s16 = sshll.u32 %s8322_s15, 4  ;;  %s224_s16 = int_to_ptr.vmem [resolvable:$true] %s223_s16 }
  0x15   : > { %15129 = sst [smem:[#allocation18_spill]] %s15128_s10  ;;  %s14564_s17 = smov 128  }
  0x16   : > { %p7683_p9 = pneg %p8431_p8  ;;  %s14565_s18 = smov 8  }
  0x17   : > { %s32_s19 = sadd.s32 1, %s8312_s26  ;;  %s35_s20 = sadd.s32 1, %s8316_s27 }
  0x18   : > { %s221_s13 = sshll.u32 %s15130_s4, 4  ;;  %p7684_p10 = pnand %p7683_p9, %p8408_p1  ;;  %s222_s13 = int_to_ptr.hbm [resolvable:$true] %s221_s13 }
  0x19   : > { %p33_p11 = scmp.ge.s32.totalorder %s32_s19, 2  ;;  %s65_s29 = sadd.s32 1, %s8300_s23 }
  0x1a   : > { %7686 = dma.hbm_to_vmem [thread:$0]  (!%p7684_p10), %s222_s13, 8192, %s224_s16, [#allocation9], %s14564_s17, %s14564_s17, %s14565_s18  }
  0x1b   : > { %p72_p12 = scmp.ne.s32.totalorder %s8300_s23, %s8296_s22  ;;  %s16283_s19 = smov (%p33_p11, %s32_s19), 0 }
  0x1c   : > { %15132 = sst [smem:[#allocation19_spill]] %s16283_s19  ;;  %s16285_s20 = smov (!%p33_p11, %s35_s20), %s8316_s27 }
  0x1d   : > { %s61_s30 = ssub.s32 %s8312_s26, %s16283_s19  ;;  %p73_p13 = scmp.eq.s32.totalorder %s8320_s28, 0 }
  0x1e   : > { %p37_p0 = scmp.ge.s32.totalorder %s16285_s20, 2  ;;  %p8455_p3 = por %p8412_p2, %p72_p12 }
  0x1f   : > { %p74_p5 = por %p73_p13, %p72_p12  ;;  %p7696_p7 = scmp.lt.s32.totalorder %s8320_s28, 4 }
  0x20   : > { %s15133_s11 = scalar_select %p8455_p3, 1, 0 }
  0x21   : > { %s16287_s20 = smov (%p37_p0, %s16285_s20), 0  ;;  %s240_s12 = sand.u32 1, %s8300_s23  }
  0x22   : > { %15134 = sst [smem:[#allocation20_spill]] %s15133_s11  ;;  %s7672_s13 = smul.u32 80, %s8312_s26 }
  0x23   : > { %15135 = sst [smem:[#allocation21_spill]] %s16287_s20  ;;  %s60_s15 = ssub.s32 %s8316_s27, %s16287_s20 }
  0x24   : > { %s62_s16 = sor.u32 %s61_s30, %s60_s15  ;;  %s7671_s17 = smul.u32 320, %s240_s12 }
  0x25   : > { %p63_p9 = scmp.eq.s32.totalorder %s62_s16, 0  ;;  %s7673_s18 = smul.u32 160, %s8316_s27 }
  0x26   : > { %p7688_p10 = pnand %p7696_p7, %p74_p5  ;;  %s244_s19 = scalar_lea.vmem [#allocation5], %s7671_s17 }
  0x27   : > { %s8468_s4 = scalar_select %p63_p9, %s8300_s23, %s65_s29  }
  0x28   : > { %s249_s8 = sadd.s32 %s7673_s18, %s7672_s13  ;;  %s254_s10 = sshll.u32 %s244_s19, 4  ;;  %s255_s10 = int_to_ptr.vmem [resolvable:$true] %s254_s10 }
  0x29   : > { %s6877_s21 = sshll.u32 %s249_s8, 2  ;;  %s241_s26 = scalar_lea.sflag [#allocation6], %s240_s12 }
  0x2a   : > { %s251_s11 = scalar_lea.hbm %s14558_s1, %s6877_s21  ;;  %s15136_s20 = smov 8  }
  0x2b   : > { %s252_s25 = sshll.u32 %s251_s11, 4  ;;  %s15137_s30 = smov 128   ;;  %s253_s25 = int_to_ptr.hbm [resolvable:$true] %s252_s25 }
  0x2c   : > { %7690 = dma.hbm_to_vmem [thread:$0]  (!%p7688_p10), %s253_s25, 5120, %s255_s10, %s241_s26, %s15137_s30, %s15137_s30, %s15136_s20  }
  0x2d   : > { %266 = sbr.rel (%p8431_p8) target bundleno = 1362 (0x552), region = 44 }
  0x32   : > { %s8479_s17 = sand.u32 1, %s8296_s22  }
  0x33   : > { %s7674_s18 = smul.u32 320, %s8479_s17  ;;  %s269_s19 = scalar_lea.sflag [#allocation6], %s8479_s17 }
  0x35   : > { %s8483_s6 = scalar_lea.vmem [#allocation5], %s7674_s18 }
  0x36   : > { %8279 = dma.done.wait (%p8418_p4), %s269_s19, 5120  }
  0x37   : > { %8281 = vsyncadd (%p8418_p4), %s269_s19, 4294962176 }
  0x38   : > { %8283 = dma.done.wait (%p8408_p1), [#allocation9], 8192  }
  0x39   : > { %8285 = vsyncadd (%p8408_p1), [#allocation9], 4294959104  ;;  %v14577_v0 = vmov 0   ;;  %v7549_v1 = vld [vmem:[%s14559_s2 + $0x38] sm:$0xff]  ;;  %v8505_v3 = vld [vmem:[%s14557_s0 + $0x20] sm:$0xff]  ;;  %s6881_s21 = sshll.u32 %s8304_s24, 3 }
  0x3a   : > { %7772 = vset.pattern.permute.xlu2 %v14577_v0  ;;  %7771 = vset.pattern.permute.xlu1 %v14577_v0  ;;  %v7557_v2 = vld [vmem:[%s14559_s2 + $0x78] sm:$0xff]  ;;  %vm352_vm0 = vcmp.lt.s32.totalorder %v8505_v3, 15  ;;  %v8511_v4 = vld [vmem:[%s14557_s0 + $0x10] sm:$0xff]  ;;  %v8516_v5 = vld [vmem:[%s14557_s0] sm:$0xff]  ;;  %s8886_s25 = sadd.s32 8, %s6881_s21  ;;  %s8904_s28 = ssub.s32 6, %s6881_s21 }
  0x3b   : > { %7770 = vset.pattern.permute.xlu0 %v14577_v0  ;;  %1063 = vmatpush.bf16.msra.mxu0 %v7549_v1  ;;  %v2277_v6 = vsel %vm352_vm0, 1, %v14577_v0  ;;  %vm350_vm1 = vcmp.lt.s32.totalorder %v8511_v4, 15  ;;  %vm348_vm2 = vcmp.lt.s32.totalorder %v8516_v5, 15  ;;  %v7548_v7 = vld [vmem:[%s14559_s2 + $0x30] sm:$0xff]  ;;  %v8532_v11 = vld [vmem:[%s14557_s0 + $0x28] sm:$0xff]  ;;  %v8537_v12 = vld [vmem:[%s14557_s0 + $0x18] sm:$0xff] }
  0x3c   : > { %7655 = vmatpush.bf16.msra.mxu2 %v7549_v1  ;;  %v7556_v8 = vld [vmem:[%s14559_s2 + $0x70] sm:$0xff]  ;;  %1172 = vmatpush.bf16.msra.mxu1 %v7557_v2  ;;  %v2275_v9 = vsel %vm350_vm1, 1, %v14577_v0  ;;  %v2273_v10 = vsel %vm348_vm2, 1, %v14577_v0  ;;  %v8542_v13 = vld [vmem:[%s14557_s0 + $0x8] sm:$0xff]  ;;  %vm353_vm3 = vcmp.lt.s32.totalorder %v8532_v11, 15  ;;  %vm351_vm4 = vcmp.lt.s32.totalorder %v8537_v12, 15 }
  0x3d   : > { %2326 = vperm.xlu2 %7772, %v2277_v6   ;;  %2320 = vperm.xlu1 %7771, %v2275_v9   ;;  %v7547_v14 = vld [vmem:[%s14559_s2 + $0x28] sm:$0xff]  ;;  %vm349_vm5 = vcmp.lt.s32.totalorder %v8542_v13, 15  ;;  %v2278_v16 = vsel %vm353_vm3, 1, %v14577_v0  ;;  %v2276_v17 = vsel %vm351_vm4, 1, %v14577_v0  ;;  %v7546_v19 = vld [vmem:[%s14559_s2 + $0x20] sm:$0xff]  ;;  %v8570_v22 = vld [vmem:[%s14557_s0 + $0x38] sm:$0xff] }
  0x3e   : > { %2314 = vperm.xlu0 %7770, %v2273_v10   ;;  %7663 = vmatpush.bf16.msra.mxu3 %v7557_v2  ;;  %v7555_v15 = vld [vmem:[%s14559_s2 + $0x68] sm:$0xff]  ;;  %v2274_v18 = vsel %vm349_vm5, 1, %v14577_v0  ;;  %v8562_v20 = vld [vmem:[%s14557_s0 + $0x40] sm:$0xff]  ;;  %v8575_v23 = vld [vmem:[%s14557_s0 + $0x30] sm:$0xff]  ;;  %vm355_vm7 = vcmp.lt.s32.totalorder %v8570_v22, 15  ;;  %s556_s26 = sadd.s32 4294967286, %s8886_s25 }
  0x3f   : > { %1064 = vmatpush.bf16.msra.mxu0 %v7548_v7  ;;  %v7554_v21 = vld [vmem:[%s14559_s2 + $0x60] sm:$0xff]  ;;  %vm356_vm6 = vcmp.lt.s32.totalorder %v8562_v20, 15  ;;  %v7545_v24 = vld [vmem:[%s14559_s2 + $0x18] sm:$0xff]  ;;  %vm354_vm8 = vcmp.lt.s32.totalorder %v8575_v23, 15  ;;  %v2280_v27 = vsel %vm355_vm7, 1, %v14577_v0  ;;  %v7544_v29 = vld [vmem:[%s14559_s2 + $0x10] sm:$0xff] }
  0x40   : > { %7656 = vmatpush.bf16.msra.mxu2 %v7548_v7  ;;  %1173 = vmatpush.bf16.msra.mxu1 %v7556_v8  ;;  %v7553_v25 = vld [vmem:[%s14559_s2 + $0x58] sm:$0xff]  ;;  %v2281_v26 = vsel %vm356_vm6, 1, %v14577_v0  ;;  %v2279_v28 = vsel %vm354_vm8, 1, %v14577_v0  ;;  %v7552_v31 = vld [vmem:[%s14559_s2 + $0x50] sm:$0xff]  ;;  %v8608_v33 = vld [vmem:[%s14557_s0 + $0x48] sm:$0xff]  ;;  %p8906_p1 = scmp.gt.s32.totalorder %s556_s26, 0 }
  0x41   : > { %v8595_v30 = vld [vmem:[%s14557_s0 + $0x58] sm:$0xff]  ;;  %v8603_v32 = vld [vmem:[%s14557_s0 + $0x50] sm:$0xff]  ;;  %v7543_v34 = vld [vmem:[%s14559_s2 + $0x8] sm:$0xff]  ;;  %vm357_vm11 = vcmp.lt.s32.totalorder %v8608_v33, 15  ;;  %p551_p2 = scmp.gt.s32.totalorder %s8904_s28, 0  ;;  %s16268_s29 = sld [smem:[#allocation15_spill]] }
  0x42   : > { %7664 = vmatpush.bf16.msra.mxu3 %v7556_v8  ;;  %vm359_vm9 = vcmp.lt.s32.totalorder %v8595_v30, 15  ;;  %vm358_vm10 = vcmp.lt.s32.totalorder %v8603_v32, 15  ;;  %v7551_v35 = vld [vmem:[%s14559_s2 + $0x48] sm:$0xff]  ;;  %v7542_v37 = vld [vmem:[%s14559_s2] sm:$0xff]  ;;  %v2282_v40 = vsel %vm357_vm11, 1, %v14577_v0  ;;  %v8636_v46 = vld [vmem:[%s14557_s0 + $0x70] sm:$0xff] }
  0x43   : > { %1065 = vmatpush.bf16.msra.mxu0 %v7547_v14  ;;  %v2284_v36 = vsel %vm359_vm9, 1, %v14577_v0  ;;  %v6887_v38 = vld [vmem:[%s8483_s6] sm:$0xf]  ;;  %v2283_v39 = vsel %vm358_vm10, 1, %v14577_v0  ;;  %v7503_v42 = vld [vmem:[%s8483_s6 + $0x4] sm:$0xf0] }
  0x44   : > { %7657 = vmatpush.bf16.msra.mxu2 %v7547_v14  ;;  %1174 = vmatpush.bf16.msra.mxu1 %v7555_v15  ;;  %v7550_v41 = vld [vmem:[%s14559_s2 + $0x40] sm:$0xff]  ;;  %v7539_v44 = vld [vmem:[%s8483_s6 + $0x124] sm:$0xf0]  ;;  %v6889_v47 = vld [vmem:[%s8483_s6 + $0x8] sm:$0xf0]  ;;  %v6888_v50 = vor.u32 %v7503_v42, %v6887_v38  ;;  %vm362_vm12 = vcmp.lt.s32.totalorder %v8636_v46, 15 }
  0x45   : > { %2329 = vperm.xlu2 %7772, %v2278_v16   ;;  %2323 = vperm.xlu1 %7771, %v2276_v17   ;;  %v7031_v43 = vld [vmem:[%s8483_s6 + $0x120] sm:$0xf]  ;;  %v7502_v45 = vld [vmem:[%s8483_s6 + $0x4] sm:$0xf]  ;;  %v8642_v48 = vld [vmem:[%s14557_s0 + $0x68] sm:$0xff]  ;;  %v2287_v55 = vsel %vm362_vm12, 1, %v14577_v0 }
  0x46   : > { %2317 = vperm.xlu0 %7770, %v2274_v18   ;;  %7665 = vmatpush.bf16.msra.mxu3 %v7555_v15  ;;  %v8647_v49 = vld [vmem:[%s14557_s0 + $0x60] sm:$0xff]  ;;  %v7032_v51 = vor.u32 %v7539_v44, %v7031_v43  ;;  %v6892_v52 = vor.u32 %v7502_v45, %v6889_v47  ;;  %vm361_vm13 = vcmp.lt.s32.totalorder %v8642_v48, 15  ;;  %v7033_v54 = vld [vmem:[%s8483_s6 + $0x128] sm:$0xf0]  ;;  %v8670_v61 = vld [vmem:[%s14557_s0 + $0x78] sm:$0xff]  ;;  %s16289_s26 = smov (!%p8906_p1, %s556_s26), 0 }
  0x47   : > { %1066 = vmatpush.bf16.msra.mxu0 %v7546_v19  ;;  %vm360_vm14 = vcmp.lt.s32.totalorder %v8647_v49, 15  ;;  %v7538_v53 = vld [vmem:[%s8483_s6 + $0x124] sm:$0xf]  ;;  %v2286_v56 = vsel %vm361_vm13, 1, %v14577_v0  ;;  %v8660_v59 = vld [vmem:[%s14557_s0 + $0x88] sm:$0xff]  ;;  %vm363_vm1 = vcmp.lt.s32.totalorder %v8670_v61, 15 }
  0x48   : > { %7658 = vmatpush.bf16.msra.mxu2 %v7546_v19  ;;  %1175 = vmatpush.bf16.msra.mxu1 %v7554_v21  ;;  %v2285_v57 = vsel %vm360_vm14, 1, %v14577_v0  ;;  %v7036_v58 = vor.u32 %v7538_v53, %v7033_v54  ;;  %v8665_v60 = vld [vmem:[%s14557_s0 + $0x80] sm:$0xff]  ;;  %vm365_vm15 = vcmp.lt.s32.totalorder %v8660_v59, 15  ;;  %v6895_v63 = vld [vmem:[%s8483_s6 + $0x10] sm:$0xf]  ;;  %v2288_v2 = vsel %vm363_vm1, 1, %v14577_v0 }
  0x49   : > { %vm364_vm0 = vcmp.lt.s32.totalorder %v8665_v60, 15  ;;  %v2290_v62 = vsel %vm365_vm15, 1, %v14577_v0  ;;  %v7505_v6 = vld [vmem:[%s8483_s6 + $0x14] sm:$0xf0]  ;;  %v7039_v7 = vld [vmem:[%s8483_s6 + $0x130] sm:$0xf] }
  0x4a   : > { %7666 = vmatpush.bf16.msra.mxu3 %v7554_v21  ;;  %v2289_v1 = vsel %vm364_vm0, 1, %v14577_v0  ;;  %v7541_v8 = vld [vmem:[%s8483_s6 + $0x134] sm:$0xf0]  ;;  %v7504_v9 = vld [vmem:[%s8483_s6 + $0x14] sm:$0xf]  ;;  %v328_v10 = vld [vmem:[%s14557_s0 + $0xa0] sm:$0xff]  ;;  %v6896_v17 = vor.u32 %v7505_v6, %v6895_v63 }
  0x4b   : > { %1067 = vmatpush.bf16.msra.mxu0 %v7545_v24  ;;  %v6897_v14 = vld [vmem:[%s8483_s6 + $0x18] sm:$0xf0]  ;;  %v8693_v16 = vld [vmem:[%s14557_s0 + $0x90] sm:$0xff]  ;;  %vm368_vm2 = vcmp.lt.s32.totalorder %v328_v10, 15  ;;  %v7040_v18 = vor.u32 %v7541_v8, %v7039_v7  ;;  %v6903_v38 = vld [vmem:[%s8483_s6 + $0x20] sm:$0xf] }
  0x4c   : > { %7659 = vmatpush.bf16.msra.mxu2 %v7545_v24  ;;  %1176 = vmatpush.bf16.msra.mxu1 %v7553_v25  ;;  %v327_v15 = vld [vmem:[%s14557_s0 + $0x98] sm:$0xff]  ;;  %v6900_v19 = vor.u32 %v7504_v9, %v6897_v14  ;;  %vm366_vm4 = vcmp.lt.s32.totalorder %v8693_v16, 15  ;;  %v7540_v21 = vld [vmem:[%s8483_s6 + $0x134] sm:$0xf]  ;;  %v6905_v42 = vld [vmem:[%s8483_s6 + $0x28] sm:$0xf0] }
  0x4d   : > { %2338 = vperm.xlu2 %7772, %v2281_v26   ;;  %2335 = vperm.xlu1 %7771, %v2280_v27   ;;  %vm367_vm3 = vcmp.lt.s32.totalorder %v327_v15, 15  ;;  %v7041_v24 = vld [vmem:[%s8483_s6 + $0x138] sm:$0xf0]  ;;  %v2291_v27 = vsel %vm366_vm4, 1, %v14577_v0  ;;  %v333_v43 = vld [vmem:[%s14557_s0 + $0xc8] sm:$0xff]  ;;  %v332_v44 = vld [vmem:[%s14557_s0 + $0xc0] sm:$0xff] }
  0x4e   : > { %2332 = vperm.xlu0 %7770, %v2279_v28   ;;  %7667 = vmatpush.bf16.msra.mxu3 %v7553_v25  ;;  %v2293_v25 = vsel %vm368_vm2, 1, %v14577_v0  ;;  %v2292_v26 = vsel %vm367_vm3, 1, %v14577_v0  ;;  %v7044_v28 = vor.u32 %v7540_v21, %v7041_v24  ;;  %vm373_vm9 = vcmp.lt.s32.totalorder %v333_v43, 15  ;;  %v337_v53 = vld [vmem:[%s14557_s0 + $0xe8] sm:$0xff]  ;;  %v336_v54 = vld [vmem:[%s14557_s0 + $0xe0] sm:$0xff]  ;;  %v339_v7 = vld [vmem:[%s14557_s0 + $0xf8] sm:$0xff] }
  0x4f   : > { %1068 = vmatpush.bf16.msra.mxu0 %v7544_v29  ;;  %vm372_vm10 = vcmp.lt.s32.totalorder %v332_v44, 15  ;;  %vm377_vm11 = vcmp.lt.s32.totalorder %v337_v53, 15  ;;  %vm376_vm12 = vcmp.lt.s32.totalorder %v336_v54, 15  ;;  %v7509_v63 = vld [vmem:[%s8483_s6 + $0x34] sm:$0xf0]  ;;  %v338_v8 = vld [vmem:[%s14557_s0 + $0xf0] sm:$0xff] }
  0x50   : > { %7660 = vmatpush.bf16.msra.mxu2 %v7544_v29  ;;  %1177 = vmatpush.bf16.msra.mxu1 %v7552_v31  ;;  %v331_v29 = vld [vmem:[%s14557_s0 + $0xb8] sm:$0xff]  ;;  %vm379_vm15 = vcmp.lt.s32.totalorder %v339_v7, 15  ;;  %vm378_vm0 = vcmp.lt.s32.totalorder %v338_v8, 15  ;;  %v341_v21 = vld [vmem:[%s14557_s0 + $0x108] sm:$0xff]  ;;  %s16291_s28 = smov (!%p551_p2, %s8904_s28), 0  ;;  %s6884_s10 = sshll.u32 %s16289_s26, 4 }
  0x51   : > { %vm371_vm5 = vcmp.lt.s32.totalorder %v331_v29, 15  ;;  %v6913_v6 = vld [vmem:[%s8483_s6 + $0x38] sm:$0xf0]  ;;  %v2304_v15 = vsel %vm379_vm15, 1, %v14577_v0  ;;  %vm381_vm3 = vcmp.lt.s32.totalorder %v341_v21, 15  ;;  %vm433_vm15 = vcmp.ge.s32.totalorder %v8532_v11, 1 }
  0x52   : > { %7668 = vmatpush.bf16.msra.mxu3 %v7552_v31  ;;  %v330_v31 = vld [vmem:[%s14557_s0 + $0xb0] sm:$0xff]  ;;  %v7510_v29 = vld [vmem:[%s8483_s6 + $0x44] sm:$0xf]  ;;  %v6929_v53 = vld [vmem:[%s8483_s6 + $0x58] sm:$0xf0]  ;;  %s6882_s7 = sshll.u32 %s16291_s28, 4 }
  0x53   : > { %1069 = vmatpush.bf16.msra.mxu0 %v7543_v34  ;;  %vm370_vm6 = vcmp.lt.s32.totalorder %v330_v31, 15  ;;  %v346_v31 = vld [vmem:[%s14557_s0 + $0x130] sm:$0xff]  ;;  %s560_s14 = ssub.s32 320, %s6884_s10  ;;  %s7654_s11 = sshll.u32 %s8304_s24, 5 }
  0x54   : > { %7661 = vmatpush.bf16.msra.mxu2 %v7543_v34  ;;  %1178 = vmatpush.bf16.msra.mxu1 %v7551_v35  ;;  %v329_v34 = vld [vmem:[%s14557_s0 + $0xa8] sm:$0xff]  ;;  %vm386_vm4 = vcmp.lt.s32.totalorder %v346_v31, 15  ;;  %s7496_s12 = sshll.u32 %s16268_s29, 6  ;;  %s16270_s18 = sld [smem:[#allocation186_spill]] }
  0x55   : > { %2347 = vperm.xlu2 %7772, %v2284_v36   ;;  %2344 = vperm.xlu1 %7771, %v2283_v39   ;;  %vm369_vm7 = vcmp.lt.s32.totalorder %v329_v34, 15  ;;  %v2295_v36 = vsel %vm370_vm6, 1, %v14577_v0  ;;  %v7507_v39 = vld [vmem:[%s8483_s6 + $0x24] sm:$0xf0]  ;;  %v6921_v34 = vld [vmem:[%s8483_s6 + $0x48] sm:$0xf0]  ;;  %s6766_s13 = sadd.s32 %s7654_s11, %s7496_s12 }
  0x56   : > { %2341 = vperm.xlu0 %7770, %v2282_v40   ;;  %7669 = vmatpush.bf16.msra.mxu3 %v7551_v35  ;;  %v2296_v35 = vsel %vm371_vm5, 1, %v14577_v0  ;;  %v7506_v40 = vld [vmem:[%s8483_s6 + $0x24] sm:$0xf]  ;;  %v6904_v45 = vor.u32 %v7507_v39, %v6903_v38  ;;  %v6924_v38 = vor.u32 %v7510_v29, %v6921_v34  ;;  %v2311_v39 = vsel %vm386_vm4, 1, %v14577_v0  ;;  %s7497_s15 = sshll.u32 %s6766_s13, 3  ;;  %s6754_s24 = scalar_lea.sflag [#allocation7], %s8479_s17 }
  0x57   : > { %1070 = vmatpush.bf16.msra.mxu0 %v7542_v37  ;;  %v6908_v47 = vor.u32 %v7506_v40, %v6905_v42  ;;  %v347_v42 = vld [vmem:[%s14557_s0 + $0x138] sm:$0xff]  ;;  %vm440_vm4 = vcmp.ge.s32.totalorder %v8647_v49, 1 }
  0x58   : > { %7662 = vmatpush.bf16.msra.mxu2 %v7542_v37  ;;  %1179 = vmatpush.bf16.msra.mxu1 %v7550_v41  ;;  %v2294_v37 = vsel %vm369_vm7, 1, %v14577_v0  ;;  %vm429_vm7 = vcmp.ge.s32.totalorder %v8542_v13, 1 }
  0x59   : > { %v2594_v43 = vsel %vm429_vm7, 1, %v14577_v0  ;;  %vm443_vm7 = vcmp.ge.s32.totalorder %v8670_v61, 1 }
  0x5a   : > { %7670 = vmatpush.bf16.msra.mxu3 %v7550_v41  ;;  %1071 = vmatmul.bf16.vlgmr.msra.gmra.mxu0 %v6888_v50  ;;  %v334_v41 = vld [vmem:[%s14557_s0 + $0xd0] sm:$0xff]  ;;  %s6768_s19 = scalar_lea.hbm %s16270_s18, %s7497_s15 }
  0x5b   : > { %1161 = vmatmul.bf16.vlgmr.msra.gmra.mxu2 %v7032_v51  ;;  %1180 = vmatmul.bf16.vlgmr.msra.gmra.mxu1 %v6892_v52  ;;  %vm374_vm8 = vcmp.lt.s32.totalorder %v334_v41, 15  ;;  %v2298_v51 = vsel %vm373_vm9, 1, %v14577_v0  ;;  %v2297_v52 = vsel %vm372_vm10, 1, %v14577_v0  ;;  %vm387_vm9 = vcmp.lt.s32.totalorder %v347_v42, 15  ;;  %s6771_s25 = sshll.u32 %s6768_s19, 4  ;;  %s6772_s25 = int_to_ptr.hbm [resolvable:$true] %s6771_s25 }
  0x5c   : > { %v2299_v50 = vsel %vm374_vm8, 1, %v14577_v0  ;;  %vm428_vm8 = vcmp.ge.s32.totalorder %v8516_v5, 1  ;;  %vm432_vm10 = vcmp.ge.s32.totalorder %v8505_v3, 1  ;;  %s8232_s26 = sshra.s32 %s6772_s25, 4  ;;  %s8233_s26 = int_to_ptr.hbm [resolvable:$true] %s8232_s26 }
  0x5d   : > { %2356 = vperm.xlu2 %7772, %v2287_v55   ;;  %2353 = vperm.xlu1 %7771, %v2286_v56   ;;  %v335_v55 = vld [vmem:[%s14557_s0 + $0xd8] sm:$0xff]  ;;  %v2302_v56 = vsel %vm377_vm11, 1, %v14577_v0  ;;  %v2593_v44 = vsel %vm428_vm8, 1, %v14577_v0  ;;  %vm431_vm11 = vcmp.ge.s32.totalorder %v8537_v12, 1  ;;  %v2597_v13 = vsel %vm432_vm10, 1, %v14577_v0  ;;  %s8234_s28 = scalar_lea.hbm %s8233_s26, 256  ;;  %p8239_p12 = scmp.lt.s32.totalorder %s8233_s26, %s16270_s18 }
  0x5e   : > { %2350 = vperm.xlu0 %7770, %v2285_v57   ;;  %1270 = vmatmul.bf16.vlgmr.msra.gmra.mxu3 %v7036_v58  ;;  %vm375_vm13 = vcmp.lt.s32.totalorder %v335_v55, 15  ;;  %v2301_v57 = vsel %vm376_vm12, 1, %v14577_v0  ;;  %vm430_vm12 = vcmp.ge.s32.totalorder %v8511_v4, 1  ;;  %v2596_v55 = vsel %vm431_vm11, 1, %v14577_v0  ;;  %p8235_p4 = scmp.ne.s32.totalorder %s8233_s26, %s8234_s28 }
  0x5f   : > { %v2300_v58 = vsel %vm375_vm13, 1, %v14577_v0  ;;  %vm435_vm13 = vcmp.ge.s32.totalorder %v8570_v22, 1  ;;  %vm442_vm8 = vcmp.ge.s32.totalorder %v8636_v46, 1  ;;  %vm446_vm10 = vcmp.ge.s32.totalorder %v8693_v16, 1  ;;  %v8878_v16 = vld [vmem:[%s14560_s3] ss:$0 sm:$0xff] }
  0x60   : > { %v2600_v4 = vsel %vm435_vm13, 1, %v14577_v0  ;;  %vm445_vm11 = vcmp.ge.s32.totalorder %v8660_v59, 1  ;;  %v2611_v42 = vsel %vm446_vm10, 1, %v14577_v0  ;;  %vm398_vm13 = vcmp.lt.s32.totalorder %v8603_v32, 14  ;;  %p8236_p8 = pnand %p8235_p4, %p8455_p3 }
  0x62   : > { %p8237_p11 = pneg %p8236_p8 }
  0x65   : > { %2365 = vperm.xlu2 %7772, %v2290_v62   ;;  %2362 = vperm.xlu1 %7771, %v2289_v1   ;;  %v6911_v62 = vld [vmem:[%s8483_s6 + $0x30] sm:$0xf]  ;;  %v7508_v1 = vld [vmem:[%s8483_s6 + $0x34] sm:$0xf] }
  0x66   : > { %2359 = vperm.xlu0 %7770, %v2288_v2   ;;  %v340_v2 = vld [vmem:[%s14557_s0 + $0x100] sm:$0xff]  ;;  %v6912_v9 = vor.u32 %v7509_v63, %v6911_v62  ;;  %v6916_v10 = vor.u32 %v7508_v1, %v6913_v6  ;;  %v7515_v63 = vld [vmem:[%s8483_s6 + $0x64] sm:$0xf0]  ;;  %v6937_v6 = vld [vmem:[%s8483_s6 + $0x68] sm:$0xf0] }
  0x67   : > { %vm380_vm14 = vcmp.lt.s32.totalorder %v340_v2, 15  ;;  %v6935_v62 = vld [vmem:[%s8483_s6 + $0x60] sm:$0xf]  ;;  %v7514_v2 = vld [vmem:[%s8483_s6 + $0x64] sm:$0xf] }
  0x68   : > { %v2305_v14 = vsel %vm380_vm14, 1, %v14577_v0  ;;  %vm434_vm14 = vcmp.ge.s32.totalorder %v8575_v23, 1  ;;  %v6936_v22 = vor.u32 %v7515_v63, %v6935_v62  ;;  %v6940_v7 = vor.u32 %v7514_v2, %v6937_v6 }
  0x69   : > { %v2599_v12 = vsel %vm434_vm14, 1, %v14577_v0  ;;  %vm403_vm14 = vcmp.lt.s32.totalorder %v8670_v61, 14 }
  0x6a   : > { %1076 = vmatmul.bf16.gmra.mxu0 %v6896_v17  ;;  %v2303_v17 = vsel %vm378_vm0, 1, %v14577_v0  ;;  %vm438_vm0 = vcmp.ge.s32.totalorder %v8603_v32, 1 }
  0x6b   : > { %1166 = vmatmul.bf16.gmra.mxu2 %v7040_v18  ;;  %1185 = vmatmul.bf16.gmra.mxu1 %v6900_v19  ;;  %v343_v18 = vld [vmem:[%s14557_s0 + $0x118] sm:$0xff]  ;;  %v342_v19 = vld [vmem:[%s14557_s0 + $0x110] sm:$0xff]  ;;  %v2603_v8 = vsel %vm438_vm0, 1, %v14577_v0  ;;  %vm483_vm0 = vcmp.ge.s32.totalorder %v8670_v61, 2 }
  0x6c   : > { %vm383_vm1 = vcmp.lt.s32.totalorder %v343_v18, 15  ;;  %vm382_vm2 = vcmp.lt.s32.totalorder %v342_v19, 15  ;;  %v2605_v19 = vsel %vm440_vm4, 1, %v14577_v0  ;;  %vm405_vm4 = vcmp.lt.s32.totalorder %v8660_v59, 14 }
  0x6d   : > { %2374 = vperm.xlu2 %7772, %v2293_v25   ;;  %2371 = vperm.xlu1 %7771, %v2292_v26   ;;  %v2308_v24 = vsel %vm383_vm1, 1, %v14577_v0  ;;  %v2307_v25 = vsel %vm382_vm2, 1, %v14577_v0  ;;  %v2306_v26 = vsel %vm381_vm3, 1, %v14577_v0  ;;  %vm437_vm1 = vcmp.ge.s32.totalorder %v8608_v33, 1 }
  0x6e   : > { %2368 = vperm.xlu0 %7770, %v2291_v27   ;;  %1275 = vmatmul.bf16.gmra.mxu3 %v7044_v28  ;;  %v6919_v27 = vld [vmem:[%s8483_s6 + $0x40] sm:$0xf]  ;;  %v7511_v28 = vld [vmem:[%s8483_s6 + $0x44] sm:$0xf0]  ;;  %vm436_vm2 = vcmp.ge.s32.totalorder %v8562_v20, 1  ;;  %vm441_vm3 = vcmp.ge.s32.totalorder %v8642_v48, 1 }
  0x6f   : > { %v2606_v18 = vsel %vm441_vm3, 1, %v14577_v0  ;;  %vm478_vm3 = vcmp.ge.s32.totalorder %v8603_v32, 2 }
  0x75   : > { %2383 = vperm.xlu2 %7772, %v2296_v35   ;;  %2380 = vperm.xlu1 %7771, %v2295_v36   ;;  %v345_v35 = vld [vmem:[%s14557_s0 + $0x128] sm:$0xff]  ;;  %v344_v36 = vld [vmem:[%s14557_s0 + $0x120] sm:$0xff] }
  0x76   : > { %2377 = vperm.xlu0 %7770, %v2294_v37   ;;  %v6920_v37 = vor.u32 %v7511_v28, %v6919_v27  ;;  %vm385_vm5 = vcmp.lt.s32.totalorder %v345_v35, 15  ;;  %vm384_vm6 = vcmp.lt.s32.totalorder %v344_v36, 15  ;;  %v6945_v27 = vld [vmem:[%s8483_s6 + $0x78] sm:$0xf0]  ;;  %v2608_v36 = vsel %vm443_vm7, 1, %v14577_v0 }
  0x77   : > { %v2310_v40 = vsel %vm385_vm5, 1, %v14577_v0  ;;  %v2309_v41 = vsel %vm384_vm6, 1, %v14577_v0  ;;  %vm439_vm5 = vcmp.ge.s32.totalorder %v8595_v30, 1  ;;  %vm444_vm6 = vcmp.ge.s32.totalorder %v8665_v60, 1 }
  0x78   : > { %v2604_v21 = vsel %vm439_vm5, 1, %v14577_v0  ;;  %v2609_v35 = vsel %vm444_vm6, 1, %v14577_v0  ;;  %vm484_vm5 = vcmp.ge.s32.totalorder %v8665_v60, 2  ;;  %vm397_vm6 = vcmp.lt.s32.totalorder %v8608_v33, 14 }
  0x79   : > { %vm396_vm7 = vcmp.lt.s32.totalorder %v8562_v20, 14 }
  0x7a   : > { %1081 = vmatmul.bf16.gmra.mxu0 %v6904_v45  ;;  %v2312_v45 = vsel %vm387_vm9, 1, %v14577_v0  ;;  %vm402_vm9 = vcmp.lt.s32.totalorder %v8636_v46, 14 }
  0x7b   : > { %1190 = vmatmul.bf16.gmra.mxu1 %v6908_v47 }
  0x7d   : > { %2392 = vperm.xlu2 %7772, %v2299_v50   ;;  %2389 = vperm.xlu1 %7771, %v2298_v51   ;;  %v6927_v50 = vld [vmem:[%s8483_s6 + $0x50] sm:$0xf]  ;;  %v7513_v51 = vld [vmem:[%s8483_s6 + $0x54] sm:$0xf0] }
  0x7e   : > { %2386 = vperm.xlu0 %7770, %v2297_v52   ;;  %v7512_v52 = vld [vmem:[%s8483_s6 + $0x54] sm:$0xf]  ;;  %v6928_v54 = vor.u32 %v7513_v51, %v6927_v50  ;;  %v7518_v50 = vld [vmem:[%s8483_s6 + $0x84] sm:$0xf]  ;;  %v6953_v51 = vld [vmem:[%s8483_s6 + $0x88] sm:$0xf0] }
  0x7f   : > { %v6932_v5 = vor.u32 %v7512_v52, %v6929_v53 }
  0x85   : > { %2401 = vperm.xlu2 %7772, %v2302_v56   ;;  %2398 = vperm.xlu1 %7771, %v2301_v57   ;;  %v2595_v56 = vsel %vm430_vm12, 1, %v14577_v0  ;;  %vm399_vm12 = vcmp.lt.s32.totalorder %v8595_v30, 14 }
  0x86   : > { %2395 = vperm.xlu0 %7770, %v2300_v58   ;;  %v2598_v58 = vsel %vm433_vm15, 1, %v14577_v0  ;;  %vm404_vm15 = vcmp.lt.s32.totalorder %v8665_v60, 14  ;;  %v2922_v60 = vsel %vm397_vm6, 1, %v14577_v0 }
  0x87   : > { %v2929_v61 = vsel %vm404_vm15, 1, %v14577_v0 }
  0x8a   : > { %1086 = vmatmul.bf16.gmra.mxu0 %v6912_v9  ;;  %v2602_v9 = vsel %vm437_vm1, 1, %v14577_v0  ;;  %vm482_vm1 = vcmp.ge.s32.totalorder %v8636_v46, 2  ;;  %v3248_v46 = vsel %vm483_vm0, 1, %v14577_v0 }
  0x8b   : > { %1195 = vmatmul.bf16.gmra.mxu1 %v6916_v10  ;;  %v2601_v10 = vsel %vm436_vm2, 1, %v14577_v0  ;;  %vm479_vm2 = vcmp.ge.s32.totalorder %v8595_v30, 2 }
  0x8d   : > { %2410 = vperm.xlu2 %7772, %v2305_v14   ;;  %2407 = vperm.xlu1 %7771, %v2304_v15  }
  0x8e   : > { %2404 = vperm.xlu0 %7770, %v2303_v17  }
  0x95   : > { %2419 = vperm.xlu2 %7772, %v2308_v24   ;;  %2416 = vperm.xlu1 %7771, %v2307_v25   ;;  %v6943_v24 = vld [vmem:[%s8483_s6 + $0x70] sm:$0xf]  ;;  %v7517_v25 = vld [vmem:[%s8483_s6 + $0x74] sm:$0xf0] }
  0x96   : > { %2413 = vperm.xlu0 %7770, %v2306_v26   ;;  %v7516_v26 = vld [vmem:[%s8483_s6 + $0x74] sm:$0xf]  ;;  %v6944_v28 = vor.u32 %v7517_v25, %v6943_v24  ;;  %v3247_v24 = vsel %vm482_vm1, 1, %v14577_v0 }
  0x97   : > { %v8793_v47 = vpop.permute.xlu2 %2326  ;;  %v6948_v31 = vor.u32 %v7516_v26, %v6945_v27  ;;  %v6959_v26 = vld [vmem:[%s8483_s6 + $0x90] sm:$0xf]  ;;  %v7521_v27 = vld [vmem:[%s8483_s6 + $0x94] sm:$0xf0] }
  0x98   : > { %15138 = vst [vmem:[#allocation22_spill] sm:$0xff] %v8793_v47 }
  0x9a   : > { %1091 = vmatmul.bf16.gmra.mxu0 %v6920_v37  ;;  %v2607_v37 = vsel %vm442_vm8, 1, %v14577_v0 }
  0x9b   : > { %1200 = vmatmul.bf16.gmra.mxu1 %v6924_v38 }
  0x9d   : > { %2428 = vperm.xlu2 %7772, %v2311_v39   ;;  %2425 = vperm.xlu1 %7771, %v2310_v40   ;;  %v2927_v40 = vsel %vm402_vm9, 1, %v14577_v0 }
  0x9e   : > { %2422 = vperm.xlu0 %7770, %v2309_v41  }
  0x9f   : > { %v8805_v57 = vpop.permute.xlu2 %2329 }
  0xa0   : > { %15139 = vst [vmem:[#allocation23_spill] sm:$0xff] %v8805_v57 }
  0xa5   : > { %2637 = vperm.xlu2 %7772, %v2594_v43   ;;  %2634 = vperm.xlu1 %7771, %v2593_v44   ;;  %v2610_v43 = vsel %vm445_vm11, 1, %v14577_v0  ;;  %v6951_v44 = vld [vmem:[%s8483_s6 + $0x80] sm:$0xf] }
  0xa6   : > { %2431 = vperm.xlu0 %7770, %v2312_v45   ;;  %v7519_v45 = vld [vmem:[%s8483_s6 + $0x84] sm:$0xf0] }
  0xa7   : > { %v8822_v23 = vpop.permute.xlu2 %2338  ;;  %v6952_v53 = vor.u32 %v7519_v45, %v6951_v44  ;;  %v6960_v44 = vor.u32 %v7521_v27, %v6959_v26 }
  0xa8   : > { %15142 = vst [vmem:[#allocation26_spill] sm:$0xff] %v8822_v23 }
  0xaa   : > { %1096 = vmatmul.bf16.gmra.mxu0 %v6928_v54  ;;  %v6956_v54 = vor.u32 %v7518_v50, %v6953_v51 }
  0xab   : > { %1205 = vmatmul.bf16.gmra.mxu1 %v6932_v5 }
  0xad   : > { %2646 = vperm.xlu2 %7772, %v2597_v13   ;;  %2643 = vperm.xlu1 %7771, %v2596_v55  }
  0xae   : > { %2640 = vperm.xlu0 %7770, %v2595_v56   ;;  %v2924_v56 = vsel %vm399_vm12, 1, %v14577_v0 }
  0xaf   : > { %v8808_v3 = vpop.permute.xlu1 %2320  ;;  %v8838_v17 = vpop.permute.xlu2 %2347 }
  0xb0   : > { %15140 = vst [vmem:[#allocation24_spill] sm:$0xff] %v8808_v3  ;;  %v8817_v1 = vpop.permute.xlu0 %2314 }
  0xb1   : > { %15141 = vst [vmem:[#allocation25_spill] sm:$0xff] %v8817_v1 }
  0xb2   : > { %15146 = vst [vmem:[#allocation30_spill] sm:$0xff] %v8838_v17 }
  0xb5   : > { %2655 = vperm.xlu2 %7772, %v2600_v4   ;;  %2652 = vperm.xlu1 %7771, %v2599_v12   ;;  %v2923_v4 = vsel %vm398_vm13, 1, %v14577_v0  ;;  %v2928_v12 = vsel %vm403_vm14, 1, %v14577_v0  ;;  %vm401_vm13 = vcmp.lt.s32.totalorder %v8642_v48, 14 }
  0xb6   : > { %2649 = vperm.xlu0 %7770, %v2598_v58  }
  0xb7   : > { %v8824_v11 = vpop.permute.xlu1 %2323  ;;  %v8857_v38 = vpop.permute.xlu2 %2356 }
  0xb8   : > { %15143 = vst [vmem:[#allocation27_spill] sm:$0xff] %v8824_v11  ;;  %v8831_v14 = vpop.permute.xlu0 %2317 }
  0xb9   : > { %15144 = vst [vmem:[#allocation28_spill] sm:$0xff] %v8831_v14 }
  0xba   : > { %1101 = vmatmul.bf16.gmra.mxu0 %v6936_v22  ;;  %15149 = vst [vmem:[#allocation33_spill] sm:$0xff] %v8857_v38 }
  0xbb   : > { %1210 = vmatmul.bf16.gmra.mxu1 %v6940_v7 }
  0xbd   : > { %2664 = vperm.xlu2 %7772, %v2603_v8   ;;  %2661 = vperm.xlu1 %7771, %v2602_v9  }
  0xbe   : > { %2658 = vperm.xlu0 %7770, %v2601_v10  }
  0xbf   : > { %v8834_v15 = vpop.permute.xlu1 %2335  ;;  %v8873_v52 = vpop.permute.xlu2 %2365 }
  0xc0   : > { %15145 = vst [vmem:[#allocation29_spill] sm:$0xff] %v8834_v15  ;;  %v8852_v34 = vpop.permute.xlu0 %2332 }
  0xc1   : > { %15148 = vst [vmem:[#allocation32_spill] sm:$0xff] %v8852_v34 }
  0xc2   : > { %15152 = vst [vmem:[#allocation36_spill] sm:$0xff] %v8873_v52 }
  0xc5   : > { %2673 = vperm.xlu2 %7772, %v2606_v18   ;;  %2670 = vperm.xlu1 %7771, %v2605_v19  }
  0xc6   : > { %2667 = vperm.xlu0 %7770, %v2604_v21  }
  0xc7   : > { %v8848_v29 = vpop.permute.xlu1 %2344  ;;  %v8899_v22 = vpop.permute.xlu2 %2374 }
  0xc8   : > { %15147 = vst [vmem:[#allocation31_spill] sm:$0xff] %v8848_v29  ;;  %v8865_v41 = vpop.permute.xlu0 %2341 }
  0xc9   : > { %15151 = vst [vmem:[#allocation35_spill] sm:$0xff] %v8865_v41 }
  0xca   : > { %1106 = vmatmul.bf16.gmra.mxu0 %v6944_v28  ;;  %15155 = vst [vmem:[#allocation39_spill] sm:$0xff] %v8899_v22  ;;  %v7585_v22 = vld [vmem:[#allocation8 + $0x54] sm:$0xf0] }
  0xcb   : > { %1215 = vmatmul.bf16.gmra.mxu1 %v6948_v31  ;;  %v7520_v31 = vld [vmem:[%s8483_s6 + $0x94] sm:$0xf] }
  0xcd   : > { %2682 = vperm.xlu2 %7772, %v2609_v35   ;;  %2679 = vperm.xlu1 %7771, %v2608_v36   ;;  %v6961_v35 = vld [vmem:[%s8483_s6 + $0x98] sm:$0xf0] }
  0xce   : > { %2676 = vperm.xlu0 %7770, %v2607_v37   ;;  %v6964_v51 = vor.u32 %v7520_v31, %v6961_v35 }
  0xcf   : > { %v8862_v39 = vpop.permute.xlu1 %2353 }
  0xd0   : > { %15150 = vst [vmem:[#allocation34_spill] sm:$0xff] %v8862_v39  ;;  %v8894_v63 = vpop.permute.xlu0 %2350 }
  0xd1   : > { %15154 = vst [vmem:[#allocation38_spill] sm:$0xff] %v8894_v63 }
  0xd5   : > { %2996 = vperm.xlu2 %7772, %v2927_v40   ;;  %2688 = vperm.xlu1 %7771, %v2611_v42  }
  0xd6   : > { %2685 = vperm.xlu0 %7770, %v2610_v43  }
  0xd7   : > { %v1072_v5 = vpop.f32.mrf.mxu0  ;;  %v8890_v58 = vpop.permute.xlu1 %2362 }
  0xd8   : > { %v1181_v13 = vpop.f32.mrf.mxu1  ;;  %v1073_v55 = vadd.f32 %v8878_v16, %v1072_v5  ;;  %15153 = vst [vmem:[#allocation37_spill] sm:$0xff] %v8890_v58  ;;  %v8931_v40 = vpop.permute.xlu0 %2359 }
  0xd9   : > { %15158 = vst [vmem:[#allocation41_spill] sm:$0xff] %v8931_v40 }
  0xda   : > { %1111 = vmatmul.bf16.gmra.mxu0 %v6952_v53  ;;  %v8892_v62 = vadd.f32 %v1181_v13, %v1073_v55  ;;  %v3244_v55 = vsel %vm479_vm2, 1, %v14577_v0 }
  0xdb   : > { %1220 = vmatmul.bf16.gmra.mxu1 %v6956_v54 }
  0xdc   : > { %v1281_v2 = vsub.f32 0.0, %v8892_v62 }
  0xdd   : > { %2987 = vperm.xlu2 %7772, %v2924_v56   ;;  %2984 = vperm.xlu1 %7771, %v2923_v4   ;;  %v8947_v56 = vpop.permute.xlu2 %2383  ;;  %v508_v4 = vlaneseq }
  0xde   : > { %2999 = vperm.xlu0 %7770, %v2928_v12   ;;  %v1162_v6 = vpop.f32.mrf.mxu2  ;;  %v1321_v7 = vmul.f32 1.442695, %v1281_v2  ;;  %15159 = vst [vmem:[#allocation42_spill] sm:$0xff] %v8947_v56  ;;  %v3243_v2 = vsel %vm478_vm3, 1, %v14577_v0 }
  0xdf   : > { %v1163_v8 = vadd.f32 %v8878_v16, %v1162_v6  ;;  %v1074_v9 = vpop.f32.mrf.mxu0  ;;  %v8928_v36 = vpop.permute.xlu1 %2371  ;;  %v2930_v6 = vsel %vm405_vm4, 1, %v14577_v0 }
  0xe0   : > { %v1183_v10 = vpop.f32.mrf.mxu1  ;;  %7774 = vpow2.f32 %v1321_v7  ;;  %v1075_v18 = vadd.f32 %v8878_v16, %v1074_v9  ;;  %15157 = vst [vmem:[#allocation40_spill] sm:$0xff] %v8928_v36  ;;  %v8978_v31 = vpop.permute.xlu0 %2368 }
  0xe1   : > { %v1271_v19 = vpop.f32.mrf.mxu3  ;;  %15161 = vst [vmem:[#allocation44_spill] sm:$0xff] %v8978_v31 }
  0xe2   : > { %v8912_v21 = vadd.f32 %v1271_v19, %v1163_v8  ;;  %v8917_v25 = vadd.f32 %v1183_v10, %v1075_v18  ;;  %v8963_v10 = vshrl.u32 %v508_v4, 7  ;;  %v8965_v18 = vstv %s6882_s7  ;;  %s8238_s7 = scalar_lea.hbm %s16270_s18, 1024 }
  0xe3   : > { %v8967_v19 = vstv %s560_s14  ;;  %p8240_p13 = scmp.lt.s32.totalorder %s8238_s7, %s8234_s28 }
  0xe4   : > { %v1317_v28 = vsub.f32 0.0, %v8912_v21  ;;  %v1282_v37 = vsub.f32 0.0, %v8917_v25  ;;  %v8981_v35 = vadd.s32 8, %v8963_v10  ;;  %vm562_vm8 = vcmp.ge.s32.totalorder %v8963_v10, %v8965_v18 }
  0xe5   : > { %3002 = vperm.xlu2 %7772, %v2929_v61   ;;  %3319 = vperm.xlu1 %7771, %v3248_v46   ;;  %vm603_vm9 = vcmp.lt.s32.totalorder %v8963_v10, %v8967_v19  ;;  %v9007_v4 = vadd.s32 288, %v8963_v10  ;;  %p8241_p0 = por %p8240_p13, %p8239_p12 }
  0xe6   : > { %3316 = vperm.xlu0 %7770, %v3247_v24   ;;  %v1393_v42 = vmul.f32 1.442695, %v1317_v28  ;;  %v1164_v43 = vpop.f32.mrf.mxu2  ;;  %v7775_v45 = vpop.eup %7774  ;;  %v1323_v50 = vmul.f32 1.442695, %v1282_v37  ;;  %vm563_vm14 = vcmp.ge.s32.totalorder %v8981_v35, %v8965_v18  ;;  %vm9054_vm1 = vmand %vm562_vm8, %vm603_vm9  ;;  %vm604_vm8 = vcmp.lt.s32.totalorder %v8981_v35, %v8967_v19 }
  0xe7   : > { %v8942_v53 = vadd.f32 1.0, %v7775_v45  ;;  %v1165_v54 = vadd.f32 %v8878_v16, %v1164_v43  ;;  %v1077_v5 = vpop.f32.mrf.mxu0  ;;  %v8972_v26 = vpop.permute.xlu1 %2380  ;;  %v3249_v43 = vsel %vm484_vm5, 1, %v14577_v0  ;;  %vm598_vm5 = vcmp.ge.s32.totalorder %v9007_v4, %v8965_v18  ;;  %p8242_p5 = pnand %p8241_p0, %p8237_p11 }
  0xe8   : > { %7776 = vpow2.f32 %v1393_v42  ;;  %v1078_v30 = vadd.f32 %v8878_v16, %v1077_v5  ;;  %v1186_v12 = vpop.f32.mrf.mxu1  ;;  %15160 = vst [vmem:[#allocation43_spill] sm:$0xff] %v8972_v26  ;;  %v2921_v5 = vsel %vm396_vm7, 1, %v14577_v0  ;;  %v9063_v11 = vpop.permute.xlu0 %2377  ;;  %vm639_vm6 = vcmp.lt.s32.totalorder %v9007_v4, %v8967_v19  ;;  %v7535_v26 = vld [vmem:[%s8483_s6 + $0x104] sm:$0xf0] }
  0xe9   : > { %7778 = vpow2.f32 %v1323_v50  ;;  %v1273_v13 = vpop.f32.mrf.mxu3  ;;  %v1450_v45 = vand.u32 2147483647, %v8942_v53  ;;  %v1452_v50 = vand.u32 2147483648, %v8942_v53  ;;  %vm1446_vm10 = vweird.f32 %v8942_v53  ;;  %15168 = vst [vmem:[#allocation47_spill] sm:$0xff] %v9063_v11 }
  0xea   : > { %7780 = vrcp.f32 %v8942_v53  ;;  %1116 = vmatmul.bf16.gmra.mxu0 %v6960_v44  ;;  %v8957_v7 = vadd.f32 %v1186_v12, %v1078_v30  ;;  %v8959_v8 = vadd.f32 %v1273_v13, %v1165_v54  ;;  %v6967_v30 = vld [vmem:[%s8483_s6 + $0xa0] sm:$0xf]  ;;  %v7523_v13 = vld [vmem:[%s8483_s6 + $0xa4] sm:$0xf0]  ;;  %v7522_v12 = vld [vmem:[%s8483_s6 + $0xa4] sm:$0xf] }
  0xeb   : > { %1225 = vmatmul.bf16.gmra.mxu1 %v6964_v51  ;;  %vm9018_vm12 = vcmp.eq.f32.partialorder %v1450_v45, 8.507059e+37 }
  0xec   : > { %v1283_v9 = vsub.f32 0.0, %v8957_v7  ;;  %v1318_v61 = vsub.f32 0.0, %v8959_v8 }
  0xed   : > { %3307 = vperm.xlu2 %7772, %v3244_v55   ;;  %3304 = vperm.xlu1 %7771, %v3243_v2   ;;  %v6969_v2 = vld [vmem:[%s8483_s6 + $0xa8] sm:$0xf0] }
  0xee   : > { %3005 = vperm.xlu0 %7770, %v2930_v6   ;;  %v7777_v32 = vpop.eup %7776  ;;  %v1325_v27 = vmul.f32 1.442695, %v1283_v9  ;;  %v1395_v42 = vmul.f32 1.442695, %v1318_v61  ;;  %v1167_v51 = vpop.f32.mrf.mxu2  ;;  %v1453_v61 = vor.u32 1.1754944e-38, %v1452_v50 }
  0xef   : > { %v7779_v46 = vpop.eup %7778  ;;  %v8970_v24 = vadd.f32 1.0, %v7777_v32  ;;  %v1079_v54 = vpop.f32.mrf.mxu0  ;;  %v1168_v20 = vadd.f32 %v8878_v16, %v1167_v51  ;;  %v6972_v51 = vor.u32 %v7522_v12, %v6969_v2 }
  0xf0   : > { %v8976_v28 = vpop.eup %7780  ;;  %v8983_v37 = vadd.f32 1.0, %v7779_v46  ;;  %v9011_v6 = vpop.permute.xlu2 %2392  ;;  %v1080_v33 = vadd.f32 %v8878_v16, %v1079_v54 }
  0xf1   : > { %v1442_v44 = vmul.f32 %v8976_v28, %v8942_v53  ;;  %7782 = vrcp.f32 %v8970_v24  ;;  %15162 = vst [vmem:[#allocation45_spill] sm:$0xff] %v9011_v6  ;;  %vm1447_vm11 = vweird.f32 %v8976_v28  ;;  %v1188_v46 = vpop.f32.mrf.mxu1  ;;  %vm1986_vm15 = vweird.f32 %v8970_v24 }
  0xf2   : > { %7784 = vrcp.f32 %v8983_v37  ;;  %v1465_v45 = vand.u32 2147483647, %v8983_v37  ;;  %v1467_v50 = vand.u32 2147483648, %v8983_v37  ;;  %vm1448_vm0 = vmor %vm1446_vm10, %vm1447_vm11  ;;  %v2926_v53 = vsel %vm401_vm13, 1, %v14577_v0 }
  0xf3   : > { %v1443_v55 = vsub.f32 1.0, %v1442_v44  ;;  %7786 = vpow2.f32 %v1325_v27  ;;  %v1276_v27 = vpop.f32.mrf.mxu3  ;;  %v9022_v44 = vadd.f32 %v1188_v46, %v1080_v33  ;;  %vm1461_vm9 = vweird.f32 %v8983_v37  ;;  %vm9110_vm13 = vmand %vm563_vm14, %vm604_vm8 }
  0xf4   : > { %7788 = vpow2.f32 %v1395_v42  ;;  %v6968_v42 = vor.u32 %v7523_v13, %v6967_v30  ;;  %v1990_v30 = vand.u32 2147483647, %v8970_v24  ;;  %v1992_v13 = vand.u32 2147483648, %v8970_v24 }
  0xf5   : > { %3322 = vperm.xlu2 %7772, %v3249_v43   ;;  %v1444_v9 = vmul.f32 %v8976_v28, %v1443_v55  ;;  %2981 = vperm.xlu1 %7771, %v2922_v60   ;;  %v9038_v55 = vadd.f32 %v1276_v27, %v1168_v20  ;;  %v1284_v46 = vsub.f32 0.0, %v9022_v44  ;;  %vm1466_vm11 = vcmp.eq.f32.partialorder %v1465_v45, 8.507059e+37 }
  0xf6   : > { %2978 = vperm.xlu0 %7770, %v2921_v5   ;;  %v1993_v57 = vor.u32 1.1754944e-38, %v1992_v13  ;;  %vm1991_vm7 = vcmp.eq.f32.partialorder %v1990_v30, 8.507059e+37  ;;  %v511_v13 = vadd.s32 16, %v8963_v10  ;;  %v1169_v30 = vpop.f32.mrf.mxu2 }
  0xf7   : > { %v7783_v43 = vpop.eup %7782  ;;  %v1445_v54 = vadd.f32 %v8976_v28, %v1444_v9  ;;  %v9042_v9 = vpop.permute.xlu1 %2389  ;;  %v1327_v34 = vmul.f32 1.442695, %v1284_v46  ;;  %v1319_v32 = vsub.f32 0.0, %v9038_v55 }
  0xf8   : > { %v7785_v60 = vpop.eup %7784  ;;  %v1982_v5 = vmul.f32 %v7783_v43, %v8970_v24  ;;  %15165 = vst [vmem:[#allocation46_spill] sm:$0xff] %v9042_v9  ;;  %vm1987_vm2 = vweird.f32 %v7783_v43  ;;  %vm564_vm14 = vcmp.ge.s32.totalorder %v511_v13, %v8965_v18 }
  0xf9   : > { %v7787_v12 = vpop.eup %7786  ;;  %v1449_v2 = vsel %vm1448_vm0, %v8976_v28, %v1445_v54  ;;  %v1457_v33 = vmul.f32 %v7785_v60, %v8983_v37  ;;  %vm1462_vm3 = vweird.f32 %v7785_v60  ;;  %vm9076_vm4 = vmor %vm1986_vm15, %vm1987_vm2  ;;  %v1191_v20 = vpop.f32.mrf.mxu1  ;;  %vm605_vm15 = vcmp.lt.s32.totalorder %v511_v13, %v8967_v19 }
  0xfa   : > { %v7789_v3 = vpop.eup %7788  ;;  %v1454_v28 = vsel %vm9018_vm12, %v1453_v61, %v1449_v2  ;;  %v1983_v27 = vsub.f32 1.0, %v1982_v5  ;;  %v9060_v54 = vadd.f32 1.0, %v7787_v12  ;;  %1121 = vmatmul.bf16.gmra.mxu0 %v6968_v42  ;;  %vm1463_vm10 = vmor %vm1461_vm9, %vm1462_vm3  ;;  %v1397_v12 = vmul.f32 1.442695, %v1319_v32  ;;  %v1082_v2 = vpop.f32.mrf.mxu0 }
  0xfb   : > { %v1455_v48 = vmul.f32 %v1454_v28, %v8892_v62  ;;  %v1458_v0 = vsub.f32 1.0, %v1457_v33  ;;  %v9065_v15 = vadd.f32 1.0, %v7789_v3  ;;  %1230 = vmatmul.bf16.gmra.mxu1 %v6972_v51  ;;  %v9082_v62 = vpop.permute.xlu2 %2401  ;;  %v1468_v51 = vor.u32 1.1754944e-38, %v1467_v50  ;;  %vm9100_vm12 = vmand %vm598_vm5, %vm639_vm6 }
  0xfc   : > { %v1984_v14 = vmul.f32 %v7783_v43, %v1983_v27  ;;  %7790 = vrcp.f32 %v9060_v54  ;;  %15171 = vst [vmem:[#allocation48_spill] sm:$0xff] %v9082_v62  ;;  %vm400_vm0 = vcmp.lt.s32.totalorder %v8647_v49, 14  ;;  %vm485_vm2 = vcmp.ge.s32.totalorder %v8660_v59, 2  ;;  %vm9163_vm6 = vmand %vm564_vm14, %vm605_vm15 }
  0xfd   : > { %2993 = vperm.xlu2 %7772, %v2926_v53   ;;  %v9071_v61 = vsel %vm9054_vm1, %v1455_v48, -inf  ;;  %v1459_v42 = vmul.f32 %v7785_v60, %v1458_v0  ;;  %7792 = vrcp.f32 %v9065_v15  ;;  %v1083_v53 = vadd.f32 %v8878_v16, %v1082_v2  ;;  %v9130_v48 = vpop.permute.xlu0 %2386 }
  0xfe   : > { %2193 = vst [vmem:[#allocation2 + $0x20] sm:$0xff] %v9071_v61  ;;  %v1985_v0 = vadd.f32 %v7783_v43, %v1984_v14  ;;  %7794 = vpow2.f32 %v1327_v34  ;;  %vm1476_vm3 = vweird.f32 %v9060_v54 }
  0xff   : > { %v1460_v24 = vadd.f32 %v7785_v60, %v1459_v42  ;;  %7796 = vpow2.f32 %v1397_v12  ;;  %v9119_v46 = vpop.permute.xlu1 %2398  ;;  %15177 = vst [vmem:[#allocation50_spill] sm:$0xff] %v9130_v48  ;;  %v9132_v32 = vadd.f32 %v1191_v20, %v1083_v53  ;;  %v1482_v42 = vand.u32 2147483648, %v9060_v54  ;;  %v1278_v12 = vpop.f32.mrf.mxu3  ;;  %v7589_v48 = vld [vmem:[#allocation8 + $0x74] sm:$0xf0] }
 0x100   : > { %v1989_v5 = vsel %vm9076_vm4, %v7783_v43, %v1985_v0  ;;  %15176 = vst [vmem:[#allocation49_spill] sm:$0xff] %v9119_v46  ;;  %v1170_v0 = vadd.f32 %v8878_v16, %v1169_v30  ;;  %v15179_v53 = vmov 0   ;;  %v2005_v20 = vand.u32 2147483647, %v9065_v15 }
 0x101   : > { %v1464_v33 = vsel %vm1463_vm10, %v7785_v60, %v1460_v24  ;;  %v1994_v34 = vsel %vm1991_vm7, %v1993_v57, %v1989_v5  ;;  %v1285_v5 = vsub.f32 0.0, %v9132_v32  ;;  %vm2001_vm7 = vweird.f32 %v9065_v15 }
 0x102   : > { %v7791_v37 = vpop.eup %7790  ;;  %v1469_v45 = vsel %vm1466_vm11, %v1468_v51, %v1464_v33  ;;  %v1995_v50 = vmul.f32 %v1994_v34, %v8912_v21  ;;  %v1480_v51 = vand.u32 2147483647, %v9060_v54  ;;  %v9144_v34 = vadd.s32 24, %v8963_v10 }
 0x103   : > { %v9115_v4 = vpop.eup %7792  ;;  %v1470_v60 = vmul.f32 %v1469_v45, %v8917_v25  ;;  %v1472_v57 = vmul.f32 %v7791_v37, %v9060_v54  ;;  %vm1477_vm1 = vweird.f32 %v7791_v37  ;;  %v9141_v33 = vpop.permute.xlu2 %2410  ;;  %v9152_v30 = vadd.f32 %v1278_v12, %v1170_v0 }
 0x104   : > { %v2157_v35 = vsel %vm9100_vm12, %v1995_v50, -inf  ;;  %v1997_v21 = vmul.f32 %v9115_v4, %v9065_v15  ;;  %v7795_v28 = vpop.eup %7794  ;;  %15178 = vst [vmem:[#allocation51_spill] sm:$0xff] %v9141_v33  ;;  %v1329_v50 = vmul.f32 1.442695, %v1285_v5  ;;  %vm1478_vm4 = vmor %vm1476_vm3, %vm1477_vm1  ;;  %vm1481_vm5 = vcmp.eq.f32.partialorder %v1480_v51, 8.507059e+37  ;;  %v1084_v54 = vpop.f32.mrf.mxu0 }
 0x105   : > { %v2122_v25 = vsel %vm9110_vm13, %v1470_v60, -inf  ;;  %2229 = vst [vmem:[#allocation2 + $0x140] sm:$0xff] %v2157_v35  ;;  %v1473_v27 = vsub.f32 1.0, %v1472_v57  ;;  %v9135_v3 = vadd.f32 1.0, %v7795_v28  ;;  %v7797_v2 = vpop.eup %7796  ;;  %v1483_v60 = vor.u32 1.1754944e-38, %v1482_v42 }
 0x106   : > { %2194 = vst [vmem:[#allocation2 + $0x28] sm:$0xff] %v2122_v25  ;;  %v1998_v14 = vsub.f32 1.0, %v1997_v21  ;;  %v9149_v45 = vadd.f32 1.0, %v7797_v2  ;;  %v2007_v57 = vand.u32 2147483648, %v9065_v15  ;;  %v2925_v35 = vsel %vm400_vm0, 1, %v15179_v53 }
 0x107   : > { %v1474_v24 = vmul.f32 %v7791_v37, %v1473_v27  ;;  %7798 = vrcp.f32 %v9135_v3  ;;  %2990 = vperm.xlu1 %7771, %v2925_v35   ;;  %vm565_vm8 = vcmp.ge.s32.totalorder %v9144_v34, %v8965_v18  ;;  %vm606_vm9 = vcmp.lt.s32.totalorder %v9144_v34, %v8967_v19  ;;  %v9178_v42 = vpop.permute.xlu1 %2407 }
 0x108   : > { %7800 = vrcp.f32 %v9149_v45  ;;  %v1999_v49 = vmul.f32 %v9115_v4, %v1998_v14  ;;  %v1320_v13 = vsub.f32 0.0, %v9152_v30  ;;  %15182 = vst [vmem:[#allocation52_spill] sm:$0xff] %v9178_v42  ;;  %vm2002_vm10 = vweird.f32 %v9115_v4 }
 0x109   : > { %v1475_v43 = vadd.f32 %v7791_v37, %v1474_v24  ;;  %7802 = vpow2.f32 %v1329_v50  ;;  %v9183_v24 = vor.u32 1.1754944e-38, %v2007_v57  ;;  %v3250_v51 = vsel %vm485_vm2, 1, %v15179_v53 }
 0x10a   : > { %vm9191_vm11 = vcmp.eq.f32.partialorder %v2005_v20, 8.507059e+37  ;;  %v1497_v14 = vand.u32 2147483648, %v9135_v3  ;;  %v1399_v50 = vmul.f32 1.442695, %v1320_v13  ;;  %3325 = vperm.xlu0 %7770, %v3250_v51   ;;  %v2000_v59 = vadd.f32 %v9115_v4, %v1999_v49 }
 0x10b   : > { %v1479_v21 = vsel %vm1478_vm4, %v7791_v37, %v1475_v43  ;;  %v9169_v37 = vadd.s32 304, %v8963_v10  ;;  %v9198_v43 = vpop.permute.xlu0 %2395  ;;  %vm2016_vm14 = vweird.f32 %v9149_v45  ;;  %v2020_v57 = vand.u32 2147483647, %v9149_v45  ;;  %v9212_v49 = vpop.permute.xlu2 %2419  ;;  %vm9230_vm4 = vmor %vm2001_vm7, %vm2002_vm10 }
 0x10c   : > { %v1484_v25 = vsel %vm1481_vm5, %v1483_v60, %v1479_v21  ;;  %15185 = vst [vmem:[#allocation53_spill] sm:$0xff] %v9198_v43  ;;  %v1193_v60 = vpop.f32.mrf.mxu1  ;;  %v1085_v35 = vadd.f32 %v8878_v16, %v1084_v54  ;;  %v2022_v28 = vand.u32 2147483648, %v9149_v45  ;;  %7804 = vpow2.f32 %v1399_v50  ;;  %v8064_v50 = vld [vmem:[%s14557_s0 + $0x40] sm:$0xff] }
 0x10d   : > { %v1485_v27 = vmul.f32 %v1484_v25, %v8957_v7  ;;  %v9180_v0 = vpop.eup %7798  ;;  %v1495_v7 = vand.u32 2147483647, %v9135_v3  ;;  %vm600_vm12 = vcmp.ge.s32.totalorder %v9169_v37, %v8965_v18  ;;  %vm641_vm13 = vcmp.lt.s32.totalorder %v9169_v37, %v8967_v19  ;;  %v8062_v25 = vld [vmem:[%s14557_s0 + $0x60] sm:$0xff]  ;;  %15186 = vst [vmem:[#allocation54_spill] sm:$0xff] %v9212_v49  ;;  %v1087_v49 = vpop.f32.mrf.mxu0  ;;  %v7524_v37 = vld [vmem:[%s8483_s6 + $0xb4] sm:$0xf] }
 0x10e   : > { %v1487_v2 = vmul.f32 %v9180_v0, %v9135_v3  ;;  %v7801_v21 = vpop.eup %7800  ;;  %vm480_vm15 = vcmp.ge.s32.totalorder %v8062_v25, 2  ;;  %vm1492_vm0 = vweird.f32 %v9180_v0  ;;  %v9216_v13 = vadd.f32 %v1193_v60, %v1085_v35 }
 0x10f   : > { %v2123_v5 = vsel %vm9163_vm6, %v1485_v27, -inf  ;;  %v2012_v27 = vmul.f32 %v7801_v21, %v9149_v45  ;;  %v3245_v54 = vsel %vm480_vm15, 1, %v15179_v53  ;;  %v7803_v51 = vpop.eup %7802  ;;  %vm2017_vm1 = vweird.f32 %v7801_v21  ;;  %vm9266_vm15 = vmand %vm565_vm8, %vm606_vm9 }
 0x110   : > { %2195 = vst [vmem:[#allocation2 + $0x30] sm:$0xff] %v2123_v5  ;;  %v1488_v20 = vsub.f32 1.0, %v1487_v2  ;;  %3310 = vperm.xlu2 %7772, %v3245_v54   ;;  %v8063_v2 = vld [vmem:[%s14557_s0 + $0x48] sm:$0xff]  ;;  %vm476_vm3 = vcmp.ge.s32.totalorder %v8064_v50, 2  ;;  %v1286_v25 = vsub.f32 0.0, %v9216_v13  ;;  %vm1491_vm5 = vweird.f32 %v9135_v3  ;;  %vm9254_vm10 = vmor %vm2016_vm14, %vm2017_vm1 }
 0x111   : > { %vm477_vm2 = vcmp.ge.s32.totalorder %v8063_v2, 2  ;;  %v2013_v35 = vsub.f32 1.0, %v2012_v27  ;;  %v9241_v50 = vadd.s32 32, %v8963_v10  ;;  %v3241_v15 = vsel %vm476_vm3, 1, %v15179_v53  ;;  %vm1493_vm6 = vmor %vm1491_vm5, %vm1492_vm0 }
 0x112   : > { %v1489_v5 = vmul.f32 %v9180_v0, %v1488_v20  ;;  %v9234_v20 = vadd.f32 1.0, %v7803_v51  ;;  %v3242_v54 = vsel %vm477_vm2, 1, %v15179_v53  ;;  %vm1496_vm7 = vcmp.eq.f32.partialorder %v1495_v7, 8.507059e+37  ;;  %v7805_v33 = vpop.eup %7804  ;;  %3298 = vperm.xlu0 %7770, %v3241_v15   ;;  %vm9289_vm8 = vmand %vm600_vm12, %vm641_vm13 }
 0x113   : > { %3301 = vperm.xlu1 %7771, %v3242_v54   ;;  %v1498_v27 = vor.u32 1.1754944e-38, %v1497_v14  ;;  %v2014_v51 = vmul.f32 %v7801_v21, %v2013_v35  ;;  %v2004_v3 = vsel %vm9230_vm4, %v9115_v4, %v2000_v59  ;;  %v2023_v42 = vor.u32 1.1754944e-38, %v2022_v28  ;;  %v9258_v14 = vpop.permute.xlu1 %2416  ;;  %v9273_v60 = vpop.permute.xlu0 %2404 }
 0x114   : > { %v1490_v2 = vadd.f32 %v9180_v0, %v1489_v5  ;;  %7806 = vrcp.f32 %v9234_v20  ;;  %v1331_v7 = vmul.f32 1.442695, %v1286_v25  ;;  %15191 = vst [vmem:[#allocation55_spill] sm:$0xff] %v9258_v14  ;;  %vm2021_vm14 = vcmp.eq.f32.partialorder %v2020_v57, 8.507059e+37  ;;  %v1196_v35 = vpop.f32.mrf.mxu1  ;;  %v6975_v57 = vld [vmem:[%s8483_s6 + $0xb0] sm:$0xf] }
 0x115   : > { %v9270_v59 = vadd.f32 1.0, %v7805_v33  ;;  %15194 = vst [vmem:[#allocation56_spill] sm:$0xff] %v9273_v60  ;;  %v2009_v34 = vsel %vm9191_vm11, %v9183_v24, %v2004_v3  ;;  %v9294_v24 = vadd.s32 312, %v8963_v10  ;;  %vm566_vm9 = vcmp.ge.s32.totalorder %v9241_v50, %v8965_v18  ;;  %v7528_v14 = vld [vmem:[%s8483_s6 + $0xd4] sm:$0xf] }
 0x116   : > { %v1494_v5 = vsel %vm1493_vm6, %v9180_v0, %v1490_v2  ;;  %v2015_v0 = vadd.f32 %v7801_v21, %v2014_v51  ;;  %7808 = vpow2.f32 %v1331_v7  ;;  %v6977_v51 = vld [vmem:[%s8483_s6 + $0xb8] sm:$0xf0]  ;;  %v9308_v3 = vmul.f32 %v2009_v34, %v8959_v8 }
 0x117   : > { %v1499_v45 = vsel %vm1496_vm7, %v1498_v27, %v1494_v5  ;;  %7810 = vrcp.f32 %v9270_v59  ;;  %v9301_v27 = vpop.permute.xlu2 %2428  ;;  %vm607_vm11 = vcmp.lt.s32.totalorder %v9241_v50, %v8967_v19  ;;  %vm1506_vm12 = vweird.f32 %v9234_v20 }
 0x118   : > { %v1500_v28 = vmul.f32 %v1499_v45, %v9022_v44  ;;  %v2019_v25 = vsel %vm9254_vm10, %v7801_v21, %v2015_v0  ;;  %v7525_v21 = vld [vmem:[%s8483_s6 + $0xb4] sm:$0xf0]  ;;  %15197 = vst [vmem:[#allocation57_spill] sm:$0xff] %v9301_v27  ;;  %v1510_v5 = vand.u32 2147483647, %v9234_v20  ;;  %v1088_v54 = vadd.f32 %v8878_v16, %v1087_v49  ;;  %v1089_v49 = vpop.f32.mrf.mxu0 }
 0x119   : > { %v2024_v12 = vsel %vm2021_vm14, %v2023_v42, %v2019_v25  ;;  %v6976_v7 = vor.u32 %v7525_v21, %v6975_v57  ;;  %v1512_v45 = vand.u32 2147483648, %v9234_v20  ;;  %vm601_vm13 = vcmp.ge.s32.totalorder %v9294_v24, %v8965_v18  ;;  %v9338_v44 = vld [vmem:[%s14557_s0 + $0x98] sm:$0xff] }
 0x11a   : > { %v2124_v33 = vsel %vm9266_vm15, %v1500_v28, -inf  ;;  %v9298_v2 = vpop.eup %7806  ;;  %v2025_v15 = vmul.f32 %v2024_v12, %v9038_v55  ;;  %vm642_vm0 = vcmp.lt.s32.totalorder %v9294_v24, %v8967_v19  ;;  %v6980_v0 = vor.u32 %v7524_v37, %v6977_v51  ;;  %v9327_v28 = vld [vmem:[%s14557_s0 + $0x90] sm:$0xff]  ;;  %vm9371_vm15 = vmand %vm566_vm9, %vm607_vm11 }
 0x11b   : > { %2196 = vst [vmem:[#allocation2 + $0x38] sm:$0xff] %v2124_v33  ;;  %v1502_v42 = vmul.f32 %v9298_v2, %v9234_v20  ;;  %vm406_vm1 = vcmp.lt.s32.totalorder %v9327_v28, 14  ;;  %vm2031_vm2 = vweird.f32 %v9270_v59  ;;  %v9333_v33 = vadd.f32 %v1196_v35, %v1088_v54  ;;  %1126 = vmatmul.bf16.gmra.mxu0 %v6976_v7 }
 0x11c   : > { %v2159_v55 = vsel %vm9289_vm8, %v2025_v15, -inf  ;;  %v7809_v4 = vpop.eup %7808  ;;  %vm447_vm3 = vcmp.ge.s32.totalorder %v9338_v44, 1  ;;  %vm1507_vm4 = vweird.f32 %v9298_v2  ;;  %1235 = vmatmul.bf16.gmra.mxu1 %v6980_v0  ;;  %v2931_v21 = vsel %vm406_vm1, 1, %v15179_v53  ;;  %v9345_v15 = vpop.permute.xlu1 %2425  ;;  %v8067_v0 = vld [vmem:[%s14557_s0 + $0x68] sm:$0xff]  ;;  %vm9403_vm1 = vmand %vm601_vm13, %vm642_vm0 }
 0x11d   : > { %2231 = vst [vmem:[#allocation2 + $0x150] sm:$0xff] %v2159_v55  ;;  %v1503_v8 = vsub.f32 1.0, %v1502_v42  ;;  %v7811_v34 = vpop.eup %7810  ;;  %v9331_v25 = vadd.f32 1.0, %v7809_v4  ;;  %v2035_v35 = vand.u32 2147483647, %v9270_v59  ;;  %v2037_v37 = vand.u32 2147483648, %v9270_v59  ;;  %3008 = vperm.xlu2 %7772, %v2931_v21   ;;  %v9351_v55 = vpop.permute.xlu0 %2413  ;;  %vm1508_vm6 = vmor %vm1506_vm12, %vm1507_vm4 }
 0x11e   : > { %v2027_v57 = vmul.f32 %v7811_v34, %v9270_v59  ;;  %15198 = vst [vmem:[#allocation58_spill] sm:$0xff] %v9345_v15  ;;  %vm2032_vm5 = vweird.f32 %v7811_v34  ;;  %v1287_v54 = vsub.f32 0.0, %v9333_v33  ;;  %v2612_v7 = vsel %vm447_vm3, 1, %v15179_v53  ;;  %v1198_v4 = vpop.f32.mrf.mxu1 }
 0x11f   : > { %v1504_v12 = vmul.f32 %v9298_v2, %v1503_v8  ;;  %7812 = vrcp.f32 %v9331_v25  ;;  %15199 = vst [vmem:[#allocation59_spill] sm:$0xff] %v9351_v55  ;;  %vm1511_vm7 = vcmp.eq.f32.partialorder %v1510_v5, 8.507059e+37  ;;  %v1513_v8 = vor.u32 1.1754944e-38, %v1512_v45  ;;  %2691 = vperm.xlu1 %7771, %v2612_v7   ;;  %vm9380_vm14 = vmor %vm2031_vm2, %vm2032_vm5  ;;  %v9384_v50 = vpop.permute.xlu2 %2637 }
 0x120   : > { %v2028_v42 = vsub.f32 1.0, %v2027_v57  ;;  %vm481_vm10 = vcmp.ge.s32.totalorder %v8067_v0, 2  ;;  %v1333_v45 = vmul.f32 1.442695, %v1287_v54  ;;  %v2038_v27 = vor.u32 1.1754944e-38, %v2037_v37  ;;  %15204 = vst [vmem:[#allocation60_spill] sm:$0xff] %v9384_v50 }
 0x121   : > { %v1505_v51 = vadd.f32 %v9298_v2, %v1504_v12  ;;  %v546_v12 = vadd.s32 296, %v8963_v10  ;;  %v3246_v21 = vsel %vm481_vm10, 1, %v15179_v53  ;;  %vm2036_vm11 = vcmp.eq.f32.partialorder %v2035_v35, 8.507059e+37 }
 0x122   : > { %v2029_v5 = vmul.f32 %v7811_v34, %v2028_v42  ;;  %3313 = vperm.xlu0 %7770, %v3246_v21   ;;  %7814 = vpow2.f32 %v1333_v45  ;;  %v1090_v54 = vadd.f32 %v8878_v16, %v1089_v49  ;;  %v1527_v35 = vand.u32 2147483648, %v9331_v25 }
 0x123   : > { %v1509_v20 = vsel %vm1508_vm6, %v9298_v2, %v1505_v51  ;;  %vm599_vm8 = vcmp.ge.s32.totalorder %v546_v12, %v8965_v18  ;;  %vm640_vm9 = vcmp.lt.s32.totalorder %v546_v12, %v8967_v19  ;;  %vm487_vm2 = vcmp.ge.s32.totalorder %v9338_v44, 2 }
 0x124   : > { %v1514_v7 = vsel %vm1511_vm7, %v1513_v8, %v1509_v20  ;;  %v2030_v51 = vadd.f32 %v7811_v34, %v2029_v5  ;;  %vm680_vm12 = vmand %vm599_vm8, %vm640_vm9  ;;  %v514_v20 = vadd.s32 40, %v8963_v10  ;;  %v9409_v57 = vadd.f32 %v1198_v4, %v1090_v54  ;;  %v9414_v21 = vpop.permute.xlu1 %2634 }
 0x125   : > { %v1515_v2 = vmul.f32 %v1514_v7, %v9132_v32  ;;  %v7813_v42 = vpop.eup %7812  ;;  %v2158_v59 = vsel %vm680_vm12, %v9308_v3, -inf  ;;  %v1092_v32 = vpop.f32.mrf.mxu0  ;;  %vm486_vm3 = vcmp.ge.s32.totalorder %v9327_v28, 2  ;;  %15207 = vst [vmem:[#allocation61_spill] sm:$0xff] %v9414_v21  ;;  %v3252_v7 = vsel %vm487_vm2, 1, %v15179_v53 }
 0x126   : > { %v2034_v8 = vsel %vm9380_vm14, %v7811_v34, %v2030_v51  ;;  %v1517_v12 = vmul.f32 %v7813_v42, %v9331_v25  ;;  %2230 = vst [vmem:[#allocation2 + $0x148] sm:$0xff] %v2158_v59  ;;  %v1525_v34 = vand.u32 2147483647, %v9331_v25  ;;  %v1288_v24 = vsub.f32 0.0, %v9409_v57  ;;  %3331 = vperm.xlu2 %7772, %v3252_v7   ;;  %v1201_v51 = vpop.f32.mrf.mxu1  ;;  %v6985_v7 = vld [vmem:[%s8483_s6 + $0xc8] sm:$0xf0] }
 0x127   : > { %v2125_v37 = vsel %vm9371_vm15, %v1515_v2, -inf  ;;  %v2039_v49 = vsel %vm2036_vm11, %v2038_v27, %v2034_v8  ;;  %v3251_v27 = vsel %vm486_vm3, 1, %v15179_v53  ;;  %vm407_vm13 = vcmp.lt.s32.totalorder %v9338_v44, 14  ;;  %v9422_v2 = vpop.permute.xlu0 %2422  ;;  %v2233_v8 = vld [vmem:[#allocation2 + $0x21] sm:$0xff]  ;;  %v9431_v3 = vpop.permute.xlu2 %2646 }
 0x128   : > { %2197 = vst [vmem:[#allocation2 + $0x40] sm:$0xff] %v2125_v37  ;;  %v2040_v5 = vmul.f32 %v2039_v49, %v9152_v30  ;;  %v1518_v45 = vsub.f32 1.0, %v1517_v12  ;;  %v7815_v0 = vpop.eup %7814  ;;  %vm1522_vm0 = vweird.f32 %v7813_v42  ;;  %3328 = vperm.xlu1 %7771, %v3251_v27   ;;  %v2932_v28 = vsel %vm407_vm13, 1, %v15179_v53  ;;  %v6983_v49 = vld [vmem:[%s8483_s6 + $0xc0] sm:$0xf] }
 0x129   : > { %15208 = vst [vmem:[#allocation62_spill] sm:$0xff] %v9422_v2  ;;  %v9425_v59 = vadd.f32 1.0, %v7815_v0  ;;  %v1335_v54 = vmul.f32 1.442695, %v1288_v24  ;;  %vm567_vm4 = vcmp.ge.s32.totalorder %v514_v20, %v8965_v18  ;;  %vm608_vm5 = vcmp.lt.s32.totalorder %v514_v20, %v8967_v19  ;;  %v7526_v24 = vld [vmem:[%s8483_s6 + $0xc4] sm:$0xf] }
 0x12a   : > { %v2160_v4 = vsel %vm9403_vm1, %v2040_v5, -inf  ;;  %v1519_v30 = vmul.f32 %v7813_v42, %v1518_v45  ;;  %3011 = vperm.xlu0 %7770, %v2932_v28   ;;  %vm1521_vm6 = vweird.f32 %v9331_v25  ;;  %v8326_v37 = vmov -inf   ;;  %15209 = vst [vmem:[#allocation63_spill] sm:$0xff] %v9431_v3  ;;  %v7527_v5 = vld [vmem:[%s8483_s6 + $0xc4] sm:$0xf0]  ;;  %vm9443_vm14 = vmand %vm567_vm4, %vm608_vm5  ;;  %v9455_v20 = vld [vmem:[%s14557_s0 + $0xa0] sm:$0xff] }
 0x12b   : > { %2232 = vst [vmem:[#allocation2 + $0x158] sm:$0xff] %v2160_v4  ;;  %vm1523_vm7 = vmor %vm1521_vm6, %vm1522_vm0  ;;  %v1528_v12 = vor.u32 1.1754944e-38, %v1527_v35  ;;  %7816 = vrcp.f32 %v9425_v59  ;;  %vm1526_vm10 = vcmp.eq.f32.partialorder %v1525_v34, 8.507059e+37  ;;  %vm14636_vm15 = vcmp.eq.s32.totalorder %v8817_v1, 1 }
 0x12c   : > { %v1520_v44 = vadd.f32 %v7813_v42, %v1519_v30  ;;  %686 = vst [vmem:[#allocation2 + $0x18] sm:$0xff] %v8326_v37  ;;  %7818 = vpow2.f32 %v1335_v54  ;;  %v1093_v34 = vadd.f32 %v8878_v16, %v1092_v32  ;;  %vm14629_vm8 = vcmp.eq.s32.totalorder %v9414_v21, 1  ;;  %v9466_v16 = vld [vmem:[%s14557_s0 + $0xa8] sm:$0xff]  ;;  %v9469_v32 = vpop.permute.xlu1 %2643 }
 0x12d   : > { %687 = vst [vmem:[#allocation2 + $0x160] sm:$0xff] %v8326_v37  ;;  %v1094_v0 = vpop.f32.mrf.mxu0  ;;  %v6984_v4 = vor.u32 %v7527_v5, %v6983_v49  ;;  %v6988_v30 = vor.u32 %v7526_v24, %v6985_v7  ;;  %vm408_vm9 = vcmp.lt.s32.totalorder %v9455_v20, 14  ;;  %vm449_vm11 = vcmp.ge.s32.totalorder %v9466_v16, 1 }
 0x12e   : > { %v1524_v45 = vsel %vm1523_vm7, %v7813_v42, %v1520_v44  ;;  %v2473_v42 = vsel %vm14636_vm15, %v2233_v8, -inf  ;;  %v9460_v28 = vadd.f32 %v1201_v51, %v1093_v34  ;;  %v2933_v54 = vsel %vm408_vm9, 1, %v15179_v53  ;;  %15212 = vst [vmem:[#allocation64_spill] sm:$0xff] %v9469_v32  ;;  %v1203_v7 = vpop.f32.mrf.mxu1 }
 0x12f   : > { %v1529_v35 = vsel %vm1526_vm10, %v1528_v12, %v1524_v45  ;;  %v2513_v8 = vmax.f32 %v9071_v61, %v2473_v42  ;;  %1131 = vmatmul.bf16.gmra.mxu0 %v6984_v4  ;;  %1240 = vmatmul.bf16.gmra.mxu1 %v6988_v30  ;;  %v2614_v51 = vsel %vm449_vm11, 1, %v15179_v53  ;;  %vm448_vm12 = vcmp.ge.s32.totalorder %v9455_v20, 1  ;;  %v9477_v45 = vpop.permute.xlu0 %2431  ;;  %v9487_v30 = vpop.permute.xlu2 %2655 }
 0x130   : > { %v1530_v27 = vmul.f32 %v1529_v35, %v9216_v13  ;;  %15213 = vst [vmem:[#allocation65_spill] sm:$0xff] %v9477_v45  ;;  %v1289_v24 = vsub.f32 0.0, %v9460_v28  ;;  %3014 = vperm.xlu2 %7772, %v2933_v54   ;;  %2697 = vperm.xlu1 %7771, %v2614_v51   ;;  %v2613_v35 = vsel %vm448_vm12, 1, %v15179_v53  ;;  %v1542_v4 = vand.u32 2147483648, %v9425_v59 }
 0x131   : > { %v7817_v44 = vpop.eup %7816  ;;  %15215 = vst [vmem:[#allocation67_spill] sm:$0xff] %v9487_v30  ;;  %v1540_v54 = vand.u32 2147483647, %v9425_v59  ;;  %vm1536_vm13 = vweird.f32 %v9425_v59  ;;  %vm489_vm5 = vcmp.ge.s32.totalorder %v9466_v16, 2  ;;  %vm488_vm7 = vcmp.ge.s32.totalorder %v9455_v20, 2 }
 0x132   : > { %v2126_v13 = vsel %vm9443_vm14, %v1530_v27, -inf  ;;  %v7819_v12 = vpop.eup %7818  ;;  %v1532_v49 = vmul.f32 %v7817_v44, %v9425_v59  ;;  %v515_v27 = vadd.s32 48, %v8963_v10  ;;  %v1337_v34 = vmul.f32 1.442695, %v1289_v24  ;;  %2694 = vperm.xlu0 %7770, %v2613_v35   ;;  %v6993_v20 = vld [vmem:[%s8483_s6 + $0xd8] sm:$0xf0] }
 0x133   : > { %2198 = vst [vmem:[#allocation2 + $0x48] sm:$0xff] %v2126_v13  ;;  %v2553_v37 = vld [vmem:[#allocation2 + $0x1f] sm:$0xff]  ;;  %v9480_v61 = vadd.f32 1.0, %v7819_v12  ;;  %vm1537_vm1 = vweird.f32 %v7817_v44  ;;  %v1543_v51 = vor.u32 1.1754944e-38, %v1542_v4  ;;  %vm1541_vm4 = vcmp.eq.f32.partialorder %v1540_v54, 8.507059e+37 }
 0x134   : > { %v2793_v5 = vsel %vm14629_vm8, %v2553_v37, -inf  ;;  %v1533_v42 = vsub.f32 1.0, %v1532_v49  ;;  %vm568_vm2 = vcmp.ge.s32.totalorder %v515_v27, %v8965_v18  ;;  %vm609_vm3 = vcmp.lt.s32.totalorder %v515_v27, %v8967_v19  ;;  %vm1538_vm0 = vmor %vm1536_vm13, %vm1537_vm1  ;;  %v9497_v12 = vld [vmem:[%s14560_s3] ss:$0 sm:$0xff]  ;;  %v9501_v24 = vpop.permute.xlu1 %2652 }
 0x135   : > { %v9482_v25 = vmax.f32 %v2513_v8, %v2793_v5  ;;  %7820 = vrcp.f32 %v9480_v61  ;;  %v1097_v8 = vpop.f32.mrf.mxu0  ;;  %v1095_v49 = vadd.f32 %v9497_v12, %v1094_v0  ;;  %15216 = vst [vmem:[#allocation68_spill] sm:$0xff] %v9501_v24  ;;  %vm9503_vm6 = vmand %vm568_vm2, %vm609_vm3  ;;  %vm409_vm10 = vcmp.lt.s32.totalorder %v9466_v16, 14 }
 0x136   : > { %v1534_v13 = vmul.f32 %v7817_v44, %v1533_v42  ;;  %7822 = vpow2.f32 %v1337_v34  ;;  %v3254_v34 = vsel %vm489_vm5, 1, %v15179_v53  ;;  %v1206_v54 = vpop.f32.mrf.mxu1  ;;  %vm1551_vm12 = vweird.f32 %v9480_v61 }
 0x137   : > { %15214 = vst [vmem:[#allocation66_spill] sm:$0xff] %v9482_v25  ;;  %v9507_v42 = vadd.f32 %v1203_v7, %v1095_v49  ;;  %v9525_v45 = vpop.permute.xlu2 %2664  ;;  %v6996_v15 = vor.u32 %v7528_v14, %v6993_v20  ;;  %v521_v46 = vadd.s32 96, %v8963_v10 }
 0x138   : > { %v1535_v37 = vadd.f32 %v7817_v44, %v1534_v13  ;;  %v9512_v13 = vpop.permute.xlu0 %2640  ;;  %3337 = vperm.xlu2 %7772, %v3254_v34   ;;  %v1557_v34 = vand.u32 2147483648, %v9480_v61  ;;  %15220 = vst [vmem:[#allocation70_spill] sm:$0xff] %v9525_v45 }
 0x139   : > { %15219 = vst [vmem:[#allocation69_spill] sm:$0xff] %v9512_v13  ;;  %v1290_v49 = vsub.f32 0.0, %v9507_v42 }
 0x13a   : > { %v1539_v5 = vsel %vm1538_vm0, %v7817_v44, %v1535_v37  ;;  %v516_v37 = vadd.s32 56, %v8963_v10 }
 0x13b   : > { %v7821_v35 = vpop.eup %7820  ;;  %v1544_v59 = vsel %vm1541_vm4, %v1543_v51, %v1539_v5  ;;  %v1555_v51 = vand.u32 2147483647, %v9480_v61  ;;  %v1339_v27 = vmul.f32 1.442695, %v1290_v49  ;;  %v1558_v49 = vor.u32 1.1754944e-38, %v1557_v34 }
 0x13c   : > { %v7823_v4 = vpop.eup %7822  ;;  %v1545_v0 = vmul.f32 %v1544_v59, %v9333_v33  ;;  %v1547_v44 = vmul.f32 %v7821_v35, %v9480_v61  ;;  %v6991_v59 = vld [vmem:[%s8483_s6 + $0xd0] sm:$0xf]  ;;  %vm1552_vm14 = vweird.f32 %v7821_v35  ;;  %vm569_vm9 = vcmp.ge.s32.totalorder %v516_v37, %v8965_v18  ;;  %v9546_v61 = vpop.permute.xlu1 %2661 }
 0x13d   : > { %v9516_v7 = vadd.f32 1.0, %v7823_v4  ;;  %v7529_v4 = vld [vmem:[%s8483_s6 + $0xd4] sm:$0xf0]  ;;  %vm610_vm11 = vcmp.lt.s32.totalorder %v516_v37, %v8967_v19  ;;  %v1099_v55 = vpop.f32.mrf.mxu0  ;;  %vm1553_vm1 = vmor %vm1551_vm12, %vm1552_vm14  ;;  %vm1556_vm2 = vcmp.eq.f32.partialorder %v1555_v51, 8.507059e+37  ;;  %15221 = vst [vmem:[#allocation71_spill] sm:$0xff] %v9546_v61 }
 0x13e   : > { %v2127_v5 = vsel %vm9503_vm6, %v1545_v0, -inf  ;;  %v1548_v33 = vsub.f32 1.0, %v1547_v44  ;;  %v3253_v0 = vsel %vm488_vm7, 1, %v15179_v53  ;;  %v2934_v44 = vsel %vm409_vm10, 1, %v15179_v53  ;;  %vm9552_vm0 = vmand %vm569_vm9, %vm610_vm11  ;;  %v1208_v37 = vpop.f32.mrf.mxu1 }
 0x13f   : > { %2199 = vst [vmem:[#allocation2 + $0x50] sm:$0xff] %v2127_v5  ;;  %7824 = vrcp.f32 %v9516_v7  ;;  %3334 = vperm.xlu1 %7771, %v3253_v0   ;;  %3017 = vperm.xlu0 %7770, %v2934_v44   ;;  %v1098_v5 = vadd.f32 %v9497_v12, %v1097_v8  ;;  %v8071_v0 = vld [vmem:[%s14557_s0 + $0xb0] sm:$0xff]  ;;  %v1570_v44 = vand.u32 2147483647, %v9516_v7  ;;  %vm1566_vm10 = vweird.f32 %v9516_v7 }
 0x140   : > { %v1549_v2 = vmul.f32 %v7821_v35, %v1548_v33  ;;  %7826 = vpow2.f32 %v1339_v27  ;;  %v6992_v33 = vor.u32 %v7529_v4, %v6991_v59  ;;  %vm410_vm3 = vcmp.lt.s32.totalorder %v8071_v0, 14  ;;  %1245 = vmatmul.bf16.gmra.mxu1 %v6996_v15  ;;  %v9560_v4 = vpop.permute.xlu0 %2649 }
 0x141   : > { %v9538_v1 = vadd.f32 %v1206_v54, %v1098_v5  ;;  %v2935_v54 = vsel %vm410_vm3, 1, %v15179_v53  ;;  %v517_v59 = vadd.s32 64, %v8963_v10  ;;  %15224 = vst [vmem:[#allocation72_spill] sm:$0xff] %v9560_v4  ;;  %vm450_vm4 = vcmp.ge.s32.totalorder %v8071_v0, 1 }
 0x142   : > { %v1550_v16 = vadd.f32 %v7821_v35, %v1549_v2  ;;  %v8072_v2 = vld [vmem:[%s14557_s0 + $0xb8] sm:$0xff]  ;;  %1136 = vmatmul.bf16.gmra.mxu0 %v6992_v33  ;;  %3020 = vperm.xlu2 %7772, %v2935_v54   ;;  %v1572_v5 = vand.u32 2147483648, %v9516_v7  ;;  %vm9577_vm14 = vcmp.eq.f32.partialorder %v1570_v44, 8.507059e+37  ;;  %vm490_vm11 = vcmp.ge.s32.totalorder %v8071_v0, 2 }
 0x143   : > { %vm451_vm13 = vcmp.ge.s32.totalorder %v8072_v2, 1  ;;  %v1291_v27 = vsub.f32 0.0, %v9538_v1  ;;  %vm570_vm5 = vcmp.ge.s32.totalorder %v517_v59, %v8965_v18  ;;  %vm611_vm7 = vcmp.lt.s32.totalorder %v517_v59, %v8967_v19 }
 0x144   : > { %v1554_v21 = vsel %vm1553_vm1, %v7821_v35, %v1550_v16  ;;  %vm491_vm9 = vcmp.ge.s32.totalorder %v8072_v2, 2  ;;  %vm411_vm1 = vcmp.lt.s32.totalorder %v8072_v2, 14 }
 0x145   : > { %v7825_v8 = vpop.eup %7824  ;;  %v1559_v35 = vsel %vm1556_vm2, %v1558_v49, %v1554_v21  ;;  %v2616_v21 = vsel %vm451_vm13, 1, %v15179_v53  ;;  %v1341_v16 = vmul.f32 1.442695, %v1291_v27  ;;  %v9569_v49 = vpop.permute.xlu2 %2673  ;;  %vm651_vm2 = vmand %vm570_vm5, %vm611_vm7 }
 0x146   : > { %v1560_v51 = vmul.f32 %v1559_v35, %v9409_v57  ;;  %v1562_v34 = vmul.f32 %v7825_v8, %v9516_v7  ;;  %v7827_v15 = vpop.eup %7826  ;;  %15225 = vst [vmem:[#allocation73_spill] sm:$0xff] %v9569_v49  ;;  %v2615_v35 = vsel %vm450_vm4, 1, %v15179_v53  ;;  %vm1567_vm6 = vweird.f32 %v7825_v8  ;;  %v1102_v27 = vpop.f32.mrf.mxu0  ;;  %v7531_v7 = vld [vmem:[%s8483_s6 + $0xe4] sm:$0xf0] }
 0x147   : > { %v9571_v33 = vadd.f32 1.0, %v7827_v15  ;;  %2703 = vperm.xlu1 %7771, %v2616_v21   ;;  %7828 = vpow2.f32 %v1341_v16  ;;  %2700 = vperm.xlu0 %7770, %v2615_v35   ;;  %vm1568_vm12 = vmor %vm1566_vm10, %vm1567_vm6  ;;  %v1573_v21 = vor.u32 1.1754944e-38, %v1572_v5  ;;  %v3256_v15 = vsel %vm491_vm9, 1, %v15179_v53  ;;  %v9589_v35 = vpop.permute.xlu1 %2670 }
 0x148   : > { %v2128_v57 = vsel %vm9552_vm0, %v1560_v51, -inf  ;;  %v1563_v20 = vsub.f32 1.0, %v1562_v34  ;;  %v1100_v34 = vadd.f32 %v9497_v12, %v1099_v55  ;;  %v3255_v16 = vsel %vm490_vm11, 1, %v15179_v53  ;;  %15228 = vst [vmem:[#allocation74_spill] sm:$0xff] %v9589_v35  ;;  %v7530_v55 = vld [vmem:[%s8483_s6 + $0xe4] sm:$0xf]  ;;  %v9602_v2 = vpop.permute.xlu0 %2658 }
 0x149   : > { %2200 = vst [vmem:[#allocation2 + $0x58] sm:$0xff] %v2128_v57  ;;  %7830 = vrcp.f32 %v9571_v33  ;;  %v6999_v57 = vld [vmem:[%s8483_s6 + $0xe0] sm:$0xf]  ;;  %v1103_v59 = vadd.f32 %v9497_v12, %v1102_v27  ;;  %vm1581_vm7 = vweird.f32 %v9571_v33 }
 0x14a   : > { %v1564_v54 = vmul.f32 %v7825_v8, %v1563_v20  ;;  %v9586_v20 = vadd.f32 %v1208_v37, %v1100_v34  ;;  %3343 = vperm.xlu2 %7772, %v3256_v15   ;;  %15229 = vst [vmem:[#allocation75_spill] sm:$0xff] %v9602_v2  ;;  %v1211_v15 = vpop.f32.mrf.mxu1  ;;  %v7000_v14 = vor.u32 %v7531_v7, %v6999_v57  ;;  %v1587_v57 = vand.u32 2147483648, %v9571_v33 }
 0x14b   : > { %v9620_v7 = vadd.f32 %v1211_v15, %v1103_v59 }
 0x14c   : > { %v1565_v51 = vadd.f32 %v7825_v8, %v1564_v54  ;;  %v7001_v54 = vld [vmem:[%s8483_s6 + $0xe8] sm:$0xf0]  ;;  %v1292_v34 = vsub.f32 0.0, %v9586_v20 }
 0x14d   : > { %v7829_v37 = vpop.eup %7828 }
 0x14e   : > { %v1569_v44 = vsel %vm1568_vm12, %v7825_v8, %v1565_v51  ;;  %v2936_v8 = vsel %vm411_vm1, 1, %v15179_v53  ;;  %v518_v51 = vadd.s32 72, %v8963_v10  ;;  %v9605_v13 = vadd.f32 1.0, %v7829_v37  ;;  %v1104_v37 = vpop.f32.mrf.mxu0 }
 0x14f   : > { %v1574_v0 = vsel %vm9577_vm14, %v1573_v21, %v1569_v44  ;;  %v7831_v25 = vpop.eup %7830  ;;  %3340 = vperm.xlu1 %7771, %v3255_v16   ;;  %v7004_v21 = vor.u32 %v7530_v55, %v7001_v54  ;;  %3023 = vperm.xlu0 %7770, %v2936_v8   ;;  %v1343_v27 = vmul.f32 1.442695, %v1292_v34  ;;  %v1585_v8 = vand.u32 2147483647, %v9571_v33 }
 0x150   : > { %v1575_v5 = vmul.f32 %v1574_v0, %v9460_v28  ;;  %v1577_v32 = vmul.f32 %v7831_v25, %v9571_v33  ;;  %v8073_v28 = vld [vmem:[%s14557_s0 + $0xc0] sm:$0xff]  ;;  %v9615_v0 = vpop.permute.xlu2 %2682  ;;  %7832 = vrcp.f32 %v9605_v13  ;;  %vm571_vm13 = vcmp.ge.s32.totalorder %v518_v51, %v8965_v18  ;;  %v9638_v30 = vpop.permute.xlu0 %2667 }
 0x151   : > { %vm412_vm3 = vcmp.lt.s32.totalorder %v8073_v28, 14  ;;  %15230 = vst [vmem:[#allocation76_spill] sm:$0xff] %v9615_v0  ;;  %1250 = vmatmul.bf16.gmra.mxu1 %v7004_v21  ;;  %vm1582_vm0 = vweird.f32 %v7831_v25  ;;  %7834 = vpow2.f32 %v1343_v27  ;;  %vm612_vm4 = vcmp.lt.s32.totalorder %v518_v51, %v8967_v19 }
 0x152   : > { %v9608_v44 = vsel %vm651_vm2, %v1575_v5, -inf  ;;  %v1578_v16 = vsub.f32 1.0, %v1577_v32  ;;  %1141 = vmatmul.bf16.gmra.mxu0 %v7000_v14  ;;  %v2937_v55 = vsel %vm412_vm3, 1, %v15179_v53  ;;  %v1293_v32 = vsub.f32 0.0, %v9620_v7  ;;  %v8074_v5 = vld [vmem:[%s14557_s0 + $0xc8] sm:$0xff]  ;;  %v9632_v14 = vpop.permute.xlu1 %2679  ;;  %vm1583_vm10 = vmor %vm1581_vm7, %vm1582_vm0  ;;  %15232 = vst [vmem:[#allocation78_spill] sm:$0xff] %v9638_v30  ;;  %v1213_v4 = vpop.f32.mrf.mxu1 }
 0x153   : > { %2201 = vst [vmem:[#allocation2 + $0x60] sm:$0xff] %v9608_v44  ;;  %3026 = vperm.xlu2 %7772, %v2937_v55   ;;  %vm453_vm5 = vcmp.ge.s32.totalorder %v8074_v5, 1  ;;  %vm452_vm6 = vcmp.ge.s32.totalorder %v8073_v28, 1  ;;  %v1105_v55 = vadd.f32 %v9497_v12, %v1104_v37  ;;  %vm493_vm14 = vcmp.ge.s32.totalorder %v8074_v5, 2  ;;  %vm652_vm11 = vmand %vm571_vm13, %vm612_vm4 }
 0x154   : > { %v1579_v54 = vmul.f32 %v7831_v25, %v1578_v16  ;;  %v2618_v15 = vsel %vm453_vm5, 1, %v15179_v53  ;;  %v2617_v59 = vsel %vm452_vm6, 1, %v15179_v53  ;;  %15231 = vst [vmem:[#allocation77_spill] sm:$0xff] %v9632_v14  ;;  %v1588_v16 = vor.u32 1.1754944e-38, %v1587_v57 }
 0x155   : > { %v1345_v27 = vmul.f32 1.442695, %v1293_v32  ;;  %vm1586_vm9 = vcmp.eq.f32.partialorder %v1585_v8, 8.507059e+37  ;;  %v1600_v32 = vand.u32 2147483647, %v9605_v13  ;;  %vm492_vm12 = vcmp.ge.s32.totalorder %v8073_v28, 2 }
 0x156   : > { %v1580_v34 = vadd.f32 %v7831_v25, %v1579_v54  ;;  %v7833_v21 = vpop.eup %7832  ;;  %v519_v54 = vadd.s32 80, %v8963_v10  ;;  %vm413_vm2 = vcmp.lt.s32.totalorder %v8074_v5, 14  ;;  %vm1596_vm0 = vweird.f32 %v9605_v13 }
 0x157   : > { %2709 = vperm.xlu1 %7771, %v2618_v15   ;;  %v1592_v33 = vmul.f32 %v7833_v21, %v9605_v13  ;;  %2706 = vperm.xlu0 %7770, %v2617_v59   ;;  %7836 = vpow2.f32 %v1345_v27  ;;  %v7835_v8 = vpop.eup %7834  ;;  %v9647_v15 = vadd.f32 %v1213_v4, %v1105_v55  ;;  %vm1597_vm1 = vweird.f32 %v7833_v21  ;;  %v1107_v55 = vpop.f32.mrf.mxu0 }
 0x158   : > { %v1584_v50 = vsel %vm1583_vm10, %v7831_v25, %v1580_v34  ;;  %v3258_v25 = vsel %vm493_vm14, 1, %v15179_v53  ;;  %v1602_v59 = vand.u32 2147483648, %v9605_v13  ;;  %v9650_v24 = vpop.permute.xlu2 %2996  ;;  %v9652_v51 = vadd.f32 1.0, %v7835_v8  ;;  %vm1598_vm4 = vmor %vm1596_vm0, %vm1597_vm1  ;;  %v7532_v13 = vld [vmem:[%s8483_s6 + $0xf4] sm:$0xf] }
 0x159   : > { %v1589_v57 = vsel %vm1586_vm9, %v1588_v16, %v1584_v50  ;;  %v1593_v34 = vsub.f32 1.0, %v1592_v33  ;;  %15233 = vst [vmem:[#allocation79_spill] sm:$0xff] %v9650_v24  ;;  %v3257_v50 = vsel %vm492_vm12, 1, %v15179_v53  ;;  %v1294_v60 = vsub.f32 0.0, %v9647_v15 }
 0x15a   : > { %v1590_v37 = vmul.f32 %v1589_v57, %v9507_v42  ;;  %vm572_vm3 = vcmp.ge.s32.totalorder %v519_v54, %v8965_v18  ;;  %vm613_vm13 = vcmp.lt.s32.totalorder %v519_v54, %v8967_v19  ;;  %7838 = vrcp.f32 %v9652_v51  ;;  %v7007_v57 = vld [vmem:[%s8483_s6 + $0xf0] sm:$0xf] }
 0x15b   : > { %v1594_v27 = vmul.f32 %v7833_v21, %v1593_v34  ;;  %3349 = vperm.xlu2 %7772, %v3258_v25   ;;  %v1347_v4 = vmul.f32 1.442695, %v1294_v60  ;;  %v2938_v28 = vsel %vm413_vm2, 1, %v15179_v53  ;;  %v1603_v5 = vor.u32 1.1754944e-38, %v1602_v59  ;;  %v7533_v25 = vld [vmem:[%s8483_s6 + $0xf4] sm:$0xf0]  ;;  %v9669_v34 = vpop.permute.xlu1 %2688  ;;  %vm653_vm6 = vmand %vm572_vm3, %vm613_vm13 }
 0x15c   : > { %v9655_v16 = vsel %vm652_vm11, %v1590_v37, -inf  ;;  %vm1601_vm5 = vcmp.eq.f32.partialorder %v1600_v32, 8.507059e+37  ;;  %15234 = vst [vmem:[#allocation80_spill] sm:$0xff] %v9669_v34  ;;  %v1108_v59 = vadd.f32 %v9497_v12, %v1107_v55  ;;  %v9681_v32 = vpop.permute.xlu0 %2676  ;;  %v7008_v43 = vor.u32 %v7533_v25, %v7007_v57  ;;  %v9696_v57 = vld [vmem:[%s14557_s0 + $0xd0] sm:$0xff] }
 0x15d   : > { %2202 = vst [vmem:[#allocation2 + $0x68] sm:$0xff] %v9655_v16  ;;  %v1595_v42 = vadd.f32 %v7833_v21, %v1594_v27  ;;  %v7837_v33 = vpop.eup %7836  ;;  %v7009_v27 = vld [vmem:[%s8483_s6 + $0xf8] sm:$0xf0]  ;;  %7840 = vpow2.f32 %v1347_v4  ;;  %vm414_vm10 = vcmp.lt.s32.totalorder %v9696_v57, 14  ;;  %vm454_vm12 = vcmp.ge.s32.totalorder %v9696_v57, 1 }
 0x15e   : > { %v9667_v37 = vadd.f32 1.0, %v7837_v33  ;;  %15235 = vst [vmem:[#allocation81_spill] sm:$0xff] %v9681_v32  ;;  %v7012_v62 = vor.u32 %v7532_v13, %v7009_v27  ;;  %v1617_v13 = vand.u32 2147483648, %v9652_v51  ;;  %vm1611_vm1 = vweird.f32 %v9652_v51 }
 0x15f   : > { %3346 = vperm.xlu1 %7771, %v3257_v50   ;;  %v1599_v8 = vsel %vm1598_vm4, %v7833_v21, %v1595_v42  ;;  %3029 = vperm.xlu0 %7770, %v2938_v28   ;;  %v520_v21 = vadd.s32 88, %v8963_v10  ;;  %v1216_v42 = vpop.f32.mrf.mxu1  ;;  %v1109_v47 = vpop.f32.mrf.mxu0  ;;  %vm14640_vm4 = vcmp.eq.s32.totalorder %v8822_v23, 1 }
 0x160   : > { %v1604_v60 = vsel %vm1601_vm5, %v1603_v5, %v1599_v8  ;;  %7842 = vrcp.f32 %v9667_v37  ;;  %v7839_v28 = vpop.eup %7838  ;;  %v9683_v33 = vadd.f32 %v1216_v42, %v1108_v59  ;;  %v9689_v55 = vpop.permute.xlu2 %2987  ;;  %v1615_v8 = vand.u32 2147483647, %v9652_v51 }
 0x161   : > { %v1605_v50 = vmul.f32 %v1604_v60, %v9538_v1  ;;  %v1607_v4 = vmul.f32 %v7839_v28, %v9652_v51  ;;  %15236 = vst [vmem:[#allocation82_spill] sm:$0xff] %v9689_v55  ;;  %1255 = vmatmul.bf16.gmra.mxu1 %v7012_v62  ;;  %vm573_vm7 = vcmp.ge.s32.totalorder %v520_v21, %v8965_v18  ;;  %v9705_v62 = vld [vmem:[%s14557_s0 + $0xd8] sm:$0xff]  ;;  %vm1612_vm9 = vweird.f32 %v7839_v28  ;;  %v7231_v51 = vld [vmem:[#allocation8 + $0x70] sm:$0xf] }
 0x162   : > { %1146 = vmatmul.bf16.gmra.mxu0 %v7008_v43  ;;  %v1295_v5 = vsub.f32 0.0, %v9683_v33  ;;  %v2939_v43 = vsel %vm414_vm10, 1, %v15179_v53  ;;  %vm455_vm14 = vcmp.ge.s32.totalorder %v9705_v62, 1  ;;  %vm614_vm11 = vcmp.lt.s32.totalorder %v520_v21, %v8967_v19  ;;  %vm1613_vm2 = vmor %vm1611_vm1, %vm1612_vm9 }
 0x163   : > { %v9685_v54 = vsel %vm653_vm6, %v1605_v50, -inf  ;;  %v1608_v1 = vsub.f32 1.0, %v1607_v4  ;;  %v7841_v25 = vpop.eup %7840  ;;  %3032 = vperm.xlu2 %7772, %v2939_v43   ;;  %v2620_v4 = vsel %vm455_vm14, 1, %v15179_v53  ;;  %v2619_v43 = vsel %vm454_vm12, 1, %v15179_v53  ;;  %vm9727_vm13 = vmand %vm573_vm7, %vm614_vm11 }
 0x164   : > { %2203 = vst [vmem:[#allocation2 + $0x70] sm:$0xff] %v9685_v54  ;;  %v9708_v59 = vadd.f32 1.0, %v7841_v25  ;;  %v1349_v50 = vmul.f32 1.442695, %v1295_v5  ;;  %v1618_v5 = vor.u32 1.1754944e-38, %v1617_v13  ;;  %vm1616_vm3 = vcmp.eq.f32.partialorder %v1615_v8, 8.507059e+37  ;;  %v9721_v9 = vpop.permute.xlu0 %2685 }
 0x165   : > { %v1609_v60 = vmul.f32 %v7839_v28, %v1608_v1  ;;  %v9717_v1 = vpop.permute.xlu1 %2984  ;;  %15238 = vst [vmem:[#allocation84_spill] sm:$0xff] %v9721_v9  ;;  %vm574_vm5 = vcmp.ge.s32.totalorder %v521_v46, %v8965_v18  ;;  %vm615_vm6 = vcmp.lt.s32.totalorder %v521_v46, %v8967_v19  ;;  %vm1626_vm10 = vweird.f32 %v9667_v37 }
 0x166   : > { %v7843_v27 = vpop.eup %7842  ;;  %7844 = vrcp.f32 %v9708_v59  ;;  %15237 = vst [vmem:[#allocation83_spill] sm:$0xff] %v9717_v1  ;;  %vm14648_vm7 = vcmp.eq.s32.totalorder %v8848_v29, 1  ;;  %vm495_vm9 = vcmp.ge.s32.totalorder %v9705_v62, 2  ;;  %vm494_vm11 = vcmp.ge.s32.totalorder %v9696_v57, 2 }
 0x167   : > { %v1622_v42 = vmul.f32 %v7843_v27, %v9667_v37  ;;  %v1610_v3 = vadd.f32 %v7839_v28, %v1609_v60  ;;  %2715 = vperm.xlu1 %7771, %v2620_v4   ;;  %7846 = vpow2.f32 %v1349_v50  ;;  %v1632_v60 = vand.u32 2147483648, %v9667_v37  ;;  %2712 = vperm.xlu0 %7770, %v2619_v43   ;;  %v1218_v43 = vpop.f32.mrf.mxu1  ;;  %v1112_v56 = vpop.f32.mrf.mxu0 }
 0x168   : > { %vm1627_vm0 = vweird.f32 %v7843_v27  ;;  %v9737_v21 = vpop.permute.xlu2 %3002  ;;  %v1110_v4 = vadd.f32 %v9497_v12, %v1109_v47  ;;  %vm14643_vm1 = vcmp.eq.s32.totalorder %v9525_v45, 1  ;;  %v3260_v46 = vsel %vm495_vm9, 1, %v15179_v53  ;;  %v2562_v45 = vld [vmem:[#allocation2 + $0x67] sm:$0xff] }
 0x169   : > { %v1623_v25 = vsub.f32 1.0, %v1622_v42  ;;  %v1614_v6 = vsel %vm1613_vm2, %v7839_v28, %v1610_v3  ;;  %v1630_v3 = vand.u32 2147483647, %v9667_v37  ;;  %15241 = vst [vmem:[#allocation85_spill] sm:$0xff] %v9737_v21  ;;  %vm1628_vm14 = vmor %vm1626_vm10, %vm1627_vm0 }
 0x16a   : > { %v1619_v50 = vsel %vm1616_vm3, %v1618_v5, %v1614_v6  ;;  %v7232_v6 = vor.u32 %v7589_v48, %v7231_v51  ;;  %v522_v48 = vadd.s32 104, %v8963_v10  ;;  %vm9758_vm2 = vmand %vm574_vm5, %vm615_vm6  ;;  %vm1641_vm6 = vweird.f32 %v9708_v59 }
 0x16b   : > { %v1624_v42 = vmul.f32 %v7843_v27, %v1623_v25  ;;  %v1620_v28 = vmul.f32 %v1619_v50, %v9586_v20  ;;  %v1633_v20 = vor.u32 1.1754944e-38, %v1632_v60  ;;  %vm1631_vm12 = vcmp.eq.f32.partialorder %v1630_v3, 8.507059e+37  ;;  %3355 = vperm.xlu2 %7772, %v3260_v46   ;;  %v2563_v23 = vld [vmem:[#allocation2 + $0x6f] sm:$0xff] }
 0x16c   : > { %v9740_v5 = vpop.eup %7844  ;;  %4119 = vmatpush.bf16.msrb.mxu2 %v7232_v6  ;;  %v7223_v6 = vld [vmem:[#allocation8 + $0x60] sm:$0xf]  ;;  %vm575_vm0 = vcmp.ge.s32.totalorder %v522_v48, %v8965_v18  ;;  %vm616_vm5 = vcmp.lt.s32.totalorder %v522_v48, %v8967_v19  ;;  %v9796_v60 = vpop.permute.xlu0 %2999  ;;  %v2803_v48 = vsel %vm14643_vm1, %v2563_v23, -inf  ;;  %vm14715_vm1 = vcmp.eq.s32.totalorder %v8862_v39, 1 }
 0x16d   : > { %v1625_v8 = vadd.f32 %v7843_v27, %v1624_v42  ;;  %v9745_v25 = vsel %vm9727_vm13, %v1620_v28, -inf  ;;  %v7847_v37 = vpop.eup %7846  ;;  %v1637_v51 = vmul.f32 %v9740_v5, %v9708_v59  ;;  %v9767_v42 = vadd.f32 %v1218_v43, %v1110_v4  ;;  %15245 = vst [vmem:[#allocation87_spill] sm:$0xff] %v9796_v60 }
 0x16e   : > { %2204 = vst [vmem:[#allocation2 + $0x78] sm:$0xff] %v9745_v25  ;;  %v9765_v50 = vadd.f32 1.0, %v7847_v37  ;;  %vm1642_vm3 = vweird.f32 %v9740_v5  ;;  %v1645_v4 = vand.u32 2147483647, %v9708_v59  ;;  %v1647_v43 = vand.u32 2147483648, %v9708_v59 }
 0x16f   : > { %v1629_v47 = vsel %vm1628_vm14, %v7843_v27, %v1625_v8  ;;  %v9763_v27 = vadd.s32 112, %v8963_v10  ;;  %v1638_v28 = vsub.f32 1.0, %v1637_v51  ;;  %v3259_v8 = vsel %vm494_vm11, 1, %v15179_v53  ;;  %v7015_v37 = vld [vmem:[%s8483_s6 + $0x100] sm:$0xf]  ;;  %vm9807_vm10 = vmor %vm1641_vm6, %vm1642_vm3 }
 0x170   : > { %v1634_v13 = vsel %vm1631_vm12, %v1633_v20, %v1629_v47  ;;  %v7587_v20 = vld [vmem:[#allocation8 + $0x64] sm:$0xf0]  ;;  %7848 = vrcp.f32 %v9765_v50  ;;  %3352 = vperm.xlu1 %7771, %v3259_v8   ;;  %vm415_vm13 = vcmp.lt.s32.totalorder %v9705_v62, 14  ;;  %v7215_v8 = vld [vmem:[#allocation8 + $0x50] sm:$0xf]  ;;  %v7016_v59 = vor.u32 %v7535_v26, %v7015_v37 }
 0x171   : > { %v1635_v3 = vmul.f32 %v1634_v13, %v9620_v7  ;;  %v2241_v47 = vld [vmem:[#allocation2 + $0x61] sm:$0xff]  ;;  %v9780_v7 = vpop.permute.xlu1 %3319  ;;  %v1639_v51 = vmul.f32 %v9740_v5, %v1638_v28  ;;  %v1296_v13 = vsub.f32 0.0, %v9767_v42  ;;  %v7224_v31 = vor.u32 %v7587_v20, %v7223_v6  ;;  %v7017_v20 = vld [vmem:[%s8483_s6 + $0x108] sm:$0xf0] }
 0x172   : > { %15244 = vst [vmem:[#allocation86_spill] sm:$0xff] %v9780_v7  ;;  %v9801_v28 = vsel %vm14640_vm4, %v2241_v47, -inf  ;;  %v1648_v47 = vor.u32 1.1754944e-38, %v1647_v43  ;;  %vm1646_vm14 = vcmp.eq.f32.partialorder %v1645_v4, 8.507059e+37  ;;  %vm576_vm9 = vcmp.ge.s32.totalorder %v9763_v27, %v8965_v18  ;;  %v7534_v6 = vld [vmem:[%s8483_s6 + $0x104] sm:$0xf]  ;;  %1151 = vmatmul.bf16.gmra.mxu0 %v7016_v59 }
 0x173   : > { %v9785_v57 = vsel %vm9758_vm2, %v1635_v3, -inf  ;;  %v2940_v3 = vsel %vm415_vm13, 1, %v15179_v53  ;;  %v1640_v62 = vadd.f32 %v9740_v5, %v1639_v51  ;;  %v1351_v46 = vmul.f32 1.442695, %v1296_v13  ;;  %vm9832_vm2 = vmand %vm575_vm0, %vm616_vm5  ;;  %4120 = vmatpush.bf16.msrb.mxu2 %v7224_v31  ;;  %v9848_v31 = vld [vmem:[%s14557_s0 + $0xe0] sm:$0xff] }
 0x174   : > { %v2161_v11 = vpack.c.bf16 %v9785_v57, %v9785_v57  ;;  %2205 = vst [vmem:[#allocation2 + $0x80] sm:$0xff] %v9785_v57  ;;  %3035 = vperm.xlu0 %7770, %v2940_v3   ;;  %v1113_v51 = vadd.f32 %v9497_v12, %v1112_v56  ;;  %v9815_v3 = vpop.permute.xlu2 %3307  ;;  %vm617_vm11 = vcmp.lt.s32.totalorder %v9763_v27, %v8967_v19  ;;  %vm14646_vm12 = vcmp.eq.s32.totalorder %v8865_v41, 1  ;;  %v2561_v41 = vld [vmem:[#allocation2 + $0x5f] sm:$0xff] }
 0x175   : > { %v2243_v36 = vld [vmem:[#allocation2 + $0x71] sm:$0xff]  ;;  %v1644_v13 = vsel %vm9807_vm10, %v9740_v5, %v1640_v62  ;;  %15248 = vst [vmem:[#allocation88_spill] sm:$0xff] %v9815_v3  ;;  %vm14647_vm3 = vcmp.eq.s32.totalorder %v9717_v1, 1  ;;  %7850 = vpow2.f32 %v1351_v46  ;;  %vm416_vm13 = vcmp.lt.s32.totalorder %v9848_v31, 14 }
 0x176   : > { %2177 = vst [vmem:[#allocation4] sm:$0xf] %v2161_v11  ;;  %v2483_v11 = vsel %vm14648_vm7, %v2243_v36, -inf  ;;  %v9825_v56 = vpop.eup %7848  ;;  %v1649_v34 = vsel %vm1646_vm14, %v1648_v47, %v1644_v13  ;;  %v1221_v36 = vpop.f32.mrf.mxu1  ;;  %v2883_v37 = vld [vmem:[#allocation2 + $0x72] sm:$0xff]  ;;  %v7020_v13 = vor.u32 %v7534_v6, %v7017_v20  ;;  %vm1656_vm6 = vweird.f32 %v9765_v50 }
 0x177   : > { %v2523_v5 = vmax.f32 %v9685_v54, %v2483_v11  ;;  %v1650_v4 = vmul.f32 %v1649_v34, %v9647_v15  ;;  %v1652_v43 = vmul.f32 %v9825_v56, %v9765_v50  ;;  %v9843_v62 = vadd.f32 %v1221_v36, %v1113_v51  ;;  %v9871_v34 = vld [vmem:[%s14557_s0 + $0xe8] sm:$0xff] }
 0x178   : > { %v7216_v54 = vor.u32 %v7585_v22, %v7215_v8  ;;  %v2941_v51 = vsel %vm416_vm13, 1, %v15179_v53  ;;  %v1660_v22 = vand.u32 2147483647, %v9765_v50  ;;  %v1662_v8 = vand.u32 2147483648, %v9765_v50  ;;  %1260 = vmatmul.bf16.gmra.mxu1 %v7020_v13  ;;  %v2242_v36 = vld [vmem:[#allocation2 + $0x69] sm:$0xff] }
 0x179   : > { %v2843_v47 = vmax.f32 %v2523_v5, %v2803_v48  ;;  %v9853_v15 = vsel %vm9832_vm2, %v1650_v4, -inf  ;;  %v1653_v46 = vsub.f32 1.0, %v1652_v43  ;;  %v1297_v23 = vsub.f32 0.0, %v9843_v62  ;;  %v9864_v6 = vpop.permute.xlu1 %3304  ;;  %3038 = vperm.xlu2 %7772, %v2941_v51   ;;  %v9875_v43 = vpop.permute.xlu0 %3316 }
 0x17a   : > { %v2162_v59 = vpack.c.bf16 %v9853_v15, %v9853_v15  ;;  %2206 = vst [vmem:[#allocation2 + $0x88] sm:$0xff] %v9853_v15  ;;  %v3123_v11 = vsel %vm14647_vm3, %v2883_v37, -inf  ;;  %4121 = vmatpush.bf16.msrb.mxu2 %v7216_v54  ;;  %vm1657_vm0 = vweird.f32 %v9825_v56  ;;  %vm457_vm5 = vcmp.ge.s32.totalorder %v9871_v34, 1  ;;  %v1114_v51 = vpop.f32.mrf.mxu0 }
 0x17b   : > { %15251 = vst [vmem:[#allocation89_spill] sm:$0xff] %v9864_v6  ;;  %v1654_v20 = vmul.f32 %v9825_v56, %v1653_v46  ;;  %v1353_v26 = vmul.f32 1.442695, %v1297_v23  ;;  %v7851_v5 = vpop.eup %7850  ;;  %v3163_v4 = vmax.f32 %v2843_v47, %v3123_v11  ;;  %v2622_v48 = vsel %vm457_vm5, 1, %v15179_v53  ;;  %vm9885_vm2 = vmor %vm1656_vm6, %vm1657_vm0  ;;  %v7207_v46 = vld [vmem:[#allocation8 + $0x40] sm:$0xf] }
 0x17c   : > { %2178 = vst [vmem:[#allocation4 + $0x8] sm:$0xf] %v2162_v59  ;;  %vm456_vm10 = vcmp.ge.s32.totalorder %v9848_v31, 1  ;;  %v9880_v13 = vadd.f32 1.0, %v7851_v5  ;;  %2721 = vperm.xlu1 %7771, %v2622_v48   ;;  %vm14641_vm14 = vcmp.eq.s32.totalorder %v9864_v6, 1  ;;  %v1663_v50 = vor.u32 1.1754944e-38, %v1662_v8  ;;  %vm9906_vm6 = vmand %vm576_vm9, %vm617_vm11 }
 0x17d   : > { %15252 = vst [vmem:[#allocation90_spill] sm:$0xff] %v9875_v43  ;;  %v1655_v37 = vadd.f32 %v9825_v56, %v1654_v20  ;;  %7852 = vpow2.f32 %v1353_v26  ;;  %v2621_v47 = vsel %vm456_vm10, 1, %v15179_v53  ;;  %v7583_v23 = vld [vmem:[#allocation8 + $0x44] sm:$0xf0]  ;;  %v2482_v59 = vsel %vm14646_vm12, %v2242_v36, -inf  ;;  %v9895_v20 = vpop.permute.xlu2 %3322  ;;  %v3203_v26 = vld [vmem:[#allocation2 + $0x6e] sm:$0xff] }
 0x17e   : > { %vm1661_vm13 = vcmp.eq.f32.partialorder %v1660_v22, 8.507059e+37  ;;  %15255 = vst [vmem:[#allocation91_spill] sm:$0xff] %v9895_v20  ;;  %7854 = vrcp.f32 %v9880_v13  ;;  %2718 = vperm.xlu0 %7770, %v2621_v47   ;;  %vm14688_vm0 = vcmp.eq.s32.totalorder %v8838_v17, 1  ;;  %vm14642_vm5 = vcmp.eq.s32.totalorder %v9546_v61, 1  ;;  %v7199_v5 = vld [vmem:[#allocation8 + $0x30] sm:$0xf] }
 0x17f   : > { %v1659_v11 = vsel %vm9885_vm2, %v9825_v56, %v1655_v37  ;;  %v3443_v22 = vsel %vm14641_vm14, %v3203_v26, -inf  ;;  %v7581_v36 = vld [vmem:[#allocation8 + $0x34] sm:$0xf0]  ;;  %vm14637_vm10 = vcmp.eq.s32.totalorder %v9602_v2, 1  ;;  %v7208_v54 = vor.u32 %v7583_v23, %v7207_v46  ;;  %v9921_v26 = vld [vmem:[#allocation2 + $0x6a] sm:$0xff] }
 0x180   : > { %v1664_v56 = vsel %vm1661_vm13, %v1663_v50, %v1659_v11  ;;  %v9914_v37 = vmax.f32 %v3163_v4, %v3443_v22  ;;  %v2522_v47 = vmax.f32 %v9655_v16, %v2482_v59  ;;  %v2521_v27 = vmax.f32 %v9608_v44, %v9801_v28  ;;  %v2564_v50 = vld [vmem:[#allocation2 + $0x77] sm:$0xff]  ;;  %v1223_v28 = vpop.f32.mrf.mxu1 }
 0x181   : > { %v1665_v48 = vmul.f32 %v1664_v56, %v9683_v33  ;;  %vm14650_vm9 = vcmp.eq.s32.totalorder %v9689_v55, 1  ;;  %vm14651_vm11 = vcmp.eq.s32.totalorder %v9638_v30, 1  ;;  %v3204_v11 = vld [vmem:[#allocation2 + $0x76] sm:$0xff]  ;;  %v9928_v16 = vadd.s32 120, %v8963_v10  ;;  %4122 = vmatpush.bf16.msrb.mxu2 %v7208_v54 }
 0x182   : > { %15258 = vst [vmem:[#allocation92_spill] sm:$0xff] %v9914_v37  ;;  %v1115_v44 = vadd.f32 %v9497_v12, %v1114_v51  ;;  %v7200_v4 = vor.u32 %v7581_v36, %v7199_v5  ;;  %vm497_vm2 = vcmp.ge.s32.totalorder %v9871_v34, 2  ;;  %vm496_vm13 = vcmp.ge.s32.totalorder %v9848_v31, 2  ;;  %v2244_v5 = vld [vmem:[#allocation2 + $0x79] sm:$0xff]  ;;  %v9953_v36 = vpop.permute.xlu0 %3005 }
 0x183   : > { %v7853_v6 = vpop.eup %7852  ;;  %v9925_v33 = vsel %vm9906_vm6, %v1665_v48, -inf  ;;  %3523 = vst [vmem:[#allocation2 + $0x70] sm:$0xff] %v9914_v37  ;;  %v3262_v51 = vsel %vm497_vm2, 1, %v15179_v53  ;;  %v3261_v56 = vsel %vm496_vm13, 1, %v15179_v53  ;;  %vm417_vm6 = vcmp.lt.s32.totalorder %v9871_v34, 14  ;;  %v2566_v37 = vld [vmem:[#allocation2 + $0x87] sm:$0xff] }
 0x184   : > { %v2163_v46 = vpack.c.bf16 %v9925_v33, %v9925_v33  ;;  %2207 = vst [vmem:[#allocation2 + $0x90] sm:$0xff] %v9925_v33  ;;  %v9935_v23 = vadd.f32 1.0, %v7853_v6  ;;  %v9939_v59 = vpop.eup %7854  ;;  %v9941_v8 = vadd.f32 %v1223_v28, %v1115_v44  ;;  %v2802_v22 = vsel %vm14642_vm5, %v2562_v45, -inf  ;;  %3361 = vperm.xlu2 %7772, %v3262_v51   ;;  %3358 = vperm.xlu1 %7771, %v3261_v56   ;;  %v7579_v44 = vld [vmem:[#allocation8 + $0x24] sm:$0xf0]  ;;  %v2884_v28 = vld [vmem:[#allocation2 + $0x7a] sm:$0xff] }
 0x185   : > { %v2801_v6 = vsel %vm14637_vm10, %v2561_v41, -inf  ;;  %v1667_v31 = vmul.f32 %v9939_v59, %v9880_v13  ;;  %15259 = vst [vmem:[#allocation93_spill] sm:$0xff] %v9953_v36  ;;  %v9955_v48 = vmax.f32 %v2522_v47, %v2802_v22  ;;  %vm14649_vm2 = vcmp.eq.s32.totalorder %v9815_v3, 1  ;;  %4123 = vmatpush.bf16.msrb.mxu2 %v7200_v4  ;;  %v7191_v41 = vld [vmem:[#allocation8 + $0x20] sm:$0xf]  ;;  %v9974_v56 = vpop.permute.xlu2 %2993 }
 0x186   : > { %2179 = vst [vmem:[#allocation4 + $0x10] sm:$0xf] %v2163_v46  ;;  %7856 = vrcp.f32 %v9935_v23  ;;  %v9957_v54 = vmax.f32 %v2521_v27, %v2801_v6  ;;  %v1298_v45 = vsub.f32 0.0, %v9941_v8  ;;  %vm577_vm13 = vcmp.ge.s32.totalorder %v9928_v16, %v8965_v18  ;;  %v1117_v27 = vpop.f32.mrf.mxu0  ;;  %v7537_v3 = vld [vmem:[%s8483_s6 + $0x114] sm:$0xf0] }
 0x187   : > { %v1668_v46 = vsub.f32 1.0, %v1667_v31  ;;  %v1675_v2 = vand.u32 2147483647, %v9880_v13  ;;  %v2942_v47 = vsel %vm417_vm6, 1, %v15179_v53  ;;  %v9969_v51 = vsel %vm14688_vm0, %v2244_v5, -inf  ;;  %15260 = vst [vmem:[#allocation94_spill] sm:$0xff] %v9974_v56 }
 0x188   : > { %vm618_vm8 = vcmp.lt.s32.totalorder %v9928_v16, %v8967_v19  ;;  %v1677_v4 = vand.u32 2147483648, %v9880_v13  ;;  %v9977_v22 = vadd.s32 128, %v8963_v10  ;;  %3041 = vperm.xlu0 %7770, %v2942_v47   ;;  %v9981_v34 = vsel %vm14651_vm11, %v2564_v50, -inf }
 0x189   : > { %v1669_v6 = vmul.f32 %v9939_v59, %v1668_v46  ;;  %vm1672_vm6 = vweird.f32 %v9939_v59  ;;  %v1355_v5 = vmul.f32 1.442695, %v1298_v45  ;;  %v9987_v31 = vsel %vm14650_vm9, %v2884_v28, -inf  ;;  %v7023_v28 = vld [vmem:[%s8483_s6 + $0x110] sm:$0xf] }
 0x18a   : > { %v9991_v61 = vsel %vm14649_vm2, %v3204_v11, -inf  ;;  %v7192_v1 = vor.u32 %v7579_v44, %v7191_v41  ;;  %v1118_v47 = vadd.f32 %v9497_v12, %v1117_v27  ;;  %vm1671_vm15 = vweird.f32 %v9880_v13  ;;  %v7183_v41 = vld [vmem:[#allocation8 + $0x10] sm:$0xf]  ;;  %v7577_v44 = vld [vmem:[#allocation8 + $0x14] sm:$0xf0]  ;;  %v10041_v16 = vpop.permute.xlu0 %2978 }
 0x18b   : > { %15261 = vst [vmem:[#allocation95_spill] sm:$0xff] %v9991_v61  ;;  %v1670_v46 = vadd.f32 %v9939_v59, %v1669_v6  ;;  %vm10000_vm10 = vcmp.eq.f32.partialorder %v1675_v2, 8.507059e+37  ;;  %vm10006_vm4 = vmor %vm1671_vm15, %vm1672_vm6  ;;  %v1678_v12 = vor.u32 1.1754944e-38, %v1677_v4  ;;  %vm578_vm14 = vcmp.ge.s32.totalorder %v9977_v22, %v8965_v18  ;;  %v1226_v2 = vpop.f32.mrf.mxu1  ;;  %v7575_v61 = vld [vmem:[#allocation8 + $0x4] sm:$0xf0] }
 0x18c   : > { %v9994_v29 = vpop.eup %7856  ;;  %vm619_vm5 = vcmp.lt.s32.totalorder %v9977_v22, %v8967_v19  ;;  %4124 = vmatpush.bf16.msrb.mxu2 %v7192_v1  ;;  %v1690_v4 = vand.u32 2147483647, %v9935_v23  ;;  %7858 = vpow2.f32 %v1355_v5  ;;  %v10021_v6 = vadd.f32 %v1226_v2, %v1118_v47  ;;  %vm10030_vm6 = vmand %vm577_vm13, %vm618_vm8  ;;  %v10037_v5 = vpop.permute.xlu1 %2981  ;;  %15269 = vst [vmem:[#allocation97_spill] sm:$0xff] %v10041_v16 }
 0x18d   : > { %v1682_v13 = vmul.f32 %v9994_v29, %v9935_v23  ;;  %v1674_v27 = vsel %vm10006_vm4, %v9939_v59, %v1670_v46  ;;  %vm14693_vm15 = vcmp.eq.s32.totalorder %v9569_v49, 1  ;;  %vm1686_vm4 = vweird.f32 %v9935_v23  ;;  %15268 = vst [vmem:[#allocation96_spill] sm:$0xff] %v10037_v5 }
 0x18e   : > { %v1679_v59 = vsel %vm10000_vm10, %v1678_v12, %v1674_v27  ;;  %v7024_v47 = vor.u32 %v7537_v3, %v7023_v28  ;;  %v1692_v2 = vand.u32 2147483648, %v9935_v23  ;;  %v1299_v50 = vsub.f32 0.0, %v10021_v6  ;;  %v10057_v3 = vld [vmem:[%s14557_s0 + $0xf8] sm:$0xff]  ;;  %v7536_v28 = vld [vmem:[%s8483_s6 + $0x114] sm:$0xf] }
 0x18f   : > { %v1683_v46 = vsub.f32 1.0, %v1682_v13  ;;  %v1680_v11 = vmul.f32 %v1679_v59, %v9767_v42  ;;  %v7184_v55 = vor.u32 %v7577_v44, %v7183_v41  ;;  %vm14668_vm8 = vcmp.eq.s32.totalorder %v9681_v32, 1  ;;  %v10051_v42 = vld [vmem:[%s14557_s0 + $0xf0] sm:$0xff]  ;;  %v7025_v12 = vld [vmem:[%s8483_s6 + $0x118] sm:$0xf0]  ;;  %s6880_s6 = sshll.u32 %s8479_s17, 8 }
 0x190   : > { %vm14666_vm10 = vcmp.eq.s32.totalorder %v9875_v43, 1  ;;  %vm1687_vm13 = vweird.f32 %v9994_v29  ;;  %1156 = vmatmul.bf16.gmra.mxu0 %v7024_v47  ;;  %vm418_vm12 = vcmp.lt.s32.totalorder %v10051_v42, 14  ;;  %vm459_vm3 = vcmp.ge.s32.totalorder %v10057_v3, 1  ;;  %v10077_v47 = vpop.permute.xlu2 %3310  ;;  %s14307_s20 = scalar_lea.vmem [#allocation10], %s6880_s6 }
 0x191   : > { %v1684_v45 = vmul.f32 %v9994_v29, %v1683_v46  ;;  %vm14714_vm7 = vcmp.eq.s32.totalorder %v8857_v38, 1  ;;  %vm14716_vm2 = vcmp.eq.s32.totalorder %v8894_v63, 1  ;;  %v10066_v13 = vsel %vm10030_vm6, %v1680_v11, -inf  ;;  %4125 = vmatpush.bf16.msrb.mxu2 %v7184_v55  ;;  %v3205_v46 = vld [vmem:[#allocation2 + $0x7e] sm:$0xff]  ;;  %15272 = vst [vmem:[#allocation98_spill] sm:$0xff] %v10077_v47  ;;  %v2246_v11 = vld [vmem:[#allocation2 + $0x89] sm:$0xff]  ;;  %vm10089_vm6 = vmor %vm1686_vm4, %vm1687_vm13 }
 0x192   : > { %vm10068_vm9 = vcmp.eq.f32.partialorder %v1690_v4, 8.507059e+37  ;;  %vm14665_vm11 = vcmp.eq.s32.totalorder %v10037_v5, 1  ;;  %v1357_v44 = vmul.f32 1.442695, %v1299_v50  ;;  %v2164_v27 = vpack.c.bf16 %v10066_v13, %v10066_v13  ;;  %2208 = vst [vmem:[#allocation2 + $0x98] sm:$0xff] %v10066_v13  ;;  %v7859_v55 = vpop.eup %7858  ;;  %s6769_s21 = sshll.u32 %s14307_s20, 4  ;;  %s6770_s21 = int_to_ptr.vmem [resolvable:$true] %s6769_s21 }
 0x193   : > { %v1685_v59 = vadd.f32 %v9994_v29, %v1684_v45  ;;  %v2943_v4 = vsel %vm418_vm12, 1, %v15179_v53  ;;  %v2624_v1 = vsel %vm459_vm3, 1, %v15179_v53  ;;  %v7175_v50 = vld [vmem:[#allocation8] sm:$0xf]  ;;  %v1693_v30 = vor.u32 1.1754944e-38, %v1692_v2 }
 0x194   : > { %7860 = vpow2.f32 %v1357_v44  ;;  %3044 = vperm.xlu2 %7772, %v2943_v4   ;;  %2727 = vperm.xlu1 %7771, %v2624_v1   ;;  %vm458_vm12 = vcmp.ge.s32.totalorder %v10051_v42, 1  ;;  %v7028_v17 = vor.u32 %v7536_v28, %v7025_v12  ;;  %vm14677_vm3 = vcmp.eq.s32.totalorder %v9589_v35, 1  ;;  %2180 = vst [vmem:[#allocation4 + $0x18] sm:$0xf] %v2164_v27  ;;  %v2567_v27 = vld [vmem:[#allocation2 + $0x8f] sm:$0xff] }
 0x195   : > { %v1689_v23 = vsel %vm10089_vm6, %v9994_v29, %v1685_v59  ;;  %v10098_v36 = vadd.f32 1.0, %v7859_v55  ;;  %vm14664_vm4 = vcmp.eq.s32.totalorder %v10041_v16, 1  ;;  %v2623_v2 = vsel %vm458_vm12, 1, %v15179_v53  ;;  %vm10115_vm6 = vmand %vm578_vm14, %vm619_vm5  ;;  %v3207_v59 = vld [vmem:[#allocation2 + $0x8e] sm:$0xff]  ;;  %v2245_v55 = vld [vmem:[#allocation2 + $0x81] sm:$0xff] }
 0x196   : > { %vm14678_vm13 = vcmp.eq.s32.totalorder %v9650_v24, 1  ;;  %v15275_v28 = vmax.f32 %v9745_v25, %v9969_v51  ;;  %v1694_v44 = vsel %vm10068_vm9, %v1693_v30, %v1689_v23  ;;  %vm14667_vm12 = vcmp.eq.s32.totalorder %v10077_v47, 1  ;;  %2724 = vperm.xlu0 %7770, %v2623_v2   ;;  %1265 = vmatmul.bf16.gmra.mxu1 %v7028_v17  ;;  %v1119_v51 = vpop.f32.mrf.mxu0  ;;  %v10159_v45 = vld [vmem:[%s14560_s3] ss:$0 sm:$0xff]  ;;  %v2885_v47 = vld [vmem:[#allocation2 + $0x82] sm:$0xff] }
 0x197   : > { %v10125_v25 = vsel %vm14665_vm11, %v9921_v26, -inf  ;;  %v10129_v22 = vsel %vm14715_vm1, %v2246_v11, -inf  ;;  %v1695_v41 = vmul.f32 %v1694_v44, %v9843_v62  ;;  %v10134_v30 = vsel %vm14667_vm12, %v3205_v46, -inf  ;;  %v2881_v26 = vld [vmem:[#allocation2 + $0x62] sm:$0xff] }
 0x198   : > { %v10107_v12 = vmax.f32 %v15275_v28, %v9981_v34  ;;  %v7559_v34 = vld [vmem:[#allocation4 + $0x4] sm:$0xf0]  ;;  %7862 = vrcp.f32 %v10098_v36  ;;  %v10139_v17 = vsel %vm14693_vm15, %v2566_v37, -inf  ;;  %v10142_v4 = vadd.s32 136, %v8963_v10  ;;  %v7111_v11 = vld [vmem:[#allocation4] sm:$0xf]  ;;  %v1228_v37 = vpop.f32.mrf.mxu1 }
 0x199   : > { %v10146_v1 = vsel %vm14664_vm4, %v2881_v26, -inf  ;;  %v7176_v62 = vor.u32 %v7575_v61, %v7175_v50  ;;  %vm14694_vm14 = vcmp.eq.s32.totalorder %v8931_v40, 1  ;;  %vm14687_vm5 = vcmp.eq.s32.totalorder %v9632_v14, 1  ;;  %v2247_v2 = vld [vmem:[#allocation2 + $0x91] sm:$0xff]  ;;  %v2565_v28 = vld [vmem:[#allocation2 + $0x7f] sm:$0xff] }
 0x19a   : > { %v10152_v46 = vsel %vm10115_vm6, %v1695_v41, -inf  ;;  %v1120_v23 = vadd.f32 %v10159_v45, %v1119_v51  ;;  %v10162_v61 = vor.u32 %v7559_v34, %v7111_v11  ;;  %v7861_v50 = vpop.eup %7860  ;;  %vm14686_vm9 = vcmp.eq.s32.totalorder %v9780_v7, 1  ;;  %v10174_v51 = vpop.permute.xlu1 %2990  ;;  %v2887_v5 = vld [vmem:[#allocation2 + $0x92] sm:$0xff] }
 0x19b   : > { %v2807_v29 = vsel %vm14668_vm8, %v2567_v27, -inf  ;;  %v3447_v44 = vsel %vm14666_vm10, %v3207_v59, -inf  ;;  %v2165_v41 = vpack.c.bf16 %v10152_v46, %v10152_v46  ;;  %2209 = vst [vmem:[#allocation2 + $0xa0] sm:$0xff] %v10152_v46  ;;  %v10176_v34 = vpop.permute.xlu0 %3325  ;;  %4126 = vmatpush.bf16.msrb.mxu2 %v7176_v62  ;;  %v2487_v26 = vsel %vm14714_vm7, %v2247_v2, -inf }
 0x19c   : > { %15278 = vst [vmem:[#allocation99_spill] sm:$0xff] %v10174_v51  ;;  %v10182_v27 = vadd.f32 1.0, %v7861_v50  ;;  %v2485_v59 = vsel %vm14716_vm2, %v2245_v55, -inf  ;;  %v2527_v16 = vmax.f32 %v9925_v33, %v2487_v26  ;;  %v10188_v43 = vadd.s32 144, %v8963_v10  ;;  %v2568_v26 = vld [vmem:[#allocation2 + $0x97] sm:$0xff] }
 0x19d   : > { %15279 = vst [vmem:[#allocation100_spill] sm:$0xff] %v10176_v34  ;;  %v10190_v62 = vadd.f32 %v1228_v37, %v1120_v23  ;;  %vm499_vm6 = vcmp.ge.s32.totalorder %v10057_v3, 2  ;;  %vm14695_vm4 = vcmp.eq.s32.totalorder %v9796_v60, 1  ;;  %vm579_vm11 = vcmp.ge.s32.totalorder %v10142_v4, %v8965_v18 }
 0x19e   : > { %2181 = vst [vmem:[#allocation4 + $0x20] sm:$0xf] %v2165_v41  ;;  %v10193_v2 = vpop.eup %7862  ;;  %vm620_vm10 = vcmp.lt.s32.totalorder %v10142_v4, %v8967_v19  ;;  %v1705_v33 = vand.u32 2147483647, %v10098_v36  ;;  %v1707_v55 = vand.u32 2147483648, %v10098_v36  ;;  %7864 = vrcp.f32 %v10182_v27  ;;  %4127 = vmatmul.bf16.vlgmr.msrb.gmra.mxu2 %v10162_v61  ;;  %v1122_v39 = vpop.f32.mrf.mxu0 }
 0x19f   : > { %vm14685_vm12 = vcmp.eq.s32.totalorder %v10174_v51, 1  ;;  %v2847_v37 = vmax.f32 %v2527_v16, %v2807_v29  ;;  %v1697_v23 = vmul.f32 %v10193_v2, %v10098_v36  ;;  %v2805_v50 = vsel %vm14677_vm3, %v2565_v28, -inf  ;;  %v3208_v29 = vld [vmem:[#allocation2 + $0x96] sm:$0xff] }
 0x1a0   : > { %v2525_v41 = vmax.f32 %v9785_v57, %v2485_v59  ;;  %v3127_v11 = vsel %vm14678_vm13, %v2887_v5, -inf  ;;  %vm1701_vm8 = vweird.f32 %v10098_v36  ;;  %v1300_v32 = vsub.f32 0.0, %v10190_v62 }
 0x1a1   : > { %v3264_v16 = vsel %vm499_vm6, 1, %v15179_v53  ;;  %v3167_v49 = vmax.f32 %v2847_v37, %v3127_v11  ;;  %v1698_v38 = vsub.f32 1.0, %v1697_v23  ;;  %v10219_v28 = vsel %vm14685_vm12, %v2885_v47, -inf }
 0x1a2   : > { %3367 = vperm.xlu2 %7772, %v3264_v16   ;;  %vm498_vm3 = vcmp.ge.s32.totalorder %v10051_v42, 2  ;;  %v2248_v57 = vld [vmem:[#allocation2 + $0x99] sm:$0xff]  ;;  %vm10222_vm13 = vcmp.eq.f32.partialorder %v1705_v33, 8.507059e+37  ;;  %v1708_v59 = vor.u32 1.1754944e-38, %v1707_v55  ;;  %v1359_v24 = vmul.f32 1.442695, %v1300_v32 }
 0x1a3   : > { %v3263_v35 = vsel %vm498_vm3, 1, %v15179_v53  ;;  %v2808_v11 = vsel %vm14687_vm5, %v2568_v26, -inf  ;;  %v10229_v37 = vmax.f32 %v3167_v49, %v3447_v44  ;;  %v2488_v47 = vsel %vm14694_vm14, %v2248_v57, -inf  ;;  %v10241_v33 = vld [vmem:[#allocation2 + $0x8a] sm:$0xff]  ;;  %v2888_v55 = vld [vmem:[#allocation2 + $0x9a] sm:$0xff]  ;;  %v10253_v26 = vpop.permute.xlu1 %3301  ;;  %v10255_v16 = vpop.permute.xlu0 %3298 }
 0x1a4   : > { %vm580_vm6 = vcmp.ge.s32.totalorder %v10188_v43, %v8965_v18  ;;  %vm621_vm12 = vcmp.lt.s32.totalorder %v10188_v43, %v8967_v19  ;;  %v10237_v42 = vmax.f32 %v2525_v41, %v2805_v50  ;;  %3364 = vperm.xlu1 %7771, %v3263_v35   ;;  %v10239_v32 = vpop.eup %7864  ;;  %v3448_v49 = vsel %vm14686_vm9, %v3208_v29, -inf  ;;  %15282 = vst [vmem:[#allocation101_spill] sm:$0xff] %v10253_v26 }
 0x1a5   : > { %v2528_v44 = vmax.f32 %v10066_v13, %v2488_v47  ;;  %v1699_v23 = vmul.f32 %v10193_v2, %v1698_v38  ;;  %vm1702_vm3 = vweird.f32 %v10193_v2  ;;  %3527 = vst [vmem:[#allocation2 + $0x90] sm:$0xff] %v10229_v37  ;;  %v1712_v50 = vmul.f32 %v10239_v32, %v10182_v27 }
 0x1a6   : > { %v1720_v35 = vand.u32 2147483647, %v10182_v27  ;;  %v1722_v41 = vand.u32 2147483648, %v10182_v27  ;;  %15283 = vst [vmem:[#allocation102_spill] sm:$0xff] %v10255_v16  ;;  %v1123_v13 = vadd.f32 %v10159_v45, %v1122_v39  ;;  %7866 = vpow2.f32 %v1359_v24  ;;  %vm1703_vm5 = vmor %vm1701_vm8, %vm1702_vm3  ;;  %v3201_v24 = vld [vmem:[#allocation2 + $0x5e] sm:$0xff] }
 0x1a7   : > { %v2848_v29 = vmax.f32 %v2528_v44, %v2808_v11  ;;  %v1700_v38 = vadd.f32 %v10193_v2, %v1699_v23  ;;  %vm419_vm9 = vcmp.lt.s32.totalorder %v10057_v3, 14  ;;  %v3128_v57 = vsel %vm14695_vm4, %v2888_v55, -inf  ;;  %v3202_v11 = vld [vmem:[#allocation2 + $0x66] sm:$0xff]  ;;  %v1231_v3 = vpop.f32.mrf.mxu1  ;;  %vm10276_vm8 = vmand %vm579_vm11, %vm620_vm10 }
 0x1a8   : > { %v1713_v47 = vsub.f32 1.0, %v1712_v50  ;;  %vm1717_vm0 = vweird.f32 %v10239_v32  ;;  %v2944_v7 = vsel %vm419_vm9, 1, %v15179_v53  ;;  %vm14697_vm15 = vcmp.eq.s32.totalorder %v10253_v26, 1 }
 0x1a9   : > { %v3168_v51 = vmax.f32 %v2848_v29, %v3128_v57  ;;  %v1704_v39 = vsel %vm1703_vm5, %v10193_v2, %v1700_v38  ;;  %3047 = vperm.xlu0 %7770, %v2944_v7   ;;  %vm14696_vm14 = vcmp.eq.s32.totalorder %v10255_v16, 1  ;;  %vm14703_vm4 = vcmp.eq.s32.totalorder %v9974_v56, 1  ;;  %v10301_v38 = vld [vmem:[#allocation2 + $0x9e] sm:$0xff] }
 0x1aa   : > { %v1709_v7 = vsel %vm10222_vm13, %v1708_v59, %v1704_v39  ;;  %v1714_v2 = vmul.f32 %v10239_v32, %v1713_v47  ;;  %v3442_v44 = vsel %vm14697_vm15, %v3202_v11, -inf  ;;  %v3441_v55 = vsel %vm14696_vm14, %v3201_v24, -inf  ;;  %v10299_v59 = vld [vmem:[#allocation2 + $0x9f] sm:$0xff]  ;;  %v1124_v47 = vpop.f32.mrf.mxu0 }
 0x1ab   : > { %v10287_v23 = vmax.f32 %v3168_v51, %v3448_v49  ;;  %v1710_v50 = vmul.f32 %v1709_v7, %v9941_v8  ;;  %v3165_v4 = vmax.f32 %v10237_v42, %v10219_v28  ;;  %v15286_v29 = vmax.f32 %v9955_v48, %v10125_v25  ;;  %v10310_v48 = vld [vmem:[%s14557_s0 + $0x28] sm:$0xff]  ;;  %v10319_v42 = vpop.permute.xlu2 %3008  ;;  %v7561_v7 = vld [vmem:[#allocation4 + $0x14] sm:$0xf0] }
 0x1ac   : > { %vm14704_vm11 = vcmp.eq.s32.totalorder %v9615_v0, 1  ;;  %vm14700_vm10 = vcmp.eq.s32.totalorder %v9895_v20, 1  ;;  %v1715_v51 = vadd.f32 %v10239_v32, %v1714_v2  ;;  %vm1716_vm13 = vweird.f32 %v10182_v27  ;;  %v7867_v25 = vpop.eup %7866  ;;  %15287 = vst [vmem:[#allocation103_spill] sm:$0xff] %v10319_v42 }
 0x1ad   : > { %v10295_v5 = vmax.f32 %v15286_v29, %v3442_v44  ;;  %v10305_v8 = vadd.f32 %v1231_v3, %v1123_v13  ;;  %vm393_vm5 = vcmp.lt.s32.totalorder %v10310_v48, 14  ;;  %vm14941_vm9 = vcmp.eq.s32.totalorder %v8890_v58, 1  ;;  %3528 = vst [vmem:[#allocation2 + $0x98] sm:$0xff] %v10287_v23  ;;  %vm1718_vm3 = vmor %vm1716_vm13, %vm1717_vm0 }
 0x1ae   : > { %v10317_v28 = vsel %vm10276_vm8, %v1710_v50, -inf  ;;  %v1723_v27 = vor.u32 1.1754944e-38, %v1722_v41  ;;  %v15288_v49 = vmax.f32 %v9957_v54, %v10146_v1  ;;  %v2918_v57 = vsel %vm393_vm5, 1, %v15179_v53  ;;  %vm10347_vm0 = vmand %vm580_vm6, %vm621_vm12 }
 0x1af   : > { %v2166_v39 = vpack.c.bf16 %v10317_v28, %v10317_v28  ;;  %2210 = vst [vmem:[#allocation2 + $0xa8] sm:$0xff] %v10317_v28  ;;  %v1719_v11 = vsel %vm1718_vm3, %v10239_v32, %v1715_v51  ;;  %vm1721_vm8 = vcmp.eq.f32.partialorder %v1720_v35, 8.507059e+37  ;;  %v10333_v24 = vadd.f32 1.0, %v7867_v25  ;;  %2969 = vperm.xlu2 %7772, %v2918_v57   ;;  %v7295_v51 = vld [vmem:[#allocation8 + $0xf0] sm:$0xf] }
 0x1b0   : > { %v10326_v13 = vmax.f32 %v15288_v49, %v3441_v55  ;;  %v15289_v54 = vmax.f32 %v9853_v15, %v10129_v22  ;;  %v1724_v32 = vsel %vm1721_vm8, %v1723_v27, %v1719_v11  ;;  %3522 = vst [vmem:[#allocation2 + $0x68] sm:$0xff] %v10295_v5  ;;  %v1301_v35 = vsub.f32 0.0, %v10305_v8  ;;  %v10356_v15 = vld [vmem:[%s14557_s0 + $0x38] sm:$0xff] }
 0x1b1   : > { %vm395_vm13 = vcmp.lt.s32.totalorder %v10356_v15, 14  ;;  %v10359_v22 = vld [vmem:[#allocation2 + $0x59] sm:$0xff]  ;;  %vm14711_vm12 = vcmp.eq.s32.totalorder %v9737_v21, 1  ;;  %2182 = vst [vmem:[#allocation4 + $0x28] sm:$0xf] %v2166_v39  ;;  %v1725_v43 = vmul.f32 %v1724_v32, %v10021_v6  ;;  %v10366_v3 = vmax.f32 %v3165_v4, %v10134_v30  ;;  %v10378_v6 = vld [vmem:[%s14557_s0 + $0x30] sm:$0xff]  ;;  %v10381_v30 = vpop.permute.xlu0 %3313 }
 0x1b2   : > { %v10339_v1 = vmax.f32 %v15289_v54, %v10139_v17  ;;  %v10361_v17 = vld [vmem:[#allocation2 + $0x5a] sm:$0xff]  ;;  %7868 = vrcp.f32 %v10333_v24  ;;  %v1125_v36 = vadd.f32 %v10159_v45, %v1124_v47  ;;  %v10371_v2 = vadd.s32 152, %v8963_v10  ;;  %15293 = vst [vmem:[#allocation105_spill] sm:$0xff] %v10381_v30  ;;  %v1233_v47 = vpop.f32.mrf.mxu1  ;;  %v7119_v39 = vld [vmem:[#allocation4 + $0x10] sm:$0xf]  ;;  %v3206_v54 = vld [vmem:[#allocation2 + $0x86] sm:$0xff] }
 0x1b3   : > { %15292 = vst [vmem:[#allocation104_spill] sm:$0xff] %v10361_v17  ;;  %v1361_v44 = vmul.f32 1.442695, %v1301_v35  ;;  %v2920_v55 = vsel %vm395_vm13, 1, %v15179_v53  ;;  %vm394_vm6 = vcmp.lt.s32.totalorder %v10378_v6, 14  ;;  %vm2450_vm5 = vcmp.eq.s32.totalorder %v8873_v52, 1 }
 0x1b4   : > { %3521 = vst [vmem:[#allocation2 + $0x60] sm:$0xff] %v10326_v13  ;;  %v10388_v4 = vsel %vm10347_vm0, %v1725_v43, -inf  ;;  %2975 = vperm.xlu1 %7771, %v2920_v55   ;;  %v2919_v29 = vsel %vm394_vm6, 1, %v15179_v53  ;;  %v7605_v25 = vld [vmem:[#allocation8 + $0xf4] sm:$0xf0]  ;;  %v3126_v27 = vsel %vm14703_vm4, %v10241_v33, -inf  ;;  %v3605_v57 = vmax.f32 %v10366_v3, %v10229_v37 }
 0x1b5   : > { %v2167_v49 = vpack.c.bf16 %v10388_v4, %v10388_v4  ;;  %2211 = vst [vmem:[#allocation2 + $0xb0] sm:$0xff] %v10388_v4  ;;  %7870 = vpow2.f32 %v1361_v44  ;;  %2972 = vperm.xlu0 %7770, %v2919_v29   ;;  %vm14712_vm3 = vcmp.eq.s32.totalorder %v9721_v9, 1  ;;  %v3166_v11 = vmax.f32 %v10339_v1, %v3126_v27  ;;  %v10415_v1 = vld [vmem:[%s14557_s0 + $0x20] sm:$0xff]  ;;  %v10431_v29 = vpop.permute.xlu2 %3331 }
 0x1b6   : > { %vm14925_vm8 = vcmp.eq.s32.totalorder %v10381_v30, 1  ;;  %v10402_v33 = vadd.f32 %v1233_v47, %v1125_v36  ;;  %v10404_v41 = vor.u32 %v7561_v7, %v7119_v39  ;;  %v2809_v32 = vsel %vm14704_vm11, %v10299_v59, -inf  ;;  %v2249_v35 = vld [vmem:[#allocation2 + $0xa1] sm:$0xff]  ;;  %v15295_v7 = vld [vmem:[#allocation93_spill] sm:$0xff]  ;;  %15296 = vst [vmem:[#allocation107_spill] sm:$0xff] %v10431_v29 }
 0x1b7   : > { %v3449_v37 = vsel %vm14700_vm10, %v10301_v38, -inf  ;;  %2183 = vst [vmem:[#allocation4 + $0x30] sm:$0xf] %v2167_v49  ;;  %vm392_vm0 = vcmp.lt.s32.totalorder %v10415_v1, 14  ;;  %v7296_v43 = vor.u32 %v7605_v25, %v7295_v51  ;;  %vm14710_vm13 = vcmp.eq.s32.totalorder %v15295_v7, 1  ;;  %v2889_v44 = vld [vmem:[#allocation2 + $0xa2] sm:$0xff]  ;;  %v1127_v49 = vpop.f32.mrf.mxu0 }
 0x1b8   : > { %15294 = vst [vmem:[#allocation106_spill] sm:$0xff] %v10404_v41  ;;  %v10418_v36 = vpop.eup %7868  ;;  %v2489_v59 = vsel %vm14941_vm9, %v2249_v35, -inf  ;;  %vm581_vm6 = vcmp.ge.s32.totalorder %v10371_v2, %v8965_v18  ;;  %vm622_vm14 = vcmp.lt.s32.totalorder %v10371_v2, %v8967_v19  ;;  %v3446_v38 = vsel %vm14925_vm8, %v3206_v54, -inf  ;;  %4132 = vmatmul.bf16.gmra.mxu2 %v10404_v41  ;;  %v15297_v51 = vld [vmem:[#allocation92_spill] sm:$0xff] }
 0x1b9   : > { %v2529_v55 = vmax.f32 %v10152_v46, %v2489_v59  ;;  %v3649_v25 = vmax.f32 %v3605_v57, %v15297_v51  ;;  %v1727_v27 = vmul.f32 %v10418_v36, %v10333_v24  ;;  %vm1731_vm15 = vweird.f32 %v10333_v24  ;;  %4168 = vmatpush.bf16.msrb.mxu3 %v7296_v43  ;;  %v2570_v43 = vld [vmem:[#allocation2 + $0xa7] sm:$0xff] }
 0x1ba   : > { %v1735_v47 = vand.u32 2147483647, %v10333_v24  ;;  %v1737_v39 = vand.u32 2147483648, %v10333_v24  ;;  %v1302_v54 = vsub.f32 0.0, %v10402_v33  ;;  %v2917_v46 = vsel %vm392_vm0, 1, %v15179_v53 }
 0x1bb   : > { %v7871_v35 = vpop.eup %7870  ;;  %v2849_v59 = vmax.f32 %v2529_v55, %v2809_v32  ;;  %v3129_v57 = vsel %vm14711_vm12, %v2889_v44, -inf  ;;  %v1728_v51 = vsub.f32 1.0, %v1727_v27  ;;  %v10445_v50 = vmax.f32 %v3166_v11, %v3446_v38  ;;  %2966 = vperm.xlu2 %7772, %v2917_v46  }
 0x1bc   : > { %v2250_v16 = vld [vmem:[#allocation2 + $0xa9] sm:$0xff]  ;;  %vm1732_vm10 = vweird.f32 %v10418_v36  ;;  %v10448_v26 = vadd.f32 1.0, %v7871_v35  ;;  %vm475_vm4 = vcmp.ge.s32.totalorder %v10356_v15, 2  ;;  %vm474_vm11 = vcmp.ge.s32.totalorder %v10378_v6, 2 }
 0x1bd   : > { %15298 = vst [vmem:[#allocation92_spill] sm:$0xff] %v10445_v50  ;;  %v3169_v20 = vmax.f32 %v2849_v59, %v3129_v57  ;;  %v2490_v32 = vsel %vm2450_vm5, %v2250_v16, -inf  ;;  %v1729_v44 = vmul.f32 %v10418_v36, %v1728_v51  ;;  %v1363_v55 = vmul.f32 1.442695, %v1302_v54  ;;  %v2890_v38 = vld [vmem:[#allocation2 + $0xaa] sm:$0xff]  ;;  %vm10467_vm0 = vmor %vm1731_vm15, %vm1732_vm10 }
 0x1be   : > { %v2530_v11 = vmax.f32 %v10317_v28, %v2490_v32  ;;  %v1738_v27 = vor.u32 1.1754944e-38, %v1737_v39  ;;  %7872 = vrcp.f32 %v10448_v26  ;;  %v1128_v46 = vadd.f32 %v10159_v45, %v1127_v49  ;;  %v3210_v57 = vld [vmem:[#allocation2 + $0xa6] sm:$0xff]  ;;  %v1236_v49 = vpop.f32.mrf.mxu1 }
 0x1bf   : > { %v3489_v35 = vmax.f32 %v3169_v20, %v3449_v37  ;;  %v2810_v21 = vsel %vm14712_vm3, %v2570_v43, -inf  ;;  %v1730_v59 = vadd.f32 %v10418_v36, %v1729_v44  ;;  %v3606_v16 = vmax.f32 %v10445_v50, %v10287_v23  ;;  %v15301_v39 = vld [vmem:[#allocation95_spill] sm:$0xff]  ;;  %v10498_v43 = vpop.permute.xlu2 %3014 }
 0x1c0   : > { %v2850_v51 = vmax.f32 %v2530_v11, %v2810_v21  ;;  %7874 = vpow2.f32 %v1363_v55  ;;  %v3240_v20 = vsel %vm475_vm4, 1, %v15179_v53  ;;  %v3239_v37 = vsel %vm474_vm11, 1, %v15179_v53  ;;  %vm662_vm11 = vmand %vm581_vm6, %vm622_vm14  ;;  %15303 = vst [vmem:[#allocation95_spill] sm:$0xff] %v10498_v43  ;;  %v10505_v55 = vpop.permute.xlu1 %2691 }
 0x1c1   : > { %3529 = vst [vmem:[#allocation2 + $0xa0] sm:$0xff] %v3489_v35  ;;  %v3729_v23 = vmax.f32 %v3649_v25, %v3489_v35  ;;  %v3130_v21 = vsel %vm14710_vm13, %v2890_v38, -inf  ;;  %v1734_v24 = vsel %vm10467_vm0, %v10418_v36, %v1730_v59  ;;  %vm1736_vm15 = vcmp.eq.f32.partialorder %v1735_v47, 8.507059e+37  ;;  %3295 = vperm.xlu1 %7771, %v3240_v20   ;;  %3292 = vperm.xlu0 %7770, %v3239_v37   ;;  %v10510_v38 = vld [vmem:[#allocation2 + $0xaf] sm:$0xff] }
 0x1c2   : > { %v15302_v15 = vmax.f32 %v10107_v12, %v9987_v31  ;;  %v3170_v6 = vmax.f32 %v2850_v51, %v3130_v21  ;;  %vm14709_vm4 = vcmp.eq.s32.totalorder %v10176_v34, 1  ;;  %v1739_v36 = vsel %vm1736_vm15, %v1738_v27, %v1734_v24  ;;  %v1129_v12 = vpop.f32.mrf.mxu0  ;;  %15304 = vst [vmem:[#allocation108_spill] sm:$0xff] %v10505_v55  ;;  %v10512_v27 = vld [vmem:[#allocation2 + $0xae] sm:$0xff]  ;;  %v8086_v24 = vld [vmem:[%s14557_s0 + $0x18] sm:$0xff]  ;;  %v7599_v34 = vld [vmem:[#allocation8 + $0xc4] sm:$0xf0] }
 0x1c3   : > { %v3450_v25 = vsel %vm14709_vm4, %v3210_v57, -inf  ;;  %v1740_v47 = vmul.f32 %v1739_v36, %v10190_v62  ;;  %v10501_v31 = vmax.f32 %v3729_v23, %v10326_v13  ;;  %v10508_v11 = vadd.f32 %v1236_v49, %v1128_v46  ;;  %v15305_v49 = vld [vmem:[#allocation44_spill] sm:$0xff]  ;;  %v7563_v36 = vld [vmem:[#allocation4 + $0x24] sm:$0xf0] }
 0x1c4   : > { %v10486_v54 = vmax.f32 %v15302_v15, %v15301_v39  ;;  %v10503_v32 = vpop.eup %7872  ;;  %v3490_v44 = vmax.f32 %v3170_v6, %v3450_v25  ;;  %v529_v35 = vadd.s32 160, %v8963_v10  ;;  %vm472_vm14 = vcmp.ge.s32.totalorder %v10415_v1, 2 }
 0x1c5   : > { %v10514_v62 = vsel %vm662_vm11, %v1740_v47, -inf  ;;  %v1742_v13 = vmul.f32 %v10503_v32, %v10448_v26  ;;  %4359 = vst [vmem:[#allocation2 + $0x80] sm:$0xff] %v10501_v31  ;;  %v1130_v51 = vadd.f32 %v10159_v45, %v1129_v12  ;;  %v1303_v37 = vsub.f32 0.0, %v10508_v11 }
 0x1c6   : > { %v3650_v2 = vmax.f32 %v3606_v16, %v10486_v54  ;;  %v7875_v59 = vpop.eup %7874  ;;  %3530 = vst [vmem:[#allocation2 + $0xa8] sm:$0xff] %v3490_v44  ;;  %v2168_v46 = vpack.c.bf16 %v10514_v62, %v10514_v62  ;;  %v1750_v16 = vand.u32 2147483647, %v10448_v26  ;;  %v3237_v23 = vsel %vm472_vm14, 1, %v15179_v53  ;;  %v1238_v47 = vpop.f32.mrf.mxu1 }
 0x1c7   : > { %2212 = vst [vmem:[#allocation2 + $0xb8] sm:$0xff] %v10514_v62  ;;  %v1743_v28 = vsub.f32 1.0, %v1742_v13  ;;  %v10526_v20 = vadd.f32 1.0, %v7875_v59  ;;  %v1752_v1 = vand.u32 2147483648, %v10448_v26  ;;  %3286 = vperm.xlu2 %7772, %v3237_v23   ;;  %vm391_vm10 = vcmp.lt.s32.totalorder %v8086_v24, 14 }
 0x1c8   : > { %v3730_v57 = vmax.f32 %v3650_v2, %v3490_v44  ;;  %2184 = vst [vmem:[#allocation4 + $0x38] sm:$0xf] %v2168_v46  ;;  %vm473_vm6 = vcmp.ge.s32.totalorder %v10310_v48, 2  ;;  %vm14938_vm0 = vcmp.eq.s32.totalorder %v15305_v49, 1  ;;  %vm1747_vm15 = vweird.f32 %v10503_v32  ;;  %v7127_v59 = vld [vmem:[#allocation4 + $0x20] sm:$0xf]  ;;  %v10559_v46 = vpop.permute.xlu2 %3337  ;;  %v10581_v23 = vpop.permute.xlu1 %3328 }
 0x1c9   : > { %v1744_v39 = vmul.f32 %v10503_v32, %v1743_v28  ;;  %7876 = vrcp.f32 %v10526_v20  ;;  %vm582_vm11 = vcmp.ge.s32.totalorder %v529_v35, %v8965_v18  ;;  %v2916_v6 = vsel %vm391_vm10, 1, %v15179_v53  ;;  %15310 = vst [vmem:[#allocation109_spill] sm:$0xff] %v10559_v46  ;;  %v15312_v28 = vld [vmem:[#allocation80_spill] sm:$0xff] }
 0x1ca   : > { %v3772_v21 = vmax.f32 %v3730_v57, %v10295_v5  ;;  %v1365_v5 = vmul.f32 1.442695, %v1303_v37  ;;  %vm623_vm14 = vcmp.lt.s32.totalorder %v529_v35, %v8967_v19  ;;  %vm1746_vm4 = vweird.f32 %v10448_v26  ;;  %2963 = vperm.xlu1 %7771, %v2916_v6   ;;  %15315 = vst [vmem:[#allocation111_spill] sm:$0xff] %v10581_v23 }
 0x1cb   : > { %v1745_v48 = vadd.f32 %v10503_v32, %v1744_v39  ;;  %v3238_v25 = vsel %vm473_vm6, 1, %v15179_v53  ;;  %vm10546_vm13 = vmor %vm1746_vm4, %vm1747_vm15  ;;  %vm10550_vm12 = vcmp.eq.f32.partialorder %v1750_v16, 8.507059e+37  ;;  %v1753_v2 = vor.u32 1.1754944e-38, %v1752_v1  ;;  %v10566_v16 = vld [vmem:[%s14557_s0 + $0x8] sm:$0xff] }
 0x1cc   : > { %v3800_v15 = vpack.c.bf16 %v3772_v21, %v3772_v21  ;;  %4360 = vst [vmem:[#allocation2 + $0x88] sm:$0xff] %v3772_v21  ;;  %7878 = vpow2.f32 %v1365_v5  ;;  %3289 = vperm.xlu0 %7770, %v3238_v25   ;;  %v10554_v13 = vadd.f32 %v1238_v47, %v1130_v51  ;;  %v10561_v57 = vor.u32 %v7563_v36, %v7127_v59  ;;  %v1132_v47 = vpop.f32.mrf.mxu0 }
 0x1cd   : > { %v1749_v26 = vsel %vm10546_vm13, %v10503_v32, %v1745_v48  ;;  %vm389_vm4 = vcmp.lt.s32.totalorder %v10566_v16, 14  ;;  %vm471_vm10 = vcmp.ge.s32.totalorder %v8086_v24, 2  ;;  %vm14789_vm6 = vcmp.eq.s32.totalorder %v15312_v28, 1  ;;  %vm10575_vm13 = vmand %vm582_vm11, %vm623_vm14  ;;  %v10618_v32 = vpop.permute.xlu0 %3011 }
 0x1ce   : > { %3816 = vst [vmem:[#allocation4 + $0xc] sm:$0xf] %v3800_v15  ;;  %vm14738_vm15 = vcmp.eq.s32.totalorder %v10319_v42, 1  ;;  %v2251_v51 = vld [vmem:[#allocation2 + $0xb1] sm:$0xff]  ;;  %v1754_v37 = vsel %vm10550_vm12, %v1753_v2, %v1749_v26  ;;  %v2914_v1 = vsel %vm389_vm4, 1, %v15179_v53  ;;  %v530_v15 = vadd.s32 168, %v8963_v10  ;;  %4137 = vmatmul.bf16.gmra.mxu2 %v10561_v57 }
 0x1cf   : > { %15311 = vst [vmem:[#allocation110_spill] sm:$0xff] %v10561_v57  ;;  %v10584_v21 = vpop.eup %7876  ;;  %v1755_v39 = vmul.f32 %v1754_v37, %v10305_v8  ;;  %v2491_v35 = vsel %vm14938_vm0, %v2251_v51, -inf  ;;  %v1304_v5 = vsub.f32 0.0, %v10554_v13  ;;  %v2811_v36 = vsel %vm14789_vm6, %v10510_v38, -inf  ;;  %v2891_v48 = vld [vmem:[#allocation2 + $0xb2] sm:$0xff]  ;;  %2957 = vperm.xlu2 %7772, %v2914_v1  }
 0x1d0   : > { %v1757_v6 = vmul.f32 %v10584_v21, %v10526_v20  ;;  %v2531_v25 = vmax.f32 %v10388_v4, %v2491_v35  ;;  %v3236_v8 = vsel %vm471_vm10, 1, %v15179_v53  ;;  %v1765_v44 = vand.u32 2147483647, %v10526_v20  ;;  %v10609_v38 = vld [vmem:[%s14557_s0 + $0x10] sm:$0xff]  ;;  %15316 = vst [vmem:[#allocation112_spill] sm:$0xff] %v10618_v32 }
 0x1d1   : > { %v10602_v12 = vsel %vm10575_vm13, %v1755_v39, -inf  ;;  %vm14713_vm12 = vcmp.eq.s32.totalorder %v10581_v23, 1  ;;  %vm390_vm11 = vcmp.lt.s32.totalorder %v10609_v38, 14  ;;  %v1767_v59 = vand.u32 2147483648, %v10526_v20 }
 0x1d2   : > { %v7879_v4 = vpop.eup %7878  ;;  %v2169_v24 = vpack.c.bf16 %v10602_v12, %v10602_v12  ;;  %2213 = vst [vmem:[#allocation2 + $0xc0] sm:$0xff] %v10602_v12  ;;  %v1758_v2 = vsub.f32 1.0, %v1757_v6  ;;  %v2851_v26 = vmax.f32 %v2531_v25, %v2811_v36  ;;  %v3131_v51 = vsel %vm14738_vm15, %v2891_v48, -inf  ;;  %3283 = vperm.xlu1 %7771, %v3236_v8   ;;  %v7287_v48 = vld [vmem:[#allocation8 + $0xe0] sm:$0xf] }
 0x1d3   : > { %v10620_v37 = vadd.f32 1.0, %v7879_v4  ;;  %v1367_v1 = vmul.f32 1.442695, %v1304_v5  ;;  %v1133_v39 = vadd.f32 %v10159_v45, %v1132_v47  ;;  %vm1762_vm14 = vweird.f32 %v10584_v21  ;;  %v7603_v25 = vld [vmem:[#allocation8 + $0xe4] sm:$0xf0]  ;;  %v1241_v4 = vpop.f32.mrf.mxu1 }
 0x1d4   : > { %2185 = vst [vmem:[#allocation4 + $0x40] sm:$0xf] %v2169_v24  ;;  %v1759_v35 = vmul.f32 %v10584_v21, %v1758_v2  ;;  %v3171_v6 = vmax.f32 %v2851_v26, %v3131_v51  ;;  %v2915_v36 = vsel %vm390_vm11, 1, %v15179_v53  ;;  %vm583_vm4 = vcmp.ge.s32.totalorder %v530_v15, %v8965_v18  ;;  %v15317_v24 = vld [vmem:[#allocation40_spill] sm:$0xff]  ;;  %v10640_v26 = vpop.permute.xlu2 %3020 }
 0x1d5   : > { %vm624_vm10 = vcmp.lt.s32.totalorder %v530_v15, %v8967_v19  ;;  %v3451_v5 = vsel %vm14713_vm12, %v10512_v27, -inf  ;;  %7880 = vrcp.f32 %v10620_v37  ;;  %2960 = vperm.xlu0 %7770, %v2915_v36   ;;  %vm1761_vm13 = vweird.f32 %v10526_v20  ;;  %v2572_v2 = vld [vmem:[#allocation2 + $0xb7] sm:$0xff]  ;;  %15318 = vst [vmem:[#allocation113_spill] sm:$0xff] %v10640_v26  ;;  %v10645_v20 = vpop.permute.xlu1 %2697  ;;  %v10666_v15 = vld [vmem:[%s14557_s0] sm:$0xff] }
 0x1d6   : > { %v1760_v8 = vadd.f32 %v10584_v21, %v1759_v35  ;;  %v3491_v47 = vmax.f32 %v3171_v6, %v3451_v5  ;;  %7882 = vpow2.f32 %v1367_v1  ;;  %vm14791_vm11 = vcmp.eq.s32.totalorder %v15317_v24, 1  ;;  %vm1763_vm12 = vmor %vm1761_vm13, %vm1762_vm14  ;;  %v3212_v51 = vld [vmem:[#allocation2 + $0xb6] sm:$0xff]  ;;  %15319 = vst [vmem:[#allocation114_spill] sm:$0xff] %v10645_v20 }
 0x1d7   : > { %vm14726_vm3 = vcmp.eq.s32.totalorder %v10431_v29, 1  ;;  %v1768_v27 = vor.u32 1.1754944e-38, %v1767_v59  ;;  %v10642_v36 = vadd.f32 %v1241_v4, %v1133_v39  ;;  %vm1766_vm7 = vcmp.eq.f32.partialorder %v1765_v44, 8.507059e+37  ;;  %vm10653_vm14 = vmand %vm583_vm4, %vm624_vm10 }
 0x1d8   : > { %v1764_v35 = vsel %vm1763_vm12, %v10584_v21, %v1760_v8  ;;  %3531 = vst [vmem:[#allocation2 + $0xb0] sm:$0xff] %v3491_v47  ;;  %v7288_v1 = vor.u32 %v7603_v25, %v7287_v48  ;;  %vm469_vm1 = vcmp.ge.s32.totalorder %v10566_v16, 2  ;;  %vm14739_vm2 = vcmp.eq.s32.totalorder %v10505_v55, 1  ;;  %v11216_v55 = vld [vmem:[#allocation2 + $0x90] sm:$0xff] }
 0x1d9   : > { %v2252_v6 = vld [vmem:[#allocation2 + $0xb9] sm:$0xff]  ;;  %v1769_v39 = vsel %vm1766_vm7, %v1768_v27, %v1764_v35  ;;  %v1305_v21 = vsub.f32 0.0, %v10642_v36  ;;  %v3234_v44 = vsel %vm469_vm1, 1, %v15179_v53  ;;  %vm14735_vm12 = vcmp.eq.s32.totalorder %v10618_v32, 1  ;;  %v15322_v35 = vld [vmem:[#allocation39_spill] sm:$0xff] }
 0x1da   : > { %v2492_v5 = vsel %vm14791_vm11, %v2252_v6, -inf  ;;  %v1770_v16 = vmul.f32 %v1769_v39, %v10402_v33  ;;  %4169 = vmatpush.bf16.msrb.mxu3 %v7288_v1  ;;  %3277 = vperm.xlu2 %7772, %v3234_v44   ;;  %vm388_vm7 = vcmp.lt.s32.totalorder %v10666_v15, 14  ;;  %v2812_v8 = vsel %vm14739_vm2, %v2572_v2, -inf  ;;  %v2892_v47 = vld [vmem:[#allocation2 + $0xba] sm:$0xff]  ;;  %v7279_v39 = vld [vmem:[#allocation8 + $0xd0] sm:$0xf] }
 0x1db   : > { %v10669_v48 = vpop.eup %7880  ;;  %v2532_v25 = vmax.f32 %v10514_v62, %v2492_v5  ;;  %v3452_v33 = vsel %vm14726_vm3, %v3212_v51, -inf  ;;  %v10677_v4 = vadd.s32 176, %v8963_v10  ;;  %vm14741_vm1 = vcmp.eq.s32.totalorder %v15322_v35, 1  ;;  %v10690_v5 = vpop.permute.xlu0 %2694  ;;  %v7636_v32 = vld [vmem:[#allocation8 + $0x174] sm:$0xf]  ;;  %v2573_v0 = vld [vmem:[#allocation2 + $0xbf] sm:$0xff] }
 0x1dc   : > { %v7883_v27 = vpop.eup %7882  ;;  %v10682_v1 = vsel %vm10653_vm14, %v1770_v16, -inf  ;;  %v1772_v62 = vmul.f32 %v10669_v48, %v10620_v37  ;;  %v1782_v6 = vand.u32 2147483648, %v10620_v37  ;;  %v1369_v2 = vmul.f32 1.442695, %v1305_v21  ;;  %15323 = vst [vmem:[#allocation115_spill] sm:$0xff] %v10690_v5 }
 0x1dd   : > { %v2852_v44 = vmax.f32 %v2532_v25, %v2812_v8  ;;  %v2170_v51 = vpack.c.bf16 %v10682_v1, %v10682_v1  ;;  %2214 = vst [vmem:[#allocation2 + $0xc8] sm:$0xff] %v10682_v1  ;;  %v10692_v29 = vadd.f32 1.0, %v7883_v27  ;;  %v2913_v59 = vsel %vm388_vm7, 1, %v15179_v53  ;;  %v7601_v16 = vld [vmem:[#allocation8 + $0xd4] sm:$0xf0] }
 0x1de   : > { %v3132_v23 = vsel %vm14735_vm12, %v2892_v47, -inf  ;;  %v1773_v21 = vsub.f32 1.0, %v1772_v62  ;;  %7884 = vpow2.f32 %v1369_v2  ;;  %2954 = vperm.xlu1 %7771, %v2913_v59   ;;  %vm470_vm4 = vcmp.ge.s32.totalorder %v10609_v38, 2  ;;  %v7565_v25 = vld [vmem:[#allocation4 + $0x34] sm:$0xf0]  ;;  %v10714_v59 = vpop.permute.xlu2 %3343 }
 0x1df   : > { %v10700_v8 = vld [vmem:[#allocation8 + $0xc0] sm:$0xf]  ;;  %2186 = vst [vmem:[#allocation4 + $0x48] sm:$0xf] %v2170_v51  ;;  %v3172_v27 = vmax.f32 %v2852_v44, %v3132_v23  ;;  %vm584_vm10 = vcmp.ge.s32.totalorder %v10677_v4, %v8965_v18  ;;  %v1780_v7 = vand.u32 2147483647, %v10620_v37  ;;  %7886 = vrcp.f32 %v10692_v29  ;;  %v1134_v23 = vpop.f32.mrf.mxu0 }
 0x1e0   : > { %vm14740_vm13 = vcmp.eq.s32.totalorder %v10498_v43, 1  ;;  %v1774_v47 = vmul.f32 %v10669_v48, %v1773_v21  ;;  %vm1777_vm14 = vweird.f32 %v10669_v48  ;;  %v3235_v38 = vsel %vm470_vm4, 1, %v15179_v53  ;;  %v7425_v62 = vld [vmem:[#allocation8 + $0x178] sm:$0xf0]  ;;  %v7652_v2 = vld [vmem:[#allocation8 + $0x1f4] sm:$0xf] }
 0x1e1   : > { %v7280_v51 = vor.u32 %v7601_v16, %v7279_v39  ;;  %v10710_v44 = vmax.f32 %v3172_v27, %v3452_v33  ;;  %vm625_vm7 = vcmp.lt.s32.totalorder %v10677_v4, %v8967_v19  ;;  %15324 = vst [vmem:[#allocation116_spill] sm:$0xff] %v10714_v59  ;;  %vm14749_vm3 = vcmp.eq.s32.totalorder %v10690_v5, 1  ;;  %3280 = vperm.xlu0 %7770, %v3235_v38   ;;  %v7489_v21 = vld [vmem:[#allocation8 + $0x1f8] sm:$0xf0]  ;;  %v10721_v33 = vpop.permute.xlu1 %3334  ;;  %v7135_v27 = vld [vmem:[#allocation4 + $0x30] sm:$0xf] }
 0x1e2   : > { %v7428_v60 = vor.u32 %v7636_v32, %v7425_v62  ;;  %v1775_v56 = vadd.f32 %v10669_v48, %v1774_v47  ;;  %vm1776_vm4 = vweird.f32 %v10620_v37  ;;  %v1783_v9 = vor.u32 1.1754944e-38, %v1782_v6  ;;  %v10719_v39 = vld [vmem:[#allocation2 + $0xbe] sm:$0xff]  ;;  %15325 = vst [vmem:[#allocation117_spill] sm:$0xff] %v10721_v33  ;;  %v10737_v47 = vld [vmem:[%s14557_s0 + $0x108] sm:$0xff] }
 0x1e3   : > { %v7492_v16 = vor.u32 %v7652_v2, %v7489_v21  ;;  %4170 = vmatpush.bf16.msrb.mxu3 %v7280_v51  ;;  %vm10725_vm12 = vmor %vm1776_vm4, %vm1777_vm14  ;;  %3532 = vst [vmem:[#allocation2 + $0xb8] sm:$0xff] %v10710_v44  ;;  %v1135_v32 = vadd.f32 %v10159_v45, %v1134_v23  ;;  %v10731_v37 = vor.u32 %v7565_v25, %v7135_v27  ;;  %vm461_vm15 = vcmp.ge.s32.totalorder %v10737_v47, 1 }
 0x1e4   : > { %6297 = vmatpush.bf16.msrb.mxu0 %v7428_v60  ;;  %v7272_v6 = vor.u32 %v7599_v34, %v10700_v8  ;;  %v7885_v38 = vpop.eup %7884  ;;  %v1779_v62 = vsel %vm10725_vm12, %v10669_v48, %v1775_v56  ;;  %vm1781_vm14 = vcmp.eq.f32.partialorder %v1780_v7, 8.507059e+37  ;;  %v2253_v60 = vld [vmem:[#allocation2 + $0xc1] sm:$0xff]  ;;  %v2626_v45 = vsel %vm461_vm15, 1, %v15179_v53  ;;  %vm10758_vm12 = vmand %vm584_vm10, %vm625_vm7  ;;  %v1243_v8 = vpop.f32.mrf.mxu1 }
 0x1e5   : > { %15328 = vst [vmem:[#allocation118_spill] sm:$0xff] %v10731_v37  ;;  %6346 = vmatpush.bf16.msrb.mxu1 %v7492_v16  ;;  %v10747_v34 = vld [vmem:[%s14557_s0 + $0x100] sm:$0xff]  ;;  %v10750_v25 = vpop.eup %7886  ;;  %v1784_v56 = vsel %vm1781_vm14, %v1783_v9, %v1779_v62  ;;  %vm14767_vm15 = vcmp.eq.s32.totalorder %v10645_v20, 1  ;;  %v2493_v7 = vsel %vm14741_vm1, %v2253_v60, -inf  ;;  %v10766_v48 = vadd.s32 184, %v8963_v10  ;;  %4142 = vmatmul.bf16.gmra.mxu2 %v10731_v37  ;;  %v10779_v16 = vpop.permute.xlu0 %3017  ;;  %v10945_v20 = vld [vmem:[%s14557_s0 + $0x110] sm:$0xff] }
 0x1e6   : > { %vm460_vm4 = vcmp.ge.s32.totalorder %v10747_v34, 1  ;;  %vm14743_vm2 = vcmp.eq.s32.totalorder %v10721_v33, 1  ;;  %2733 = vperm.xlu2 %7772, %v2626_v45   ;;  %v1785_v4 = vmul.f32 %v1784_v56, %v10508_v11  ;;  %v2533_v2 = vmax.f32 %v10602_v12, %v2493_v7  ;;  %v2893_v51 = vld [vmem:[#allocation2 + $0xc2] sm:$0xff]  ;;  %15331 = vst [vmem:[#allocation119_spill] sm:$0xff] %v10779_v16 }
 0x1e7   : > { %v1787_v9 = vmul.f32 %v10750_v25, %v10692_v29  ;;  %v10775_v23 = vadd.s32 192, %v8963_v10  ;;  %4171 = vmatpush.bf16.msrb.mxu3 %v7272_v6  ;;  %v2813_v21 = vsel %vm14749_vm3, %v2573_v0, -inf  ;;  %v10781_v27 = vadd.f32 1.0, %v7885_v38  ;;  %v15332_v12 = vld [vmem:[#allocation47_spill] sm:$0xff] }
 0x1e8   : > { %v10783_v62 = vadd.f32 %v1243_v8, %v1135_v32  ;;  %v2625_v11 = vsel %vm460_vm4, 1, %v15179_v53  ;;  %vm14788_vm10 = vcmp.eq.s32.totalorder %v15332_v12, 1  ;;  %vm14750_vm7 = vcmp.eq.s32.totalorder %v10559_v46, 1  ;;  %v7263_v8 = vld [vmem:[#allocation8 + $0xb0] sm:$0xf]  ;;  %v3214_v33 = vld [vmem:[#allocation2 + $0xc6] sm:$0xff] }
 0x1e9   : > { %v10792_v6 = vsel %vm10758_vm12, %v1785_v4, -inf  ;;  %v2853_v60 = vmax.f32 %v2533_v2, %v2813_v21  ;;  %v1788_v0 = vsub.f32 1.0, %v1787_v9  ;;  %2730 = vperm.xlu1 %7771, %v2625_v11   ;;  %vm468_vm14 = vcmp.ge.s32.totalorder %v10666_v15, 2  ;;  %v7597_v4 = vld [vmem:[#allocation8 + $0xb4] sm:$0xf0]  ;;  %v1137_v2 = vpop.f32.mrf.mxu0  ;;  %v2574_v9 = vld [vmem:[#allocation2 + $0xc7] sm:$0xff]  ;;  %v10807_v21 = vpop.permute.xlu2 %3026 }
 0x1ea   : > { %v2171_v32 = vpack.c.bf16 %v10792_v6, %v10792_v6  ;;  %2215 = vst [vmem:[#allocation2 + $0xd0] sm:$0xff] %v10792_v6  ;;  %v1797_v38 = vand.u32 2147483648, %v10692_v29  ;;  %v3133_v45 = vsel %vm14740_vm13, %v2893_v51, -inf  ;;  %7888 = vrcp.f32 %v10781_v27  ;;  %v7595_v37 = vld [vmem:[#allocation8 + $0xa4] sm:$0xf0] }
 0x1eb   : > { %v1789_v14 = vmul.f32 %v10750_v25, %v1788_v0  ;;  %vm1792_vm4 = vweird.f32 %v10750_v25  ;;  %v1795_v56 = vand.u32 2147483647, %v10692_v29  ;;  %v3173_v7 = vmax.f32 %v2853_v60, %v3133_v45  ;;  %15333 = vst [vmem:[#allocation120_spill] sm:$0xff] %v10807_v21  ;;  %v7255_v45 = vld [vmem:[#allocation8 + $0xa0] sm:$0xf] }
 0x1ec   : > { %2187 = vst [vmem:[#allocation4 + $0x50] sm:$0xf] %v2171_v32  ;;  %vm585_vm12 = vcmp.ge.s32.totalorder %v10766_v48, %v8965_v18  ;;  %v3453_v51 = vsel %vm14743_vm2, %v10719_v39, -inf  ;;  %v1306_v11 = vsub.f32 0.0, %v10783_v62  ;;  %v3233_v60 = vsel %vm468_vm14, 1, %v15179_v53 }
 0x1ed   : > { %vm626_vm13 = vcmp.lt.s32.totalorder %v10766_v48, %v8967_v19  ;;  %v1790_v0 = vadd.f32 %v10750_v25, %v1789_v14  ;;  %vm1791_vm1 = vweird.f32 %v10692_v29  ;;  %v10820_v32 = vmax.f32 %v3173_v7, %v3453_v51  ;;  %3274 = vperm.xlu0 %7770, %v3233_v60   ;;  %v7143_v12 = vld [vmem:[#allocation4 + $0x40] sm:$0xf] }
 0x1ee   : > { %vm10824_vm2 = vmor %vm1791_vm1, %vm1792_vm4  ;;  %v1798_v15 = vor.u32 1.1754944e-38, %v1797_v38  ;;  %vm14763_vm14 = vcmp.eq.s32.totalorder %v10779_v16, 1  ;;  %v1371_v57 = vmul.f32 1.442695, %v1306_v11  ;;  %v7264_v40 = vor.u32 %v7597_v4, %v7263_v8  ;;  %v10839_v38 = vpop.permute.xlu1 %2703  ;;  %v10856_v8 = vld [vmem:[%s14560_s3] ss:$0 sm:$0xff] }
 0x1ef   : > { %v2814_v29 = vsel %vm14767_vm15, %v2574_v9, -inf  ;;  %v1794_v14 = vsel %vm10824_vm2, %v10750_v25, %v1790_v0  ;;  %vm1796_vm3 = vcmp.eq.f32.partialorder %v1795_v56, 8.507059e+37  ;;  %3533 = vst [vmem:[#allocation2 + $0xc0] sm:$0xff] %v10820_v32  ;;  %vm586_vm1 = vcmp.ge.s32.totalorder %v10775_v23, %v8965_v18  ;;  %vm10849_vm2 = vmand %vm585_vm12, %vm626_vm13  ;;  %v1246_v9 = vpop.f32.mrf.mxu1 }
 0x1f0   : > { %vm627_vm4 = vcmp.lt.s32.totalorder %v10775_v23, %v8967_v19  ;;  %15336 = vst [vmem:[#allocation121_spill] sm:$0xff] %v10839_v38  ;;  %v10841_v7 = vpop.eup %7888  ;;  %v1799_v56 = vsel %vm1796_vm3, %v1798_v15, %v1794_v14  ;;  %7890 = vpow2.f32 %v1371_v57  ;;  %4172 = vmatpush.bf16.msrb.mxu3 %v7264_v40  ;;  %v1138_v4 = vadd.f32 %v10856_v8, %v1137_v2  ;;  %v10870_v2 = vpop.permute.xlu0 %2700  ;;  %v10939_v23 = vld [vmem:[%s14557_s0 + $0x118] sm:$0xff] }
 0x1f1   : > { %v7256_v51 = vor.u32 %v7595_v37, %v7255_v45  ;;  %v2254_v11 = vld [vmem:[#allocation2 + $0xc9] sm:$0xff]  ;;  %v1800_v60 = vmul.f32 %v1799_v56, %v10554_v13  ;;  %v1802_v48 = vmul.f32 %v10841_v7, %v10781_v27  ;;  %vm500_vm13 = vcmp.ge.s32.totalorder %v10747_v34, 2  ;;  %15339 = vst [vmem:[#allocation122_spill] sm:$0xff] %v10870_v2  ;;  %v7593_v56 = vld [vmem:[#allocation8 + $0x94] sm:$0xf0] }
 0x1f2   : > { %vm421_vm3 = vcmp.lt.s32.totalorder %v10737_v47, 14  ;;  %v2494_v40 = vsel %vm14788_vm10, %v2254_v11, -inf  ;;  %v3454_v57 = vsel %vm14750_vm7, %v3214_v33, -inf  ;;  %vm1806_vm12 = vweird.f32 %v10781_v27  ;;  %v7247_v13 = vld [vmem:[#allocation8 + $0x90] sm:$0xf] }
 0x1f3   : > { %v1810_v37 = vand.u32 2147483647, %v10781_v27  ;;  %v2534_v0 = vmax.f32 %v10682_v1, %v2494_v40  ;;  %v10875_v45 = vsel %vm10849_vm2, %v1800_v60, -inf  ;;  %v2894_v39 = vld [vmem:[#allocation2 + $0xca] sm:$0xff]  ;;  %v1803_v15 = vsub.f32 1.0, %v1802_v48 }
 0x1f4   : > { %v1812_v14 = vand.u32 2147483648, %v10781_v27  ;;  %v2172_v33 = vpack.c.bf16 %v10875_v45, %v10875_v45  ;;  %2216 = vst [vmem:[#allocation2 + $0xd8] sm:$0xff] %v10875_v45  ;;  %v10881_v11 = vadd.f32 %v1246_v9, %v1138_v4  ;;  %4173 = vmatpush.bf16.msrb.mxu3 %v7256_v51  ;;  %v3265_v1 = vsel %vm500_vm13, 1, %v15179_v53  ;;  %v7239_v60 = vld [vmem:[#allocation8 + $0x80] sm:$0xf]  ;;  %v1139_v4 = vpop.f32.mrf.mxu0 }
 0x1f5   : > { %v2946_v25 = vsel %vm421_vm3, 1, %v15179_v53  ;;  %v2854_v48 = vmax.f32 %v2534_v0, %v2814_v29  ;;  %v1804_v40 = vmul.f32 %v10841_v7, %v1803_v15  ;;  %vm1807_vm2 = vweird.f32 %v10841_v7  ;;  %3370 = vperm.xlu2 %7772, %v3265_v1   ;;  %v7567_v9 = vld [vmem:[#allocation4 + $0x44] sm:$0xf0]  ;;  %v10898_v29 = vpop.permute.xlu2 %3349 }
 0x1f6   : > { %3053 = vperm.xlu1 %7771, %v2946_v25   ;;  %vm420_vm7 = vcmp.lt.s32.totalorder %v10747_v34, 14  ;;  %v7591_v51 = vld [vmem:[#allocation8 + $0x84] sm:$0xf0]  ;;  %v7891_v46 = vpop.eup %7890  ;;  %2188 = vst [vmem:[#allocation4 + $0x58] sm:$0xf] %v2172_v33  ;;  %v3134_v43 = vsel %vm14763_vm14, %v2894_v39, -inf  ;;  %v7248_v33 = vor.u32 %v7593_v56, %v7247_v13  ;;  %vm1808_vm3 = vmor %vm1806_vm12, %vm1807_vm2  ;;  %v1140_v16 = vadd.f32 %v10856_v8, %v1139_v4 }
 0x1f7   : > { %vm10894_vm13 = vcmp.eq.f32.partialorder %v1810_v37, 8.507059e+37  ;;  %15342 = vst [vmem:[#allocation123_spill] sm:$0xff] %v10898_v29  ;;  %v1307_v0 = vsub.f32 0.0, %v10881_v11  ;;  %v2945_v15 = vsel %vm420_vm7, 1, %v15179_v53  ;;  %v3174_v1 = vmax.f32 %v2854_v48, %v3134_v43  ;;  %v15345_v56 = vld [vmem:[#allocation43_spill] sm:$0xff]  ;;  %vm10925_vm12 = vmand %vm586_vm1, %vm627_vm4  ;;  %v15349_v4 = vld [vmem:[#allocation42_spill] sm:$0xff] }
 0x1f8   : > { %v1805_v34 = vadd.f32 %v10841_v7, %v1804_v40  ;;  %v10903_v25 = vadd.f32 1.0, %v7891_v46  ;;  %3050 = vperm.xlu0 %7770, %v2945_v15   ;;  %v1813_v37 = vor.u32 1.1754944e-38, %v1812_v14  ;;  %v10910_v35 = vor.u32 %v7567_v9, %v7143_v12  ;;  %v10916_v46 = vpop.permute.xlu1 %3340  ;;  %4174 = vmatpush.bf16.msrb.mxu3 %v7248_v33  ;;  %v1248_v14 = vpop.f32.mrf.mxu1 }
 0x1f9   : > { %v1373_v39 = vmul.f32 1.442695, %v1307_v0  ;;  %v10912_v63 = vmax.f32 %v3174_v1, %v3454_v57  ;;  %15344 = vst [vmem:[#allocation125_spill] sm:$0xff] %v10916_v46  ;;  %v7240_v13 = vor.u32 %v7591_v51, %v7239_v60  ;;  %vm14768_vm7 = vcmp.eq.s32.totalorder %v15345_v56, 1  ;;  %v3215_v57 = vld [vmem:[#allocation2 + $0xce] sm:$0xff] }
 0x1fa   : > { %15343 = vst [vmem:[#allocation124_spill] sm:$0xff] %v10910_v35  ;;  %v1809_v43 = vsel %vm1808_vm3, %v10841_v7, %v1805_v34  ;;  %7892 = vrcp.f32 %v10903_v25  ;;  %v2575_v7 = vld [vmem:[#allocation2 + $0xcf] sm:$0xff]  ;;  %4147 = vmatmul.bf16.gmra.mxu2 %v10910_v35  ;;  %v10934_v40 = vadd.f32 %v1248_v14, %v1140_v16  ;;  %vm463_vm1 = vcmp.ge.s32.totalorder %v10939_v23, 1  ;;  %v10951_v16 = vpop.permute.xlu0 %3023 }
 0x1fb   : > { %v1814_v12 = vsel %vm10894_vm13, %v1813_v37, %v1809_v43  ;;  %7894 = vpow2.f32 %v1373_v39  ;;  %v2255_v48 = vld [vmem:[#allocation2 + $0xd1] sm:$0xff]  ;;  %3534 = vst [vmem:[#allocation2 + $0xc8] sm:$0xff] %v10912_v63  ;;  %vm462_vm4 = vcmp.ge.s32.totalorder %v10945_v20, 1  ;;  %vm14766_vm2 = vcmp.eq.s32.totalorder %v10870_v2, 1 }
 0x1fc   : > { %v1815_v60 = vmul.f32 %v1814_v12, %v10642_v36  ;;  %v2495_v36 = vsel %vm14768_vm7, %v2255_v48, -inf  ;;  %15348 = vst [vmem:[#allocation126_spill] sm:$0xff] %v10951_v16  ;;  %vm14779_vm13 = vcmp.eq.s32.totalorder %v15349_v4, 1  ;;  %vm14765_vm3 = vcmp.eq.s32.totalorder %v10640_v26, 1  ;;  %v2895_v15 = vld [vmem:[#allocation2 + $0xd2] sm:$0xff]  ;;  %4175 = vmatpush.bf16.msrb.mxu3 %v7240_v13  ;;  %v1142_v13 = vpop.f32.mrf.mxu0 }
 0x1fd   : > { %v2535_v51 = vmax.f32 %v10792_v6, %v2495_v36  ;;  %v2815_v0 = vsel %vm14766_vm2, %v2575_v7, -inf  ;;  %v1308_v34 = vsub.f32 0.0, %v10934_v40  ;;  %v2628_v33 = vsel %vm463_vm1, 1, %v15179_v53  ;;  %v10977_v7 = vpop.permute.xlu2 %3032 }
 0x1fe   : > { %v10957_v9 = vsel %vm10925_vm12, %v1815_v60, -inf  ;;  %v2627_v37 = vsel %vm462_vm4, 1, %v15179_v53  ;;  %vm14780_vm12 = vcmp.eq.s32.totalorder %v10714_v59, 1  ;;  %v534_v43 = vadd.s32 200, %v8963_v10  ;;  %2739 = vperm.xlu2 %7772, %v2628_v33   ;;  %15350 = vst [vmem:[#allocation127_spill] sm:$0xff] %v10977_v7 }
 0x1ff   : > { %v2173_v1 = vpack.c.bf16 %v10957_v9, %v10957_v9  ;;  %2217 = vst [vmem:[#allocation2 + $0xe0] sm:$0xff] %v10957_v9  ;;  %v2855_v6 = vmax.f32 %v2535_v51, %v2815_v0  ;;  %2736 = vperm.xlu1 %7771, %v2627_v37   ;;  %vm501_vm14 = vcmp.ge.s32.totalorder %v10737_v47, 2  ;;  %v3135_v14 = vsel %vm14765_vm3, %v2895_v15, -inf  ;;  %v2576_v15 = vld [vmem:[#allocation2 + $0xd7] sm:$0xff] }
 0x200   : > { %v10970_v39 = vpop.eup %7892  ;;  %v1375_v60 = vmul.f32 1.442695, %v1308_v34  ;;  %v3266_v48 = vsel %vm501_vm14, 1, %v15179_v53  ;;  %vm14764_vm1 = vcmp.eq.s32.totalorder %v10916_v46, 1  ;;  %v3799_v47 = vpack.c.bf16 %v10501_v31, %v10501_v31  ;;  %v1251_v31 = vpop.f32.mrf.mxu1  ;;  %v7233_v46 = vld [vmem:[#allocation8 + $0x78] sm:$0xf0] }
 0x201   : > { %v7895_v27 = vpop.eup %7894  ;;  %2189 = vst [vmem:[#allocation4 + $0x60] sm:$0xf] %v2173_v1  ;;  %v1817_v12 = vmul.f32 %v10970_v39, %v10903_v25  ;;  %v3175_v36 = vmax.f32 %v2855_v6, %v3135_v14  ;;  %3373 = vperm.xlu0 %7770, %v3266_v48   ;;  %v3455_v1 = vsel %vm14764_vm1, %v3215_v57, -inf  ;;  %v1143_v33 = vadd.f32 %v10856_v8, %v1142_v13  ;;  %v10995_v6 = vpop.permute.xlu1 %2709  ;;  %v3216_v13 = vld [vmem:[#allocation2 + $0xd6] sm:$0xff] }
 0x202   : > { %v10983_v51 = vadd.f32 1.0, %v7895_v27  ;;  %7896 = vpow2.f32 %v1375_v60  ;;  %vm1822_vm4 = vweird.f32 %v10970_v39  ;;  %v1827_v34 = vand.u32 2147483648, %v10903_v25  ;;  %15351 = vst [vmem:[#allocation128_spill] sm:$0xff] %v10995_v6 }
 0x203   : > { %v1818_v0 = vsub.f32 1.0, %v1817_v12  ;;  %v10992_v37 = vmax.f32 %v3175_v36, %v3455_v1  ;;  %3815 = vst [vmem:[#allocation4 + $0x4] sm:$0xf] %v3799_v47  ;;  %vm14782_vm14 = vcmp.eq.s32.totalorder %v10839_v38, 1  ;;  %v1825_v27 = vand.u32 2147483647, %v10903_v25 }
 0x204   : > { %7898 = vrcp.f32 %v10983_v51  ;;  %v11001_v12 = vadd.s32 208, %v8963_v10  ;;  %vm587_vm1 = vcmp.ge.s32.totalorder %v534_v43, %v8965_v18  ;;  %vm628_vm3 = vcmp.lt.s32.totalorder %v534_v43, %v8967_v19  ;;  %v7604_v38 = vld [vmem:[#allocation8 + $0xf4] sm:$0xf]  ;;  %v1144_v47 = vpop.f32.mrf.mxu0 }
 0x205   : > { %v1819_v57 = vmul.f32 %v10970_v39, %v1818_v0  ;;  %vm1821_vm2 = vweird.f32 %v10903_v25  ;;  %3535 = vst [vmem:[#allocation2 + $0xd0] sm:$0xff] %v10992_v37  ;;  %vm14781_vm15 = vcmp.eq.s32.totalorder %v10951_v16, 1  ;;  %v2816_v48 = vsel %vm14782_vm14, %v2576_v15, -inf  ;;  %v11019_v0 = vpop.permute.xlu0 %2706  ;;  %v7588_v25 = vld [vmem:[#allocation8 + $0x74] sm:$0xf]  ;;  %v11110_v16 = vld [vmem:[%s14557_s0 + $0x128] sm:$0xff] }
 0x206   : > { %v2256_v14 = vld [vmem:[#allocation2 + $0xd9] sm:$0xff]  ;;  %vm11015_vm7 = vmor %vm1821_vm2, %vm1822_vm4  ;;  %15354 = vst [vmem:[#allocation129_spill] sm:$0xff] %v11019_v0  ;;  %v11021_v1 = vadd.f32 %v1251_v31, %v1143_v33  ;;  %v1828_v4 = vor.u32 1.1754944e-38, %v1827_v34  ;;  %vm1826_vm2 = vcmp.eq.f32.partialorder %v1825_v27, 8.507059e+37  ;;  %v3456_v26 = vsel %vm14780_vm12, %v3216_v13, -inf }
 0x207   : > { %v2496_v60 = vsel %vm14779_vm13, %v2256_v14, -inf  ;;  %v1820_v36 = vadd.f32 %v10970_v39, %v1819_v57  ;;  %v2896_v14 = vld [vmem:[#allocation2 + $0xda] sm:$0xff]  ;;  %vm588_vm4 = vcmp.ge.s32.totalorder %v11001_v12, %v8965_v18  ;;  %v7236_v33 = vor.u32 %v7588_v25, %v7233_v46  ;;  %vm11037_vm13 = vmand %vm587_vm1, %vm628_vm3  ;;  %v7113_v13 = vld [vmem:[#allocation4 + $0x8] sm:$0xf0] }
 0x208   : > { %v2536_v35 = vmax.f32 %v10875_v45, %v2496_v60  ;;  %v7897_v15 = vpop.eup %7896  ;;  %v7297_v31 = vld [vmem:[#allocation8 + $0xf8] sm:$0xf0]  ;;  %v3136_v46 = vsel %vm14781_vm15, %v2896_v14, -inf  ;;  %v1309_v43 = vsub.f32 0.0, %v11021_v1  ;;  %v1145_v34 = vadd.f32 %v10856_v8, %v1144_v47 }
 0x209   : > { %v1824_v57 = vsel %vm11015_vm7, %v10970_v39, %v1820_v36  ;;  %v11041_v27 = vadd.f32 1.0, %v7897_v15  ;;  %v7300_v60 = vor.u32 %v7604_v38, %v7297_v31  ;;  %4217 = vmatpush.bf16.msra.mxu2 %v7236_v33  ;;  %vm502_vm7 = vcmp.ge.s32.totalorder %v10945_v20, 2  ;;  %v2577_v47 = vld [vmem:[#allocation2 + $0xdf] sm:$0xff] }
 0x20a   : > { %v11031_v2 = vpop.eup %7898  ;;  %v2856_v45 = vmax.f32 %v2536_v35, %v2816_v48  ;;  %v1829_v39 = vsel %vm1826_vm2, %v1828_v4, %v1824_v57  ;;  %v11048_v48 = vpop.permute.xlu2 %3355  ;;  %v11052_v4 = vadd.s32 216, %v8963_v10  ;;  %v7558_v38 = vld [vmem:[#allocation4 + $0x4] sm:$0xf]  ;;  %v1840_v57 = vand.u32 2147483647, %v10983_v51 }
 0x20b   : > { %v1830_v36 = vmul.f32 %v1829_v39, %v10783_v62  ;;  %v1832_v35 = vmul.f32 %v11031_v2, %v10983_v51  ;;  %15357 = vst [vmem:[#allocation130_spill] sm:$0xff] %v11048_v48  ;;  %7900 = vrcp.f32 %v11041_v27  ;;  %4266 = vmatpush.bf16.msra.mxu3 %v7300_v60  ;;  %v15358_v62 = vld [vmem:[#allocation50_spill] sm:$0xff]  ;;  %v11062_v33 = vor.u32 %v7558_v38, %v7113_v13  ;;  %v11070_v60 = vpop.permute.xlu1 %3346 }
 0x20c   : > { %v3176_v25 = vmax.f32 %v2856_v45, %v3136_v46  ;;  %vm14824_vm3 = vcmp.eq.s32.totalorder %v15358_v62, 1  ;;  %v1842_v39 = vand.u32 2147483648, %v10983_v51  ;;  %15360 = vst [vmem:[#allocation132_spill] sm:$0xff] %v11070_v60  ;;  %v1377_v13 = vmul.f32 1.442695, %v1309_v43 }
 0x20d   : > { %v11059_v14 = vsel %vm11037_vm13, %v1830_v36, -inf  ;;  %v1833_v15 = vsub.f32 1.0, %v1832_v35  ;;  %15359 = vst [vmem:[#allocation131_spill] sm:$0xff] %v11062_v33  ;;  %vm1837_vm13 = vweird.f32 %v11031_v2  ;;  %4176 = vmatmul.bf16.vlgmr.msrb.gmra.mxu3 %v11062_v33  ;;  %v3267_v46 = vsel %vm502_vm7, 1, %v15179_v53  ;;  %v1253_v35 = vpop.f32.mrf.mxu1  ;;  %v11089_v38 = vpop.permute.xlu0 %3029  ;;  %v7151_v33 = vld [vmem:[#allocation4 + $0x50] sm:$0xf] }
 0x20e   : > { %v2174_v31 = vpack.c.bf16 %v11059_v14, %v11059_v14  ;;  %2218 = vst [vmem:[#allocation2 + $0xe8] sm:$0xff] %v11059_v14  ;;  %v11067_v45 = vmax.f32 %v3176_v25, %v3456_v26  ;;  %v7569_v26 = vld [vmem:[#allocation4 + $0x54] sm:$0xf0]  ;;  %vm629_vm1 = vcmp.lt.s32.totalorder %v11001_v12, %v8967_v19  ;;  %vm1836_vm2 = vweird.f32 %v10983_v51  ;;  %v11083_v25 = vld [vmem:[#allocation2 + $0xde] sm:$0xff]  ;;  %3376 = vperm.xlu2 %7772, %v3267_v46  }
 0x20f   : > { %v1834_v36 = vmul.f32 %v11031_v2, %v1833_v15  ;;  %vm14822_vm12 = vcmp.eq.s32.totalorder %v11019_v0, 1  ;;  %vm423_vm15 = vcmp.lt.s32.totalorder %v10939_v23, 14  ;;  %vm422_vm14 = vcmp.lt.s32.totalorder %v10945_v20, 14  ;;  %15361 = vst [vmem:[#allocation133_spill] sm:$0xff] %v11089_v38  ;;  %vm11099_vm7 = vmor %vm1836_vm2, %vm1837_vm13 }
 0x210   : > { %2190 = vst [vmem:[#allocation4 + $0x68] sm:$0xf] %v2174_v31  ;;  %7902 = vpow2.f32 %v1377_v13  ;;  %v2948_v15 = vsel %vm423_vm15, 1, %v15179_v53  ;;  %v2947_v31 = vsel %vm422_vm14, 1, %v15179_v53  ;;  %v11103_v46 = vadd.f32 %v1253_v35, %v1145_v34  ;;  %vm11127_vm10 = vmand %vm588_vm4, %vm629_vm1  ;;  %v11136_v35 = vld [vmem:[%s14557_s0 + $0x120] sm:$0xff] }
 0x211   : > { %v1835_v43 = vadd.f32 %v11031_v2, %v1834_v36  ;;  %3536 = vst [vmem:[#allocation2 + $0xd8] sm:$0xff] %v11067_v45  ;;  %v11093_v59 = vpop.eup %7900  ;;  %v1843_v36 = vor.u32 1.1754944e-38, %v1842_v39  ;;  %3059 = vperm.xlu1 %7771, %v2948_v15   ;;  %3056 = vperm.xlu0 %7770, %v2947_v31   ;;  %v11105_v13 = vor.u32 %v7569_v26, %v7151_v33  ;;  %vm465_vm15 = vcmp.ge.s32.totalorder %v11110_v16, 1 }
 0x212   : > { %vm1841_vm14 = vcmp.eq.f32.partialorder %v1840_v57, 8.507059e+37  ;;  %v1847_v39 = vmul.f32 %v11093_v59, %v11041_v27  ;;  %v1855_v34 = vand.u32 2147483647, %v11041_v27  ;;  %vm14817_vm13 = vcmp.eq.s32.totalorder %v11070_v60, 1  ;;  %v11143_v31 = vpop.permute.xlu2 %3038  ;;  %v7225_v60 = vld [vmem:[#allocation8 + $0x68] sm:$0xf0] }
 0x213   : > { %15364 = vst [vmem:[#allocation134_spill] sm:$0xff] %v11105_v13  ;;  %v1839_v51 = vsel %vm11099_vm7, %v11031_v2, %v1835_v43  ;;  %vm14820_vm2 = vcmp.eq.s32.totalorder %v10807_v21, 1  ;;  %v1310_v57 = vsub.f32 0.0, %v11103_v46  ;;  %4152 = vmatmul.bf16.gmra.mxu2 %v11105_v13  ;;  %vm464_vm7 = vcmp.ge.s32.totalorder %v11136_v35, 1  ;;  %v15368_v13 = vld [vmem:[#allocation46_spill] sm:$0xff]  ;;  %v11170_v33 = vpop.permute.xlu1 %2715 }
 0x214   : > { %v1844_v2 = vsel %vm1841_vm14, %v1843_v36, %v1839_v51  ;;  %vm503_vm6 = vcmp.ge.s32.totalorder %v10939_v23, 2  ;;  %vm14807_vm4 = vcmp.eq.s32.totalorder %v10995_v6, 1  ;;  %v1848_v43 = vsub.f32 1.0, %v1847_v39  ;;  %15367 = vst [vmem:[#allocation135_spill] sm:$0xff] %v11143_v31 }
 0x215   : > { %v1845_v12 = vmul.f32 %v1844_v2, %v10881_v11  ;;  %v2257_v26 = vld [vmem:[#allocation2 + $0xe1] sm:$0xff]  ;;  %v1857_v15 = vand.u32 2147483648, %v11041_v27  ;;  %v2630_v20 = vsel %vm465_vm15, 1, %v15179_v53  ;;  %vm1852_vm1 = vweird.f32 %v11093_v59  ;;  %15369 = vst [vmem:[#allocation136_spill] sm:$0xff] %v11170_v33 }
 0x216   : > { %v2497_v36 = vsel %vm14824_vm3, %v2257_v26, -inf  ;;  %v1379_v51 = vmul.f32 1.442695, %v1310_v57  ;;  %v2629_v11 = vsel %vm464_vm7, 1, %v15179_v53  ;;  %v7903_v2 = vpop.eup %7902  ;;  %vm14815_vm14 = vcmp.eq.s32.totalorder %v15368_v13, 1  ;;  %2745 = vperm.xlu2 %7772, %v2630_v20  }
 0x217   : > { %vm14816_vm11 = vcmp.eq.s32.totalorder %v10898_v29, 1  ;;  %v11156_v39 = vsel %vm11127_vm10, %v1845_v12, -inf  ;;  %v2537_v56 = vmax.f32 %v10957_v9, %v2497_v36  ;;  %v1849_v5 = vmul.f32 %v11093_v59, %v1848_v43  ;;  %v7634_v12 = vld [vmem:[#allocation8 + $0x164] sm:$0xf]  ;;  %v7417_v43 = vld [vmem:[#allocation8 + $0x168] sm:$0xf0] }
 0x218   : > { %v3268_v26 = vsel %vm503_vm6, 1, %v15179_v53  ;;  %v2175_v57 = vpack.c.bf16 %v11156_v39, %v11156_v39  ;;  %2219 = vst [vmem:[#allocation2 + $0xf0] sm:$0xff] %v11156_v39  ;;  %vm589_vm15 = vcmp.ge.s32.totalorder %v11052_v4, %v8965_v18  ;;  %v11168_v62 = vadd.f32 1.0, %v7903_v2 }
 0x219   : > { %7904 = vpow2.f32 %v1379_v51  ;;  %v2817_v9 = vsel %vm14822_vm12, %v2577_v47, -inf  ;;  %vm630_vm6 = vcmp.lt.s32.totalorder %v11052_v4, %v8967_v19  ;;  %v1850_v23 = vadd.f32 %v11093_v59, %v1849_v5  ;;  %v2897_v47 = vld [vmem:[#allocation2 + $0xe2] sm:$0xff]  ;;  %2742 = vperm.xlu1 %7771, %v2629_v11   ;;  %3379 = vperm.xlu0 %7770, %v3268_v26  }
 0x21a   : > { %vm1851_vm10 = vweird.f32 %v11041_v27  ;;  %2191 = vst [vmem:[#allocation4 + $0x70] sm:$0xf] %v2175_v57  ;;  %v11178_v36 = vmax.f32 %v2537_v56, %v2817_v9  ;;  %v1858_v20 = vor.u32 1.1754944e-38, %v1857_v15  ;;  %v11187_v2 = vadd.s32 224, %v8963_v10  ;;  %v11190_v5 = vld [vmem:[#allocation2 + $0xa0] sm:$0xff]  ;;  %v11195_v57 = vpop.permute.xlu0 %2712 }
 0x21b   : > { %vm11182_vm7 = vmor %vm1851_vm10, %vm1852_vm1  ;;  %7906 = vrcp.f32 %v11168_v62  ;;  %v2578_v27 = vld [vmem:[#allocation2 + $0xe7] sm:$0xff]  ;;  %vm1856_vm1 = vcmp.eq.f32.partialorder %v1855_v34, 8.507059e+37  ;;  %15372 = vst [vmem:[#allocation137_spill] sm:$0xff] %v11195_v57  ;;  %v7420_v34 = vor.u32 %v7634_v12, %v7417_v43  ;;  %v3137_v0 = vsel %vm14820_vm2, %v2897_v47, -inf }
 0x21c   : > { %v1854_v56 = vsel %vm11182_vm7, %v11093_v59, %v1850_v23  ;;  %v7650_v9 = vld [vmem:[#allocation8 + $0x1e4] sm:$0xf]  ;;  %v7481_v15 = vld [vmem:[#allocation8 + $0x1e8] sm:$0xf0]  ;;  %vm11203_vm10 = vmand %vm589_vm15, %vm630_vm6  ;;  %v3457_v59 = vsel %vm14817_vm13, %v11083_v25, -inf  ;;  %vm14821_vm7 = vcmp.eq.s32.totalorder %v11089_v38, 1  ;;  %v3177_v43 = vmax.f32 %v11178_v36, %v3137_v0  ;;  %v11233_v0 = vpop.permute.xlu2 %3361 }
 0x21d   : > { %v1859_v26 = vsel %vm1856_vm1, %v1858_v20, %v1854_v56  ;;  %v11211_v23 = vld [vmem:[#allocation2 + $0xa8] sm:$0xff]  ;;  %v7484_v42 = vor.u32 %v7650_v9, %v7481_v15  ;;  %v3607_v20 = vmax.f32 %v11216_v55, %v11190_v5  ;;  %v7586_v56 = vld [vmem:[#allocation8 + $0x64] sm:$0xf]  ;;  %v2818_v12 = vsel %vm14807_vm4, %v2578_v27, -inf  ;;  %6298 = vmatpush.bf16.msrb.mxu0 %v7420_v34  ;;  %v1147_v9 = vpop.f32.mrf.mxu0  ;;  %v15376_v15 = vld [vmem:[#allocation45_spill] sm:$0xff]  ;;  %15377 = vst [vmem:[#allocation139_spill] sm:$0xff] %v11233_v0 }
 0x21e   : > { %15375 = vst [vmem:[#allocation138_spill] sm:$0xff] %v11211_v23  ;;  %v1860_v51 = vmul.f32 %v1859_v26, %v10934_v40  ;;  %v3218_v4 = vld [vmem:[#allocation2 + $0xe6] sm:$0xff]  ;;  %vm14823_vm15 = vcmp.eq.s32.totalorder %v11195_v57, 1  ;;  %v7228_v40 = vor.u32 %v7586_v56, %v7225_v60  ;;  %vm14893_vm6 = vcmp.eq.s32.totalorder %v15376_v15, 1  ;;  %v11237_v60 = vld [vmem:[#allocation2 + $0x98] sm:$0xff] }
 0x21f   : > { %v7905_v25 = vpop.eup %7904  ;;  %v7602_v47 = vld [vmem:[#allocation8 + $0xe4] sm:$0xf]  ;;  %v7289_v26 = vld [vmem:[#allocation8 + $0xe8] sm:$0xf0]  ;;  %vm590_vm1 = vcmp.ge.s32.totalorder %v11187_v2, %v8965_v18  ;;  %vm631_vm4 = vcmp.lt.s32.totalorder %v11187_v2, %v8967_v19  ;;  %6347 = vmatpush.bf16.msrb.mxu1 %v7484_v42  ;;  %v3608_v27 = vmax.f32 %v11237_v60, %v11211_v23  ;;  %v3458_v42 = vsel %vm14816_vm11, %v3218_v4, -inf }
 0x220   : > { %v2258_v21 = vld [vmem:[#allocation2 + $0xe9] sm:$0xff]  ;;  %v11227_v28 = vsel %vm11203_vm10, %v1860_v51, -inf  ;;  %v11235_v36 = vadd.f32 1.0, %v7905_v25  ;;  %v7292_v34 = vor.u32 %v7602_v47, %v7289_v26  ;;  %vm14892_vm10 = vcmp.eq.s32.totalorder %v10977_v7, 1  ;;  %4218 = vmatpush.bf16.msra.mxu2 %v7228_v40  ;;  %v11263_v40 = vpop.permute.xlu1 %3352  ;;  %v7584_v38 = vld [vmem:[#allocation8 + $0x54] sm:$0xf] }
 0x221   : > { %v11241_v11 = vpop.eup %7906  ;;  %v2498_v51 = vsel %vm14815_vm14, %v2258_v21, -inf  ;;  %v2176_v56 = vpack.c.bf16 %v11227_v28, %v11227_v28  ;;  %2220 = vst [vmem:[#allocation2 + $0xf8] sm:$0xff] %v11227_v28  ;;  %v1870_v25 = vand.u32 2147483647, %v11168_v62  ;;  %v2898_v26 = vld [vmem:[#allocation2 + $0xea] sm:$0xff]  ;;  %v1148_v13 = vadd.f32 %v10856_v8, %v1147_v9 }
 0x222   : > { %v2538_v47 = vmax.f32 %v11059_v14, %v2498_v51  ;;  %v1862_v6 = vmul.f32 %v11241_v11, %v11168_v62  ;;  %7908 = vrcp.f32 %v11235_v36  ;;  %v3691_v21 = vld [vmem:[#allocation2 + $0xb0] sm:$0xff]  ;;  %4267 = vmatpush.bf16.msra.mxu3 %v7292_v34  ;;  %v11257_v41 = vmax.f32 %v3177_v43, %v3457_v59  ;;  %15379 = vst [vmem:[#allocation141_spill] sm:$0xff] %v11263_v40  ;;  %v1256_v51 = vpop.f32.mrf.mxu1 }
 0x223   : > { %2192 = vst [vmem:[#allocation4 + $0x78] sm:$0xf] %v2176_v56  ;;  %v1872_v4 = vand.u32 2147483648, %v11168_v62  ;;  %v11261_v29 = vadd.s32 232, %v8963_v10  ;;  %v3651_v14 = vmax.f32 %v3607_v20, %v10366_v3  ;;  %vm1866_vm14 = vweird.f32 %v11168_v62  ;;  %v2579_v34 = vld [vmem:[#allocation2 + $0xef] sm:$0xff] }
 0x224   : > { %15378 = vst [vmem:[#allocation140_spill] sm:$0xff] %v11257_v41  ;;  %v2858_v17 = vmax.f32 %v2538_v47, %v2818_v12  ;;  %v1863_v24 = vsub.f32 1.0, %v1862_v6  ;;  %v3652_v9 = vmax.f32 %v3608_v27, %v10445_v50  ;;  %v3138_v59 = vsel %vm14821_vm7, %v2898_v26, -inf }
 0x225   : > { %vm1867_vm11 = vweird.f32 %v11241_v11  ;;  %vm11271_vm13 = vcmp.eq.f32.partialorder %v1870_v25, 8.507059e+37  ;;  %v3731_v56 = vmax.f32 %v3651_v14, %v3691_v21  ;;  %vm14853_vm2 = vcmp.eq.s32.totalorder %v11263_v40, 1 }
 0x226   : > { %v3178_v52 = vmax.f32 %v2858_v17, %v3138_v59  ;;  %v1864_v20 = vmul.f32 %v11241_v11, %v1863_v24  ;;  %v3732_v6 = vmax.f32 %v3652_v9, %v10710_v44  ;;  %v11278_v12 = vadd.f32 %v1256_v51, %v1148_v13  ;;  %v11288_v17 = vld [vmem:[#allocation2 + $0x70] sm:$0xff] }
 0x227   : > { %v1873_v47 = vor.u32 1.1754944e-38, %v1872_v4  ;;  %v2819_v25 = vsel %vm14823_vm15, %v2579_v34, -inf  ;;  %vm591_vm7 = vcmp.ge.s32.totalorder %v11261_v29, %v8965_v18  ;;  %vm632_vm12 = vcmp.lt.s32.totalorder %v11261_v29, %v8967_v19  ;;  %vm1868_vm15 = vmor %vm1866_vm14, %vm1867_vm11  ;;  %v3219_v59 = vld [vmem:[#allocation2 + $0xee] sm:$0xff] }
 0x228   : > { %v11291_v24 = vmax.f32 %v3731_v56, %v11288_v17  ;;  %v11293_v44 = vpop.eup %7908  ;;  %v11295_v13 = vmax.f32 %v3178_v52, %v3458_v42  ;;  %v1865_v26 = vadd.f32 %v11241_v11, %v1864_v20  ;;  %v2259_v21 = vld [vmem:[#allocation2 + $0xf1] sm:$0xff]  ;;  %v11299_v14 = vmax.f32 %v3732_v6, %v10486_v54  ;;  %v11315_v6 = vpop.permute.xlu2 %3044  ;;  %vm671_vm11 = vmand %vm590_vm1, %vm631_vm4 }
 0x229   : > { %v2899_v4 = vld [vmem:[#allocation2 + $0xf2] sm:$0xff]  ;;  %v1311_v51 = vsub.f32 0.0, %v11278_v12  ;;  %v2499_v34 = vsel %vm14893_vm6, %v2259_v21, -inf  ;;  %v1877_v52 = vmul.f32 %v11293_v44, %v11235_v36  ;;  %v1885_v42 = vand.u32 2147483647, %v11235_v36  ;;  %15385 = vst [vmem:[#allocation145_spill] sm:$0xff] %v11315_v6  ;;  %v11427_v40 = vpop.permute.xlu1 %2721 }
 0x22a   : > { %15382 = vst [vmem:[#allocation142_spill] sm:$0xff] %v11291_v24  ;;  %v1887_v9 = vand.u32 2147483648, %v11235_v36  ;;  %v1869_v56 = vsel %vm1868_vm15, %v11241_v11, %v1865_v26  ;;  %v2539_v20 = vmax.f32 %v11156_v39, %v2499_v34  ;;  %vm1882_vm3 = vweird.f32 %v11293_v44 }
 0x22b   : > { %15383 = vst [vmem:[#allocation143_spill] sm:$0xff] %v11295_v13  ;;  %v3139_v62 = vsel %vm14892_vm10, %v2899_v4, -inf  ;;  %v1874_v11 = vsel %vm11271_vm13, %v1873_v47, %v1869_v56  ;;  %v1878_v39 = vsub.f32 1.0, %v1877_v52  ;;  %v3801_v26 = vpack.c.bf16 %v11291_v24, %v11291_v24 }
 0x22c   : > { %15384 = vst [vmem:[#allocation144_spill] sm:$0xff] %v11299_v14  ;;  %v3802_v21 = vpack.c.bf16 %v11299_v14, %v11299_v14  ;;  %v1875_v4 = vmul.f32 %v1874_v11, %v11021_v1  ;;  %v2859_v34 = vmax.f32 %v2539_v20, %v2819_v25  ;;  %v1381_v27 = vmul.f32 1.442695, %v1311_v51  ;;  %v1149_v25 = vpop.f32.mrf.mxu0  ;;  %v7571_v51 = vld [vmem:[#allocation4 + $0x64] sm:$0xf0] }
 0x22d   : > { %3538 = vst [vmem:[#allocation2 + $0xe8] sm:$0xff] %v11295_v13  ;;  %vm504_vm14 = vcmp.ge.s32.totalorder %v11136_v35, 2  ;;  %v1879_v7 = vmul.f32 %v11293_v44, %v1878_v39  ;;  %vm425_vm13 = vcmp.lt.s32.totalorder %v11110_v16, 14  ;;  %vm424_vm4 = vcmp.lt.s32.totalorder %v11136_v35, 14  ;;  %v7159_v20 = vld [vmem:[#allocation4 + $0x60] sm:$0xf]  ;;  %v1258_v39 = vpop.f32.mrf.mxu1 }
 0x22e   : > { %3817 = vst [vmem:[#allocation4 + $0x14] sm:$0xf] %v3801_v26  ;;  %v3269_v2 = vsel %vm504_vm14, 1, %v15179_v53  ;;  %v11338_v43 = vsel %vm671_vm11, %v1875_v4, -inf  ;;  %v3179_v47 = vmax.f32 %v2859_v34, %v3139_v62  ;;  %7910 = vpow2.f32 %v1381_v27  ;;  %v11356_v26 = vld [vmem:[#allocation2 + $0xf7] sm:$0xff]  ;;  %v11363_v4 = vpop.permute.xlu0 %3035 }
 0x22f   : > { %3818 = vst [vmem:[#allocation4 + $0x1c] sm:$0xf] %v3802_v21  ;;  %3382 = vperm.xlu2 %7772, %v3269_v2   ;;  %v2950_v1 = vsel %vm425_vm13, 1, %v15179_v53  ;;  %v1880_v52 = vadd.f32 %v11293_v44, %v1879_v7  ;;  %vm1881_vm15 = vweird.f32 %v11235_v36  ;;  %v3459_v56 = vsel %vm14853_vm2, %v3219_v59, -inf  ;;  %v11361_v21 = vld [vmem:[#allocation2 + $0xf6] sm:$0xff]  ;;  %vm11383_vm13 = vmand %vm591_vm7, %vm632_vm12 }
 0x230   : > { %2221 = vst [vmem:[#allocation2 + $0x100] sm:$0xff] %v11338_v43  ;;  %3065 = vperm.xlu1 %7771, %v2950_v1   ;;  %v2949_v35 = vsel %vm424_vm4, 1, %v15179_v53  ;;  %vm11349_vm1 = vmor %vm1881_vm15, %vm1882_vm3  ;;  %v1888_v62 = vor.u32 1.1754944e-38, %v1887_v9  ;;  %v3499_v11 = vmax.f32 %v3179_v47, %v3459_v56  ;;  %v1150_v7 = vadd.f32 %v10856_v8, %v1149_v25  ;;  %v11368_v9 = vld [vmem:[%s14557_s0 + $0x138] sm:$0xff]  ;;  %v11374_v34 = vld [vmem:[%s14557_s0 + $0x130] sm:$0xff] }
 0x231   : > { %3062 = vperm.xlu0 %7770, %v2949_v35   ;;  %v11354_v36 = vor.u32 %v7571_v51, %v7159_v20  ;;  %v1884_v59 = vsel %vm11349_vm1, %v11293_v44, %v1880_v52  ;;  %vm1886_vm11 = vcmp.eq.f32.partialorder %v1885_v42, 8.507059e+37  ;;  %15389 = vst [vmem:[#allocation147_spill] sm:$0xff] %v11363_v4  ;;  %vm467_vm3 = vcmp.ge.s32.totalorder %v11368_v9, 1  ;;  %v11397_v51 = vld [vmem:[#allocation2 + $0xb8] sm:$0xff]  ;;  %v11399_v20 = vpop.permute.xlu2 %3367 }
 0x232   : > { %vm466_vm14 = vcmp.ge.s32.totalorder %v11374_v34, 1  ;;  %v1889_v42 = vsel %vm1886_vm11, %v1888_v62, %v1884_v59  ;;  %3539 = vst [vmem:[#allocation2 + $0xf0] sm:$0xff] %v3499_v11  ;;  %v15392_v2 = vmax.f32 %v10992_v37, %v11257_v41  ;;  %v11391_v1 = vadd.f32 %v1258_v39, %v1150_v7  ;;  %v8102_v62 = vld [vmem:[#allocation2 + $0xa0] sm:$0xff]  ;;  %v11402_v7 = vld [vmem:[#allocation2 + $0xb0] sm:$0xff] }
 0x233   : > { %15388 = vst [vmem:[#allocation146_spill] sm:$0xff] %v11354_v36  ;;  %4157 = vmatmul.bf16.gmra.mxu2 %v11354_v36  ;;  %vm505_vm4 = vcmp.ge.s32.totalorder %v11110_v16, 2  ;;  %v1890_v25 = vmul.f32 %v1889_v42, %v11103_v46  ;;  %v2632_v29 = vsel %vm467_vm3, 1, %v15179_v53  ;;  %v2631_v27 = vsel %vm466_vm14, 1, %v15179_v53 }
 0x234   : > { %v3659_v47 = vmax.f32 %v15392_v2, %v10820_v32  ;;  %15393 = vst [vmem:[#allocation148_spill] sm:$0xff] %v11397_v51  ;;  %v7911_v52 = vpop.eup %7910  ;;  %v3609_v39 = vmax.f32 %v8102_v62, %v11402_v7  ;;  %v1312_v2 = vsub.f32 0.0, %v11391_v1  ;;  %v8104_v62 = vld [vmem:[#allocation2 + $0xa8] sm:$0xff]  ;;  %v1152_v57 = vpop.f32.mrf.mxu0  ;;  %vm14854_vm15 = vcmp.eq.s32.totalorder %v11143_v31, 1  ;;  %v11536_v31 = vld [vmem:[#allocation2 + $0xc0] sm:$0xff] }
 0x235   : > { %v7560_v35 = vld [vmem:[#allocation4 + $0x14] sm:$0xf]  ;;  %15394 = vst [vmem:[#allocation149_spill] sm:$0xff] %v11399_v20  ;;  %v11407_v59 = vsel %vm11383_vm13, %v1890_v25, -inf  ;;  %v11409_v42 = vadd.f32 1.0, %v7911_v52  ;;  %v3610_v44 = vmax.f32 %v8104_v62, %v11397_v51  ;;  %v3611_v25 = vmax.f32 %v11402_v7, %v10820_v32  ;;  %v15396_v52 = vld [vmem:[#allocation22_spill] sm:$0xff] }
 0x236   : > { %v3739_v56 = vmax.f32 %v3659_v47, %v3499_v11  ;;  %v7121_v46 = vld [vmem:[#allocation4 + $0x18] sm:$0xf0]  ;;  %v3270_v11 = vsel %vm505_vm4, 1, %v15179_v53  ;;  %v2237_v47 = vld [vmem:[#allocation2 + $0x41] sm:$0xff]  ;;  %2222 = vst [vmem:[#allocation2 + $0x108] sm:$0xff] %v11407_v59  ;;  %vm14852_vm12 = vcmp.eq.s32.totalorder %v15396_v52, 1  ;;  %v3653_v32 = vmax.f32 %v3609_v39, %v11216_v55  ;;  %v11439_v15 = vpop.permute.xlu0 %2718 }
 0x237   : > { %v11416_v36 = vor.u32 %v7560_v35, %v7121_v46  ;;  %2751 = vperm.xlu2 %7772, %v2632_v29   ;;  %7912 = vrcp.f32 %v11409_v42  ;;  %15398 = vst [vmem:[#allocation152_spill] sm:$0xff] %v11427_v40  ;;  %v3693_v29 = vld [vmem:[#allocation2 + $0xc0] sm:$0xff]  ;;  %v11431_v35 = vsel %vm14852_vm12, %v2237_v47, -inf  ;;  %v1383_v46 = vmul.f32 1.442695, %v1312_v2  ;;  %v11441_v20 = vld [vmem:[#allocation2 + $0xd0] sm:$0xff] }
 0x238   : > { %2748 = vperm.xlu1 %7771, %v2631_v27   ;;  %v11424_v16 = vmax.f32 %v3739_v56, %v11402_v7  ;;  %v11435_v27 = vadd.s32 240, %v8963_v10  ;;  %v3654_v62 = vmax.f32 %v3610_v44, %v11237_v60  ;;  %v3655_v56 = vmax.f32 %v3611_v25, %v11190_v5  ;;  %15399 = vst [vmem:[#allocation153_spill] sm:$0xff] %v11439_v15  ;;  %v7600_v52 = vld [vmem:[#allocation8 + $0xd4] sm:$0xf]  ;;  %v7281_v47 = vld [vmem:[#allocation8 + $0xd8] sm:$0xf0] }
 0x239   : > { %15395 = vst [vmem:[#allocation150_spill] sm:$0xff] %v11416_v36  ;;  %4181 = vmatmul.bf16.gmra.mxu3 %v11416_v36  ;;  %3385 = vperm.xlu0 %7770, %v3270_v11   ;;  %v7217_v36 = vld [vmem:[#allocation8 + $0x58] sm:$0xf0]  ;;  %7914 = vpow2.f32 %v1383_v46  ;;  %v3733_v11 = vmax.f32 %v3653_v32, %v3693_v29  ;;  %v11444_v39 = vld [vmem:[#allocation2 + $0x40] sm:$0xff]  ;;  %v7284_v13 = vor.u32 %v7600_v52, %v7281_v47  ;;  %vm14851_vm11 = vcmp.eq.s32.totalorder %v11439_v15, 1  ;;  %v3698_v58 = vld [vmem:[#allocation2 + $0xe8] sm:$0xff] }
 0x23a   : > { %15397 = vst [vmem:[#allocation151_spill] sm:$0xff] %v11424_v16  ;;  %v15401_v2 = vld [vmem:[#allocation49_spill] sm:$0xff]  ;;  %v3734_v25 = vmax.f32 %v3654_v62, %v10912_v63  ;;  %v3735_v51 = vmax.f32 %v3655_v56, %v10992_v37  ;;  %v7220_v32 = vor.u32 %v7584_v38, %v7217_v36  ;;  %v1153_v24 = vadd.f32 %v10856_v8, %v1152_v57  ;;  %v11463_v62 = vpop.permute.xlu2 %2969  ;;  %v1261_v56 = vpop.f32.mrf.mxu1  ;;  %v15404_v36 = vld [vmem:[#allocation63_spill] sm:$0xff] }
 0x23b   : > { %15400 = vst [vmem:[#allocation154_spill] sm:$0xff] %v11441_v20  ;;  %vm14848_vm7 = vcmp.eq.s32.totalorder %v15401_v2, 1  ;;  %v11454_v46 = vmax.f32 %v3733_v11, %v10366_v3  ;;  %vm592_vm1 = vcmp.ge.s32.totalorder %v11435_v27, %v8965_v18  ;;  %v2581_v37 = vld [vmem:[#allocation2 + $0xff] sm:$0xff]  ;;  %v1900_v11 = vand.u32 2147483647, %v11409_v42  ;;  %4268 = vmatpush.bf16.msra.mxu3 %v7284_v13  ;;  %v11480_v2 = vld [vmem:[#allocation2 + $0xc8] sm:$0xff] }
 0x23c   : > { %4369 = vst [vmem:[#allocation2 + $0xd0] sm:$0xff] %v11424_v16  ;;  %v1902_v38 = vand.u32 2147483648, %v11409_v42  ;;  %v11470_v57 = vmax.f32 %v3734_v25, %v10445_v50  ;;  %4219 = vmatpush.bf16.msra.mxu2 %v7220_v32  ;;  %vm14871_vm3 = vcmp.eq.s32.totalorder %v15404_v36, 1  ;;  %v11476_v44 = vmax.f32 %v3735_v51, %v11216_v55  ;;  %v3221_v15 = vld [vmem:[#allocation2 + $0xfe] sm:$0xff]  ;;  %v7573_v36 = vld [vmem:[#allocation4 + $0x74] sm:$0xf0] }
 0x23d   : > { %v11451_v14 = vpop.eup %7912  ;;  %v2261_v29 = vld [vmem:[#allocation2 + $0x101] sm:$0xff]  ;;  %15402 = vst [vmem:[#allocation155_spill] sm:$0xff] %v11463_v62  ;;  %v3803_v16 = vpack.c.bf16 %v11454_v46, %v11454_v46  ;;  %vm1896_vm14 = vweird.f32 %v11409_v42  ;;  %v2821_v25 = vsel %vm14851_vm11, %v2581_v37, -inf  ;;  %vm633_vm4 = vcmp.lt.s32.totalorder %v11435_v27, %v8967_v19 }
 0x23e   : > { %v1892_v63 = vmul.f32 %v11451_v14, %v11409_v42  ;;  %v2501_v8 = vsel %vm14848_vm7, %v2261_v29, -inf  ;;  %15403 = vst [vmem:[#allocation156_spill] sm:$0xff] %v11470_v57  ;;  %v2901_v13 = vld [vmem:[#allocation2 + $0x102] sm:$0xff]  ;;  %v3804_v32 = vpack.c.bf16 %v11470_v57, %v11470_v57  ;;  %vm1897_vm13 = vweird.f32 %v11451_v14 }
 0x23f   : > { %4363 = vst [vmem:[#allocation2 + $0xa0] sm:$0xff] %v11454_v46  ;;  %v2541_v47 = vmax.f32 %v11338_v43, %v2501_v8  ;;  %v7915_v29 = vpop.eup %7914  ;;  %v11488_v43 = vadd.f32 %v1261_v56, %v1153_v24  ;;  %v11494_v8 = vpop.permute.xlu1 %3358  ;;  %vm11498_vm7 = vcmp.eq.f32.partialorder %v1900_v11, 8.507059e+37  ;;  %v8106_v56 = vld [vmem:[#allocation2 + $0xb8] sm:$0xff]  ;;  %vm1898_vm11 = vmor %vm1896_vm14, %vm1897_vm13  ;;  %vm506_vm2 = vcmp.ge.s32.totalorder %v11374_v34, 2  ;;  %v7582_v27 = vld [vmem:[#allocation8 + $0x44] sm:$0xf] }
 0x240   : > { %v1893_v52 = vsub.f32 1.0, %v1892_v63  ;;  %15405 = vst [vmem:[#allocation157_spill] sm:$0xff] %v11480_v2  ;;  %v11492_v63 = vadd.f32 1.0, %v7915_v29  ;;  %v1903_v29 = vor.u32 1.1754944e-38, %v1902_v38  ;;  %vm14870_vm12 = vcmp.eq.s32.totalorder %v11494_v8, 1 }
 0x241   : > { %4364 = vst [vmem:[#allocation2 + $0xa8] sm:$0xff] %v11470_v57  ;;  %v2861_v51 = vmax.f32 %v2541_v47, %v2821_v25  ;;  %v1313_v24 = vsub.f32 0.0, %v11488_v43  ;;  %vm427_vm14 = vcmp.lt.s32.totalorder %v11368_v9, 14  ;;  %v11545_v57 = vld [vmem:[#allocation2 + $0x106] sm:$0xff]  ;;  %v7580_v38 = vld [vmem:[#allocation8 + $0x34] sm:$0xf] }
 0x242   : > { %v1894_v55 = vmul.f32 %v11451_v14, %v1893_v52  ;;  %15406 = vst [vmem:[#allocation158_spill] sm:$0xff] %v11494_v8  ;;  %v3612_v52 = vmax.f32 %v8106_v56, %v11480_v2  ;;  %7916 = vrcp.f32 %v11492_v63  ;;  %v11543_v8 = vld [vmem:[#allocation2 + $0x107] sm:$0xff]  ;;  %v2952_v37 = vsel %vm427_vm14, 1, %v15179_v53 }
 0x243   : > { %3819 = vst [vmem:[#allocation4 + $0x24] sm:$0xf] %v3803_v16  ;;  %v3141_v16 = vsel %vm14854_vm15, %v2901_v13, -inf  ;;  %v1385_v25 = vmul.f32 1.442695, %v1313_v24  ;;  %vm11521_vm15 = vmand %vm592_vm1, %vm633_vm4  ;;  %v3461_v13 = vsel %vm14870_vm12, %v3221_v15, -inf  ;;  %v3613_v15 = vmax.f32 %v11536_v31, %v11441_v20  ;;  %3071 = vperm.xlu1 %7771, %v2952_v37   ;;  %v11586_v20 = vpop.permute.xlu0 %3041 }
 0x244   : > { %3820 = vst [vmem:[#allocation4 + $0x2c] sm:$0xf] %v3804_v32  ;;  %v1895_v47 = vadd.f32 %v11451_v14, %v1894_v55  ;;  %v3181_v11 = vmax.f32 %v2861_v51, %v3141_v16  ;;  %v2557_v32 = vld [vmem:[#allocation2 + $0x3f] sm:$0xff]  ;;  %v3271_v55 = vsel %vm506_vm2, 1, %v15179_v53  ;;  %v7209_v16 = vld [vmem:[#allocation8 + $0x48] sm:$0xf0] }
 0x245   : > { %4365 = vst [vmem:[#allocation2 + $0xb0] sm:$0xff] %v11476_v44  ;;  %v11530_v51 = vld [vmem:[#allocation2 + $0xf9] sm:$0xff]  ;;  %7918 = vpow2.f32 %v1385_v25  ;;  %3388 = vperm.xlu2 %7772, %v3271_v55   ;;  %vm426_vm2 = vcmp.lt.s32.totalorder %v11374_v34, 14  ;;  %v2797_v25 = vsel %vm14871_vm3, %v2557_v32, -inf  ;;  %v15415_v34 = vmax.f32 %v11444_v39, %v11431_v35  ;;  %v1154_v35 = vpop.f32.mrf.mxu0  ;;  %v7167_v39 = vld [vmem:[#allocation4 + $0x70] sm:$0xf] }
 0x246   : > { %v1899_v42 = vsel %vm1898_vm11, %v11451_v14, %v1895_v47  ;;  %v11534_v56 = vmax.f32 %v3181_v11, %v3461_v13  ;;  %15412 = vst [vmem:[#allocation160_spill] sm:$0xff] %v11536_v31  ;;  %v11540_v14 = vld [vmem:[#allocation2 + $0xfa] sm:$0xff]  ;;  %v3656_v11 = vmax.f32 %v3612_v52, %v11211_v23  ;;  %v7212_v13 = vor.u32 %v7582_v27, %v7209_v16 }
 0x247   : > { %v1904_v24 = vsel %vm11498_vm7, %v1903_v29, %v1899_v42  ;;  %v11549_v29 = vpop.permute.xlu2 %2966  ;;  %v11562_v31 = vmax.f32 %v15415_v34, %v2797_v25  ;;  %v540_v27 = vadd.s32 248, %v8963_v10  ;;  %v1915_v25 = vand.u32 2147483647, %v11492_v63  ;;  %15418 = vst [vmem:[#allocation164_spill] sm:$0xff] %v11586_v20 }
 0x248   : > { %15411 = vst [vmem:[#allocation159_spill] sm:$0xff] %v11534_v56  ;;  %v1905_v47 = vmul.f32 %v1904_v24, %v11278_v12  ;;  %v2951_v12 = vsel %vm426_vm2, 1, %v15179_v53  ;;  %v11556_v55 = vpop.eup %7916  ;;  %v15414_v24 = vld [vmem:[#allocation48_spill] sm:$0xff]  ;;  %v3736_v37 = vmax.f32 %v3656_v11, %v11067_v45  ;;  %4220 = vmatpush.bf16.msra.mxu2 %v7212_v13  ;;  %v11581_v45 = vld [vmem:[%s14560_s3] ss:$0 sm:$0xff]  ;;  %v11584_v34 = vor.u32 %v7573_v36, %v7167_v39 }
 0x249   : > { %15413 = vst [vmem:[#allocation161_spill] sm:$0xff] %v11549_v29  ;;  %vm14886_vm7 = vcmp.eq.s32.totalorder %v15414_v24, 1  ;;  %3068 = vperm.xlu0 %7770, %v2951_v12   ;;  %v1907_v16 = vmul.f32 %v11556_v55, %v11492_v63  ;;  %v1917_v12 = vand.u32 2147483648, %v11492_v63  ;;  %v1155_v11 = vadd.f32 %v11581_v45, %v1154_v35 }
 0x24a   : > { %3541 = vst [vmem:[#allocation2 + $0x100] sm:$0xff] %v11534_v56  ;;  %v7562_v42 = vld [vmem:[#allocation4 + $0x24] sm:$0xf]  ;;  %v11566_v52 = vsel %vm11521_vm15, %v1905_v47, -inf  ;;  %v3657_v47 = vmax.f32 %v3613_v15, %v11402_v7  ;;  %vm14890_vm15 = vcmp.eq.s32.totalorder %v11549_v29, 1  ;;  %v1263_v7 = vpop.f32.mrf.mxu1  ;;  %4162 = vmatmul.bf16.gmra.mxu2 %v11584_v34  ;;  %vm507_vm1 = vcmp.ge.s32.totalorder %v11368_v9, 2 }
 0x24b   : > { %v7129_v32 = vld [vmem:[#allocation4 + $0x28] sm:$0xf0]  ;;  %2223 = vst [vmem:[#allocation2 + $0x110] sm:$0xff] %v11566_v52  ;;  %v7919_v13 = vpop.eup %7918  ;;  %v11593_v50 = vadd.f32 %v1263_v7, %v1155_v11  ;;  %v11598_v36 = vmax.f32 %v3736_v37, %v11237_v60  ;;  %vm14877_vm11 = vcmp.eq.s32.totalorder %v11233_v0, 1  ;;  %vm1912_vm13 = vweird.f32 %v11556_v55  ;;  %v2877_v60 = vld [vmem:[#allocation2 + $0x42] sm:$0xff]  ;;  %v15432_v0 = vld [vmem:[#allocation53_spill] sm:$0xff] }
 0x24c   : > { %v11573_v56 = vor.u32 %v7562_v42, %v7129_v32  ;;  %15417 = vst [vmem:[#allocation163_spill] sm:$0xff] %v11584_v34  ;;  %v7201_v42 = vld [vmem:[#allocation8 + $0x38] sm:$0xf0]  ;;  %v1908_v32 = vsub.f32 1.0, %v1907_v16  ;;  %v3737_v23 = vmax.f32 %v3657_v47, %v11257_v41  ;;  %v11591_v2 = vadd.f32 1.0, %v7919_v13 }
 0x24d   : > { %v7204_v15 = vor.u32 %v7580_v38, %v7201_v42  ;;  %v3272_v35 = vsel %vm507_vm1, 1, %v15179_v53  ;;  %vm14885_vm4 = vcmp.eq.s32.totalorder %v11427_v40, 1  ;;  %vm593_vm14 = vcmp.ge.s32.totalorder %v540_v27, %v8965_v18  ;;  %4366 = vst [vmem:[#allocation2 + $0xb8] sm:$0xff] %v11598_v36  ;;  %v7648_v40 = vld [vmem:[#allocation8 + $0x1d4] sm:$0xf] }
 0x24e   : > { %15416 = vst [vmem:[#allocation162_spill] sm:$0xff] %v11573_v56  ;;  %4186 = vmatmul.bf16.gmra.mxu3 %v11573_v56  ;;  %v1909_v16 = vmul.f32 %v11556_v55, %v1908_v32  ;;  %v11605_v39 = vmax.f32 %v3737_v23, %v11190_v5  ;;  %vm14880_vm2 = vcmp.eq.s32.totalorder %v11586_v20, 1  ;;  %7920 = vrcp.f32 %v11591_v2  ;;  %v7578_v5 = vld [vmem:[#allocation8 + $0x24] sm:$0xf]  ;;  %v7193_v23 = vld [vmem:[#allocation8 + $0x28] sm:$0xf0] }
 0x24f   : > { %4221 = vmatpush.bf16.msra.mxu2 %v7204_v15  ;;  %vm634_vm12 = vcmp.lt.s32.totalorder %v540_v27, %v8967_v19  ;;  %vm1911_vm1 = vweird.f32 %v11492_v63  ;;  %v1314_v53 = vsub.f32 0.0, %v11593_v50  ;;  %v1918_v47 = vor.u32 1.1754944e-38, %v1917_v12  ;;  %v11625_v42 = vpop.permute.xlu2 %3286  ;;  %v7473_v38 = vld [vmem:[#allocation8 + $0x1d8] sm:$0xf0]  ;;  %v2234_v20 = vld [vmem:[#allocation2 + $0x29] sm:$0xff] }
 0x250   : > { %v1910_v9 = vadd.f32 %v11556_v55, %v1909_v16  ;;  %4367 = vst [vmem:[#allocation2 + $0xc0] sm:$0xff] %v11605_v39  ;;  %vm11619_vm3 = vmor %vm1911_vm1, %vm1912_vm13  ;;  %v3117_v11 = vsel %vm14890_vm15, %v2877_v60, -inf  ;;  %v3805_v63 = vpack.c.bf16 %v11476_v44, %v11476_v44  ;;  %v3806_v13 = vpack.c.bf16 %v11598_v36, %v11598_v36  ;;  %v7632_v16 = vld [vmem:[#allocation8 + $0x154] sm:$0xf] }
 0x251   : > { %3391 = vperm.xlu0 %7770, %v3272_v35   ;;  %15421 = vst [vmem:[#allocation165_spill] sm:$0xff] %v11625_v42  ;;  %v2822_v7 = vsel %vm14885_vm4, %v11543_v8, -inf  ;;  %vm1916_vm13 = vcmp.eq.f32.partialorder %v1915_v25, 8.507059e+37  ;;  %vm11644_vm1 = vmand %vm593_vm14, %vm634_vm12  ;;  %v1387_v56 = vmul.f32 1.442695, %v1314_v53  ;;  %v7196_v24 = vor.u32 %v7578_v5, %v7193_v23  ;;  %v11655_v5 = vld [vmem:[#allocation2 + $0x3a] sm:$0xff] }
 0x252   : > { %v2262_v37 = vld [vmem:[#allocation2 + $0x109] sm:$0xff]  ;;  %v1914_v12 = vsel %vm11619_vm3, %v11556_v55, %v1910_v9  ;;  %v7409_v8 = vld [vmem:[#allocation8 + $0x158] sm:$0xf0]  ;;  %v3157_v25 = vmax.f32 %v11562_v31, %v3117_v11  ;;  %vm14889_vm3 = vcmp.eq.s32.totalorder %v11625_v42, 1  ;;  %3821 = vst [vmem:[#allocation4 + $0x34] sm:$0xf] %v3805_v63  ;;  %v7476_v34 = vor.u32 %v7648_v40, %v7473_v38 }
 0x253   : > { %v2502_v32 = vsel %vm14886_vm7, %v2262_v37, -inf  ;;  %v2902_v15 = vld [vmem:[#allocation2 + $0x10a] sm:$0xff]  ;;  %v1919_v37 = vsel %vm1916_vm13, %v1918_v47, %v1914_v12  ;;  %v7412_v9 = vor.u32 %v7632_v16, %v7409_v8  ;;  %7922 = vpow2.f32 %v1387_v56  ;;  %3822 = vst [vmem:[#allocation4 + $0x3c] sm:$0xf] %v3806_v13  ;;  %4222 = vmatpush.bf16.msra.mxu2 %v7196_v24  ;;  %v11659_v31 = vld [vmem:[#allocation2 + $0x39] sm:$0xff]  ;;  %v11669_v56 = vpop.permute.xlu1 %2727  ;;  %v11680_v12 = vpop.permute.xlu0 %2724 }
 0x254   : > { %v2542_v35 = vmax.f32 %v11407_v59, %v2502_v32  ;;  %v1920_v55 = vmul.f32 %v1919_v37, %v11391_v1  ;;  %v3197_v59 = vld [vmem:[#allocation2 + $0x3e] sm:$0xff]  ;;  %v11651_v27 = vpop.eup %7920  ;;  %15424 = vst [vmem:[#allocation166_spill] sm:$0xff] %v11655_v5  ;;  %v11657_v1 = vld [vmem:[#allocation2 + $0x46] sm:$0xff]  ;;  %v3142_v47 = vsel %vm14880_vm2, %v2902_v15, -inf  ;;  %v3462_v63 = vsel %vm14877_vm11, %v11545_v57, -inf  ;;  %6348 = vmatpush.bf16.msrb.mxu1 %v7476_v34  ;;  %v1157_v16 = vpop.f32.mrf.mxu0  ;;  %v2583_v38 = vld [vmem:[#allocation2 + $0x10f] sm:$0xff] }
 0x255   : > { %v3437_v53 = vsel %vm14889_vm3, %v3197_v59, -inf  ;;  %15425 = vst [vmem:[#allocation167_spill] sm:$0xff] %v11657_v1  ;;  %v1922_v40 = vmul.f32 %v11651_v27, %v11591_v2  ;;  %6299 = vmatpush.bf16.msrb.mxu0 %v7412_v9  ;;  %v11673_v11 = vld [vmem:[#allocation2 + $0x47] sm:$0xff]  ;;  %v1930_v60 = vand.u32 2147483647, %v11591_v2  ;;  %vm1926_vm14 = vweird.f32 %v11591_v2  ;;  %v15433_v5 = vld [vmem:[#allocation56_spill] sm:$0xff] }
 0x256   : > { %v2862_v32 = vmax.f32 %v2542_v35, %v2822_v7  ;;  %15426 = vst [vmem:[#allocation168_spill] sm:$0xff] %v11659_v31  ;;  %v11663_v23 = vsel %vm11644_vm1, %v1920_v55, -inf  ;;  %v11671_v24 = vmax.f32 %v3157_v25, %v3437_v53  ;;  %v541_v7 = vadd.s32 256, %v8963_v10  ;;  %v7598_v15 = vld [vmem:[#allocation8 + $0xc4] sm:$0xf]  ;;  %v15429_v8 = vld [vmem:[#allocation23_spill] sm:$0xff] }
 0x257   : > { %15427 = vst [vmem:[#allocation169_spill] sm:$0xff] %v11669_v56  ;;  %v1923_v35 = vsub.f32 1.0, %v1922_v40  ;;  %v7273_v37 = vld [vmem:[#allocation8 + $0xc8] sm:$0xf0]  ;;  %vm14909_vm12 = vcmp.eq.s32.totalorder %v15429_v8, 1  ;;  %v1932_v57 = vand.u32 2147483648, %v11591_v2  ;;  %vm1927_vm13 = vweird.f32 %v11651_v27 }
 0x258   : > { %2224 = vst [vmem:[#allocation2 + $0x118] sm:$0xff] %v11663_v23  ;;  %v3182_v13 = vmax.f32 %v2862_v32, %v3142_v47  ;;  %v7576_v25 = vld [vmem:[#allocation8 + $0x14] sm:$0xf]  ;;  %v7185_v9 = vld [vmem:[#allocation8 + $0x18] sm:$0xf0]  ;;  %v7276_v32 = vor.u32 %v7598_v15, %v7273_v37  ;;  %v1158_v53 = vadd.f32 %v11581_v45, %v1157_v16  ;;  %v1266_v47 = vpop.f32.mrf.mxu1  ;;  %vm14905_vm2 = vcmp.eq.s32.totalorder %v15432_v0, 1  ;;  %vm1928_vm15 = vmor %vm1926_vm14, %vm1927_vm13 }
 0x259   : > { %15428 = vst [vmem:[#allocation170_spill] sm:$0xff] %v11680_v12  ;;  %v1924_v34 = vmul.f32 %v11651_v27, %v1923_v35  ;;  %v11691_v59 = vld [vmem:[#allocation2 + $0x10e] sm:$0xff]  ;;  %v7923_v40 = vpop.eup %7922  ;;  %v7188_v35 = vor.u32 %v7576_v25, %v7185_v9  ;;  %vm594_vm4 = vcmp.ge.s32.totalorder %v541_v7, %v8965_v18  ;;  %vm635_vm7 = vcmp.lt.s32.totalorder %v541_v7, %v8967_v19 }
 0x25a   : > { %3517 = vst [vmem:[#allocation2 + $0x40] sm:$0xff] %v11671_v24  ;;  %v11685_v55 = vmax.f32 %v3182_v13, %v3462_v63  ;;  %v15430_v63 = vld [vmem:[#allocation28_spill] sm:$0xff]  ;;  %v11701_v16 = vadd.f32 1.0, %v7923_v40  ;;  %v7137_v29 = vld [vmem:[#allocation4 + $0x38] sm:$0xf0]  ;;  %4269 = vmatpush.bf16.msra.mxu3 %v7276_v32  ;;  %vm14903_vm3 = vcmp.eq.s32.totalorder %v15433_v5, 1  ;;  %v11710_v56 = vadd.f32 %v1266_v47, %v1158_v53  ;;  %vm11725_vm14 = vmand %vm594_vm4, %vm635_vm7 }
 0x25b   : > { %vm14906_vm1 = vcmp.eq.s32.totalorder %v15430_v63, 1  ;;  %v15431_v13 = vld [vmem:[#allocation32_spill] sm:$0xff]  ;;  %v1925_v15 = vadd.f32 %v11651_v27, %v1924_v34  ;;  %v1933_v25 = vor.u32 1.1754944e-38, %v1932_v57  ;;  %4223 = vmatpush.bf16.msra.mxu2 %v7188_v35  ;;  %vm1931_vm10 = vcmp.eq.f32.partialorder %v1930_v60, 8.507059e+37  ;;  %v15458_v8 = vld [vmem:[#allocation143_spill] sm:$0xff] }
 0x25c   : > { %vm2439_vm11 = vcmp.eq.s32.totalorder %v15431_v13, 1  ;;  %3542 = vst [vmem:[#allocation2 + $0x108] sm:$0xff] %v11685_v55  ;;  %v2238_v42 = vld [vmem:[#allocation2 + $0x49] sm:$0xff]  ;;  %v7564_v37 = vld [vmem:[#allocation4 + $0x34] sm:$0xf]  ;;  %v11714_v34 = vsel %vm14906_vm1, %v2234_v20, -inf  ;;  %7924 = vrcp.f32 %v11701_v16  ;;  %v1159_v5 = vpop.f32.mrf.mxu0  ;;  %vm1941_vm1 = vweird.f32 %v11701_v16 }
 0x25d   : > { %v2239_v31 = vld [vmem:[#allocation2 + $0x51] sm:$0xff]  ;;  %v11708_v9 = vor.u32 %v7564_v37, %v7137_v29  ;;  %15435 = vst [vmem:[#allocation172_spill] sm:$0xff] %v11714_v34  ;;  %v1929_v32 = vsel %vm1928_vm15, %v11651_v27, %v1925_v15  ;;  %v2478_v2 = vsel %vm14909_vm12, %v2238_v42, -inf  ;;  %vm14902_vm15 = vcmp.eq.s32.totalorder %v11680_v12, 1  ;;  %v11743_v15 = vpop.permute.xlu1 %3364  ;;  %v11745_v37 = vpop.permute.xlu0 %3047  ;;  %v7574_v12 = vld [vmem:[#allocation8 + $0x4] sm:$0xf] }
 0x25e   : > { %v15436_v1 = vld [vmem:[#allocation68_spill] sm:$0xff]  ;;  %v1934_v20 = vsel %vm1931_vm10, %v1933_v25, %v1929_v32  ;;  %v2479_v60 = vsel %vm2439_vm11, %v2239_v31, -inf  ;;  %v2500_v47 = vsel %vm14905_vm2, %v11530_v51, -inf  ;;  %v2823_v35 = vsel %vm14902_vm15, %v2583_v38, -inf  ;;  %15440 = vst [vmem:[#allocation173_spill] sm:$0xff] %v11743_v15  ;;  %v8110_v38 = vld [vmem:[#allocation2 + $0x48] sm:$0xff] }
 0x25f   : > { %15434 = vst [vmem:[#allocation171_spill] sm:$0xff] %v11708_v9  ;;  %v2263_v40 = vld [vmem:[#allocation2 + $0x111] sm:$0xff]  ;;  %vm2759_vm6 = vcmp.eq.s32.totalorder %v15436_v1, 1  ;;  %4191 = vmatmul.bf16.gmra.mxu3 %v11708_v9  ;;  %v1935_v57 = vmul.f32 %v1934_v20, %v11488_v43  ;;  %v1315_v43 = vsub.f32 0.0, %v11710_v56  ;;  %vm14901_vm10 = vcmp.eq.s32.totalorder %v11315_v6, 1 }
 0x260   : > { %v2503_v27 = vsel %vm14903_vm3, %v2263_v40, -inf  ;;  %v2903_v7 = vld [vmem:[#allocation2 + $0x112] sm:$0xff]  ;;  %15441 = vst [vmem:[#allocation174_spill] sm:$0xff] %v11745_v37  ;;  %v2518_v20 = vmax.f32 %v8110_v38, %v2478_v2  ;;  %vm14900_vm4 = vcmp.eq.s32.totalorder %v11743_v15, 1  ;;  %v7177_v29 = vld [vmem:[#allocation8 + $0x8] sm:$0xf0] }
 0x261   : > { %v2543_v42 = vmax.f32 %v11566_v52, %v2503_v27  ;;  %v15439_v53 = vld [vmem:[#allocation72_spill] sm:$0xff]  ;;  %v2153_v25 = vsel %vm11725_vm14, %v1935_v57, -inf  ;;  %v3143_v27 = vsel %vm14901_vm10, %v2903_v7, -inf  ;;  %v1389_v9 = vmul.f32 1.442695, %v1315_v43  ;;  %v11790_v38 = vld [vmem:[#allocation2 + $0x68] sm:$0xff] }
 0x262   : > { %vm14908_vm7 = vcmp.eq.s32.totalorder %v15439_v53, 1  ;;  %v2559_v31 = vld [vmem:[#allocation2 + $0x4f] sm:$0xff]  ;;  %2225 = vst [vmem:[#allocation2 + $0x120] sm:$0xff] %v2153_v25  ;;  %v11756_v0 = vpop.eup %7924  ;;  %v1160_v57 = vadd.f32 %v11581_v45, %v1159_v5  ;;  %vm14904_vm14 = vcmp.eq.s32.totalorder %v11170_v33, 1  ;;  %v7180_v45 = vor.u32 %v7574_v12, %v7177_v29  ;;  %v15468_v37 = vld [vmem:[#allocation106_spill] sm:$0xff] }
 0x263   : > { %v2798_v52 = vsel %vm14908_vm7, %v11673_v11, -inf  ;;  %v2863_v51 = vmax.f32 %v2543_v42, %v2823_v35  ;;  %v8109_v32 = vld [vmem:[#allocation2 + $0x50] sm:$0xff]  ;;  %v2540_v11 = vmax.f32 %v11227_v28, %v2500_v47  ;;  %v15442_v42 = vld [vmem:[#allocation29_spill] sm:$0xff]  ;;  %v2799_v2 = vsel %vm2759_vm6, %v2559_v31, -inf }
 0x264   : > { %v2519_v40 = vmax.f32 %v8109_v32, %v2479_v60  ;;  %v1268_v60 = vpop.f32.mrf.mxu1  ;;  %vm2440_vm13 = vcmp.eq.s32.totalorder %v15442_v42, 1  ;;  %v1937_v7 = vmul.f32 %v11756_v0, %v11701_v16  ;;  %v3463_v35 = vsel %vm14900_vm4, %v11691_v59, -inf  ;;  %v11776_v31 = vld [vmem:[#allocation2 + $0x117] sm:$0xff]  ;;  %4224 = vmatpush.bf16.msra.mxu2 %v7180_v45  ;;  %v2878_v29 = vld [vmem:[#allocation2 + $0x4a] sm:$0xff] }
 0x265   : > { %v3183_v63 = vmax.f32 %v2863_v51, %v3143_v27  ;;  %7926 = vpow2.f32 %v1389_v9  ;;  %v542_v28 = vadd.s32 264, %v8963_v10  ;;  %v11771_v5 = vmax.f32 %v2518_v20, %v2798_v52  ;;  %15443 = vst [vmem:[#allocation175_spill] sm:$0xff] %v11776_v31  ;;  %v11778_v51 = vld [vmem:[#allocation2 + $0x116] sm:$0xff] }
 0x266   : > { %v2820_v43 = vsel %vm14904_vm14, %v11356_v26, -inf  ;;  %v1938_v25 = vsub.f32 1.0, %v1937_v7  ;;  %15444 = vst [vmem:[#allocation176_spill] sm:$0xff] %v11778_v51  ;;  %v11780_v32 = vadd.f32 %v1268_v60, %v1160_v57  ;;  %v11782_v59 = vmax.f32 %v2519_v40, %v2799_v2  ;;  %v11803_v60 = vpop.permute.xlu0 %2972  ;;  %v4403_v7 = vld [vmem:[#allocation2 + $0xa1] sm:$0xff]  ;;  %v15462_v13 = vld [vmem:[#allocation92_spill] sm:$0xff] }
 0x267   : > { %v3503_v47 = vmax.f32 %v3183_v63, %v3463_v35  ;;  %v2860_v9 = vmax.f32 %v2540_v11, %v2820_v43  ;;  %vm14907_vm4 = vcmp.eq.s32.totalorder %v11363_v4, 1  ;;  %v1947_v12 = vand.u32 2147483648, %v11701_v16  ;;  %v15445_v11 = vld [vmem:[#allocation67_spill] sm:$0xff]  ;;  %15446 = vst [vmem:[#allocation177_spill] sm:$0xff] %v11803_v60  ;;  %4225 = vmatmul.bf16.vlgmr.msra.gmra.mxu2 %v10162_v61  ;;  %v11816_v61 = vpop.permute.xlu1 %2975  ;;  %v15456_v4 = vld [vmem:[#allocation142_spill] sm:$0xff]  ;;  %v15469_v31 = vld [vmem:[#allocation52_spill] sm:$0xff] }
 0x268   : > { %v1939_v63 = vmul.f32 %v11756_v0, %v1938_v25  ;;  %vm1942_vm10 = vweird.f32 %v11756_v0  ;;  %v1945_v26 = vand.u32 2147483647, %v11701_v16  ;;  %v1316_v52 = vsub.f32 0.0, %v11780_v32  ;;  %v4760_v43 = vld [vmem:[#allocation2 + $0x86] sm:$0xff]  ;;  %15447 = vst [vmem:[#allocation178_spill] sm:$0xff] %v11816_v61 }
 0x269   : > { %3543 = vst [vmem:[#allocation2 + $0x110] sm:$0xff] %v3503_v47  ;;  %v3140_v20 = vsel %vm14907_vm4, %v11540_v14, -inf  ;;  %vm14937_vm15 = vcmp.eq.s32.totalorder %v11463_v62, 1  ;;  %vm595_vm3 = vcmp.ge.s32.totalorder %v542_v28, %v8965_v18  ;;  %vm2760_vm14 = vcmp.eq.s32.totalorder %v15445_v11, 1  ;;  %vm1943_vm7 = vmor %vm1941_vm1, %vm1942_vm10  ;;  %v4405_v47 = vld [vmem:[#allocation2 + $0xb1] sm:$0xff]  ;;  %v8114_v62 = vld [vmem:[#allocation2 + $0xc8] sm:$0xff] }
 0x26a   : > { %vm636_vm2 = vcmp.lt.s32.totalorder %v542_v28, %v8967_v19  ;;  %v1940_v57 = vadd.f32 %v11756_v0, %v1939_v63  ;;  %v1391_v2 = vmul.f32 1.442695, %v1316_v52  ;;  %vm14932_vm4 = vcmp.eq.s32.totalorder %v11048_v48, 1 }
 0x26b   : > { %v7927_v27 = vpop.eup %7926  ;;  %v3180_v14 = vmax.f32 %v2860_v9, %v3140_v20  ;;  %v1948_v35 = vor.u32 1.1754944e-38, %v1947_v12  ;;  %v11813_v16 = vsel %vm14937_vm15, %v2878_v29, -inf  ;;  %vm1946_vm12 = vcmp.eq.f32.partialorder %v1945_v26, 8.507059e+37  ;;  %vm11825_vm1 = vmand %vm595_vm3, %vm636_vm2  ;;  %v4404_v26 = vld [vmem:[#allocation2 + $0xa9] sm:$0xff]  ;;  %v4406_v20 = vld [vmem:[#allocation2 + $0xb9] sm:$0xff] }
 0x26c   : > { %v11809_v45 = vadd.f32 1.0, %v7927_v27  ;;  %v1944_v25 = vsel %vm1943_vm7, %v11756_v0, %v1940_v57  ;;  %7928 = vpow2.f32 %v1391_v2  ;;  %v3460_v9 = vsel %vm14932_vm4, %v11361_v21, -inf  ;;  %v11845_v29 = vld [vmem:[#allocation2 + $0x60] sm:$0xff] }
 0x26d   : > { %v1949_v63 = vsel %vm1946_vm12, %v1948_v35, %v1944_v25  ;;  %v2480_v0 = vsel %vm2440_vm13, %v10359_v22, -inf  ;;  %v11835_v52 = vsel %vm14941_vm9, %v4403_v7, -inf  ;;  %v11840_v28 = vsel %vm14938_vm0, %v4405_v47, -inf  ;;  %v8113_v35 = vld [vmem:[#allocation2 + $0x58] sm:$0xff]  ;;  %v15455_v22 = vld [vmem:[#allocation104_spill] sm:$0xff] }
 0x26e   : > { %7930 = vrcp.f32 %v11809_v45  ;;  %v1950_v21 = vmul.f32 %v1949_v63, %v11593_v50  ;;  %v11843_v27 = vadd.s32 272, %v8963_v10  ;;  %v11851_v57 = vsel %vm14925_vm8, %v4760_v43, -inf  ;;  %v2560_v25 = vld [vmem:[#allocation2 + $0x57] sm:$0xff] }
 0x26f   : > { %v11853_v2 = vmax.f32 %v3180_v14, %v3460_v9  ;;  %v2520_v47 = vmax.f32 %v8113_v35, %v2480_v0  ;;  %vm15017_vm2 = vcmp.eq.s32.totalorder %v11816_v61, 1  ;;  %vm3079_vm3 = vcmp.eq.s32.totalorder %v11803_v60, 1  ;;  %v15452_v43 = vld [vmem:[#allocation40_spill] sm:$0xff]  ;;  %v11879_v50 = vld [vmem:[#allocation2 + $0xd8] sm:$0xff] }
 0x270   : > { %v2154_v7 = vsel %vm11825_vm1, %v1950_v21, -inf  ;;  %v11863_v40 = vsel %vm2450_vm5, %v4404_v26, -inf  ;;  %vm15453_vm12 = vcmp.eq.s32.totalorder %v15452_v43, 1  ;;  %vm596_vm7 = vcmp.ge.s32.totalorder %v11843_v27, %v8965_v18  ;;  %v2879_v35 = vld [vmem:[#allocation2 + $0x52] sm:$0xff]  ;;  %15454 = vst [vmem:[#allocation180_spill] sm:$0xff] %v11879_v50 }
 0x271   : > { %15450 = vst [vmem:[#allocation179_spill] sm:$0xff] %v11853_v2  ;;  %v11869_v9 = vsel %vm15453_vm12, %v4406_v20, -inf  ;;  %vm637_vm10 = vcmp.lt.s32.totalorder %v11843_v27, %v8967_v19  ;;  %v1960_v26 = vand.u32 2147483647, %v11809_v45  ;;  %v1962_v21 = vand.u32 2147483648, %v11809_v45  ;;  %v11919_v60 = vld [vmem:[#allocation2 + $0x98] sm:$0xff] }
 0x272   : > { %2226 = vst [vmem:[#allocation2 + $0x128] sm:$0xff] %v2154_v7  ;;  %v7929_v0 = vpop.eup %7928  ;;  %v3687_v7 = vld [vmem:[#allocation2 + $0x90] sm:$0xff]  ;;  %v3807_v20 = vpack.c.bf16 %v11605_v39, %v11605_v39  ;;  %v2800_v12 = vsel %vm2760_vm14, %v2560_v25, -inf  ;;  %v11890_v30 = vsel %vm15017_vm2, %v15455_v22, -inf  ;;  %v3119_v15 = vsel %vm3079_vm3, %v2879_v35, -inf  ;;  %v11904_v25 = vpop.permute.xlu0 %3292  ;;  %v8115_v35 = vld [vmem:[#allocation2 + $0xd8] sm:$0xff] }
 0x273   : > { %v11894_v6 = vadd.f32 1.0, %v7929_v0  ;;  %4361 = vst [vmem:[#allocation2 + $0x90] sm:$0xff] %v15456_v4  ;;  %v11899_v33 = vmax.f32 %v2520_v47, %v2800_v12  ;;  %v11902_v53 = vadd.s32 280, %v8963_v10  ;;  %v3614_v22 = vmax.f32 %v8114_v62, %v11879_v50  ;;  %v11917_v62 = vpop.permute.xlu1 %3295  ;;  %v15463_v61 = vld [vmem:[#allocation144_spill] sm:$0xff] }
 0x274   : > { %v11883_v14 = vpop.eup %7930  ;;  %15457 = vst [vmem:[#allocation104_spill] sm:$0xff] %v11904_v25  ;;  %vm1956_vm1 = vweird.f32 %v11809_v45  ;;  %v3603_v0 = vmax.f32 %v11288_v17, %v10366_v3  ;;  %v3616_v47 = vmax.f32 %v8115_v35, %v15458_v8  ;;  %vm11913_vm8 = vcmp.eq.f32.partialorder %v1960_v26, 8.507059e+37  ;;  %v7265_v35 = vld [vmem:[#allocation8 + $0xb8] sm:$0xf0]  ;;  %v15464_v63 = vld [vmem:[#allocation148_spill] sm:$0xff] }
 0x275   : > { %v1952_v48 = vmul.f32 %v11883_v14, %v11809_v45  ;;  %3823 = vst [vmem:[#allocation4 + $0x44] sm:$0xf] %v3807_v20  ;;  %7932 = vrcp.f32 %v11894_v6  ;;  %vm1957_vm12 = vweird.f32 %v11883_v14  ;;  %v1963_v49 = vor.u32 1.1754944e-38, %v1962_v21  ;;  %v3199_v20 = vld [vmem:[#allocation2 + $0x4e] sm:$0xff]  ;;  %v4526_v10 = vld [vmem:[#allocation2 + $0xb7] sm:$0xff] }
 0x276   : > { %15461 = vst [vmem:[#allocation142_spill] sm:$0xff] %v11917_v62  ;;  %v3159_v1 = vmax.f32 %v11782_v59, %v3119_v15  ;;  %v3647_v11 = vmax.f32 %v3603_v0, %v11845_v29  ;;  %vm15016_vm4 = vcmp.eq.s32.totalorder %v11904_v25, 1  ;;  %v3604_v26 = vmax.f32 %v10486_v54, %v15462_v13  ;;  %vm11937_vm15 = vmor %vm1956_vm1, %vm1957_vm12  ;;  %v15467_v25 = vld [vmem:[#allocation157_spill] sm:$0xff] }
 0x277   : > { %v1953_v12 = vsub.f32 1.0, %v1952_v48  ;;  %v7596_v48 = vld [vmem:[#allocation8 + $0xb4] sm:$0xf]  ;;  %4362 = vst [vmem:[#allocation2 + $0x98] sm:$0xff] %v15463_v61  ;;  %v3439_v42 = vsel %vm15016_vm4, %v3199_v20, -inf  ;;  %v3658_v43 = vmax.f32 %v3614_v22, %v15464_v63  ;;  %v3618_v15 = vmax.f32 %v15458_v8, %v11853_v2  ;;  %4230 = vmatmul.bf16.gmra.mxu2 %v15468_v37  ;;  %vm11977_vm12 = vmand %vm596_vm7, %vm637_vm10 }
 0x278   : > { %vm15015_vm0 = vcmp.eq.s32.totalorder %v11917_v62, 1  ;;  %v3727_v0 = vmax.f32 %v3647_v11, %v3687_v7  ;;  %v3660_v20 = vmax.f32 %v3616_v47, %v15467_v25  ;;  %vm1971_vm9 = vweird.f32 %v11894_v6  ;;  %v15553_v62 = vld [vmem:[#allocation99_spill] sm:$0xff] }
 0x279   : > { %v1954_v21 = vmul.f32 %v11883_v14, %v1953_v12  ;;  %v11942_v12 = vmax.f32 %v3159_v1, %v3439_v42  ;;  %v3738_v8 = vmax.f32 %v3658_v43, %v3698_v58  ;;  %v7268_v51 = vor.u32 %v7596_v48, %v7265_v35  ;;  %v4525_v58 = vld [vmem:[#allocation2 + $0xaf] sm:$0xff] }
 0x27a   : > { %vm14952_vm1 = vcmp.eq.s32.totalorder %v15469_v31, 1  ;;  %v1975_v34 = vand.u32 2147483647, %v11894_v6  ;;  %v15470_v1 = vmax.f32 %v11845_v29, %v11288_v17  ;;  %v3740_v7 = vmax.f32 %v3660_v20, %v11853_v2  ;;  %v3200_v48 = vld [vmem:[#allocation2 + $0x56] sm:$0xff]  ;;  %v15471_v17 = vld [vmem:[#allocation138_spill] sm:$0xff] }
 0x27b   : > { %v1955_v22 = vadd.f32 %v11883_v14, %v1954_v21  ;;  %v11948_v45 = vpop.eup %7932  ;;  %v11957_v11 = vmax.f32 %v3727_v0, %v11942_v12  ;;  %v1977_v47 = vand.u32 2147483648, %v11894_v6  ;;  %v11966_v35 = vld [vmem:[#allocation2 + $0x70] sm:$0xff]  ;;  %v11969_v21 = vmax.f32 %v3738_v8, %v15471_v17  ;;  %4270 = vmatpush.bf16.msra.mxu3 %v7268_v51 }
 0x27c   : > { %v3645_v42 = vmax.f32 %v15470_v1, %v11942_v12  ;;  %v1967_v43 = vmul.f32 %v11948_v45, %v11894_v6  ;;  %v3440_v0 = vsel %vm15015_vm0, %v3200_v48, -inf  ;;  %v11988_v51 = vmax.f32 %v3740_v7, %v15464_v63  ;;  %v11990_v20 = vld [vmem:[#allocation2 + $0xf0] sm:$0xff]  ;;  %v4527_v48 = vld [vmem:[#allocation2 + $0xbf] sm:$0xff] }
 0x27d   : > { %v1959_v37 = vsel %vm11937_vm15, %v11883_v14, %v1955_v22  ;;  %4357 = vst [vmem:[#allocation2 + $0x70] sm:$0xff] %v11957_v11  ;;  %vm1972_vm15 = vweird.f32 %v11948_v45  ;;  %v15475_v1 = vld [vmem:[#allocation80_spill] sm:$0xff]  ;;  %v3160_v63 = vmax.f32 %v11899_v33, %v11890_v30  ;;  %vm597_vm7 = vcmp.ge.s32.totalorder %v11902_v53, %v8965_v18  ;;  %v15493_v33 = vld [vmem:[#allocation34_spill] sm:$0xff] }
 0x27e   : > { %v1964_v59 = vsel %vm11913_vm8, %v1963_v49, %v1959_v37  ;;  %v3725_v8 = vmax.f32 %v3645_v42, %v10366_v3  ;;  %15474 = vst [vmem:[#allocation92_spill] sm:$0xff] %v11990_v20  ;;  %v1968_v22 = vsub.f32 1.0, %v1967_v43  ;;  %v3808_v49 = vpack.c.bf16 %v11969_v21, %v11969_v21  ;;  %v2264_v42 = vld [vmem:[#allocation2 + $0x119] sm:$0xff] }
 0x27f   : > { %v1965_v27 = vmul.f32 %v1964_v59, %v11710_v56  ;;  %4368 = vst [vmem:[#allocation2 + $0xc8] sm:$0xff] %v11969_v21  ;;  %vm15476_vm8 = vcmp.eq.s32.totalorder %v15475_v1, 1  ;;  %v4645_v7 = vld [vmem:[#allocation2 + $0xb2] sm:$0xff]  ;;  %vm638_vm10 = vcmp.lt.s32.totalorder %v11902_v53, %v8967_v19  ;;  %v3617_v30 = vmax.f32 %v11257_v41, %v11990_v20  ;;  %v12026_v59 = vld [vmem:[#allocation2 + $0x60] sm:$0xff] }
 0x280   : > { %v4565_v3 = vsel %vm15476_vm8, %v4525_v58, -inf  ;;  %v12004_v56 = vmax.f32 %v3725_v8, %v11671_v24  ;;  %4370 = vst [vmem:[#allocation2 + $0xd8] sm:$0xff] %v11988_v51  ;;  %v1969_v58 = vmul.f32 %v11948_v45, %v1968_v22  ;;  %vm12018_vm8 = vmor %vm1971_vm9, %vm1972_vm15  ;;  %v1978_v24 = vor.u32 1.1754944e-38, %v1977_v47  ;;  %v4399_v8 = vld [vmem:[#allocation2 + $0x81] sm:$0xff]  ;;  %v15481_v22 = vld [vmem:[#allocation108_spill] sm:$0xff] }
 0x281   : > { %v2155_v37 = vsel %vm11977_vm12, %v1965_v27, -inf  ;;  %3824 = vst [vmem:[#allocation4 + $0x4c] sm:$0xf] %v3808_v49  ;;  %v12022_v43 = vmax.f32 %v3160_v63, %v3440_v0  ;;  %v3648_v17 = vmax.f32 %v3604_v26, %v11790_v38  ;;  %v3662_v14 = vmax.f32 %v3618_v15, %v11879_v50  ;;  %v4400_v47 = vld [vmem:[#allocation2 + $0x89] sm:$0xff]  ;;  %v15491_v53 = vld [vmem:[#allocation38_spill] sm:$0xff] }
 0x282   : > { %15477 = vst [vmem:[#allocation144_spill] sm:$0xff] %v12004_v56  ;;  %vm15482_vm12 = vcmp.eq.s32.totalorder %v15481_v22, 1  ;;  %v1970_v49 = vadd.f32 %v11948_v45, %v1969_v58  ;;  %vm1976_vm9 = vcmp.eq.f32.partialorder %v1975_v34, 8.507059e+37  ;;  %v15483_v26 = vmax.f32 %v11476_v44, %v11840_v28  ;;  %v15484_v0 = vld [vmem:[#allocation103_spill] sm:$0xff]  ;;  %v15490_v28 = vld [vmem:[#allocation154_spill] sm:$0xff] }
 0x283   : > { %2227 = vst [vmem:[#allocation2 + $0x130] sm:$0xff] %v2155_v37  ;;  %v12032_v6 = vsel %vm15482_vm12, %v4526_v10, -inf  ;;  %vm15485_vm15 = vcmp.eq.s32.totalorder %v15484_v0, 1  ;;  %v3728_v37 = vmax.f32 %v3648_v17, %v11919_v60  ;;  %v3742_v10 = vmax.f32 %v3662_v14, %v11685_v55  ;;  %vm12057_vm12 = vmand %vm597_vm7, %vm638_vm10  ;;  %v15488_v60 = vld [vmem:[#allocation115_spill] sm:$0xff]  ;;  %v7566_v17 = vld [vmem:[#allocation4 + $0x44] sm:$0xf] }
 0x284   : > { %15480 = vst [vmem:[#allocation148_spill] sm:$0xff] %v12026_v59  ;;  %v12039_v15 = vmax.f32 %v15483_v26, %v4565_v3  ;;  %v12043_v63 = vsel %vm15485_vm15, %v4645_v7, -inf  ;;  %v12049_v58 = vsel %vm14952_vm1, %v2264_v42, -inf  ;;  %v1974_v34 = vsel %vm12018_vm8, %v11948_v45, %v1970_v49  ;;  %v4401_v42 = vld [vmem:[#allocation2 + $0x91] sm:$0xff]  ;;  %v15495_v49 = vld [vmem:[#allocation39_spill] sm:$0xff]  ;;  %v15505_v0 = vld [vmem:[#allocation114_spill] sm:$0xff] }
 0x285   : > { %4355 = vst [vmem:[#allocation2 + $0x60] sm:$0xff] %v12004_v56  ;;  %vm15489_vm15 = vcmp.eq.s32.totalorder %v15488_v60, 1  ;;  %v3661_v3 = vmax.f32 %v3617_v30, %v15490_v28  ;;  %v1979_v7 = vsel %vm1976_vm9, %v1978_v24, %v1974_v34  ;;  %v12068_v18 = vmax.f32 %v3728_v37, %v12022_v43  ;;  %v15497_v34 = vld [vmem:[#allocation47_spill] sm:$0xff]  ;;  %v4402_v60 = vld [vmem:[#allocation2 + $0x99] sm:$0xff] }
 0x286   : > { %v4567_v55 = vsel %vm15489_vm15, %v4527_v48, -inf  ;;  %v4407_v19 = vld [vmem:[#allocation2 + $0xc1] sm:$0xff]  ;;  %v4408_v14 = vld [vmem:[#allocation2 + $0xc9] sm:$0xff]  ;;  %vm15492_vm7 = vcmp.eq.s32.totalorder %v15491_v53, 1  ;;  %vm15494_vm10 = vcmp.eq.s32.totalorder %v15493_v33, 1  ;;  %v1980_v48 = vmul.f32 %v1979_v7, %v11780_v32 }
 0x287   : > { %v4528_v26 = vld [vmem:[#allocation2 + $0xc7] sm:$0xff]  ;;  %v12072_v27 = vsel %vm15492_vm7, %v4399_v8, -inf  ;;  %v12076_v45 = vsel %vm15494_vm10, %v4400_v47, -inf  ;;  %v4409_v30 = vld [vmem:[#allocation2 + $0xd1] sm:$0xff]  ;;  %vm15496_vm8 = vcmp.eq.s32.totalorder %v15495_v49, 1  ;;  %vm15498_vm9 = vcmp.eq.s32.totalorder %v15497_v34, 1 }
 0x288   : > { %v4447_v24 = vsel %vm15496_vm8, %v4407_v19, -inf  ;;  %v4448_v31 = vsel %vm15498_vm9, %v4408_v14, -inf  ;;  %v4529_v20 = vld [vmem:[#allocation2 + $0xcf] sm:$0xff]  ;;  %v12084_v37 = vmax.f32 %v3742_v10, %v15467_v25  ;;  %v4647_v7 = vld [vmem:[#allocation2 + $0xc2] sm:$0xff]  ;;  %v2156_v14 = vsel %vm12057_vm12, %v1980_v48, -inf  ;;  %4358 = vst [vmem:[#allocation2 + $0x78] sm:$0xff] %v12068_v18 }
 0x289   : > { %v7145_v8 = vld [vmem:[#allocation4 + $0x48] sm:$0xf0]  ;;  %v4487_v47 = vmax.f32 %v11605_v39, %v4447_v24  ;;  %v4488_v32 = vmax.f32 %v11969_v21, %v4448_v31  ;;  %vm15506_vm7 = vcmp.eq.s32.totalorder %v15505_v0, 1  ;;  %2228 = vst [vmem:[#allocation2 + $0x138] sm:$0xff] %v2156_v14  ;;  %v15507_v39 = vld [vmem:[#allocation122_spill] sm:$0xff] }
 0x28a   : > { %15499 = vst [vmem:[#allocation157_spill] sm:$0xff] %v12084_v37  ;;  %v15500_v59 = vld [vmem:[#allocation43_spill] sm:$0xff]  ;;  %v12093_v34 = vor.u32 %v7566_v17, %v7145_v8  ;;  %v4568_v1 = vsel %vm15506_vm7, %v4528_v26, -inf  ;;  %vm15508_vm10 = vcmp.eq.s32.totalorder %v15507_v39, 1  ;;  %v4767_v24 = vld [vmem:[#allocation2 + $0xbe] sm:$0xff]  ;;  %v15522_v39 = vmax.f32 %v11598_v36, %v11869_v9 }
 0x28b   : > { %vm15501_vm15 = vcmp.eq.s32.totalorder %v15500_v59, 1  ;;  %v4648_v53 = vld [vmem:[#allocation2 + $0xca] sm:$0xff]  ;;  %v4649_v59 = vld [vmem:[#allocation2 + $0xd2] sm:$0xff]  ;;  %v4569_v31 = vsel %vm15508_vm10, %v4529_v20, -inf  ;;  %v4607_v21 = vmax.f32 %v4487_v47, %v4567_v55  ;;  %4372 = vst [vmem:[#allocation2 + $0xe8] sm:$0xff] %v12084_v37  ;;  %v15517_v55 = vld [vmem:[#allocation110_spill] sm:$0xff] }
 0x28c   : > { %v4449_v33 = vsel %vm15501_vm15, %v4409_v30, -inf  ;;  %v15502_v49 = vld [vmem:[#allocation159_spill] sm:$0xff]  ;;  %15503 = vst [vmem:[#allocation106_spill] sm:$0xff] %v12093_v34  ;;  %v4608_v30 = vmax.f32 %v4488_v32, %v4568_v1  ;;  %4196 = vmatmul.bf16.gmra.mxu3 %v12093_v34  ;;  %v15515_v8 = vld [vmem:[#allocation41_spill] sm:$0xff]  ;;  %4235 = vmatmul.bf16.gmra.mxu2 %v15517_v55 }
 0x28d   : > { %v3741_v19 = vmax.f32 %v3661_v3, %v15502_v49  ;;  %v15504_v25 = vld [vmem:[#allocation151_spill] sm:$0xff]  ;;  %v15509_v3 = vld [vmem:[#allocation33_spill] sm:$0xff]  ;;  %vm15516_vm15 = vcmp.eq.s32.totalorder %v15515_v8, 1 }
 0x28e   : > { %v4489_v10 = vmax.f32 %v15504_v25, %v4449_v33  ;;  %vm15510_vm8 = vcmp.eq.s32.totalorder %v15509_v3, 1  ;;  %v15511_v48 = vld [vmem:[#allocation95_spill] sm:$0xff]  ;;  %v4442_v20 = vsel %vm15516_vm15, %v4402_v60, -inf  ;;  %v15518_v1 = vld [vmem:[#allocation113_spill] sm:$0xff]  ;;  %v12123_v60 = vmax.f32 %v15522_v39, %v12032_v6 }
 0x28f   : > { %v4441_v44 = vsel %vm15510_vm8, %v4401_v42, -inf  ;;  %vm15512_vm12 = vcmp.eq.s32.totalorder %v15511_v48, 1  ;;  %v15513_v49 = vld [vmem:[#allocation119_spill] sm:$0xff]  ;;  %vm15519_vm7 = vcmp.eq.s32.totalorder %v15518_v1, 1  ;;  %v4522_v6 = vld [vmem:[#allocation2 + $0x97] sm:$0xff]  ;;  %v4523_v39 = vld [vmem:[#allocation2 + $0x9f] sm:$0xff]  ;;  %v4482_v1 = vmax.f32 %v15463_v61, %v4442_v20 }
 0x290   : > { %v4609_v17 = vmax.f32 %v4489_v10, %v4569_v31  ;;  %v4687_v33 = vsel %vm15512_vm12, %v4647_v7, -inf  ;;  %vm15514_vm9 = vcmp.eq.s32.totalorder %v15513_v49, 1  ;;  %v4689_v42 = vsel %vm15519_vm7, %v4649_v59, -inf  ;;  %v4768_v14 = vld [vmem:[#allocation2 + $0xc6] sm:$0xff]  ;;  %v4769_v25 = vld [vmem:[#allocation2 + $0xce] sm:$0xff]  ;;  %v15527_v55 = vld [vmem:[#allocation125_spill] sm:$0xff] }
 0x291   : > { %v4688_v26 = vsel %vm15514_vm9, %v4648_v53, -inf  ;;  %v4727_v47 = vmax.f32 %v4607_v21, %v4687_v33  ;;  %v15520_v10 = vld [vmem:[#allocation160_spill] sm:$0xff]  ;;  %v4520_v21 = vld [vmem:[#allocation2 + $0x87] sm:$0xff]  ;;  %v15523_v33 = vld [vmem:[#allocation117_spill] sm:$0xff]  ;;  %vm15528_vm12 = vcmp.eq.s32.totalorder %v15527_v55, 1 }
 0x292   : > { %v4728_v32 = vmax.f32 %v4608_v30, %v4688_v26  ;;  %v12115_v7 = vmax.f32 %v3741_v19, %v15520_v10  ;;  %v15521_v53 = vld [vmem:[#allocation156_spill] sm:$0xff]  ;;  %v4729_v59 = vmax.f32 %v4609_v17, %v4689_v42  ;;  %vm15524_vm10 = vcmp.eq.s32.totalorder %v15523_v33, 1  ;;  %v8117_v10 = vld [vmem:[#allocation2 + $0x88] sm:$0xff]  ;;  %v15525_v17 = vld [vmem:[#allocation109_spill] sm:$0xff] }
 0x293   : > { %v4484_v31 = vmax.f32 %v15521_v53, %v11863_v40  ;;  %v4807_v19 = vsel %vm15524_vm10, %v4767_v24, -inf  ;;  %v8116_v40 = vld [vmem:[#allocation2 + $0x80] sm:$0xff]  ;;  %v4480_v36 = vmax.f32 %v8117_v10, %v12076_v45  ;;  %v4521_v9 = vld [vmem:[#allocation2 + $0x8f] sm:$0xff]  ;;  %v4530_v53 = vld [vmem:[#allocation2 + $0xd7] sm:$0xff]  ;;  %vm15526_vm8 = vcmp.eq.s32.totalorder %v15525_v17, 1 }
 0x294   : > { %4371 = vst [vmem:[#allocation2 + $0xe0] sm:$0xff] %v12115_v7  ;;  %v4479_v26 = vmax.f32 %v8116_v40, %v12072_v27  ;;  %v4808_v42 = vsel %vm15526_vm8, %v4768_v14, -inf  ;;  %v4809_v30 = vsel %vm15528_vm12, %v4769_v25, -inf  ;;  %v4481_v24 = vmax.f32 %v15456_v4, %v4441_v44  ;;  %v4524_v49 = vld [vmem:[#allocation2 + $0xa7] sm:$0xff]  ;;  %v4398_v40 = vld [vmem:[#allocation2 + $0x79] sm:$0xff]  ;;  %v15540_v20 = vld [vmem:[#allocation76_spill] sm:$0xff] }
 0x295   : > { %v12140_v0 = vmax.f32 %v4727_v47, %v4807_v19  ;;  %v12142_v27 = vmax.f32 %v4728_v32, %v4808_v42  ;;  %v12144_v45 = vmax.f32 %v4729_v59, %v4809_v30  ;;  %v4518_v10 = vld [vmem:[#allocation2 + $0x77] sm:$0xff]  ;;  %v15534_v14 = vld [vmem:[#allocation30_spill] sm:$0xff]  ;;  %vm15541_vm8 = vcmp.eq.s32.totalorder %v15540_v20, 1  ;;  %v15561_v3 = vld [vmem:[#allocation79_spill] sm:$0xff] }
 0x296   : > { %v15532_v34 = vld [vmem:[#allocation73_spill] sm:$0xff]  ;;  %vm15535_vm15 = vcmp.eq.s32.totalorder %v15534_v14, 1  ;;  %v4563_v47 = vsel %vm15541_vm8, %v4523_v39, -inf  ;;  %v4639_v32 = vld [vmem:[#allocation2 + $0x82] sm:$0xff]  ;;  %vm15554_vm8 = vcmp.eq.s32.totalorder %v15553_v62, 1  ;;  %v4765_v56 = vld [vmem:[#allocation2 + $0xae] sm:$0xff] }
 0x297   : > { %15529 = vst [vmem:[#allocation138_spill] sm:$0xff] %v12140_v0  ;;  %vm15533_vm9 = vcmp.eq.s32.totalorder %v15532_v34, 1  ;;  %v4438_v55 = vsel %vm15535_vm15, %v4398_v40, -inf  ;;  %v4519_v25 = vld [vmem:[#allocation2 + $0x7f] sm:$0xff]  ;;  %v4758_v50 = vld [vmem:[#allocation2 + $0x76] sm:$0xff] }
 0x298   : > { %15530 = vst [vmem:[#allocation108_spill] sm:$0xff] %v12142_v27  ;;  %v4560_v17 = vsel %vm15533_vm9, %v4520_v21, -inf  ;;  %v15536_v33 = vld [vmem:[#allocation81_spill] sm:$0xff]  ;;  %v4478_v59 = vmax.f32 %v12068_v18, %v4438_v55  ;;  %v15542_v30 = vld [vmem:[#allocation74_spill] sm:$0xff]  ;;  %v15544_v21 = vld [vmem:[#allocation84_spill] sm:$0xff] }
 0x299   : > { %15531 = vst [vmem:[#allocation159_spill] sm:$0xff] %v12144_v45  ;;  %vm15537_vm7 = vcmp.eq.s32.totalorder %v15536_v33, 1  ;;  %v15538_v61 = vld [vmem:[#allocation77_spill] sm:$0xff]  ;;  %vm15543_vm12 = vcmp.eq.s32.totalorder %v15542_v30, 1  ;;  %vm15545_vm9 = vcmp.eq.s32.totalorder %v15544_v21, 1  ;;  %v15548_v14 = vld [vmem:[#allocation78_spill] sm:$0xff]  ;;  %v12167_v39 = vmax.f32 %v4480_v36, %v4560_v17 }
 0x29a   : > { %v4561_v4 = vsel %vm15537_vm7, %v4521_v9, -inf  ;;  %vm15539_vm10 = vcmp.eq.s32.totalorder %v15538_v61, 1  ;;  %v4559_v19 = vsel %vm15543_vm12, %v4519_v25, -inf  ;;  %v4564_v42 = vsel %vm15545_vm9, %v4524_v49, -inf  ;;  %v15546_v40 = vld [vmem:[#allocation121_spill] sm:$0xff]  ;;  %v4640_v9 = vld [vmem:[#allocation2 + $0x8a] sm:$0xff] }
 0x29b   : > { %v4562_v44 = vsel %vm15539_vm10, %v4522_v6, -inf  ;;  %vm15547_vm15 = vcmp.eq.s32.totalorder %v15546_v40, 1  ;;  %v4638_v48 = vld [vmem:[#allocation2 + $0x7a] sm:$0xff]  ;;  %vm15549_vm7 = vcmp.eq.s32.totalorder %v15548_v14, 1  ;;  %v12165_v33 = vmax.f32 %v4479_v26, %v4559_v19  ;;  %v4641_v18 = vld [vmem:[#allocation2 + $0x92] sm:$0xff]  ;;  %v4644_v26 = vld [vmem:[#allocation2 + $0xaa] sm:$0xff] }
 0x29c   : > { %v4570_v34 = vsel %vm15547_vm15, %v4530_v53, -inf  ;;  %v4558_v6 = vsel %vm15549_vm7, %v4518_v10, -inf  ;;  %v12169_v20 = vmax.f32 %v4481_v24, %v4561_v4  ;;  %v4642_v55 = vld [vmem:[#allocation2 + $0x9a] sm:$0xff]  ;;  %v4602_v40 = vmax.f32 %v4482_v1, %v4562_v44  ;;  %v4643_v10 = vld [vmem:[#allocation2 + $0xa2] sm:$0xff] }
 0x29d   : > { %v12173_v49 = vmax.f32 %v4478_v59, %v4558_v6  ;;  %v15550_v53 = vmax.f32 %v11454_v46, %v11835_v52  ;;  %v4646_v19 = vld [vmem:[#allocation2 + $0xba] sm:$0xff]  ;;  %v4604_v4 = vmax.f32 %v4484_v31, %v4564_v42  ;;  %v4679_v59 = vsel %vm15554_vm8, %v4639_v32, -inf  ;;  %v4651_v25 = vld [vmem:[#allocation2 + $0xe2] sm:$0xff] }
 0x29e   : > { %v4410_v36 = vld [vmem:[#allocation2 + $0xd9] sm:$0xff]  ;;  %v4411_v17 = vld [vmem:[#allocation2 + $0xe1] sm:$0xff]  ;;  %vm15562_vm7 = vcmp.eq.s32.totalorder %v15561_v3, 1  ;;  %v15571_v3 = vld [vmem:[#allocation112_spill] sm:$0xff] }
 0x29f   : > { %v12178_v30 = vmax.f32 %v15550_v53, %v4563_v47  ;;  %v4531_v24 = vld [vmem:[#allocation2 + $0xdf] sm:$0xff]  ;;  %v4681_v31 = vsel %vm15562_vm7, %v4641_v18, -inf  ;;  %v15563_v42 = vld [vmem:[#allocation87_spill] sm:$0xff] }
 0x2a0   : > { %v15551_v14 = vld [vmem:[#allocation82_spill] sm:$0xff]  ;;  %vm15564_vm1 = vcmp.eq.s32.totalorder %v15563_v42, 1  ;;  %v4721_v42 = vmax.f32 %v12169_v20, %v4681_v31 }
 0x2a1   : > { %vm15552_vm10 = vcmp.eq.s32.totalorder %v15551_v14, 1  ;;  %v15555_v6 = vld [vmem:[#allocation94_spill] sm:$0xff] }
 0x2a2   : > { %v4678_v37 = vsel %vm15552_vm10, %v4638_v48, -inf  ;;  %vm15556_vm12 = vcmp.eq.s32.totalorder %v15555_v6, 1  ;;  %v15557_v44 = vld [vmem:[#allocation42_spill] sm:$0xff]  ;;  %v4682_v48 = vsel %vm15564_vm1, %v4642_v55, -inf  ;;  %v15565_v6 = vld [vmem:[#allocation129_spill] sm:$0xff] }
 0x2a3   : > { %v4680_v1 = vsel %vm15556_vm12, %v4640_v9, -inf  ;;  %vm15558_vm9 = vcmp.eq.s32.totalorder %v15557_v44, 1  ;;  %v15559_v52 = vld [vmem:[#allocation50_spill] sm:$0xff]  ;;  %vm15566_vm10 = vcmp.eq.s32.totalorder %v15565_v6, 1  ;;  %v15567_v44 = vld [vmem:[#allocation85_spill] sm:$0xff]  ;;  %v4718_v55 = vmax.f32 %v12173_v49, %v4678_v37  ;;  %v15575_v6 = vld [vmem:[#allocation120_spill] sm:$0xff] }
 0x2a4   : > { %v4450_v46 = vsel %vm15558_vm9, %v4410_v36, -inf  ;;  %vm15560_vm15 = vcmp.eq.s32.totalorder %v15559_v52, 1  ;;  %v4650_v53 = vld [vmem:[#allocation2 + $0xda] sm:$0xff]  ;;  %v4571_v9 = vsel %vm15566_vm10, %v4531_v24, -inf  ;;  %v4719_v36 = vmax.f32 %v12165_v33, %v4679_v59 }
 0x2a5   : > { %v4451_v47 = vsel %vm15560_vm15, %v4411_v17, -inf  ;;  %v4490_v62 = vmax.f32 %v11988_v51, %v4450_v46  ;;  %vm15568_vm8 = vcmp.eq.s32.totalorder %v15567_v44, 1  ;;  %v15569_v52 = vld [vmem:[#allocation93_spill] sm:$0xff]  ;;  %vm15572_vm9 = vcmp.eq.s32.totalorder %v15571_v3, 1  ;;  %v4761_v46 = vld [vmem:[#allocation2 + $0x8e] sm:$0xff]  ;;  %v4764_v44 = vld [vmem:[#allocation2 + $0xa6] sm:$0xff] }
 0x2a6   : > { %v4491_v32 = vmax.f32 %v12115_v7, %v4451_v47  ;;  %v4683_v17 = vsel %vm15568_vm8, %v4643_v10, -inf  ;;  %vm15570_vm12 = vcmp.eq.s32.totalorder %v15569_v52, 1  ;;  %v4686_v18 = vsel %vm15572_vm9, %v4646_v19, -inf  ;;  %v15573_v47 = vld [vmem:[#allocation126_spill] sm:$0xff]  ;;  %v4762_v10 = vld [vmem:[#allocation2 + $0x96] sm:$0xff] }
 0x2a7   : > { %v4684_v14 = vsel %vm15570_vm12, %v4644_v26, -inf  ;;  %v4610_v28 = vmax.f32 %v4490_v62, %v4570_v34  ;;  %vm15574_vm1 = vcmp.eq.s32.totalorder %v15573_v47, 1  ;;  %vm15576_vm15 = vcmp.eq.s32.totalorder %v15575_v6, 1  ;;  %v4759_v59 = vld [vmem:[#allocation2 + $0x7e] sm:$0xff]  ;;  %v4766_v62 = vld [vmem:[#allocation2 + $0xb6] sm:$0xff] }
 0x2a8   : > { %v4611_v7 = vmax.f32 %v4491_v32, %v4571_v9  ;;  %v4690_v24 = vsel %vm15574_vm1, %v4650_v53, -inf  ;;  %v4691_v33 = vsel %vm15576_vm15, %v4651_v25, -inf  ;;  %v4720_v26 = vmax.f32 %v12167_v39, %v4680_v1  ;;  %v4763_v49 = vld [vmem:[#allocation2 + $0x9e] sm:$0xff]  ;;  %v15577_v6 = vld [vmem:[#allocation88_spill] sm:$0xff] }
 0x2a9   : > { %v4722_v19 = vmax.f32 %v4602_v40, %v4682_v48  ;;  %v4723_v37 = vmax.f32 %v12178_v30, %v4683_v17  ;;  %v4724_v34 = vmax.f32 %v4604_v4, %v4684_v14  ;;  %v4726_v32 = vmax.f32 %v12123_v60, %v4686_v18  ;;  %v4771_v9 = vld [vmem:[#allocation2 + $0xde] sm:$0xff]  ;;  %v12223_v14 = vpop.f32.mrf.mxu2  ;;  %v4770_v60 = vld [vmem:[#allocation2 + $0xd6] sm:$0xff]  ;;  %v15591_v17 = vld [vmem:[#allocation111_spill] sm:$0xff] }
 0x2aa   : > { %v4730_v53 = vmax.f32 %v4610_v28, %v4690_v24  ;;  %vm15578_vm7 = vcmp.eq.s32.totalorder %v15577_v6, 1  ;;  %v15579_v47 = vld [vmem:[#allocation118_spill] sm:$0xff]  ;;  %v4731_v61 = vmax.f32 %v4611_v7, %v4691_v33  ;;  %15586 = vst [vmem:[#allocation151_spill] sm:$0xff] %v12223_v14  ;;  %v15587_v28 = vld [vmem:[#allocation91_spill] sm:$0xff]  ;;  %v15589_v48 = vld [vmem:[#allocation100_spill] sm:$0xff]  ;;  %vm15592_vm15 = vcmp.eq.s32.totalorder %v15591_v17, 1  ;;  %v12241_v14 = vpop.permute.xlu2 %2957 }
 0x2ab   : > { %v4798_v25 = vsel %vm15578_vm7, %v4758_v50, -inf  ;;  %4240 = vmatmul.bf16.gmra.mxu2 %v15579_v47  ;;  %v15580_v39 = vld [vmem:[#allocation98_spill] sm:$0xff]  ;;  %vm15588_vm9 = vcmp.eq.s32.totalorder %v15587_v28, 1  ;;  %vm15590_vm1 = vcmp.eq.s32.totalorder %v15589_v48, 1  ;;  %v4805_v18 = vsel %vm15592_vm15, %v4765_v56, -inf  ;;  %v15593_v7 = vld [vmem:[#allocation107_spill] sm:$0xff] }
 0x2ac   : > { %vm15581_vm10 = vcmp.eq.s32.totalorder %v15580_v39, 1  ;;  %v15582_v40 = vld [vmem:[#allocation90_spill] sm:$0xff]  ;;  %v4803_v4 = vsel %vm15588_vm9, %v4763_v49, -inf  ;;  %v4804_v50 = vsel %vm15590_vm1, %v4764_v44, -inf  ;;  %vm15594_vm7 = vcmp.eq.s32.totalorder %v15593_v7, 1  ;;  %v15595_v24 = vld [vmem:[#allocation132_spill] sm:$0xff] }
 0x2ad   : > { %v4799_v20 = vsel %vm15581_vm10, %v4759_v59, -inf  ;;  %vm15583_vm8 = vcmp.eq.s32.totalorder %v15582_v40, 1  ;;  %v15584_v1 = vld [vmem:[#allocation86_spill] sm:$0xff]  ;;  %v4806_v47 = vsel %vm15594_vm7, %v4766_v62, -inf  ;;  %vm15596_vm10 = vcmp.eq.s32.totalorder %v15595_v24, 1  ;;  %15597 = vst [vmem:[#allocation41_spill] sm:$0xff] %v12241_v14 }
 0x2ae   : > { %v4801_v30 = vsel %vm15583_vm8, %v4761_v46, -inf  ;;  %vm15585_vm12 = vcmp.eq.s32.totalorder %v15584_v1, 1  ;;  %v4811_v46 = vsel %vm15596_vm10, %v4771_v9, -inf  ;;  %v12235_v33 = vmax.f32 %v4719_v36, %v4799_v20  ;;  %v15601_v9 = vld [vmem:[#allocation116_spill] sm:$0xff]  ;;  %v15621_v17 = vld [vmem:[#allocation175_spill] sm:$0xff] }
 0x2af   : > { %v4802_v31 = vsel %vm15585_vm12, %v4762_v10, -inf  ;;  %v12237_v59 = vmax.f32 %v4721_v42, %v4801_v30  ;;  %v12243_v49 = vmax.f32 %v4723_v37, %v4803_v4  ;;  %v12245_v44 = vmax.f32 %v4724_v34, %v4804_v50  ;;  %v15605_v37 = vld [vmem:[#allocation27_spill] sm:$0xff]  ;;  %v12289_v50 = vpop.permute.xlu0 %3289  ;;  %v15619_v6 = vld [vmem:[#allocation172_spill] sm:$0xff] }
 0x2b0   : > { %v12239_v10 = vmax.f32 %v4722_v19, %v4802_v31  ;;  %v15599_v56 = vmax.f32 %v12039_v15, %v12043_v63  ;;  %v12252_v62 = vmax.f32 %v4726_v32, %v4806_v47  ;;  %vm15602_vm8 = vcmp.eq.s32.totalorder %v15601_v9, 1  ;;  %v15606_v32 = vld [vmem:[#allocation24_spill] sm:$0xff]  ;;  %15609 = vst [vmem:[#allocation112_spill] sm:$0xff] %v12289_v50 }
 0x2b1   : > { %15598 = vst [vmem:[#allocation110_spill] sm:$0xff] %v12243_v49  ;;  %v4810_v36 = vsel %vm15602_vm8, %v4770_v60, -inf  ;;  %v12256_v42 = vmax.f32 %v4718_v55, %v4798_v25  ;;  %v12259_v19 = vmax.f32 %v4720_v26, %v11851_v57  ;;  %v12261_v20 = vmax.f32 %v4731_v61, %v4811_v46  ;;  %v2555_v40 = vld [vmem:[#allocation2 + $0x2f] sm:$0xff] }
 0x2b2   : > { %v12250_v39 = vmax.f32 %v15599_v56, %v4805_v18  ;;  %15600 = vst [vmem:[#allocation160_spill] sm:$0xff] %v12252_v62  ;;  %vm14959_vm12 = vcmp.eq.s32.totalorder %v15605_v37, 1  ;;  %v4961_v34 = vmax.f32 %v12237_v59, %v12243_v49  ;;  %v4962_v15 = vmax.f32 %v12239_v10, %v12245_v44  ;;  %v8120_v37 = vld [vmem:[#allocation2 + $0x30] sm:$0xff] }
 0x2b3   : > { %15603 = vst [vmem:[#allocation156_spill] sm:$0xff] %v12256_v42  ;;  %v4964_v55 = vmax.f32 %v12245_v44, %v12252_v62  ;;  %vm2435_vm9 = vcmp.eq.s32.totalorder %v15606_v32, 1  ;;  %v12273_v57 = vmax.f32 %v4730_v53, %v4810_v36  ;;  %v4966_v26 = vmax.f32 %v12252_v62, %v12142_v27 }
 0x2b4   : > { %15604 = vst [vmem:[#allocation84_spill] sm:$0xff] %v12261_v20  ;;  %v4963_v63 = vmax.f32 %v12243_v49, %v12250_v39  ;;  %v4965_v61 = vmax.f32 %v12250_v39, %v12140_v0  ;;  %v15608_v25 = vmax.f32 %v12140_v0, %v12144_v45  ;;  %v12284_v31 = vmax.f32 %v4961_v34, %v12235_v33  ;;  %v15616_v34 = vld [vmem:[#allocation169_spill] sm:$0xff] }
 0x2b5   : > { %15607 = vst [vmem:[#allocation93_spill] sm:$0xff] %v12273_v57  ;;  %v5006_v60 = vmax.f32 %v4962_v15, %v12259_v19  ;;  %v5008_v53 = vmax.f32 %v4964_v55, %v12239_v10  ;;  %v15610_v18 = vmax.f32 %v11790_v38, %v10486_v54  ;;  %v5010_v56 = vmax.f32 %v4966_v26, %v12245_v44  ;;  %v12311_v26 = vpop.permute.xlu1 %2963 }
 0x2b6   : > { %v5011_v30 = vmax.f32 %v15608_v25, %v12250_v39  ;;  %v5007_v4 = vmax.f32 %v4963_v63, %v12237_v59  ;;  %v5009_v46 = vmax.f32 %v4965_v61, %v12243_v49  ;;  %vm14958_vm1 = vcmp.eq.s32.totalorder %v12289_v50, 1  ;;  %v12309_v61 = vpop.f32.mrf.mxu2  ;;  %15613 = vst [vmem:[#allocation100_spill] sm:$0xff] %v12311_v26 }
 0x2b7   : > { %v3646_v47 = vmax.f32 %v15610_v18, %v12022_v43  ;;  %v5086_v15 = vmax.f32 %v5006_v60, %v12252_v62  ;;  %v5088_v55 = vmax.f32 %v5008_v53, %v12142_v27  ;;  %v5090_v24 = vmax.f32 %v5010_v56, %v12273_v57  ;;  %15612 = vst [vmem:[#allocation86_spill] sm:$0xff] %v12309_v61  ;;  %v15615_v53 = vld [vmem:[#allocation167_spill] sm:$0xff] }
 0x2b8   : > { %v5091_v36 = vmax.f32 %v5011_v30, %v12261_v20  ;;  %v5087_v63 = vmax.f32 %v5007_v4, %v12140_v0  ;;  %v5089_v25 = vmax.f32 %v5009_v46, %v12144_v45  ;;  %v3438_v46 = vsel %vm14958_vm1, %v15615_v53, -inf  ;;  %v2554_v56 = vld [vmem:[#allocation2 + $0x27] sm:$0xff]  ;;  %v15620_v53 = vld [vmem:[#allocation60_spill] sm:$0xff] }
 0x2b9   : > { %v12314_v30 = vmax.f32 %v5086_v15, %v12256_v42  ;;  %v12320_v4 = vmax.f32 %v5088_v55, %v12259_v19  ;;  %vm14957_vm15 = vcmp.eq.s32.totalorder %v15616_v34, 1  ;;  %v3726_v61 = vmax.f32 %v3646_v47, %v15462_v13  ;;  %v8118_v55 = vld [vmem:[#allocation2 + $0x28] sm:$0xff]  ;;  %v12341_v13 = vpop.permute.xlu2 %3277 }
 0x2ba   : > { %v12306_v18 = vmax.f32 %v5091_v36, %v12243_v49  ;;  %v12317_v60 = vmax.f32 %v5087_v63, %v12235_v33  ;;  %v2235_v36 = vld [vmem:[#allocation2 + $0x31] sm:$0xff]  ;;  %v12328_v9 = vmax.f32 %v5089_v25, %v12237_v59  ;;  %v15618_v15 = vmax.f32 %v11771_v5, %v11813_v16  ;;  %15622 = vst [vmem:[#allocation172_spill] sm:$0xff] %v12341_v13 }
 0x2bb   : > { %v2514_v50 = vmax.f32 %v8118_v55, %v15619_v6  ;;  %vm14961_vm7 = vcmp.eq.s32.totalorder %v15620_v53, 1  ;;  %v2824_v28 = vsel %vm14957_vm15, %v15621_v17, -inf  ;;  %v12344_v47 = vmax.f32 %v5090_v24, %v12239_v10  ;;  %5200 = vst [vmem:[#allocation2 + $0x98] sm:$0xff] %v12314_v30  ;;  %v15624_v25 = vld [vmem:[#allocation168_spill] sm:$0xff]  ;;  %v12378_v53 = vld [vmem:[#allocation2 + $0x68] sm:$0xff] }
 0x2bc   : > { %15611 = vst [vmem:[#allocation118_spill] sm:$0xff] %v12306_v18  ;;  %v12334_v63 = vmax.f32 %v15618_v15, %v3438_v46  ;;  %v2476_v5 = vsel %vm14959_vm12, %v15624_v25, -inf  ;;  %v15625_v16 = vmax.f32 %v11663_v23, %v12049_v58  ;;  %v2904_v46 = vld [vmem:[#allocation2 + $0x11a] sm:$0xff]  ;;  %vm14979_vm10 = vcmp.eq.s32.totalorder %v12241_v14, 1  ;;  %v15626_v15 = vld [vmem:[#allocation64_spill] sm:$0xff]  ;;  %v12422_v14 = vpop.permute.xlu0 %2960 }
 0x2bd   : > { %15614 = vst [vmem:[#allocation107_spill] sm:$0xff] %v12317_v60  ;;  %v2794_v24 = vsel %vm14961_vm7, %v2554_v56, -inf  ;;  %vm14996_vm8 = vcmp.eq.s32.totalorder %v15626_v15, 1  ;;  %v2475_v55 = vsel %vm2435_vm9, %v2235_v36, -inf  ;;  %v5156_v23 = vpack.c.bf16 %v12314_v30, %v12314_v30  ;;  %v15627_v58 = vld [vmem:[#allocation124_spill] sm:$0xff]  ;;  %v15629_v25 = vld [vmem:[#allocation174_spill] sm:$0xff] }
 0x2be   : > { %15617 = vst [vmem:[#allocation167_spill] sm:$0xff] %v12328_v9  ;;  %v2864_v6 = vmax.f32 %v15625_v16, %v2824_v28  ;;  %v12356_v17 = vmax.f32 %v3726_v61, %v12334_v63  ;;  %4245 = vmatmul.bf16.gmra.mxu2 %v15627_v58  ;;  %v15628_v28 = vld [vmem:[#allocation69_spill] sm:$0xff]  ;;  %vm14972_vm1 = vcmp.eq.s32.totalorder %v15629_v25, 1  ;;  %v2874_v61 = vld [vmem:[#allocation2 + $0x2a] sm:$0xff]  ;;  %vm14973_vm12 = vcmp.eq.s32.totalorder %v12341_v13, 1  ;;  %v12401_v13 = vpop.permute.xlu1 %3283 }
 0x2bf   : > { %5205 = vst [vmem:[#allocation2 + $0xc0] sm:$0xff] %v12306_v18  ;;  %vm2755_vm15 = vcmp.eq.s32.totalorder %v15628_v28, 1  ;;  %v5158_v56 = vpack.c.bf16 %v12320_v4, %v12320_v4  ;;  %v8119_v36 = vld [vmem:[#allocation2 + $0x38] sm:$0xff]  ;;  %v3144_v34 = vsel %vm14972_vm1, %v2904_v46, -inf  ;;  %v3114_v58 = vsel %vm14979_vm10, %v2874_v61, -inf  ;;  %v15647_v28 = vld [vmem:[#allocation70_spill] sm:$0xff] }
 0x2c0   : > { %15623 = vst [vmem:[#allocation175_spill] sm:$0xff] %v12344_v47  ;;  %v2516_v16 = vmax.f32 %v8119_v36, %v2476_v5  ;;  %vm15024_vm7 = vcmp.eq.s32.totalorder %v12311_v26, 1  ;;  %v2834_v32 = vmax.f32 %v2514_v50, %v2794_v24  ;;  %v2515_v18 = vmax.f32 %v8120_v37, %v2475_v55  ;;  %v4397_v49 = vld [vmem:[#allocation2 + $0x71] sm:$0xff]  ;;  %v15631_v24 = vld [vmem:[#allocation166_spill] sm:$0xff] }
 0x2c1   : > { %5201 = vst [vmem:[#allocation2 + $0xa0] sm:$0xff] %v12317_v60  ;;  %v3184_v0 = vmax.f32 %v2864_v6, %v3144_v34  ;;  %v2556_v5 = vld [vmem:[#allocation2 + $0x37] sm:$0xff]  ;;  %v2795_v46 = vsel %vm2755_vm15, %v2555_v40, -inf  ;;  %v3116_v34 = vsel %vm15024_vm7, %v15631_v24, -inf }
 0x2c2   : > { %5202 = vst [vmem:[#allocation2 + $0xa8] sm:$0xff] %v12320_v4  ;;  %v2796_v36 = vsel %vm14996_vm8, %v2556_v5, -inf  ;;  %v15630_v50 = vld [vmem:[#allocation149_spill] sm:$0xff]  ;;  %v3154_v37 = vmax.f32 %v2834_v32, %v3114_v58  ;;  %v15632_v55 = vld [vmem:[#allocation176_spill] sm:$0xff]  ;;  %v12399_v5 = vpop.f32.mrf.mxu2  ;;  %v12403_v32 = vmax.f32 %v2515_v18, %v2795_v46  ;;  %vm15026_vm8 = vcmp.eq.s32.totalorder %v12422_v14, 1 }
 0x2c3   : > { %5203 = vst [vmem:[#allocation2 + $0xb0] sm:$0xff] %v12328_v9  ;;  %v3194_v9 = vld [vmem:[#allocation2 + $0x26] sm:$0xff]  ;;  %vm14977_vm1 = vcmp.eq.s32.totalorder %v15630_v50, 1  ;;  %v2836_v6 = vmax.f32 %v2516_v16, %v2796_v36  ;;  %v4637_v16 = vld [vmem:[#allocation2 + $0x72] sm:$0xff] }
 0x2c4   : > { %5204 = vst [vmem:[#allocation2 + $0xb8] sm:$0xff] %v12344_v47  ;;  %v3434_v61 = vsel %vm14973_vm12, %v3194_v9, -inf  ;;  %v3464_v40 = vsel %vm14977_vm1, %v15632_v55, -inf  ;;  %v3600_v9 = vmax.f32 %v12022_v43, %v11790_v38  ;;  %v3196_v55 = vld [vmem:[#allocation2 + $0x36] sm:$0xff]  ;;  %vm14987_vm1 = vcmp.eq.s32.totalorder %v12401_v13, 1 }
 0x2c5   : > { %4356 = vst [vmem:[#allocation2 + $0x68] sm:$0xff] %v12356_v17  ;;  %v12405_v58 = vmax.f32 %v3184_v0, %v3464_v40  ;;  %v3156_v36 = vmax.f32 %v2836_v6, %v3116_v34  ;;  %v8121_v50 = vld [vmem:[#allocation2 + $0xd0] sm:$0xff]  ;;  %v4960_v0 = vmax.f32 %v12259_v19, %v12239_v10  ;;  %v15637_v34 = vld [vmem:[#allocation83_spill] sm:$0xff] }
 0x2c6   : > { %5172 = vst [vmem:[#allocation4 + $0x18] sm:$0xf] %v5156_v23  ;;  %v15633_v23 = vld [vmem:[#allocation31_spill] sm:$0xff]  ;;  %v3644_v38 = vmax.f32 %v3600_v9, %v12334_v63  ;;  %v15639_v40 = vld [vmem:[#allocation40_spill] sm:$0xff] }
 0x2c7   : > { %5174 = vst [vmem:[#allocation4 + $0x28] sm:$0xf] %v5158_v56  ;;  %vm15634_vm12 = vcmp.eq.s32.totalorder %v15633_v23, 1  ;;  %v12407_v56 = vmax.f32 %v3154_v37, %v3434_v61  ;;  %v3436_v37 = vsel %vm14987_vm1, %v3196_v55, -inf  ;;  %vm15640_vm10 = vcmp.eq.s32.totalorder %v15639_v40, 1 }
 0x2c8   : > { %v4437_v25 = vsel %vm15634_vm12, %v4397_v49, -inf  ;;  %15635 = vst [vmem:[#allocation168_spill] sm:$0xff] %v12399_v5  ;;  %v3809_v49 = vpack.c.bf16 %v8121_v50, %v8121_v50  ;;  %vm15638_vm12 = vcmp.eq.s32.totalorder %v15637_v34, 1  ;;  %v3476_v23 = vmax.f32 %v3156_v36, %v3436_v37 }
 0x2c9   : > { %15636 = vst [vmem:[#allocation124_spill] sm:$0xff] %v12401_v13  ;;  %v4477_v18 = vmax.f32 %v11957_v11, %v4437_v25  ;;  %v4677_v6 = vsel %vm15638_vm12, %v4637_v16, -inf  ;;  %v3810_v11 = vpack.c.bf16 %v11988_v51, %v11988_v51  ;;  %v12427_v25 = vmax.f32 %v4960_v0, %v12256_v42 }
 0x2ca   : > { %v5242_v24 = vld [vmem:[#allocation2 + $0xa9] sm:$0xff]  ;;  %15641 = vst [vmem:[#allocation166_spill] sm:$0xff] %v12422_v14  ;;  %v3594_v51 = vmax.f32 %v12407_v56, %v3476_v23  ;;  %v3596_v0 = vmax.f32 %v3476_v23, %v12334_v63  ;;  %v3724_v5 = vmax.f32 %v3644_v38, %v10486_v54  ;;  %vm15648_vm1 = vcmp.eq.s32.totalorder %v15647_v28, 1 }
 0x2cb   : > { %v5244_v46 = vld [vmem:[#allocation2 + $0xb9] sm:$0xff]  ;;  %v12431_v13 = vsel %vm2450_vm5, %v5242_v24, -inf  ;;  %3825 = vst [vmem:[#allocation4 + $0x54] sm:$0xf] %v3809_v49  ;;  %vm15644_vm5 = vcmp.eq.s32.totalorder %v15571_v3, 1  ;;  %v15650_v3 = vld [vmem:[#allocation71_spill] sm:$0xff] }
 0x2cc   : > { %v5364_v61 = vld [vmem:[#allocation2 + $0xb7] sm:$0xff]  ;;  %v5284_v9 = vsel %vm15640_vm10, %v5244_v46, -inf  ;;  %v3598_v46 = vmax.f32 %v12334_v63, %v12022_v43  ;;  %vm15643_vm10 = vcmp.eq.s32.totalorder %v15481_v22, 1  ;;  %v4396_v37 = vld [vmem:[#allocation2 + $0x69] sm:$0xff]  ;;  %3826 = vst [vmem:[#allocation4 + $0x5c] sm:$0xf] %v3810_v11 }
 0x2cd   : > { %v5484_v50 = vld [vmem:[#allocation2 + $0xba] sm:$0xff]  ;;  %v5324_v55 = vmax.f32 %v12344_v47, %v5284_v9  ;;  %v5404_v36 = vsel %vm15643_vm10, %v5364_v61, -inf  ;;  %v4516_v40 = vld [vmem:[#allocation2 + $0x67] sm:$0xff]  ;;  %v4517_v34 = vld [vmem:[#allocation2 + $0x6f] sm:$0xff]  ;;  %vm15649_vm10 = vcmp.eq.s32.totalorder %v15593_v7, 1 }
 0x2ce   : > { %v5604_v16 = vld [vmem:[#allocation2 + $0xb6] sm:$0xff]  ;;  %v5524_v9 = vsel %vm15644_vm5, %v5484_v50, -inf  ;;  %v15645_v47 = vld [vmem:[#allocation35_spill] sm:$0xff]  ;;  %v4557_v22 = vsel %vm15648_vm1, %v4517_v34, -inf  ;;  %vm15651_vm5 = vcmp.eq.s32.totalorder %v15650_v3, 1  ;;  %v3642_v3 = vmax.f32 %v3598_v46, %v3476_v23 }
 0x2cf   : > { %v5444_v24 = vmax.f32 %v5324_v55, %v5404_v36  ;;  %vm15646_vm12 = vcmp.eq.s32.totalorder %v15645_v47, 1  ;;  %v4636_v61 = vld [vmem:[#allocation2 + $0x6a] sm:$0xff]  ;;  %v5644_v26 = vsel %vm15649_vm10, %v5604_v16, -inf  ;;  %v4597_v60 = vmax.f32 %v4477_v18, %v4557_v22  ;;  %v12455_v55 = vld [vmem:[#allocation2 + $0x11e] sm:$0xff]  ;;  %v12464_v11 = vld [vmem:[#allocation2 + $0xb2] sm:$0xff] }
 0x2d0   : > { %v4436_v15 = vsel %vm15646_vm12, %v4396_v37, -inf  ;;  %v4757_v45 = vld [vmem:[#allocation2 + $0x6e] sm:$0xff]  ;;  %v4556_v38 = vsel %vm15651_vm5, %v4516_v40, -inf  ;;  %15654 = vst [vmem:[#allocation176_spill] sm:$0xff] %v12455_v55  ;;  %v12457_v34 = vld [vmem:[#allocation2 + $0x18] sm:$0xff]  ;;  %v4756_v40 = vld [vmem:[#allocation2 + $0x66] sm:$0xff]  ;;  %v3640_v22 = vmax.f32 %v3596_v0, %v12407_v56  ;;  %v12473_v55 = vmax.f32 %v3724_v5, %v3476_v23 }
 0x2d1   : > { %v4476_v62 = vmax.f32 %v12356_v17, %v4436_v15  ;;  %v5564_v54 = vmax.f32 %v5444_v24, %v5524_v9  ;;  %v15652_v49 = vld [vmem:[#allocation96_spill] sm:$0xff]  ;;  %v3638_v7 = vmax.f32 %v3594_v51, %v12457_v34  ;;  %v7594_v16 = vld [vmem:[#allocation8 + $0xa4] sm:$0xf]  ;;  %v4717_v37 = vmax.f32 %v4597_v60, %v4677_v6  ;;  %v15656_v24 = vld [vmem:[#allocation89_spill] sm:$0xff] }
 0x2d2   : > { %vm15653_vm12 = vcmp.eq.s32.totalorder %v15652_v49, 1  ;;  %v2875_v17 = vld [vmem:[#allocation2 + $0x32] sm:$0xff]  ;;  %v12462_v18 = vld [vmem:[#allocation2 + $0xbf] sm:$0xff]  ;;  %vm15657_vm1 = vcmp.eq.s32.totalorder %v15656_v24, 1  ;;  %v12469_v49 = vpop.f32.mrf.mxu2  ;;  %v7465_v46 = vld [vmem:[#allocation8 + $0x1c8] sm:$0xf0] }
 0x2d3   : > { %v4676_v50 = vsel %vm15653_vm12, %v4636_v61, -inf  ;;  %v12460_v15 = vld [vmem:[#allocation2 + $0xb1] sm:$0xff]  ;;  %15655 = vst [vmem:[#allocation40_spill] sm:$0xff] %v12462_v18  ;;  %v4596_v36 = vmax.f32 %v4476_v62, %v4556_v38  ;;  %v4797_v9 = vsel %vm15657_vm1, %v4757_v45, -inf  ;;  %v7257_v61 = vld [vmem:[#allocation8 + $0xa8] sm:$0xf0]  ;;  %v5684_v28 = vmax.f32 %v5564_v54, %v5644_v26 }
 0x2d4   : > { %15658 = vst [vmem:[#allocation36_spill] sm:$0xff] %v12469_v49  ;;  %v15659_v51 = vld [vmem:[#allocation134_spill] sm:$0xff]  ;;  %v3718_v47 = vmax.f32 %v3638_v7, %v12334_v63  ;;  %v7401_v62 = vld [vmem:[#allocation8 + $0x148] sm:$0xf0]  ;;  %v5084_v45 = vmax.f32 %v12427_v25, %v12245_v44  ;;  %v12481_v38 = vmax.f32 %v4717_v37, %v4797_v9  ;;  %v15662_v23 = vld [vmem:[#allocation101_spill] sm:$0xff]  ;;  %v3722_v54 = vmax.f32 %v3642_v3, %v12378_v53 }
 0x2d5   : > { %4250 = vmatmul.bf16.gmra.mxu2 %v15659_v51  ;;  %v7630_v18 = vld [vmem:[#allocation8 + $0x144] sm:$0xf]  ;;  %v4716_v0 = vmax.f32 %v4596_v36, %v4676_v50  ;;  %v3720_v51 = vmax.f32 %v3640_v22, %v12022_v43  ;;  %vm15663_vm10 = vcmp.eq.s32.totalorder %v15662_v23, 1  ;;  %v3115_v50 = vsel %vm15026_vm8, %v2875_v17, -inf  ;;  %v3195_v43 = vld [vmem:[#allocation2 + $0x2e] sm:$0xff]  ;;  %4354 = vst [vmem:[#allocation2 + $0x58] sm:$0xff] %v12473_v55 }
 0x2d6   : > { %v12475_v60 = vld [vmem:[#allocation2 + $0x11f] sm:$0xff]  ;;  %15661 = vst [vmem:[#allocation181_spill] sm:$0xff] %v12481_v38  ;;  %v5362_v63 = vld [vmem:[#allocation2 + $0xa7] sm:$0xff]  ;;  %v4796_v5 = vsel %vm15663_vm10, %v4756_v40, -inf  ;;  %v12489_v25 = vmax.f32 %v3718_v47, %v12457_v34  ;;  %v7260_v53 = vor.u32 %v7594_v16, %v7257_v61  ;;  %v12507_v47 = vpop.permute.xlu0 %3280  ;;  %v15667_v17 = vmax.f32 %v11942_v12, %v11845_v29 }
 0x2d7   : > { %15660 = vst [vmem:[#allocation134_spill] sm:$0xff] %v12475_v60  ;;  %v12479_v6 = vld [vmem:[#allocation2 + $0xbe] sm:$0xff]  ;;  %v12495_v36 = vmax.f32 %v4716_v0, %v4796_v5  ;;  %v12504_v40 = vmax.f32 %v3720_v51, %v12457_v34  ;;  %v12516_v22 = vmax.f32 %v3722_v54, %v12407_v56  ;;  %v7404_v51 = vor.u32 %v7630_v18, %v7401_v62  ;;  %v3580_v18 = vld [vmem:[#allocation2 + $0x108] sm:$0xff]  ;;  %v8124_v54 = vld [vmem:[#allocation2 + $0xf0] sm:$0xff] }
 0x2d8   : > { %v7646_v26 = vld [vmem:[#allocation8 + $0x1c4] sm:$0xf]  ;;  %3544 = vst [vmem:[#allocation2 + $0x118] sm:$0xff] %v12405_v58  ;;  %v7153_v0 = vld [vmem:[#allocation4 + $0x58] sm:$0xf0]  ;;  %vm15668_vm5 = vcmp.eq.s32.totalorder %v15544_v21, 1  ;;  %4271 = vmatpush.bf16.msra.mxu3 %v7260_v53  ;;  %v5322_v29 = vmax.f32 %v12320_v4, %v12431_v13  ;;  %v3155_v56 = vmax.f32 %v12403_v32, %v3115_v50  ;;  %v3620_v53 = vmax.f32 %v11853_v2, %v3580_v18 }
 0x2d9   : > { %5724 = vst [vmem:[#allocation2 + $0xb8] sm:$0xff] %v5684_v28  ;;  %v12493_v7 = vld [vmem:[#allocation2 + $0x22] sm:$0xff]  ;;  %v15665_v28 = vmax.f32 %v12284_v31, %v12250_v39  ;;  %v7568_v31 = vld [vmem:[#allocation4 + $0x54] sm:$0xf]  ;;  %v7468_v5 = vor.u32 %v7646_v26, %v7465_v46  ;;  %v5402_v16 = vsel %vm15668_vm5, %v5362_v63, -inf  ;;  %v5126_v61 = vmax.f32 %v5084_v45, %v12495_v36  ;;  %6300 = vmatpush.bf16.msrb.mxu0 %v7404_v51  ;;  %v5482_v26 = vld [vmem:[#allocation2 + $0xaa] sm:$0xff] }
 0x2da   : > { %15664 = vst [vmem:[#allocation182_spill] sm:$0xff] %v12495_v36  ;;  %v12509_v3 = vld [vmem:[#allocation2 + $0x40] sm:$0xff]  ;;  %v12523_v49 = vor.u32 %v7568_v31, %v7153_v0  ;;  %vm14997_vm12 = vcmp.eq.s32.totalorder %v12507_v47, 1  ;;  %vm15670_vm1 = vcmp.eq.s32.totalorder %v15515_v8, 1  ;;  %v5442_v32 = vmax.f32 %v5322_v29, %v5402_v16  ;;  %v15699_v23 = vld [vmem:[#allocation159_spill] sm:$0xff] }
 0x2db   : > { %v12501_v37 = vmax.f32 %v15665_v28, %v12481_v38  ;;  %15666 = vst [vmem:[#allocation183_spill] sm:$0xff] %v12507_v47  ;;  %v3643_v9 = vmax.f32 %v15667_v17, %v12509_v3  ;;  %v5240_v28 = vld [vmem:[#allocation2 + $0x99] sm:$0xff]  ;;  %6349 = vmatpush.bf16.msrb.mxu1 %v7468_v5  ;;  %v5154_v62 = vpack.c.bf16 %v5126_v61, %v5126_v61  ;;  %v3435_v45 = vsel %vm14997_vm12, %v3195_v43, -inf  ;;  %v4395_v63 = vld [vmem:[#allocation2 + $0x61] sm:$0xff]  ;;  %v3703_v43 = vld [vmem:[#allocation2 + $0x110] sm:$0xff] }
 0x2dc   : > { %4348 = vst [vmem:[#allocation2 + $0x28] sm:$0xff] %v12489_v25  ;;  %v3579_v21 = vld [vmem:[#allocation2 + $0x100] sm:$0xff]  ;;  %4201 = vmatmul.bf16.gmra.mxu3 %v12523_v49  ;;  %v5280_v13 = vsel %vm15670_vm1, %v5240_v28, -inf  ;;  %v12537_v46 = vmax.f32 %v3155_v56, %v3435_v45  ;;  %v4958_v17 = vmax.f32 %v12256_v42, %v12259_v19  ;;  %vm15671_vm10 = vcmp.eq.s32.totalorder %v15569_v52, 1  ;;  %v15672_v5 = vld [vmem:[#allocation143_spill] sm:$0xff] }
 0x2dd   : > { %5199 = vst [vmem:[#allocation2 + $0x90] sm:$0xff] %v12501_v37  ;;  %v3723_v4 = vmax.f32 %v3643_v9, %v11966_v35  ;;  %v3619_v50 = vmax.f32 %v8124_v54, %v3579_v21  ;;  %v4515_v8 = vld [vmem:[#allocation2 + $0x5f] sm:$0xff]  ;;  %v5320_v9 = vmax.f32 %v12314_v30, %v5280_v13  ;;  %v5522_v0 = vsel %vm15671_vm10, %v5482_v26, -inf  ;;  %v15679_v54 = vld [vmem:[#allocation144_spill] sm:$0xff]  ;;  %v15700_v60 = vld [vmem:[#allocation107_spill] sm:$0xff] }
 0x2de   : > { %15669 = vst [vmem:[#allocation184_spill] sm:$0xff] %v12523_v49  ;;  %v5480_v31 = vld [vmem:[#allocation2 + $0x9a] sm:$0xff]  ;;  %v3664_v28 = vmax.f32 %v3620_v53, %v15672_v5  ;;  %v5602_v29 = vld [vmem:[#allocation2 + $0xa6] sm:$0xff]  ;;  %v12551_v56 = vmax.f32 %v4958_v17, %v12495_v36 }
 0x2df   : > { %4350 = vst [vmem:[#allocation2 + $0x38] sm:$0xff] %v12504_v40  ;;  %v12543_v35 = vmax.f32 %v3723_v4, %v12537_v46  ;;  %v3663_v51 = vmax.f32 %v3619_v50, %v11257_v41  ;;  %v4394_v16 = vld [vmem:[#allocation2 + $0x59] sm:$0xff]  ;;  %v4635_v45 = vld [vmem:[#allocation2 + $0x62] sm:$0xff] }
 0x2e0   : > { %4352 = vst [vmem:[#allocation2 + $0x48] sm:$0xff] %v12516_v22  ;;  %v15673_v18 = vld [vmem:[#allocation26_spill] sm:$0xff]  ;;  %v15677_v4 = vld [vmem:[#allocation77_spill] sm:$0xff]  ;;  %v15680_v17 = vld [vmem:[#allocation87_spill] sm:$0xff] }
 0x2e1   : > { %5198 = vst [vmem:[#allocation2 + $0x88] sm:$0xff] %v5126_v61  ;;  %v5562_v61 = vmax.f32 %v5442_v32, %v5522_v0  ;;  %vm15674_vm5 = vcmp.eq.s32.totalorder %v15673_v18, 1  ;;  %vm15678_vm10 = vcmp.eq.s32.totalorder %v15677_v4, 1  ;;  %v3743_v26 = vmax.f32 %v3663_v51, %v3703_v43  ;;  %v4532_v53 = vld [vmem:[#allocation2 + $0xe7] sm:$0xff]  ;;  %v15685_v43 = vld [vmem:[#allocation180_spill] sm:$0xff] }
 0x2e2   : > { %5170 = vst [vmem:[#allocation4 + $0x8] sm:$0xf] %v5154_v62  ;;  %v4435_v30 = vsel %vm15674_vm5, %v4395_v63, -inf  ;;  %v15675_v62 = vld [vmem:[#allocation75_spill] sm:$0xff]  ;;  %v3744_v32 = vmax.f32 %v3664_v28, %v12405_v58  ;;  %vm15681_vm12 = vcmp.eq.s32.totalorder %v15680_v17, 1  ;;  %v4434_v63 = vsel %vm2440_vm13, %v4394_v16, -inf }
 0x2e3   : > { %4353 = vst [vmem:[#allocation2 + $0x50] sm:$0xff] %v12543_v35  ;;  %vm15676_vm1 = vcmp.eq.s32.totalorder %v15675_v62, 1  ;;  %v4475_v50 = vmax.f32 %v15679_v54, %v4435_v30  ;;  %v5520_v0 = vsel %vm15681_vm12, %v5480_v31, -inf  ;;  %vm15683_vm5 = vcmp.eq.s32.totalorder %v15589_v48, 1  ;;  %v15684_v41 = vld [vmem:[#allocation154_spill] sm:$0xff]  ;;  %v15687_v54 = vld [vmem:[#allocation97_spill] sm:$0xff] }
 0x2e4   : > { %v5360_v21 = vld [vmem:[#allocation2 + $0x97] sm:$0xff]  ;;  %v4555_v52 = vsel %vm15676_vm1, %v4515_v8, -inf  ;;  %v5642_v8 = vsel %vm15683_vm5, %v5602_v29, -inf  ;;  %v12569_v4 = vmax.f32 %v3743_v26, %v15684_v41  ;;  %v12572_v51 = vmax.f32 %v3744_v32, %v15685_v43  ;;  %v12586_v26 = vld [vmem:[#allocation2 + $0x9f] sm:$0xff]  ;;  %v15695_v43 = vld [vmem:[#allocation123_spill] sm:$0xff] }
 0x2e5   : > { %v5400_v13 = vsel %vm15678_vm10, %v5360_v21, -inf  ;;  %v5600_v5 = vld [vmem:[#allocation2 + $0x96] sm:$0xff]  ;;  %v4595_v58 = vmax.f32 %v4475_v50, %v4555_v52  ;;  %v4755_v28 = vld [vmem:[#allocation2 + $0x5e] sm:$0xff]  ;;  %v4772_v21 = vld [vmem:[#allocation2 + $0xe6] sm:$0xff]  ;;  %v5682_v30 = vmax.f32 %v5562_v61, %v5642_v8  ;;  %vm15688_vm12 = vcmp.eq.s32.totalorder %v15687_v54, 1 }
 0x2e6   : > { %v5440_v49 = vmax.f32 %v5320_v9, %v5400_v13  ;;  %15686 = vst [vmem:[#allocation77_spill] sm:$0xff] %v12572_v51  ;;  %v4634_v13 = vld [vmem:[#allocation2 + $0x5a] sm:$0xff]  ;;  %v4675_v16 = vsel %vm15688_vm12, %v4635_v45, -inf  ;;  %vm15689_vm1 = vcmp.eq.s32.totalorder %v15584_v1, 1  ;;  %v4474_v41 = vmax.f32 %v12473_v55, %v4434_v63  ;;  %v15690_v29 = vld [vmem:[#allocation128_spill] sm:$0xff]  ;;  %v12635_v24 = vld [vmem:[#allocation2 + $0xa2] sm:$0xff] }
 0x2e7   : > { %v5640_v48 = vsel %vm15689_vm1, %v5600_v5, -inf  ;;  %4373 = vst [vmem:[#allocation2 + $0xf0] sm:$0xff] %v12569_v4  ;;  %vm15691_vm10 = vcmp.eq.s32.totalorder %v15690_v29, 1  ;;  %v4715_v61 = vmax.f32 %v4595_v58, %v4675_v16  ;;  %v12588_v32 = vld [vmem:[#allocation2 + $0x9e] sm:$0xff]  ;;  %v4959_v5 = vmax.f32 %v12235_v33, %v12237_v59  ;;  %v15702_v62 = vld [vmem:[#allocation160_spill] sm:$0xff] }
 0x2e8   : > { %v5560_v31 = vmax.f32 %v5440_v49, %v5520_v0  ;;  %v12584_v52 = vsel %vm15691_vm10, %v4532_v53, -inf  ;;  %v5239_v49 = vld [vmem:[#allocation2 + $0x91] sm:$0xff]  ;;  %4374 = vst [vmem:[#allocation2 + $0xf8] sm:$0xff] %v12572_v51  ;;  %v15692_v45 = vld [vmem:[#allocation102_spill] sm:$0xff]  ;;  %v4968_v55 = vmax.f32 %v12142_v27, %v12273_v57  ;;  %v4674_v8 = vsel %vm15017_vm2, %v4634_v13, -inf }
 0x2e9   : > { %vm15693_vm5 = vcmp.eq.s32.totalorder %v15692_v45, 1  ;;  %v12597_v53 = vld [vmem:[#allocation2 + $0x92] sm:$0xff]  ;;  %vm15696_vm12 = vcmp.eq.s32.totalorder %v15695_v43, 1  ;;  %v4956_v29 = vmax.f32 %v12495_v36, %v12256_v42  ;;  %v4957_v13 = vmax.f32 %v12481_v38, %v12235_v33 }
 0x2ea   : > { %v5680_v50 = vmax.f32 %v5560_v31, %v5640_v48  ;;  %v4795_v1 = vsel %vm15693_vm5, %v4755_v28, -inf  ;;  %v4393_v17 = vld [vmem:[#allocation2 + $0x51] sm:$0xff]  ;;  %v12603_v58 = vsel %vm15696_vm12, %v4772_v21, -inf  ;;  %v5155_v28 = vpack.c.bf16 %v12501_v37, %v12501_v37 }
 0x2eb   : > { %v4513_v0 = vld [vmem:[#allocation2 + $0x4f] sm:$0xff]  ;;  %v12605_v31 = vmax.f32 %v4715_v61, %v4795_v1  ;;  %v4433_v48 = vsel %vm2439_vm11, %v4393_v17, -inf  ;;  %v4514_v9 = vld [vmem:[#allocation2 + $0x57] sm:$0xff]  ;;  %v5003_v43 = vmax.f32 %v4959_v5, %v12481_v38  ;;  %v5157_v45 = vpack.c.bf16 %v15700_v60, %v15700_v60 }
 0x2ec   : > { %5720 = vst [vmem:[#allocation2 + $0x98] sm:$0xff] %v5680_v50  ;;  %v4473_v21 = vmax.f32 %v12543_v35, %v4433_v48  ;;  %v4554_v1 = vsel %vm2760_vm14, %v4514_v9, -inf  ;;  %v4633_v27 = vld [vmem:[#allocation2 + $0x52] sm:$0xff]  ;;  %v4553_v54 = vsel %vm2759_vm6, %v4513_v0, -inf  ;;  %v12626_v5 = vmax.f32 %v4968_v55, %v15702_v62  ;;  %v5241_v35 = vld [vmem:[#allocation2 + $0xa1] sm:$0xff] }
 0x2ed   : > { %v4753_v57 = vld [vmem:[#allocation2 + $0x4e] sm:$0xff]  ;;  %v4754_v50 = vld [vmem:[#allocation2 + $0x56] sm:$0xff]  ;;  %v4594_v63 = vmax.f32 %v4474_v41, %v4554_v1  ;;  %v4673_v61 = vsel %vm3079_vm3, %v4633_v27, -inf  ;;  %v5001_v42 = vmax.f32 %v4957_v13, %v12605_v31  ;;  %5171 = vst [vmem:[#allocation4 + $0x10] sm:$0xf] %v5155_v28  ;;  %v4955_v27 = vmax.f32 %v12605_v31, %v12481_v38  ;;  %v15709_v13 = vld [vmem:[#allocation46_spill] sm:$0xff] }
 0x2ee   : > { %v15703_v48 = vld [vmem:[#allocation33_spill] sm:$0xff]  ;;  %v5363_v18 = vld [vmem:[#allocation2 + $0xaf] sm:$0xff]  ;;  %v4593_v2 = vmax.f32 %v4473_v21, %v4553_v54  ;;  %v4793_v16 = vsel %vm15016_vm4, %v4753_v57, -inf  ;;  %v4794_v54 = vsel %vm15015_vm0, %v4754_v50, -inf  ;;  %v15708_v21 = vld [vmem:[#allocation110_spill] sm:$0xff]  ;;  %vm15710_vm10 = vcmp.eq.s32.totalorder %v15709_v13, 1 }
 0x2ef   : > { %vm15704_vm1 = vcmp.eq.s32.totalorder %v15703_v48, 1  ;;  %v12637_v41 = vld [vmem:[#allocation2 + $0xae] sm:$0xff]  ;;  %v4714_v48 = vmax.f32 %v4594_v63, %v4674_v8  ;;  %v5083_v62 = vmax.f32 %v5003_v43, %v15708_v21  ;;  %v15711_v28 = vld [vmem:[#allocation37_spill] sm:$0xff]  ;;  %5173 = vst [vmem:[#allocation4 + $0x20] sm:$0xf] %v5157_v45  ;;  %v15724_v45 = vmax.f32 %v12551_v56, %v12239_v10 }
 0x2f0   : > { %v5279_v9 = vsel %vm15704_vm1, %v5239_v49, -inf  ;;  %v4412_v55 = vld [vmem:[#allocation2 + $0xe9] sm:$0xff]  ;;  %5722 = vst [vmem:[#allocation2 + $0xa8] sm:$0xff] %v5682_v30  ;;  %v4413_v57 = vld [vmem:[#allocation2 + $0xf1] sm:$0xff]  ;;  %v4713_v36 = vmax.f32 %v4593_v2, %v4673_v61  ;;  %vm15712_vm5 = vcmp.eq.s32.totalorder %v15711_v28, 1 }
 0x2f1   : > { %v4533_v0 = vld [vmem:[#allocation2 + $0xef] sm:$0xff]  ;;  %v4452_v17 = vsel %vm15710_vm10, %v4412_v55, -inf  ;;  %v5281_v47 = vsel %vm15712_vm5, %v5241_v35, -inf  ;;  %v15715_v50 = vld [vmem:[#allocation45_spill] sm:$0xff]  ;;  %v12656_v13 = vmax.f32 %v4714_v48, %v4794_v54  ;;  %v5319_v10 = vmax.f32 %v12501_v37, %v5279_v9 }
 0x2f2   : > { %v4652_v1 = vld [vmem:[#allocation2 + $0xea] sm:$0xff]  ;;  %v4653_v51 = vld [vmem:[#allocation2 + $0xf2] sm:$0xff]  ;;  %vm15716_vm1 = vcmp.eq.s32.totalorder %v15715_v50, 1  ;;  %v12661_v55 = vmax.f32 %v4713_v36, %v4793_v16  ;;  %v5321_v54 = vmax.f32 %v15700_v60, %v5281_v47  ;;  %v15733_v60 = vld [vmem:[#allocation138_spill] sm:$0xff]  ;;  %v15734_v47 = vmax.f32 %v15699_v23, %v12261_v20 }
 0x2f3   : > { %v15713_v63 = vld [vmem:[#allocation44_spill] sm:$0xff]  ;;  %v4453_v49 = vsel %vm15716_vm1, %v4413_v57, -inf  ;;  %v15717_v38 = vld [vmem:[#allocation157_spill] sm:$0xff]  ;;  %v15722_v28 = vld [vmem:[#allocation127_spill] sm:$0xff]  ;;  %v12674_v48 = vmax.f32 %v15724_v45, %v12656_v13 }
 0x2f4   : > { %vm15714_vm12 = vcmp.eq.s32.totalorder %v15713_v63, 1  ;;  %v4492_v14 = vmax.f32 %v15717_v38, %v4452_v17  ;;  %v15718_v43 = vld [vmem:[#allocation137_spill] sm:$0xff]  ;;  %v4773_v21 = vld [vmem:[#allocation2 + $0xee] sm:$0xff]  ;;  %v4493_v2 = vmax.f32 %v12569_v4, %v4453_v49  ;;  %vm15723_vm5 = vcmp.eq.s32.totalorder %v15722_v28, 1 }
 0x2f5   : > { %v5283_v8 = vsel %vm15714_vm12, %v12460_v15, -inf  ;;  %vm15719_vm0 = vcmp.eq.s32.totalorder %v15718_v43, 1  ;;  %v15720_v61 = vld [vmem:[#allocation133_spill] sm:$0xff]  ;;  %v5081_v15 = vmax.f32 %v5001_v42, %v12237_v59  ;;  %v4693_v17 = vsel %vm15723_vm5, %v4653_v51, -inf  ;;  %v5359_v42 = vld [vmem:[#allocation2 + $0x8f] sm:$0xff]  ;;  %5196 = vst [vmem:[#allocation2 + $0x78] sm:$0xff] %v12674_v48 }
 0x2f6   : > { %v4573_v30 = vsel %vm15719_vm0, %v4533_v0, -inf  ;;  %vm15721_vm10 = vcmp.eq.s32.totalorder %v15720_v61, 1  ;;  %v4612_v57 = vmax.f32 %v4492_v14, %v12584_v52  ;;  %v12668_v0 = vmax.f32 %v4956_v29, %v12656_v13  ;;  %v15730_v9 = vld [vmem:[#allocation76_spill] sm:$0xff]  ;;  %v15806_v23 = vld [vmem:[#allocation61_spill] sm:$0xff] }
 0x2f7   : > { %v4692_v35 = vsel %vm15721_vm10, %v4652_v1, -inf  ;;  %v4613_v49 = vmax.f32 %v4493_v2, %v4573_v30  ;;  %v15725_v1 = vld [vmem:[#allocation141_spill] sm:$0xff]  ;;  %v12679_v59 = vmax.f32 %v4955_v27, %v12661_v55  ;;  %v12682_v14 = vmax.f32 %v5081_v15, %v12661_v55  ;;  %v15727_v27 = vld [vmem:[#allocation167_spill] sm:$0xff] }
 0x2f8   : > { %vm15726_vm0 = vcmp.eq.s32.totalorder %v15725_v1, 1  ;;  %v4732_v51 = vmax.f32 %v4612_v57, %v4692_v35  ;;  %v12687_v52 = vmax.f32 %v5083_v62, %v12605_v31  ;;  %v5323_v63 = vmax.f32 %v15727_v27, %v5283_v8  ;;  %v12705_v35 = vpop.permute.xlu1 %2954  ;;  %v15735_v8 = vld [vmem:[#allocation80_spill] sm:$0xff] }
 0x2f9   : > { %v4813_v36 = vsel %vm15726_vm0, %v4773_v21, -inf  ;;  %v4733_v56 = vmax.f32 %v4613_v49, %v4693_v17  ;;  %5195 = vst [vmem:[#allocation2 + $0x70] sm:$0xff] %v12682_v14  ;;  %v15728_v21 = vld [vmem:[#allocation81_spill] sm:$0xff]  ;;  %vm15731_vm1 = vcmp.eq.s32.totalorder %v15730_v9, 1  ;;  %vm15736_vm10 = vcmp.eq.s32.totalorder %v15735_v8, 1 }
 0x2fa   : > { %v4852_v30 = vmax.f32 %v4732_v51, %v12603_v58  ;;  %v5153_v62 = vpack.c.bf16 %v12687_v52, %v12687_v52  ;;  %5197 = vst [vmem:[#allocation2 + $0x80] sm:$0xff] %v12687_v52  ;;  %vm15729_vm12 = vcmp.eq.s32.totalorder %v15728_v21, 1  ;;  %v5401_v2 = vsel %vm15731_vm1, %v12586_v26, -inf  ;;  %v15737_v26 = vld [vmem:[#allocation79_spill] sm:$0xff]  ;;  %v15739_v21 = vld [vmem:[#allocation85_spill] sm:$0xff] }
 0x2fb   : > { %v5399_v37 = vsel %vm15729_vm12, %v5359_v42, -inf  ;;  %v12707_v15 = vmax.f32 %v4733_v56, %v4813_v36  ;;  %v5013_v58 = vmax.f32 %v15734_v47, %v15733_v60  ;;  %v5403_v57 = vsel %vm15736_vm10, %v5363_v18, -inf  ;;  %v5599_v36 = vld [vmem:[#allocation2 + $0x8e] sm:$0xff] }
 0x2fc   : > { %v5439_v17 = vmax.f32 %v5319_v10, %v5399_v37  ;;  %4892 = vst [vmem:[#allocation2 + $0xe8] sm:$0xff] %v4852_v30  ;;  %v5092_v45 = vmax.f32 %v12626_v5, %v4852_v30  ;;  %v5441_v49 = vmax.f32 %v5321_v54, %v5401_v2  ;;  %v5443_v42 = vmax.f32 %v5323_v63, %v5403_v57  ;;  %v15741_v18 = vld [vmem:[#allocation103_spill] sm:$0xff]  ;;  %v15743_v30 = vld [vmem:[#allocation90_spill] sm:$0xff] }
 0x2fd   : > { %15732 = vst [vmem:[#allocation144_spill] sm:$0xff] %v12707_v15  ;;  %vm15738_vm5 = vcmp.eq.s32.totalorder %v15737_v26, 1  ;;  %v5093_v56 = vmax.f32 %v5013_v58, %v12707_v15  ;;  %vm15740_vm0 = vcmp.eq.s32.totalorder %v15739_v21, 1  ;;  %vm15742_vm12 = vcmp.eq.s32.totalorder %v15741_v18, 1  ;;  %v15745_v2 = vld [vmem:[#allocation91_spill] sm:$0xff]  ;;  %v15752_v21 = vld [vmem:[#allocation38_spill] sm:$0xff] }
 0x2fe   : > { %v5519_v51 = vsel %vm15738_vm5, %v12597_v53, -inf  ;;  %5169 = vst [vmem:[#allocation4] sm:$0xf] %v5153_v62  ;;  %v5521_v9 = vsel %vm15740_vm0, %v12635_v24, -inf  ;;  %v5523_v10 = vsel %vm15742_vm12, %v12464_v11, -inf  ;;  %vm3073_vm1 = vcmp.eq.s32.totalorder %v12705_v35, 1  ;;  %v12728_v53 = vpop.permute.xlu0 %3274 }
 0x2ff   : > { %v5559_v37 = vmax.f32 %v5439_v17, %v5519_v51  ;;  %v5134_v5 = vmax.f32 %v5092_v45, %v12245_v44  ;;  %v5561_v54 = vmax.f32 %v5441_v49, %v5521_v9  ;;  %v5563_v63 = vmax.f32 %v5443_v42, %v5523_v10  ;;  %v15747_v58 = vld [vmem:[#allocation111_spill] sm:$0xff]  ;;  %v15754_v18 = vld [vmem:[#allocation78_spill] sm:$0xff]  ;;  %v15810_v15 = vld [vmem:[#allocation41_spill] sm:$0xff] }
 0x300   : > { %vm15744_vm10 = vcmp.eq.s32.totalorder %v15743_v30, 1  ;;  %vm15746_vm5 = vcmp.eq.s32.totalorder %v15745_v2, 1  ;;  %v3597_v47 = vmax.f32 %v12509_v3, %v11942_v12  ;;  %v5356_v11 = vld [vmem:[#allocation2 + $0x77] sm:$0xff]  ;;  %vm15748_vm0 = vcmp.eq.s32.totalorder %v15747_v58, 1  ;;  %v12751_v51 = vld [vmem:[#allocation2 + $0x89] sm:$0xff]  ;;  %v15756_v10 = vld [vmem:[#allocation74_spill] sm:$0xff] }
 0x301   : > { %v5639_v62 = vsel %vm15744_vm10, %v5599_v36, -inf  ;;  %v5641_v24 = vsel %vm15746_vm5, %v12588_v32, -inf  ;;  %5206 = vst [vmem:[#allocation2 + $0xc8] sm:$0xff] %v5134_v5  ;;  %v5643_v44 = vsel %vm15748_vm0, %v12637_v41, -inf  ;;  %v3113_v17 = vsel %vm3073_vm1, %v12493_v7, -inf  ;;  %v5236_v32 = vld [vmem:[#allocation2 + $0x79] sm:$0xff] }
 0x302   : > { %v12740_v8 = vmax.f32 %v5559_v37, %v5639_v62  ;;  %v12742_v57 = vmax.f32 %v5561_v54, %v5641_v24  ;;  %v5135_v45 = vmax.f32 %v5093_v56, %v12250_v39  ;;  %v5237_v49 = vld [vmem:[#allocation2 + $0x81] sm:$0xff]  ;;  %v12748_v26 = vmax.f32 %v5563_v63, %v5643_v44  ;;  %15749 = vst [vmem:[#allocation87_spill] sm:$0xff] %v12751_v51  ;;  %v12761_v56 = vld [vmem:[#allocation2 + $0x8a] sm:$0xff]  ;;  %v5596_v58 = vld [vmem:[#allocation2 + $0x76] sm:$0xff] }
 0x303   : > { %v5357_v42 = vld [vmem:[#allocation2 + $0x7f] sm:$0xff]  ;;  %vm15023_vm12 = vcmp.eq.s32.totalorder %v12728_v53, 1  ;;  %vm15753_vm5 = vcmp.eq.s32.totalorder %v15752_v21, 1  ;;  %vm15755_vm0 = vcmp.eq.s32.totalorder %v15754_v18, 1  ;;  %vm15757_vm4 = vcmp.eq.s32.totalorder %v15756_v10, 1  ;;  %15758 = vst [vmem:[#allocation154_spill] sm:$0xff] %v12761_v56 }
 0x304   : > { %v15750_v41 = vld [vmem:[#allocation30_spill] sm:$0xff]  ;;  %v5277_v9 = vsel %vm15753_vm5, %v5237_v49, -inf  ;;  %v5396_v7 = vsel %vm15755_vm0, %v5356_v11, -inf  ;;  %v5397_v39 = vsel %vm15757_vm4, %v5357_v42, -inf  ;;  %v3641_v37 = vmax.f32 %v3597_v47, %v12537_v46  ;;  %5719 = vst [vmem:[#allocation2 + $0x90] sm:$0xff] %v12740_v8  ;;  %v15762_v42 = vld [vmem:[#allocation99_spill] sm:$0xff] }
 0x305   : > { %vm15751_vm10 = vcmp.eq.s32.totalorder %v15750_v41, 1  ;;  %v5317_v54 = vmax.f32 %v12687_v52, %v5277_v9  ;;  %v5476_v63 = vld [vmem:[#allocation2 + $0x7a] sm:$0xff]  ;;  %v5477_v30 = vld [vmem:[#allocation2 + $0x82] sm:$0xff]  ;;  %5721 = vst [vmem:[#allocation2 + $0xa0] sm:$0xff] %v12742_v57  ;;  %v3595_v52 = vmax.f32 %v12537_v46, %v12509_v3  ;;  %v15765_v10 = vld [vmem:[#allocation88_spill] sm:$0xff]  ;;  %v3813_v1 = vpack.c.bf16 %v12569_v4, %v12569_v4 }
 0x306   : > { %v5276_v36 = vsel %vm15751_vm10, %v5236_v32, -inf  ;;  %v15759_v62 = vld [vmem:[#allocation66_spill] sm:$0xff]  ;;  %5723 = vst [vmem:[#allocation2 + $0xb0] sm:$0xff] %v12748_v26  ;;  %vm15763_vm10 = vcmp.eq.s32.totalorder %v15762_v42, 1  ;;  %vm15766_vm5 = vcmp.eq.s32.totalorder %v15765_v10, 1  ;;  %v15804_v51 = vld [vmem:[#allocation25_spill] sm:$0xff] }
 0x307   : > { %v5316_v5 = vmax.f32 %v12674_v48, %v5276_v36  ;;  %v3153_v2 = vmax.f32 %v15759_v62, %v3113_v17  ;;  %v3193_v24 = vld [vmem:[#allocation2 + $0x1e] sm:$0xff]  ;;  %v5437_v44 = vmax.f32 %v5317_v54, %v5397_v39  ;;  %v5517_v17 = vsel %vm15763_vm10, %v5477_v30, -inf  ;;  %5207 = vst [vmem:[#allocation2 + $0xd0] sm:$0xff] %v5135_v45  ;;  %v15764_v36 = vld [vmem:[#allocation148_spill] sm:$0xff]  ;;  %v12796_v42 = vld [vmem:[#allocation2 + $0x86] sm:$0xff] }
 0x308   : > { %v5597_v32 = vld [vmem:[#allocation2 + $0x7e] sm:$0xff]  ;;  %v3433_v48 = vsel %vm15023_vm12, %v3193_v24, -inf  ;;  %v3721_v21 = vmax.f32 %v3641_v37, %v15764_v36  ;;  %v5636_v39 = vsel %vm15766_vm5, %v5596_v58, -inf  ;;  %v15773_v58 = vld [vmem:[#allocation40_spill] sm:$0xff]  ;;  %15776 = vst [vmem:[#allocation107_spill] sm:$0xff] %v12796_v42 }
 0x309   : > { %v5436_v11 = vmax.f32 %v5316_v5, %v5396_v7  ;;  %v15760_v47 = vld [vmem:[#allocation82_spill] sm:$0xff]  ;;  %v3473_v41 = vmax.f32 %v3153_v2, %v3433_v48  ;;  %v5557_v7 = vmax.f32 %v5437_v44, %v5517_v17  ;;  %v15767_v5 = vld [vmem:[#allocation39_spill] sm:$0xff]  ;;  %3829 = vst [vmem:[#allocation4 + $0x74] sm:$0xf] %v3813_v1 }
 0x30a   : > { %vm15761_vm4 = vcmp.eq.s32.totalorder %v15760_v47, 1  ;;  %v5245_v9 = vld [vmem:[#allocation2 + $0xc1] sm:$0xff]  ;;  %vm15768_vm0 = vcmp.eq.s32.totalorder %v15767_v5, 1  ;;  %v15780_v5 = vld [vmem:[#allocation117_spill] sm:$0xff] }
 0x30b   : > { %v5516_v49 = vsel %vm15761_vm4, %v5476_v63, -inf  ;;  %v5285_v54 = vsel %vm15768_vm0, %v5245_v9, -inf  ;;  %v15769_v3 = vld [vmem:[#allocation98_spill] sm:$0xff]  ;;  %v3593_v63 = vmax.f32 %v3473_v41, %v12537_v46  ;;  %v3639_v24 = vmax.f32 %v3595_v52, %v3473_v41  ;;  %v15774_v47 = vld [vmem:[#allocation115_spill] sm:$0xff]  ;;  %v12800_v52 = vpop.permute.xlu2 %2733 }
 0x30c   : > { %v5556_v18 = vmax.f32 %v5436_v11, %v5516_v49  ;;  %vm15770_vm2 = vcmp.eq.s32.totalorder %v15769_v3, 1  ;;  %v15771_v30 = vld [vmem:[#allocation118_spill] sm:$0xff]  ;;  %v12789_v11 = vmax.f32 %v3721_v21, %v3473_v41  ;;  %vm15775_vm4 = vcmp.eq.s32.totalorder %v15774_v47, 1  ;;  %15777 = vst [vmem:[#allocation33_spill] sm:$0xff] %v12800_v52  ;;  %v12803_v41 = vld [vmem:[#allocation2 + $0x71] sm:$0xff]  ;;  %v15778_v9 = vld [vmem:[#allocation95_spill] sm:$0xff] }
 0x30d   : > { %v5637_v62 = vsel %vm15770_vm2, %v5597_v32, -inf  ;;  %v5325_v2 = vmax.f32 %v15771_v30, %v5285_v54  ;;  %v5485_v45 = vld [vmem:[#allocation2 + $0xc2] sm:$0xff]  ;;  %v5405_v49 = vsel %vm15775_vm4, %v15773_v58, -inf  ;;  %v3637_v32 = vmax.f32 %v3593_v63, %v12457_v34  ;;  %v12805_v21 = vld [vmem:[#allocation2 + $0x72] sm:$0xff] }
 0x30e   : > { %v5676_v48 = vmax.f32 %v5556_v18, %v5636_v39  ;;  %v12787_v37 = vmax.f32 %v5557_v7, %v5637_v62  ;;  %v12791_v44 = vld [vmem:[#allocation2 + $0x87] sm:$0xff]  ;;  %v3719_v46 = vmax.f32 %v3639_v24, %v11942_v12  ;;  %vm15779_vm2 = vcmp.eq.s32.totalorder %v15778_v9, 1 }
 0x30f   : > { %15772 = vst [vmem:[#allocation180_spill] sm:$0xff] %v12791_v44  ;;  %v3677_v17 = vld [vmem:[#allocation2 + $0x40] sm:$0xff]  ;;  %v5445_v36 = vmax.f32 %v5325_v2, %v5405_v49  ;;  %v5525_v18 = vsel %vm15779_vm2, %v5485_v45, -inf  ;;  %v4392_v39 = vld [vmem:[#allocation2 + $0x49] sm:$0xff]  ;;  %vm15781_vm10 = vcmp.eq.s32.totalorder %v15780_v5, 1 }
 0x310   : > { %5717 = vst [vmem:[#allocation2 + $0x80] sm:$0xff] %v12787_v37  ;;  %v3717_v7 = vmax.f32 %v3637_v32, %v3677_v17  ;;  %v3761_v10 = vmax.f32 %v3719_v46, %v12457_v34  ;;  %v5645_v54 = vsel %vm15781_vm10, %v12479_v6, -inf  ;;  %v15782_v63 = vld [vmem:[#allocation23_spill] sm:$0xff]  ;;  %v15795_v17 = vld [vmem:[#allocation72_spill] sm:$0xff] }
 0x311   : > { %4351 = vst [vmem:[#allocation2 + $0x40] sm:$0xff] %v12789_v11  ;;  %v5565_v12 = vmax.f32 %v5445_v36, %v5525_v18  ;;  %vm15783_vm5 = vcmp.eq.s32.totalorder %v15782_v63, 1  ;;  %v4632_v2 = vld [vmem:[#allocation2 + $0x4a] sm:$0xff]  ;;  %v15790_v18 = vld [vmem:[#allocation22_spill] sm:$0xff] }
 0x312   : > { %5716 = vst [vmem:[#allocation2 + $0x78] sm:$0xff] %v5676_v48  ;;  %v12815_v3 = vmax.f32 %v3717_v7, %v12457_v34  ;;  %v4432_v24 = vsel %vm15783_vm5, %v4392_v39, -inf  ;;  %v12819_v45 = vld [vmem:[#allocation2 + $0xc7] sm:$0xff]  ;;  %vm15791_vm2 = vcmp.eq.s32.totalorder %v15790_v18, 1  ;;  %vm15796_vm5 = vcmp.eq.s32.totalorder %v15795_v17, 1 }
 0x313   : > { %4349 = vst [vmem:[#allocation2 + $0x30] sm:$0xff] %v3761_v10  ;;  %v5685_v62 = vmax.f32 %v5565_v12, %v5645_v54  ;;  %v12821_v58 = vld [vmem:[#allocation2 + $0xc6] sm:$0xff]  ;;  %v4472_v48 = vmax.f32 %v12516_v22, %v4432_v24  ;;  %v12837_v54 = vpop.permute.xlu2 %3370 }
 0x314   : > { %15784 = vst [vmem:[#allocation110_spill] sm:$0xff] %v12819_v45  ;;  %v15786_v47 = vld [vmem:[#allocation155_spill] sm:$0xff]  ;;  %v15798_v45 = vld [vmem:[#allocation28_spill] sm:$0xff] }
 0x315   : > { %15785 = vst [vmem:[#allocation37_spill] sm:$0xff] %v12821_v58  ;;  %vm15787_vm0 = vcmp.eq.s32.totalorder %v15786_v47, 1  ;;  %v15788_v36 = vld [vmem:[#allocation27_spill] sm:$0xff]  ;;  %v15813_v58 = vld [vmem:[#allocation161_spill] sm:$0xff] }
 0x316   : > { %4347 = vst [vmem:[#allocation2 + $0x20] sm:$0xff] %v12815_v3  ;;  %v12827_v6 = vsel %vm15787_vm0, %v4632_v2, -inf  ;;  %vm15789_vm4 = vcmp.eq.s32.totalorder %v15788_v36, 1  ;;  %v15792_v12 = vld [vmem:[#allocation63_spill] sm:$0xff]  ;;  %vm15799_vm0 = vcmp.eq.s32.totalorder %v15798_v45, 1 }
 0x317   : > { %5725 = vst [vmem:[#allocation2 + $0xc0] sm:$0xff] %v5685_v62  ;;  %vm15793_vm10 = vcmp.eq.s32.totalorder %v15792_v12, 1  ;;  %v15821_v12 = vld [vmem:[#allocation165_spill] sm:$0xff] }
 0x318   : > { %v4390_v49 = vld [vmem:[#allocation2 + $0x39] sm:$0xff]  ;;  %v4391_v32 = vld [vmem:[#allocation2 + $0x41] sm:$0xff]  ;;  %15794 = vst [vmem:[#allocation44_spill] sm:$0xff] %v12837_v54 }
 0x319   : > { %v4511_v46 = vld [vmem:[#allocation2 + $0x3f] sm:$0xff]  ;;  %v4430_v9 = vsel %vm15789_vm4, %v4390_v49, -inf  ;;  %v4431_v7 = vsel %vm15791_vm2, %v4391_v32, -inf  ;;  %v4512_v39 = vld [vmem:[#allocation2 + $0x47] sm:$0xff]  ;;  %vm15805_vm2 = vcmp.eq.s32.totalorder %v15804_v51, 1 }
 0x31a   : > { %v4551_v22 = vsel %vm15793_vm10, %v4511_v46, -inf  ;;  %v4630_v5 = vld [vmem:[#allocation2 + $0x3a] sm:$0xff]  ;;  %v4388_v62 = vld [vmem:[#allocation2 + $0x29] sm:$0xff]  ;;  %v4389_v24 = vld [vmem:[#allocation2 + $0x31] sm:$0xff]  ;;  %v4470_v2 = vmax.f32 %v12504_v40, %v4430_v9  ;;  %v4471_v29 = vmax.f32 %v12789_v11, %v4431_v7  ;;  %v4552_v49 = vsel %vm15796_vm5, %v4512_v39, -inf }
 0x31b   : > { %v4509_v16 = vld [vmem:[#allocation2 + $0x2f] sm:$0xff]  ;;  %v4631_v61 = vld [vmem:[#allocation2 + $0x42] sm:$0xff]  ;;  %v4670_v32 = vsel %vm15024_vm7, %v4630_v5, -inf  ;;  %v4428_v46 = vsel %vm15799_vm0, %v4388_v62, -inf  ;;  %v4429_v28 = vsel %vm2435_vm9, %v4389_v24, -inf  ;;  %v4510_v43 = vld [vmem:[#allocation2 + $0x37] sm:$0xff]  ;;  %v4592_v9 = vmax.f32 %v4472_v48, %v4552_v49 }
 0x31c   : > { %v4549_v40 = vsel %vm2755_vm15, %v4509_v16, -inf  ;;  %v4628_v11 = vld [vmem:[#allocation2 + $0x2a] sm:$0xff]  ;;  %v4629_v7 = vld [vmem:[#allocation2 + $0x32] sm:$0xff]  ;;  %v4468_v39 = vmax.f32 %v12489_v25, %v4428_v46  ;;  %v4469_v42 = vmax.f32 %v3761_v10, %v4429_v28  ;;  %v4591_v62 = vmax.f32 %v4471_v29, %v4551_v22 }
 0x31d   : > { %v4387_v50 = vld [vmem:[#allocation2 + $0x21] sm:$0xff]  ;;  %v15802_v5 = vld [vmem:[#allocation64_spill] sm:$0xff]  ;;  %vm15807_vm10 = vcmp.eq.s32.totalorder %v15806_v23, 1  ;;  %vm15811_vm0 = vcmp.eq.s32.totalorder %v15810_v15, 1 }
 0x31e   : > { %v4507_v56 = vld [vmem:[#allocation2 + $0x1f] sm:$0xff]  ;;  %v4508_v60 = vld [vmem:[#allocation2 + $0x27] sm:$0xff]  ;;  %vm15803_vm4 = vcmp.eq.s32.totalorder %v15802_v5, 1  ;;  %v4427_v24 = vsel %vm15805_vm2, %v4387_v50, -inf  ;;  %v15808_v16 = vld [vmem:[#allocation60_spill] sm:$0xff]  ;;  %v4589_v10 = vmax.f32 %v4469_v42, %v4549_v40  ;;  %v4668_v50 = vsel %vm15811_vm0, %v4628_v11, -inf }
 0x31f   : > { %v4550_v44 = vsel %vm15803_vm4, %v4510_v43, -inf  ;;  %v4547_v27 = vsel %vm15807_vm10, %v4507_v56, -inf  ;;  %vm15809_vm5 = vcmp.eq.s32.totalorder %v15808_v16, 1  ;;  %v4627_v20 = vld [vmem:[#allocation2 + $0x22] sm:$0xff]  ;;  %v4467_v25 = vmax.f32 %v12815_v3, %v4427_v24  ;;  %v4749_v22 = vld [vmem:[#allocation2 + $0x2e] sm:$0xff] }
 0x320   : > { %v4548_v48 = vsel %vm15809_vm5, %v4508_v60, -inf  ;;  %v4590_v49 = vmax.f32 %v4470_v2, %v4550_v44  ;;  %v4667_v46 = vsel %vm3073_vm1, %v4627_v20, -inf  ;;  %v4747_v43 = vld [vmem:[#allocation2 + $0x1e] sm:$0xff]  ;;  %v4748_v29 = vld [vmem:[#allocation2 + $0x26] sm:$0xff]  ;;  %v4669_v56 = vsel %vm15026_vm8, %v4629_v7, -inf  ;;  %v4750_v2 = vld [vmem:[#allocation2 + $0x36] sm:$0xff] }
 0x321   : > { %v4588_v28 = vmax.f32 %v4468_v39, %v4548_v48  ;;  %vm15814_vm4 = vcmp.eq.s32.totalorder %v15813_v58, 1  ;;  %v4751_v3 = vld [vmem:[#allocation2 + $0x3e] sm:$0xff]  ;;  %v4752_v39 = vld [vmem:[#allocation2 + $0x46] sm:$0xff]  ;;  %v4587_v42 = vmax.f32 %v4467_v25, %v4547_v27  ;;  %v4709_v24 = vmax.f32 %v4589_v10, %v4669_v56  ;;  %v15815_v11 = vld [vmem:[#allocation172_spill] sm:$0xff] }
 0x322   : > { %v4671_v60 = vsel %vm15814_vm4, %v4631_v61, -inf  ;;  %v4710_v44 = vmax.f32 %v4590_v49, %v4670_v32  ;;  %v4712_v48 = vmax.f32 %v4592_v9, %v12827_v6  ;;  %v4787_v15 = vsel %vm15023_vm12, %v4747_v43, -inf  ;;  %v15817_v7 = vld [vmem:[#allocation183_spill] sm:$0xff]  ;;  %v15819_v32 = vld [vmem:[#allocation124_spill] sm:$0xff]  ;;  %v12882_v43 = vpop.permute.xlu2 %2739  ;;  %v8125_v56 = vld [vmem:[#allocation2 + $0xe0] sm:$0xff] }
 0x323   : > { %v4708_v40 = vmax.f32 %v4588_v28, %v4668_v50  ;;  %v4711_v20 = vmax.f32 %v4591_v62, %v4671_v60  ;;  %vm15816_vm2 = vcmp.eq.s32.totalorder %v15815_v11, 1  ;;  %vm15818_vm10 = vcmp.eq.s32.totalorder %v15817_v7, 1  ;;  %v15823_v25 = vld [vmem:[#allocation112_spill] sm:$0xff]  ;;  %15825 = vst [vmem:[#allocation157_spill] sm:$0xff] %v12882_v43 }
 0x324   : > { %v4788_v47 = vsel %vm15816_vm2, %v4748_v29, -inf  ;;  %v4789_v58 = vsel %vm15818_vm10, %v4749_v22, -inf  ;;  %v4707_v61 = vmax.f32 %v4587_v42, %v4667_v46  ;;  %vm15820_vm5 = vcmp.eq.s32.totalorder %v15819_v32, 1  ;;  %v15826_v29 = vld [vmem:[#allocation182_spill] sm:$0xff] }
 0x325   : > { %v4790_v49 = vsel %vm15820_vm5, %v4750_v2, -inf  ;;  %vm15822_vm0 = vcmp.eq.s32.totalorder %v15821_v12, 1  ;;  %vm15824_vm4 = vcmp.eq.s32.totalorder %v15823_v25, 1  ;;  %v4828_v6 = vmax.f32 %v4708_v40, %v4788_v47  ;;  %v15829_v25 = vld [vmem:[#allocation156_spill] sm:$0xff] }
 0x326   : > { %v4791_v27 = vsel %vm15822_vm0, %v4751_v3, -inf  ;;  %v4792_v62 = vsel %vm15824_vm4, %v4752_v39, -inf  ;;  %v4829_v9 = vmax.f32 %v4709_v24, %v4789_v58  ;;  %v4830_v28 = vmax.f32 %v4710_v44, %v4790_v49 }
 0x327   : > { %v4831_v10 = vmax.f32 %v4711_v20, %v4791_v27  ;;  %v4954_v50 = vmax.f32 %v12656_v13, %v15826_v29  ;;  %v4827_v22 = vmax.f32 %v4707_v61, %v4787_v15  ;;  %v4832_v46 = vmax.f32 %v4712_v48, %v4792_v62  ;;  %v15828_v61 = vld [vmem:[#allocation181_spill] sm:$0xff] }
 0x328   : > { %v3811_v60 = vpack.c.bf16 %v8125_v56, %v8125_v56  ;;  %v4948_v2 = vmax.f32 %v4828_v6, %v4830_v28  ;;  %v15827_v39 = vmax.f32 %v12661_v55, %v12605_v31  ;;  %vm2786_vm4 = vcmp.eq.s32.totalorder %v12800_v52, 1 }
 0x329   : > { %v4949_v42 = vmax.f32 %v4829_v9, %v4831_v10  ;;  %v4951_v3 = vmax.f32 %v4831_v10, %v12661_v55  ;;  %v4947_v58 = vmax.f32 %v4827_v22, %v4829_v9  ;;  %v4950_v44 = vmax.f32 %v4830_v28, %v4832_v46 }
 0x32a   : > { %v4997_v47 = vmax.f32 %v15827_v39, %v4831_v10  ;;  %v4952_v40 = vmax.f32 %v4832_v46, %v12656_v13  ;;  %v4998_v24 = vmax.f32 %v4954_v50, %v4832_v46  ;;  %3827 = vst [vmem:[#allocation4 + $0x64] sm:$0xf] %v3811_v60  ;;  %v4992_v20 = vmax.f32 %v4948_v2, %v12457_v34 }
 0x32b   : > { %v4993_v15 = vmax.f32 %v4949_v42, %v4827_v22  ;;  %v4995_v48 = vmax.f32 %v4951_v3, %v4829_v9  ;;  %v4991_v27 = vmax.f32 %v4947_v58, %v12457_v34  ;;  %v4994_v62 = vmax.f32 %v4950_v44, %v4828_v6  ;;  %v12903_v3 = vpop.f32.mrf.mxu2  ;;  %v2586_v58 = vld [vmem:[#allocation2 + $0x127] sm:$0xff]  ;;  %v2268_v44 = vld [vmem:[#allocation2 + $0x139] sm:$0xff] }
 0x32c   : > { %v5077_v49 = vmax.f32 %v4997_v47, %v15828_v61  ;;  %v4996_v56 = vmax.f32 %v4952_v40, %v4830_v28  ;;  %v5078_v12 = vmax.f32 %v4998_v24, %v15829_v25  ;;  %v5072_v32 = vmax.f32 %v4992_v20, %v4832_v46  ;;  %15830 = vst [vmem:[#allocation81_spill] sm:$0xff] %v12903_v3  ;;  %v2588_v40 = vld [vmem:[#allocation2 + $0x137] sm:$0xff] }
 0x32d   : > { %v5073_v39 = vmax.f32 %v4993_v15, %v12661_v55  ;;  %v5075_v7 = vmax.f32 %v4995_v48, %v12605_v31  ;;  %v5071_v50 = vmax.f32 %v4991_v27, %v4831_v10  ;;  %v5074_v60 = vmax.f32 %v4994_v62, %v12656_v13  ;;  %v12919_v13 = vpop.permute.xlu1 %2730  ;;  %v15840_v15 = vld [vmem:[#allocation54_spill] sm:$0xff]  ;;  %v3227_v62 = vld [vmem:[#allocation2 + $0x12e] sm:$0xff] }
 0x32e   : > { %v12897_v11 = vmax.f32 %v5077_v49, %v4829_v9  ;;  %v5076_v2 = vmax.f32 %v4996_v56, %v15826_v29  ;;  %v12901_v42 = vmax.f32 %v5078_v12, %v4830_v28  ;;  %v12906_v47 = vmax.f32 %v5072_v32, %v12457_v34  ;;  %15832 = vst [vmem:[#allocation76_spill] sm:$0xff] %v12919_v13  ;;  %v2265_v27 = vld [vmem:[#allocation2 + $0x121] sm:$0xff] }
 0x32f   : > { %v12909_v25 = vmax.f32 %v5073_v39, %v12457_v34  ;;  %v12911_v55 = vmax.f32 %v5075_v7, %v4827_v22  ;;  %v15831_v31 = vmax.f32 %v12679_v59, %v12235_v33  ;;  %v12922_v12 = vmax.f32 %v5071_v50, %v12457_v34  ;;  %v2270_v33 = vld [vmem:[#allocation2 + $0x149] sm:$0xff]  ;;  %v12936_v59 = vpop.permute.xlu2 %3376 }
 0x330   : > { %5191 = vst [vmem:[#allocation2 + $0x50] sm:$0xff] %v12897_v11  ;;  %v12925_v32 = vmax.f32 %v5074_v60, %v12457_v34  ;;  %v12927_v28 = vmax.f32 %v5076_v2, %v4828_v6  ;;  %v15833_v7 = vmax.f32 %v12668_v0, %v12259_v19  ;;  %v15836_v34 = vld [vmem:[#allocation58_spill] sm:$0xff]  ;;  %v2266_v22 = vld [vmem:[#allocation2 + $0x129] sm:$0xff]  ;;  %vm3425_vm12 = vcmp.eq.s32.totalorder %v12837_v54, 1 }
 0x331   : > { %v12916_v9 = vmax.f32 %v15831_v31, %v4831_v10  ;;  %5192 = vst [vmem:[#allocation2 + $0x58] sm:$0xff] %v12901_v42  ;;  %v15835_v10 = vld [vmem:[#allocation51_spill] sm:$0xff]  ;;  %vm15025_vm10 = vcmp.eq.s32.totalorder %v15836_v34, 1  ;;  %vm15102_vm7 = vcmp.eq.s32.totalorder %v12936_v59, 1  ;;  %v5763_v24 = vmax.f32 %v12740_v8, %v12742_v57 }
 0x332   : > { %v12932_v29 = vmax.f32 %v15833_v7, %v4832_v46  ;;  %5186 = vst [vmem:[#allocation2 + $0x28] sm:$0xff] %v12906_v47  ;;  %vm2465_vm2 = vcmp.eq.s32.totalorder %v15835_v10, 1  ;;  %v2269_v6 = vld [vmem:[#allocation2 + $0x141] sm:$0xff]  ;;  %v12945_v0 = vsel %vm15025_vm10, %v2270_v33, -inf  ;;  %v3812_v20 = vpack.c.bf16 %v15717_v38, %v15717_v38  ;;  %v15845_v7 = vld [vmem:[#allocation176_spill] sm:$0xff] }
 0x333   : > { %15834 = vst [vmem:[#allocation80_spill] sm:$0xff] %v12936_v59  ;;  %v15837_v19 = vld [vmem:[#allocation59_spill] sm:$0xff]  ;;  %v15839_v46 = vld [vmem:[#allocation62_spill] sm:$0xff]  ;;  %vm15046_vm10 = vcmp.eq.s32.totalorder %v15840_v15, 1  ;;  %v12968_v49 = vsel %vm2786_vm4, %v2586_v58, -inf  ;;  %vm15044_vm8 = vcmp.eq.s32.totalorder %v12882_v43, 1  ;;  %v12982_v50 = vmax.f32 %v5763_v24, %v12787_v37  ;;  %v13019_v34 = vpop.f32.mrf.mxu2 }
 0x334   : > { %5185 = vst [vmem:[#allocation2 + $0x20] sm:$0xff] %v12922_v12  ;;  %vm2466_vm5 = vcmp.eq.s32.totalorder %v15837_v19, 1  ;;  %vm15027_vm0 = vcmp.eq.s32.totalorder %v15839_v46, 1  ;;  %v12973_v38 = vsel %vm15046_vm10, %v2268_v44, -inf  ;;  %v15842_v56 = vld [vmem:[#allocation31_spill] sm:$0xff]  ;;  %v12992_v33 = vsel %vm3425_vm12, %v15845_v7, -inf }
 0x335   : > { %5187 = vst [vmem:[#allocation2 + $0x30] sm:$0xff] %v12909_v25  ;;  %v12960_v48 = vsel %vm15027_vm0, %v2269_v6, -inf  ;;  %v12964_v61 = vsel %vm2466_vm5, %v2266_v22, -inf  ;;  %vm15843_vm0 = vcmp.eq.s32.totalorder %v15842_v56, 1  ;;  %v12985_v2 = vld [vmem:[#allocation2 + $0x148] sm:$0xff]  ;;  %v13000_v6 = vsel %vm15102_vm7, %v3227_v62, -inf  ;;  %v13033_v59 = vpop.permute.xlu1 %3053 }
 0x336   : > { %15838 = vst [vmem:[#allocation79_spill] sm:$0xff] %v12945_v0  ;;  %v12979_v39 = vsel %vm15843_vm0, %v12803_v41, -inf  ;;  %v12996_v41 = vsel %vm15044_vm8, %v2588_v40, -inf  ;;  %v13003_v44 = vld [vmem:[#allocation2 + $0x140] sm:$0xff]  ;;  %v13007_v56 = vld [vmem:[#allocation2 + $0x128] sm:$0xff]  ;;  %v13013_v40 = vsel %vm2465_vm2, %v2265_v27, -inf }
 0x337   : > { %5188 = vst [vmem:[#allocation2 + $0x38] sm:$0xff] %v12925_v32  ;;  %v15848_v46 = vld [vmem:[#allocation146_spill] sm:$0xff]  ;;  %v15849_v7 = vld [vmem:[#allocation83_spill] sm:$0xff] }
 0x338   : > { %5189 = vst [vmem:[#allocation2 + $0x40] sm:$0xff] %v12911_v55  ;;  %v5231_v60 = vld [vmem:[#allocation2 + $0x51] sm:$0xff]  ;;  %4255 = vmatmul.bf16.gmra.mxu2 %v15848_v46  ;;  %vm15850_vm0 = vcmp.eq.s32.totalorder %v15849_v7, 1 }
 0x339   : > { %15841 = vst [vmem:[#allocation85_spill] sm:$0xff] %v12960_v48  ;;  %v5352_v22 = vld [vmem:[#allocation2 + $0x57] sm:$0xff]  ;;  %v13017_v3 = vsel %vm2439_vm11, %v5231_v60, -inf  ;;  %v13027_v15 = vsel %vm15850_vm0, %v12805_v21, -inf  ;;  %vm15851_vm11 = vcmp.eq.s32.totalorder %v15804_v51, 1  ;;  %vm15856_vm0 = vcmp.eq.s32.totalorder %v15798_v45, 1 }
 0x33a   : > { %5190 = vst [vmem:[#allocation2 + $0x48] sm:$0xff] %v12927_v28  ;;  %v5471_v58 = vld [vmem:[#allocation2 + $0x52] sm:$0xff]  ;;  %v13042_v52 = vsel %vm2760_vm14, %v5352_v22, -inf  ;;  %v5311_v46 = vmax.f32 %v12897_v11, %v13017_v3  ;;  %vm15858_vm14 = vcmp.eq.s32.totalorder %v15788_v36, 1 }
 0x33b   : > { %5193 = vst [vmem:[#allocation2 + $0x60] sm:$0xff] %v12916_v9  ;;  %v5225_v62 = vld [vmem:[#allocation2 + $0x21] sm:$0xff]  ;;  %v13046_v51 = vsel %vm3079_vm3, %v5471_v58, -inf  ;;  %vm15859_vm3 = vcmp.eq.s32.totalorder %v15808_v16, 1 }
 0x33c   : > { %15844 = vst [vmem:[#allocation103_spill] sm:$0xff] %v12985_v2  ;;  %v5345_v43 = vld [vmem:[#allocation2 + $0x1f] sm:$0xff]  ;;  %v5226_v31 = vld [vmem:[#allocation2 + $0x29] sm:$0xff]  ;;  %v5265_v60 = vsel %vm15851_vm11, %v5225_v62, -inf  ;;  %vm15857_vm11 = vcmp.eq.s32.totalorder %v15806_v23, 1 }
 0x33d   : > { %5194 = vst [vmem:[#allocation2 + $0x68] sm:$0xff] %v12932_v29  ;;  %v5305_v7 = vmax.f32 %v12922_v12, %v5265_v60  ;;  %v5347_v21 = vld [vmem:[#allocation2 + $0x2f] sm:$0xff]  ;;  %v5266_v19 = vsel %vm15856_vm0, %v5226_v31, -inf  ;;  %v5385_v12 = vsel %vm15857_vm11, %v5345_v43, -inf  ;;  %v5465_v54 = vld [vmem:[#allocation2 + $0x22] sm:$0xff]  ;;  %vm15861_vm0 = vcmp.eq.s32.totalorder %v15782_v63, 1 }
 0x33e   : > { %3828 = vst [vmem:[#allocation4 + $0x6c] sm:$0xf] %v3812_v20  ;;  %v5346_v20 = vld [vmem:[#allocation2 + $0x27] sm:$0xff]  ;;  %v5227_v24 = vld [vmem:[#allocation2 + $0x31] sm:$0xff]  ;;  %v5387_v36 = vsel %vm2755_vm15, %v5347_v21, -inf  ;;  %v5306_v0 = vmax.f32 %v12906_v47, %v5266_v19  ;;  %v13078_v63 = vsel %vm3073_vm1, %v5465_v54, -inf }
 0x33f   : > { %15847 = vst [vmem:[#allocation90_spill] sm:$0xff] %v13019_v34  ;;  %v13035_v34 = vpop.permute.xlu0 %3050  ;;  %v5228_v62 = vld [vmem:[#allocation2 + $0x39] sm:$0xff]  ;;  %v5267_v10 = vsel %vm2435_vm9, %v5227_v24, -inf  ;;  %v5386_v45 = vsel %vm15859_vm3, %v5346_v20, -inf  ;;  %v13060_v31 = vmax.f32 %v5305_v7, %v5385_v12  ;;  %vm15860_vm9 = vcmp.eq.s32.totalorder %v15790_v18, 1  ;;  %v15866_v21 = vld [vmem:[#allocation35_spill] sm:$0xff] }
 0x340   : > { %15852 = vst [vmem:[#allocation91_spill] sm:$0xff] %v13033_v59  ;;  %v5268_v58 = vsel %vm15858_vm14, %v5228_v62, -inf  ;;  %v5348_v27 = vld [vmem:[#allocation2 + $0x37] sm:$0xff]  ;;  %v5307_v18 = vmax.f32 %v12909_v25, %v5267_v10  ;;  %vm15867_vm15 = vcmp.eq.s32.totalorder %v15866_v21, 1  ;;  %v5466_v54 = vld [vmem:[#allocation2 + $0x2a] sm:$0xff]  ;;  %vm15870_vm1 = vcmp.eq.s32.totalorder %v15795_v17, 1 }
 0x341   : > { %15853 = vst [vmem:[#allocation111_spill] sm:$0xff] %v13035_v34  ;;  %v5229_v22 = vld [vmem:[#allocation2 + $0x41] sm:$0xff]  ;;  %v5230_v60 = vld [vmem:[#allocation2 + $0x49] sm:$0xff]  ;;  %v15862_v62 = vld [vmem:[#allocation77_spill] sm:$0xff]  ;;  %v5308_v2 = vmax.f32 %v12925_v32, %v5268_v58 }
 0x342   : > { %v5232_v24 = vld [vmem:[#allocation2 + $0x59] sm:$0xff]  ;;  %v5269_v23 = vsel %vm15860_vm9, %v5229_v22, -inf  ;;  %v5270_v11 = vsel %vm15861_vm0, %v5230_v60, -inf  ;;  %v5350_v43 = vld [vmem:[#allocation2 + $0x47] sm:$0xff]  ;;  %v5351_v3 = vld [vmem:[#allocation2 + $0x4f] sm:$0xff]  ;;  %v3814_v16 = vpack.c.bf16 %v15862_v62, %v15862_v62 }
 0x343   : > { %v5272_v4 = vsel %vm2440_vm13, %v5232_v24, -inf  ;;  %v5353_v22 = vld [vmem:[#allocation2 + $0x5f] sm:$0xff]  ;;  %v5309_v12 = vmax.f32 %v12911_v55, %v5269_v23  ;;  %v5310_v25 = vmax.f32 %v12927_v28, %v5270_v11  ;;  %vm15868_vm13 = vcmp.eq.s32.totalorder %v15802_v5, 1  ;;  %v15872_v23 = vld [vmem:[#allocation75_spill] sm:$0xff]  ;;  %v13100_v11 = vpop.permute.xlu1 %2736 }
 0x344   : > { %v5233_v20 = vld [vmem:[#allocation2 + $0x61] sm:$0xff]  ;;  %v5234_v7 = vld [vmem:[#allocation2 + $0x69] sm:$0xff]  ;;  %v5312_v10 = vmax.f32 %v12901_v42, %v5272_v4  ;;  %v5388_v19 = vsel %vm15868_vm13, %v5348_v27, -inf  ;;  %v5390_v55 = vsel %vm15870_vm1, %v5350_v43, -inf  ;;  %v5391_v58 = vsel %vm2759_vm6, %v5351_v3, -inf  ;;  %v5467_v42 = vld [vmem:[#allocation2 + $0x32] sm:$0xff] }
 0x345   : > { %v15864_v60 = vld [vmem:[#allocation26_spill] sm:$0xff]  ;;  %v5274_v62 = vsel %vm15867_vm15, %v5234_v7, -inf  ;;  %v5355_v47 = vld [vmem:[#allocation2 + $0x6f] sm:$0xff]  ;;  %vm15873_vm14 = vcmp.eq.s32.totalorder %v15872_v23, 1  ;;  %15874 = vst [vmem:[#allocation38_spill] sm:$0xff] %v13100_v11  ;;  %v15882_v23 = vld [vmem:[#allocation41_spill] sm:$0xff] }
 0x346   : > { %vm15865_vm11 = vcmp.eq.s32.totalorder %v15864_v60, 1  ;;  %v5349_v24 = vld [vmem:[#allocation2 + $0x3f] sm:$0xff]  ;;  %v5354_v48 = vld [vmem:[#allocation2 + $0x67] sm:$0xff]  ;;  %v5314_v7 = vmax.f32 %v12932_v29, %v5274_v62  ;;  %v5393_v28 = vsel %vm15873_vm14, %v5353_v22, -inf  ;;  %v5426_v60 = vmax.f32 %v5306_v0, %v5386_v45  ;;  %3830 = vst [vmem:[#allocation4 + $0x7c] sm:$0xf] %v3814_v16 }
 0x347   : > { %v5273_v30 = vsel %vm15865_vm11, %v5233_v20, -inf  ;;  %v13091_v20 = vpop.f32.mrf.mxu2  ;;  %v15876_v5 = vld [vmem:[#allocation63_spill] sm:$0xff]  ;;  %v15880_v17 = vld [vmem:[#allocation70_spill] sm:$0xff]  ;;  %v5428_v22 = vmax.f32 %v5308_v2, %v5388_v19  ;;  %vm15883_vm6 = vcmp.eq.s32.totalorder %v15882_v23, 1  ;;  %vm2785_vm11 = vcmp.eq.s32.totalorder %v12919_v13, 1  ;;  %v16000_v13 = vld [vmem:[#allocation164_spill] sm:$0xff] }
 0x348   : > { %v5313_v35 = vmax.f32 %v12916_v9, %v5273_v30  ;;  %15869 = vst [vmem:[#allocation30_spill] sm:$0xff] %v13091_v20  ;;  %v13102_v9 = vpop.permute.xlu0 %3373  ;;  %vm15877_vm3 = vcmp.eq.s32.totalorder %v15876_v5, 1  ;;  %v15878_v4 = vld [vmem:[#allocation71_spill] sm:$0xff]  ;;  %vm15881_vm0 = vcmp.eq.s32.totalorder %v15880_v17, 1  ;;  %v5468_v3 = vld [vmem:[#allocation2 + $0x3a] sm:$0xff]  ;;  %v5427_v30 = vmax.f32 %v5307_v18, %v5387_v36 }
 0x349   : > { %15875 = vst [vmem:[#allocation78_spill] sm:$0xff] %v13102_v9  ;;  %v5389_v27 = vsel %vm15877_vm3, %v5349_v24, -inf  ;;  %vm15879_vm9 = vcmp.eq.s32.totalorder %v15878_v4, 1  ;;  %v5395_v43 = vsel %vm15881_vm0, %v5355_v47, -inf  ;;  %v5469_v62 = vld [vmem:[#allocation2 + $0x42] sm:$0xff]  ;;  %v5470_v32 = vld [vmem:[#allocation2 + $0x4a] sm:$0xff]  ;;  %v5430_v24 = vmax.f32 %v5310_v25, %v5390_v55 }
 0x34a   : > { %v5394_v29 = vsel %vm15879_vm9, %v5354_v48, -inf  ;;  %v13110_v21 = vmax.f32 %v5309_v12, %v5389_v27  ;;  %v5506_v1 = vsel %vm15883_vm6, %v5466_v54, -inf  ;;  %v13115_v5 = vmax.f32 %v5311_v46, %v5391_v58  ;;  %v5472_v45 = vld [vmem:[#allocation2 + $0x5a] sm:$0xff]  ;;  %v5473_v36 = vld [vmem:[#allocation2 + $0x62] sm:$0xff]  ;;  %v5474_v12 = vld [vmem:[#allocation2 + $0x6a] sm:$0xff] }
 0x34b   : > { %v13118_v48 = vmax.f32 %v5312_v10, %v13042_v52  ;;  %v13120_v0 = vmax.f32 %v5313_v35, %v5393_v28  ;;  %v13122_v2 = vmax.f32 %v5314_v7, %v5394_v29  ;;  %v15884_v16 = vmax.f32 %v12682_v14, %v12979_v39  ;;  %v15885_v47 = vld [vmem:[#allocation166_spill] sm:$0xff]  ;;  %v15887_v25 = vld [vmem:[#allocation100_spill] sm:$0xff]  ;;  %v15889_v54 = vld [vmem:[#allocation161_spill] sm:$0xff] }
 0x34c   : > { %vm15886_vm15 = vcmp.eq.s32.totalorder %v15885_v47, 1  ;;  %vm15888_vm13 = vcmp.eq.s32.totalorder %v15887_v25, 1  ;;  %vm15890_vm1 = vcmp.eq.s32.totalorder %v15889_v54, 1  ;;  %v15891_v10 = vld [vmem:[#allocation155_spill] sm:$0xff]  ;;  %v5545_v7 = vmax.f32 %v13060_v31, %v13078_v63  ;;  %v5585_v58 = vld [vmem:[#allocation2 + $0x1e] sm:$0xff] }
 0x34d   : > { %v5435_v18 = vmax.f32 %v15884_v16, %v5395_v43  ;;  %v5507_v19 = vsel %vm15886_vm15, %v5467_v42, -inf  ;;  %v5508_v46 = vsel %vm15888_vm13, %v5468_v3, -inf  ;;  %v5509_v52 = vsel %vm15890_vm1, %v5469_v62, -inf  ;;  %v5586_v14 = vld [vmem:[#allocation2 + $0x26] sm:$0xff]  ;;  %v15895_v27 = vld [vmem:[#allocation97_spill] sm:$0xff]  ;;  %v5587_v17 = vld [vmem:[#allocation2 + $0x2e] sm:$0xff] }
 0x34e   : > { %vm15892_vm14 = vcmp.eq.s32.totalorder %v15891_v10, 1  ;;  %v5546_v55 = vmax.f32 %v5426_v60, %v5506_v1  ;;  %v15893_v39 = vld [vmem:[#allocation178_spill] sm:$0xff]  ;;  %vm15896_vm9 = vcmp.eq.s32.totalorder %v15895_v27, 1  ;;  %v5547_v4 = vmax.f32 %v5427_v30, %v5507_v19  ;;  %v5588_v43 = vld [vmem:[#allocation2 + $0x36] sm:$0xff]  ;;  %v15897_v3 = vld [vmem:[#allocation55_spill] sm:$0xff]  ;;  %v13160_v19 = vpop.permute.xlu1 %3059 }
 0x34f   : > { %v5510_v35 = vsel %vm15892_vm14, %v5470_v32, -inf  ;;  %vm15894_vm3 = vcmp.eq.s32.totalorder %v15893_v39, 1  ;;  %v5513_v42 = vsel %vm15896_vm9, %v5473_v36, -inf  ;;  %v5548_v29 = vmax.f32 %v5428_v22, %v5508_v46  ;;  %v15898_v62 = vld [vmem:[#allocation96_spill] sm:$0xff]  ;;  %v5589_v23 = vld [vmem:[#allocation2 + $0x3e] sm:$0xff]  ;;  %v5590_v1 = vld [vmem:[#allocation2 + $0x46] sm:$0xff]  ;;  %v13151_v30 = vpop.f32.mrf.mxu2 }
 0x350   : > { %v5512_v28 = vsel %vm15894_vm3, %v5472_v45, -inf  ;;  %vm2467_vm0 = vcmp.eq.s32.totalorder %v15897_v3, 1  ;;  %vm15899_vm6 = vcmp.eq.s32.totalorder %v15898_v62, 1  ;;  %v5549_v31 = vmax.f32 %v13110_v21, %v5509_v52  ;;  %v13149_v45 = vpop.permute.xlu2 %2745  ;;  %15901 = vst [vmem:[#allocation66_spill] sm:$0xff] %v13151_v30  ;;  %v15902_v22 = vld [vmem:[#allocation163_spill] sm:$0xff]  ;;  %v13162_v25 = vpop.permute.xlu0 %3056  ;;  %v15910_v52 = vld [vmem:[#allocation124_spill] sm:$0xff] }
 0x351   : > { %v13144_v32 = vsel %vm15899_vm6, %v5474_v12, -inf  ;;  %v5550_v63 = vmax.f32 %v5430_v24, %v5510_v35  ;;  %v5551_v60 = vmax.f32 %v13115_v5, %v13046_v51  ;;  %15900 = vst [vmem:[#allocation74_spill] sm:$0xff] %v13149_v45  ;;  %4260 = vmatmul.bf16.gmra.mxu2 %v15902_v22  ;;  %v5552_v36 = vmax.f32 %v13118_v48, %v5512_v28  ;;  %v5591_v12 = vld [vmem:[#allocation2 + $0x4e] sm:$0xff]  ;;  %v7249_v35 = vld [vmem:[#allocation8 + $0x98] sm:$0xf0] }
 0x352   : > { %v5555_v16 = vmax.f32 %v5435_v18, %v13027_v15  ;;  %v5595_v47 = vld [vmem:[#allocation2 + $0x6e] sm:$0xff]  ;;  %vm15903_vm15 = vcmp.eq.s32.totalorder %v12728_v53, 1  ;;  %15906 = vst [vmem:[#allocation82_spill] sm:$0xff] %v13160_v19  ;;  %vm15911_vm14 = vcmp.eq.s32.totalorder %v15910_v52, 1  ;;  %v5553_v53 = vmax.f32 %v13120_v0, %v5513_v42  ;;  %v5593_v39 = vld [vmem:[#allocation2 + $0x5e] sm:$0xff]  ;;  %v5594_v0 = vld [vmem:[#allocation2 + $0x66] sm:$0xff] }
 0x353   : > { %v5625_v21 = vsel %vm15903_vm15, %v5585_v58, -inf  ;;  %v15904_v24 = vld [vmem:[#allocation172_spill] sm:$0xff]  ;;  %v7161_v5 = vld [vmem:[#allocation4 + $0x68] sm:$0xf0]  ;;  %15907 = vst [vmem:[#allocation99_spill] sm:$0xff] %v13162_v25  ;;  %v5628_v48 = vsel %vm15911_vm14, %v5588_v43, -inf }
 0x354   : > { %vm15905_vm13 = vcmp.eq.s32.totalorder %v15904_v24, 1  ;;  %v15908_v46 = vld [vmem:[#allocation183_spill] sm:$0xff]  ;;  %v5665_v15 = vmax.f32 %v5545_v7, %v5625_v21  ;;  %v7592_v10 = vld [vmem:[#allocation8 + $0x94] sm:$0xf]  ;;  %v5668_v62 = vmax.f32 %v5548_v29, %v5628_v48  ;;  %v15918_v43 = vld [vmem:[#allocation89_spill] sm:$0xff]  ;;  %v5554_v29 = vmax.f32 %v13122_v2, %v13144_v32 }
 0x355   : > { %v5626_v51 = vsel %vm15905_vm13, %v5586_v14, -inf  ;;  %vm15909_vm1 = vcmp.eq.s32.totalorder %v15908_v46, 1  ;;  %v5592_v58 = vld [vmem:[#allocation2 + $0x56] sm:$0xff]  ;;  %vm15919_vm15 = vcmp.eq.s32.totalorder %v15918_v43, 1  ;;  %v7570_v21 = vld [vmem:[#allocation4 + $0x64] sm:$0xf] }
 0x356   : > { %v5627_v54 = vsel %vm15909_vm1, %v5587_v17, -inf  ;;  %v5666_v18 = vmax.f32 %v5546_v55, %v5626_v51  ;;  %v15912_v14 = vld [vmem:[#allocation165_spill] sm:$0xff]  ;;  %v15914_v22 = vld [vmem:[#allocation112_spill] sm:$0xff]  ;;  %v5635_v7 = vsel %vm15919_vm15, %v5595_v47, -inf  ;;  %5705 = vst [vmem:[#allocation2 + $0x20] sm:$0xff] %v5665_v15  ;;  %v13177_v52 = vor.u32 %v7570_v21, %v7161_v5  ;;  %v15925_v48 = vld [vmem:[#allocation134_spill] sm:$0xff] }
 0x357   : > { %vm15913_vm3 = vcmp.eq.s32.totalorder %v15912_v14, 1  ;;  %v5667_v27 = vmax.f32 %v5547_v4, %v5627_v54  ;;  %vm15915_vm9 = vcmp.eq.s32.totalorder %v15914_v22, 1  ;;  %v15916_v17 = vld [vmem:[#allocation104_spill] sm:$0xff]  ;;  %v5675_v51 = vmax.f32 %v5555_v16, %v5635_v7  ;;  %5708 = vst [vmem:[#allocation2 + $0x38] sm:$0xff] %v5668_v62  ;;  %v7590_v32 = vld [vmem:[#allocation8 + $0x84] sm:$0xf] }
 0x358   : > { %v5629_v28 = vsel %vm15913_vm3, %v5589_v23, -inf  ;;  %v5630_v24 = vsel %vm15915_vm9, %v5590_v1, -inf  ;;  %vm15917_vm6 = vcmp.eq.s32.totalorder %v15916_v17, 1  ;;  %5706 = vst [vmem:[#allocation2 + $0x28] sm:$0xff] %v5666_v18  ;;  %v7252_v4 = vor.u32 %v7592_v10, %v7249_v35  ;;  %v15921_v23 = vld [vmem:[#allocation142_spill] sm:$0xff]  ;;  %4206 = vmatmul.bf16.gmra.mxu3 %v13177_v52  ;;  %v15927_v35 = vld [vmem:[#allocation101_spill] sm:$0xff]  ;;  %v13213_v17 = vpop.permute.xlu0 %3379 }
 0x359   : > { %v5631_v46 = vsel %vm15917_vm6, %v5591_v12, -inf  ;;  %v5669_v55 = vmax.f32 %v5549_v31, %v5629_v28  ;;  %v5670_v42 = vmax.f32 %v5550_v63, %v5630_v24  ;;  %15920 = vst [vmem:[#allocation148_spill] sm:$0xff] %v13177_v52  ;;  %vm15922_vm13 = vcmp.eq.s32.totalorder %v15921_v23, 1  ;;  %v15923_v12 = vld [vmem:[#allocation102_spill] sm:$0xff]  ;;  %v2267_v31 = vld [vmem:[#allocation2 + $0x131] sm:$0xff]  ;;  %v13211_v24 = vpop.permute.xlu1 %2742 }
 0x35a   : > { %v5632_v1 = vsel %vm15922_vm13, %v5592_v58, -inf  ;;  %vm15924_vm1 = vcmp.eq.s32.totalorder %v15923_v12, 1  ;;  %v5671_v47 = vmax.f32 %v5551_v60, %v5631_v46  ;;  %5707 = vst [vmem:[#allocation2 + $0x30] sm:$0xff] %v5667_v27  ;;  %v2825_v63 = vsel %vm2785_vm11, %v15925_v48, -inf  ;;  %v7241_v18 = vld [vmem:[#allocation8 + $0x88] sm:$0xf0]  ;;  %4272 = vmatpush.bf16.msra.mxu3 %v7252_v4 }
 0x35b   : > { %v5633_v54 = vsel %vm15924_vm1, %v5593_v39, -inf  ;;  %v5672_v16 = vmax.f32 %v5552_v36, %v5632_v1  ;;  %v15926_v15 = vmax.f32 %v12787_v37, %v12740_v8  ;;  %v7628_v10 = vld [vmem:[#allocation8 + $0x134] sm:$0xf]  ;;  %vm15928_vm14 = vcmp.eq.s32.totalorder %v15927_v35, 1  ;;  %5709 = vst [vmem:[#allocation2 + $0x40] sm:$0xff] %v5669_v55  ;;  %v2906_v36 = vld [vmem:[#allocation2 + $0x12a] sm:$0xff]  ;;  %v13224_v55 = vpop.permute.xlu2 %3382 }
 0x35c   : > { %v5673_v5 = vmax.f32 %v5553_v53, %v5633_v54  ;;  %v5634_v60 = vsel %vm15928_vm14, %v5594_v0, -inf  ;;  %v15929_v58 = vmax.f32 %v12982_v50, %v12748_v26  ;;  %vm3106_vm3 = vcmp.eq.s32.totalorder %v13033_v59, 1  ;;  %v2905_v8 = vld [vmem:[#allocation2 + $0x122] sm:$0xff]  ;;  %v7393_v37 = vld [vmem:[#allocation8 + $0x138] sm:$0xf0]  ;;  %5710 = vst [vmem:[#allocation2 + $0x48] sm:$0xff] %v5670_v42 }
 0x35d   : > { %v5781_v2 = vmax.f32 %v15926_v15, %v5675_v51  ;;  %vm15090_vm9 = vcmp.eq.s32.totalorder %v13035_v34, 1  ;;  %v8129_v53 = vld [vmem:[#allocation2 + $0x138] sm:$0xff]  ;;  %v15930_v28 = vmax.f32 %v13007_v56, %v12964_v61  ;;  %v2507_v50 = vsel %vm2467_vm0, %v2267_v31, -inf  ;;  %v7644_v62 = vld [vmem:[#allocation8 + $0x1b4] sm:$0xf]  ;;  %15931 = vst [vmem:[#allocation88_spill] sm:$0xff] %v13211_v24 }
 0x35e   : > { %v13197_v39 = vmax.f32 %v15929_v58, %v5675_v51  ;;  %v2548_v14 = vmax.f32 %v8129_v53, %v12973_v38  ;;  %v7457_v22 = vld [vmem:[#allocation8 + $0x1b8] sm:$0xf0]  ;;  %15932 = vst [vmem:[#allocation39_spill] sm:$0xff] %v13213_v17  ;;  %v8130_v46 = vld [vmem:[#allocation2 + $0x120] sm:$0xff]  ;;  %v5674_v43 = vmax.f32 %v5554_v29, %v5634_v60  ;;  %vm15050_vm6 = vcmp.eq.s32.totalorder %v13149_v45, 1  ;;  %v2587_v61 = vld [vmem:[#allocation2 + $0x12f] sm:$0xff] }
 0x35f   : > { %v13206_v27 = vmax.f32 %v15930_v28, %v12968_v49  ;;  %v5813_v26 = vmax.f32 %v5781_v2, %v12742_v57  ;;  %v2545_v38 = vmax.f32 %v8130_v46, %v13013_v40  ;;  %5711 = vst [vmem:[#allocation2 + $0x50] sm:$0xff] %v5671_v47  ;;  %vm2787_vm15 = vcmp.eq.s32.totalorder %v13100_v11, 1  ;;  %v7626_v57 = vld [vmem:[#allocation8 + $0x124] sm:$0xf]  ;;  %v7385_v21 = vld [vmem:[#allocation8 + $0x128] sm:$0xf0] }
 0x360   : > { %5712 = vst [vmem:[#allocation2 + $0x58] sm:$0xff] %v5672_v16  ;;  %v13220_v56 = vsel %vm3106_vm3, %v2906_v36, -inf  ;;  %v3145_v7 = vsel %vm15090_vm9, %v2905_v8, -inf  ;;  %v2827_v40 = vsel %vm2787_vm15, %v2587_v61, -inf  ;;  %v5849_v0 = vpack.c.bf16 %v13197_v39, %v13197_v39  ;;  %v8131_v42 = vld [vmem:[#allocation2 + $0x130] sm:$0xff]  ;;  %v2908_v1 = vld [vmem:[#allocation2 + $0x13a] sm:$0xff] }
 0x361   : > { %v5831_v49 = vmax.f32 %v5813_v26, %v5673_v5  ;;  %15933 = vst [vmem:[#allocation98_spill] sm:$0xff] %v13224_v55  ;;  %v2547_v4 = vmax.f32 %v8131_v42, %v2507_v50  ;;  %v7244_v29 = vor.u32 %v7590_v32, %v7241_v18  ;;  %v7396_v23 = vor.u32 %v7628_v10, %v7393_v37  ;;  %v2907_v12 = vld [vmem:[#allocation2 + $0x132] sm:$0xff]  ;;  %v13233_v16 = vld [vmem:[#allocation8 + $0x118] sm:$0xf0]  ;;  %v2590_v8 = vld [vmem:[#allocation2 + $0x147] sm:$0xff]  ;;  %v13249_v26 = vpop.permute.xlu1 %3065  ;;  %v13251_v50 = vpop.permute.xlu0 %3062 }
 0x362   : > { %5713 = vst [vmem:[#allocation2 + $0x60] sm:$0xff] %v5673_v5  ;;  %v2865_v54 = vmax.f32 %v2545_v38, %v2825_v63  ;;  %v7460_v31 = vor.u32 %v7644_v62, %v7457_v22  ;;  %vm15045_vm13 = vcmp.eq.s32.totalorder %v13160_v19, 1  ;;  %v13231_v48 = vld [vmem:[#allocation8 + $0x114] sm:$0xf]  ;;  %v7423_v5 = vld [vmem:[#allocation8 + $0x170] sm:$0xf]  ;;  %v2868_v10 = vmax.f32 %v2548_v14, %v12996_v41 }
 0x363   : > { %5715 = vst [vmem:[#allocation2 + $0x70] sm:$0xff] %v5675_v51  ;;  %v5847_v47 = vpack.c.bf16 %v5831_v49, %v5831_v49  ;;  %v7637_v15 = vld [vmem:[#allocation8 + $0x174] sm:$0xf0]  ;;  %v2867_v2 = vmax.f32 %v2547_v4, %v2827_v40  ;;  %4273 = vmatpush.bf16.msra.mxu3 %v7244_v29  ;;  %6301 = vmatpush.bf16.msrb.mxu0 %v7396_v23  ;;  %v3148_v32 = vsel %vm15045_vm13, %v2908_v1, -inf  ;;  %vm15047_vm1 = vcmp.eq.s32.totalorder %v13162_v25, 1  ;;  %v2589_v36 = vld [vmem:[#allocation2 + $0x13f] sm:$0xff] }
 0x364   : > { %5714 = vst [vmem:[#allocation2 + $0x68] sm:$0xff] %v5674_v43  ;;  %v7388_v51 = vor.u32 %v7626_v57, %v7385_v21  ;;  %v3228_v63 = vld [vmem:[#allocation2 + $0x136] sm:$0xff]  ;;  %v7487_v18 = vld [vmem:[#allocation8 + $0x1f0] sm:$0xf]  ;;  %v3185_v35 = vmax.f32 %v2865_v54, %v3145_v7  ;;  %vm15103_vm14 = vcmp.eq.s32.totalorder %v13102_v9, 1  ;;  %6350 = vmatpush.bf16.msrb.mxu1 %v7460_v31  ;;  %v3147_v60 = vsel %vm15047_vm1, %v2907_v12, -inf  ;;  %v13284_v31 = vpop.permute.xlu2 %2751 }
 0x365   : > { %5863 = vst [vmem:[#allocation4 + $0x4] sm:$0xf] %v5847_v47  ;;  %v7653_v58 = vld [vmem:[#allocation8 + $0x1f4] sm:$0xf0]  ;;  %vm15051_vm8 = vcmp.eq.s32.totalorder %v13224_v55, 1  ;;  %v3187_v39 = vmax.f32 %v2867_v2, %v3147_v60  ;;  %vm15049_vm13 = vcmp.eq.s32.totalorder %v13211_v24, 1  ;;  %v3188_v37 = vmax.f32 %v2868_v10, %v3148_v32 }
 0x366   : > { %5865 = vst [vmem:[#allocation4 + $0x14] sm:$0xf] %v5849_v0  ;;  %vm15048_vm10 = vcmp.eq.s32.totalorder %v13213_v17, 1  ;;  %v3226_v41 = vld [vmem:[#allocation2 + $0x126] sm:$0xff]  ;;  %v2829_v53 = vsel %vm15049_vm13, %v2589_v36, -inf  ;;  %v7424_v28 = vor.u32 %v7637_v15, %v7423_v5  ;;  %v13253_v62 = vld [vmem:[#allocation2 + $0x110] sm:$0xff]  ;;  %v3186_v46 = vmax.f32 %v13206_v27, %v13220_v56 }
 0x367   : > { %v3468_v14 = vsel %vm15048_vm10, %v3228_v63, -inf  ;;  %15934 = vst [vmem:[#allocation40_spill] sm:$0xff] %v13249_v26  ;;  %v15936_v22 = vld [vmem:[#allocation57_spill] sm:$0xff]  ;;  %v3466_v43 = vsel %vm15103_vm14, %v3226_v41, -inf  ;;  %v7572_v61 = vld [vmem:[#allocation4 + $0x74] sm:$0xf]  ;;  %6302 = vmatpush.bf16.msrb.mxu0 %v7388_v51  ;;  %v7380_v49 = vor.u32 %v13231_v48, %v13233_v16  ;;  %v7488_v7 = vor.u32 %v7653_v58, %v7487_v18 }
 0x368   : > { %15935 = vst [vmem:[#allocation115_spill] sm:$0xff] %v13251_v50  ;;  %vm2471_vm1 = vcmp.eq.s32.totalorder %v15936_v22, 1  ;;  %v3229_v38 = vld [vmem:[#allocation2 + $0x13e] sm:$0xff]  ;;  %v13263_v40 = vmax.f32 %v3185_v35, %v12992_v33  ;;  %v13266_v21 = vmax.f32 %v3187_v39, %v13000_v6  ;;  %v13268_v0 = vmax.f32 %v3188_v37, %v3468_v14  ;;  %6199 = vmatpush.bf16.msrb.mxu2 %v7424_v28  ;;  %v7369_v56 = vld [vmem:[#allocation8 + $0x108] sm:$0xf0]  ;;  %v15942_v51 = vld [vmem:[#allocation92_spill] sm:$0xff] }
 0x369   : > { %v7169_v57 = vld [vmem:[#allocation4 + $0x78] sm:$0xf0]  ;;  %v7622_v27 = vld [vmem:[#allocation8 + $0x104] sm:$0xf]  ;;  %vm15052_vm10 = vcmp.eq.s32.totalorder %v13249_v26, 1  ;;  %v2830_v42 = vsel %vm15050_vm6, %v2590_v8, -inf  ;;  %6248 = vmatpush.bf16.msrb.mxu3 %v7488_v7  ;;  %v13280_v54 = vmax.f32 %v3186_v46, %v3466_v43 }
 0x36a   : > { %v15937_v4 = vld [vmem:[#allocation85_spill] sm:$0xff]  ;;  %v2909_v33 = vld [vmem:[#allocation2 + $0x142] sm:$0xff]  ;;  %vm15054_vm13 = vcmp.eq.s32.totalorder %v13251_v50, 1  ;;  %v3469_v12 = vsel %vm15051_vm8, %v3229_v38, -inf  ;;  %v13282_v47 = vor.u32 %v7572_v61, %v7169_v57  ;;  %15940 = vst [vmem:[#allocation117_spill] sm:$0xff] %v13284_v31  ;;  %v2910_v48 = vld [vmem:[#allocation2 + $0x14a] sm:$0xff]  ;;  %v7372_v5 = vor.u32 %v7622_v27, %v7369_v56  ;;  %v13308_v27 = vpop.permute.xlu0 %3385 }
 0x36b   : > { %v15938_v29 = vmax.f32 %v13003_v44, %v15937_v4  ;;  %v8132_v6 = vld [vmem:[#allocation2 + $0x100] sm:$0xff]  ;;  %v3149_v44 = vsel %vm15054_vm13, %v2909_v33, -inf  ;;  %v15941_v16 = vld [vmem:[#allocation65_spill] sm:$0xff]  ;;  %6303 = vmatpush.bf16.msrb.mxu0 %v7380_v49  ;;  %v3150_v2 = vsel %vm15052_vm10, %v2910_v48, -inf  ;;  %v7635_v10 = vld [vmem:[#allocation8 + $0x164] sm:$0xf0]  ;;  %v3625_v39 = vmax.f32 %v13263_v40, %v13266_v21  ;;  %v13306_v49 = vpop.permute.xlu1 %2748 }
 0x36c   : > { %v3621_v1 = vmax.f32 %v8132_v6, %v13253_v62  ;;  %15939 = vst [vmem:[#allocation95_spill] sm:$0xff] %v13282_v47  ;;  %vm15072_vm6 = vcmp.eq.s32.totalorder %v15941_v16, 1  ;;  %v7303_v15 = vld [vmem:[#allocation4] sm:$0xf]  ;;  %4211 = vmatmul.bf16.gmra.mxu3 %v13282_v47  ;;  %v8133_v60 = vld [vmem:[#allocation2 + $0x110] sm:$0xff]  ;;  %v3626_v36 = vmax.f32 %v13280_v54, %v13268_v0  ;;  %v15943_v8 = vld [vmem:[#allocation103_spill] sm:$0xff] }
 0x36d   : > { %v2869_v23 = vmax.f32 %v15938_v29, %v2829_v53  ;;  %v7415_v18 = vld [vmem:[#allocation8 + $0x160] sm:$0xf]  ;;  %v3623_v58 = vmax.f32 %v8133_v60, %v13263_v40  ;;  %v15944_v41 = vld [vmem:[#allocation79_spill] sm:$0xff]  ;;  %v2271_v46 = vld [vmem:[#allocation2 + $0x151] sm:$0xff]  ;;  %15947 = vst [vmem:[#allocation27_spill] sm:$0xff] %v13306_v49  ;;  %vm15053_vm8 = vcmp.eq.s32.totalorder %v13308_v27, 1 }
 0x36e   : > { %v3665_v63 = vmax.f32 %v3621_v1, %v15942_v51  ;;  %v7479_v35 = vld [vmem:[#allocation8 + $0x1e0] sm:$0xf]  ;;  %v15945_v37 = vmax.f32 %v15943_v8, %v15944_v41  ;;  %v7607_v14 = vld [vmem:[#allocation4 + $0x4] sm:$0xf0]  ;;  %v7416_v38 = vor.u32 %v7635_v10, %v7415_v18  ;;  %15948 = vst [vmem:[#allocation22_spill] sm:$0xff] %v13308_v27  ;;  %v13312_v33 = vld [vmem:[#allocation2 + $0x118] sm:$0xff] }
 0x36f   : > { %v3189_v32 = vmax.f32 %v2869_v23, %v3149_v44  ;;  %v7651_v43 = vld [vmem:[#allocation8 + $0x1e4] sm:$0xf0]  ;;  %v13304_v57 = vor.u32 %v7607_v14, %v7303_v15  ;;  %v8134_v4 = vld [vmem:[#allocation2 + $0x100] sm:$0xff]  ;;  %6304 = vmatpush.bf16.msrb.mxu0 %v7372_v5  ;;  %v7449_v1 = vld [vmem:[#allocation8 + $0x1a8] sm:$0xf0]  ;;  %v2511_v44 = vsel %vm2471_vm1, %v2271_v46, -inf  ;;  %v3670_v18 = vmax.f32 %v3626_v36, %v13312_v33 }
 0x370   : > { %v2870_v53 = vmax.f32 %v15945_v37, %v2830_v42  ;;  %v3745_v61 = vmax.f32 %v3665_v63, %v13263_v40  ;;  %v3230_v7 = vld [vmem:[#allocation2 + $0x146] sm:$0xff]  ;;  %v7480_v56 = vor.u32 %v7651_v43, %v7479_v35  ;;  %v3667_v29 = vmax.f32 %v3623_v58, %v8134_v4  ;;  %6200 = vmatpush.bf16.msrb.mxu2 %v7416_v38  ;;  %v15949_v10 = vld [vmem:[#allocation140_spill] sm:$0xff]  ;;  %v13342_v43 = vpop.permute.xlu2 %3388  ;;  %v15962_v52 = vld [vmem:[#allocation53_spill] sm:$0xff] }
 0x371   : > { %v13301_v28 = vmax.f32 %v3189_v32, %v3469_v12  ;;  %15946 = vst [vmem:[#allocation23_spill] sm:$0xff] %v13304_v57  ;;  %v3669_v42 = vmax.f32 %v3625_v39, %v13253_v62  ;;  %v7642_v6 = vld [vmem:[#allocation8 + $0x1a4] sm:$0xf]  ;;  %v8135_v12 = vld [vmem:[#allocation2 + $0x118] sm:$0xff]  ;;  %v3470_v15 = vsel %vm15053_vm8, %v3230_v7, -inf  ;;  %vm15055_vm10 = vcmp.eq.s32.totalorder %v13306_v49, 1 }
 0x372   : > { %v3190_v23 = vmax.f32 %v2870_v53, %v3150_v2  ;;  %v3624_v48 = vmax.f32 %v8135_v12, %v13280_v54  ;;  %6249 = vmatpush.bf16.msrb.mxu3 %v7480_v56  ;;  %v3747_v5 = vmax.f32 %v3667_v29, %v13266_v21  ;;  %v2272_v32 = vld [vmem:[#allocation2 + $0x159] sm:$0xff]  ;;  %v13326_v35 = vmax.f32 %v3745_v61, %v15949_v10  ;;  %v8136_v8 = vld [vmem:[#allocation2 + $0x108] sm:$0xff]  ;;  %v8138_v61 = vld [vmem:[#allocation2 + $0x150] sm:$0xff] }
 0x373   : > { %v3749_v2 = vmax.f32 %v3669_v42, %v13301_v28  ;;  %6305 = vmatmul.bf16.vlgmr.msrb.gmra.mxu0 %v13304_v57  ;;  %v7452_v39 = vor.u32 %v7642_v6, %v7449_v1  ;;  %v3622_v41 = vmax.f32 %v8136_v8, %v13312_v33  ;;  %v2592_v37 = vld [vmem:[#allocation2 + $0x157] sm:$0xff]  ;;  %vm15062_vm8 = vcmp.eq.s32.totalorder %v13284_v31, 1  ;;  %v2591_v53 = vld [vmem:[#allocation2 + $0x14f] sm:$0xff]  ;;  %15950 = vst [vmem:[#allocation72_spill] sm:$0xff] %v13342_v43 }
 0x374   : > { %v13322_v63 = vmax.f32 %v3190_v23, %v3470_v15  ;;  %v13330_v60 = vmax.f32 %v3747_v5, %v15942_v51  ;;  %4375 = vst [vmem:[#allocation2 + $0x100] sm:$0xff] %v13326_v35  ;;  %v8137_v46 = vld [vmem:[#allocation2 + $0x108] sm:$0xff]  ;;  %v2512_v38 = vsel %vm15072_vm6, %v2272_v32, -inf  ;;  %v2551_v7 = vmax.f32 %v8138_v61, %v2511_v44  ;;  %v15952_v42 = vld [vmem:[#allocation144_spill] sm:$0xff]  ;;  %v15981_v25 = vld [vmem:[#allocation73_spill] sm:$0xff] }
 0x375   : > { %v13332_v58 = vmax.f32 %v3749_v2, %v8134_v4  ;;  %v3668_v51 = vmax.f32 %v3624_v48, %v8137_v46  ;;  %v2831_v56 = vsel %vm15055_vm10, %v2591_v53, -inf  ;;  %6351 = vmatpush.bf16.msrb.mxu1 %v7452_v39  ;;  %v15951_v4 = vld [vmem:[#allocation179_spill] sm:$0xff]  ;;  %v15953_v23 = vld [vmem:[#allocation84_spill] sm:$0xff]  ;;  %v2832_v15 = vsel %vm15062_vm8, %v2592_v37, -inf  ;;  %v13363_v2 = vpop.permute.xlu0 %3068  ;;  %v8139_v53 = vld [vmem:[#allocation2 + $0x158] sm:$0xff] }
 0x376   : > { %v3750_v36 = vmax.f32 %v3670_v18, %v13322_v63  ;;  %v3628_v14 = vmax.f32 %v13268_v0, %v13322_v63  ;;  %4377 = vst [vmem:[#allocation2 + $0x110] sm:$0xff] %v13330_v60  ;;  %v3666_v29 = vmax.f32 %v3622_v41, %v15951_v4  ;;  %v4971_v6 = vmax.f32 %v15953_v23, %v15952_v42  ;;  %v13357_v44 = vld [vmem:[#allocation2 + $0xe8] sm:$0xff]  ;;  %v7311_v8 = vld [vmem:[#allocation4 + $0x10] sm:$0xf]  ;;  %v16002_v3 = vld [vmem:[#allocation145_spill] sm:$0xff] }
 0x377   : > { %4379 = vst [vmem:[#allocation2 + $0x120] sm:$0xff] %v13332_v58  ;;  %v3748_v48 = vmax.f32 %v3668_v51, %v13268_v0  ;;  %v3627_v5 = vmax.f32 %v13266_v21, %v13301_v28  ;;  %v15955_v18 = vld [vmem:[#allocation167_spill] sm:$0xff]  ;;  %vm15065_vm13 = vcmp.eq.s32.totalorder %v13342_v43, 1  ;;  %v2871_v39 = vmax.f32 %v2551_v7, %v2831_v56  ;;  %v2911_v41 = vld [vmem:[#allocation2 + $0x152] sm:$0xff] }
 0x378   : > { %v13350_v1 = vmax.f32 %v3750_v36, %v8137_v46  ;;  %v13354_v12 = vmax.f32 %v3628_v14, %v13280_v54  ;;  %15954 = vst [vmem:[#allocation28_spill] sm:$0xff] %v13363_v2  ;;  %v3746_v32 = vmax.f32 %v3666_v29, %v13280_v54  ;;  %v5159_v10 = vpack.c.bf16 %v15955_v18, %v15955_v18  ;;  %v4534_v14 = vld [vmem:[#allocation2 + $0xf7] sm:$0xff]  ;;  %v15956_v61 = vld [vmem:[#allocation143_spill] sm:$0xff] }
 0x379   : > { %vm15059_vm10 = vcmp.eq.s32.totalorder %v13363_v2, 1  ;;  %v13372_v37 = vmax.f32 %v3748_v48, %v15951_v4  ;;  %v2552_v36 = vmax.f32 %v8139_v53, %v2512_v38  ;;  %v4774_v46 = vld [vmem:[#allocation2 + $0xf6] sm:$0xff]  ;;  %v15958_v18 = vld [vmem:[#allocation159_spill] sm:$0xff]  ;;  %v7319_v38 = vld [vmem:[#allocation4 + $0x20] sm:$0xf] }
 0x37a   : > { %4380 = vst [vmem:[#allocation2 + $0x128] sm:$0xff] %v13350_v1  ;;  %v3151_v51 = vsel %vm15059_vm10, %v2911_v41, -inf  ;;  %v13377_v29 = vmax.f32 %v3746_v32, %v15956_v61  ;;  %v15957_v7 = vld [vmem:[#allocation93_spill] sm:$0xff]  ;;  %v13382_v30 = vmax.f32 %v4971_v6, %v15958_v18  ;;  %v3231_v20 = vld [vmem:[#allocation2 + $0x14e] sm:$0xff]  ;;  %v3671_v6 = vmax.f32 %v3627_v5, %v13263_v40  ;;  %v15970_v2 = vld [vmem:[#allocation130_spill] sm:$0xff] }
 0x37b   : > { %v4970_v56 = vmax.f32 %v15957_v7, %v13357_v44  ;;  %5175 = vst [vmem:[#allocation4 + $0x30] sm:$0xf] %v5159_v10  ;;  %v7609_v4 = vld [vmem:[#allocation4 + $0x14] sm:$0xf0]  ;;  %v3191_v48 = vmax.f32 %v2871_v39, %v3151_v51  ;;  %v15959_v53 = vld [vmem:[#allocation175_spill] sm:$0xff]  ;;  %v13387_v41 = vmax.f32 %v2552_v36, %v2832_v15  ;;  %v3471_v32 = vsel %vm15065_vm13, %v3231_v20, -inf  ;;  %v13393_v10 = vpop.permute.xlu1 %3071 }
 0x37c   : > { %4378 = vst [vmem:[#allocation2 + $0x118] sm:$0xff] %v13372_v37  ;;  %v5160_v47 = vpack.c.bf16 %v15959_v53, %v15959_v53  ;;  %v13391_v61 = vor.u32 %v7609_v4, %v7311_v8  ;;  %v4414_v39 = vld [vmem:[#allocation2 + $0xf9] sm:$0xff]  ;;  %v7611_v51 = vld [vmem:[#allocation4 + $0x24] sm:$0xf0]  ;;  %vm15963_vm10 = vcmp.eq.s32.totalorder %v15962_v52, 1  ;;  %v15964_v15 = vld [vmem:[#allocation136_spill] sm:$0xff] }
 0x37d   : > { %15961 = vst [vmem:[#allocation69_spill] sm:$0xff] %v13393_v10  ;;  %v3511_v57 = vmax.f32 %v3191_v48, %v3471_v32  ;;  %v4454_v27 = vsel %vm15963_vm10, %v4414_v39, -inf  ;;  %v4535_v53 = vld [vmem:[#allocation2 + $0xff] sm:$0xff]  ;;  %vm15965_vm8 = vcmp.eq.s32.totalorder %v15964_v15, 1  ;;  %v15966_v20 = vld [vmem:[#allocation87_spill] sm:$0xff]  ;;  %vm15971_vm6 = vcmp.eq.s32.totalorder %v15970_v2, 1 }
 0x37e   : > { %15960 = vst [vmem:[#allocation24_spill] sm:$0xff] %v13391_v61  ;;  %v4574_v36 = vsel %vm15965_vm8, %v4534_v14, -inf  ;;  %v4654_v43 = vld [vmem:[#allocation2 + $0xfa] sm:$0xff]  ;;  %v15969_v55 = vld [vmem:[#allocation131_spill] sm:$0xff]  ;;  %v13409_v48 = vsel %vm15971_vm6, %v4774_v46, -inf  ;;  %v15972_v32 = vld [vmem:[#allocation108_spill] sm:$0xff]  ;;  %v13414_v26 = vor.u32 %v7611_v51, %v7319_v38 }
 0x37f   : > { %4376 = vst [vmem:[#allocation2 + $0x108] sm:$0xff] %v13377_v29  ;;  %v15967_v8 = vld [vmem:[#allocation34_spill] sm:$0xff]  ;;  %4274 = vmatmul.bf16.vlgmr.msra.gmra.mxu3 %v15969_v55  ;;  %v8140_v5 = vld [vmem:[#allocation2 + $0xf8] sm:$0xff]  ;;  %v13412_v39 = vmax.f32 %v4970_v56, %v15972_v32  ;;  %vm3112_vm8 = vcmp.eq.s32.totalorder %v13393_v10, 1  ;;  %v3629_v14 = vmax.f32 %v13301_v28, %v3511_v57  ;;  %v15976_v19 = vld [vmem:[#allocation147_spill] sm:$0xff] }
 0x380   : > { %vm15968_vm13 = vcmp.eq.s32.totalorder %v15967_v8, 1  ;;  %v4494_v17 = vmax.f32 %v8140_v5, %v4454_v27  ;;  %15973 = vst [vmem:[#allocation64_spill] sm:$0xff] %v13414_v26  ;;  %v3751_v8 = vmax.f32 %v3671_v6, %v3511_v57  ;;  %v15974_v5 = vld [vmem:[#allocation153_spill] sm:$0xff]  ;;  %vm15977_vm6 = vcmp.eq.s32.totalorder %v15976_v19, 1  ;;  %v16104_v10 = vld [vmem:[#allocation22_spill] sm:$0xff] }
 0x381   : > { %v13404_v4 = vsel %vm15968_vm13, %v15966_v20, -inf  ;;  %5176 = vst [vmem:[#allocation4 + $0x38] sm:$0xf] %v5160_v47  ;;  %v13418_v20 = vld [vmem:[#allocation2 + $0x18] sm:$0xff]  ;;  %v4419_v27 = vld [vmem:[#allocation2 + $0x121] sm:$0xff]  ;;  %vm15975_vm10 = vcmp.eq.s32.totalorder %v15974_v5, 1 }
 0x382   : > { %v3631_v55 = vmax.f32 %v3511_v57, %v13418_v20  ;;  %v4575_v46 = vsel %vm15975_vm10, %v4535_v53, -inf  ;;  %v13423_v50 = vmax.f32 %v4494_v17, %v4574_v36  ;;  %v4659_v56 = vld [vmem:[#allocation2 + $0x122] sm:$0xff]  ;;  %v13427_v38 = vsel %vm15977_vm6, %v4654_v43, -inf  ;;  %v15987_v51 = vld [vmem:[#allocation49_spill] sm:$0xff] }
 0x383   : > { %v13429_v47 = vld [vmem:[#allocation2 + $0x88] sm:$0xff]  ;;  %v4459_v31 = vsel %vm2465_vm2, %v4419_v27, -inf  ;;  %v3673_v57 = vmax.f32 %v3629_v14, %v13266_v21  ;;  %v13438_v17 = vmax.f32 %v3751_v8, %v13253_v62  ;;  %v4417_v36 = vld [vmem:[#allocation2 + $0x111] sm:$0xff]  ;;  %v4418_v43 = vld [vmem:[#allocation2 + $0x119] sm:$0xff]  ;;  %v13443_v45 = vsel %vm15090_vm9, %v4659_v56, -inf  ;;  %6310 = vmatmul.bf16.gmra.mxu0 %v13391_v61 }
 0x384   : > { %v3675_v6 = vmax.f32 %v3631_v55, %v13301_v28  ;;  %v4499_v53 = vmax.f32 %v13332_v58, %v4459_v31  ;;  %v4538_v49 = vld [vmem:[#allocation2 + $0x117] sm:$0xff]  ;;  %vm15982_vm13 = vcmp.eq.s32.totalorder %v15981_v25, 1  ;;  %vm15988_vm9 = vcmp.eq.s32.totalorder %v15987_v51, 1 }
 0x385   : > { %15979 = vst [vmem:[#allocation25_spill] sm:$0xff] %v13438_v17  ;;  %v15980_v27 = vld [vmem:[#allocation180_spill] sm:$0xff]  ;;  %v3753_v28 = vmax.f32 %v3673_v57, %v13418_v20 }
 0x386   : > { %v5398_v14 = vsel %vm15982_vm13, %v15980_v27, -inf  ;;  %v3755_v62 = vmax.f32 %v3675_v6, %v13418_v20  ;;  %4381 = vst [vmem:[#allocation2 + $0x130] sm:$0xff] %v13438_v17  ;;  %v4415_v31 = vld [vmem:[#allocation2 + $0x101] sm:$0xff]  ;;  %v4416_v58 = vld [vmem:[#allocation2 + $0x109] sm:$0xff] }
 0x387   : > { %v15983_v55 = vld [vmem:[#allocation56_spill] sm:$0xff]  ;;  %v4536_v24 = vld [vmem:[#allocation2 + $0x107] sm:$0xff]  ;;  %v4455_v25 = vsel %vm15988_vm9, %v4415_v31, -inf  ;;  %v4539_v17 = vld [vmem:[#allocation2 + $0x11f] sm:$0xff] }
 0x388   : > { %vm15984_vm10 = vcmp.eq.s32.totalorder %v15983_v55, 1  ;;  %v15985_v56 = vld [vmem:[#allocation52_spill] sm:$0xff]  ;;  %v4495_v61 = vmax.f32 %v13326_v35, %v4455_v25  ;;  %v4655_v31 = vld [vmem:[#allocation2 + $0x102] sm:$0xff]  ;;  %v2912_v35 = vld [vmem:[#allocation2 + $0x15a] sm:$0xff] }
 0x389   : > { %v4457_v8 = vsel %vm15984_vm10, %v4417_v36, -inf  ;;  %vm15986_vm6 = vcmp.eq.s32.totalorder %v15985_v56, 1  ;;  %v15989_v27 = vld [vmem:[#allocation48_spill] sm:$0xff]  ;;  %v13465_v36 = vmax.f32 %v3753_v28, %v13263_v40  ;;  %v4658_v28 = vld [vmem:[#allocation2 + $0x11a] sm:$0xff]  ;;  %v4776_v19 = vld [vmem:[#allocation2 + $0x106] sm:$0xff] }
 0x38a   : > { %v4458_v34 = vsel %vm15986_vm6, %v4418_v43, -inf  ;;  %vm15990_vm13 = vcmp.eq.s32.totalorder %v15989_v27, 1  ;;  %v4497_v6 = vmax.f32 %v13330_v60, %v4457_v8  ;;  %v4537_v22 = vld [vmem:[#allocation2 + $0x10f] sm:$0xff]  ;;  %v13468_v43 = vmax.f32 %v3755_v62, %v13266_v21  ;;  %v15994_v8 = vld [vmem:[#allocation170_spill] sm:$0xff] }
 0x38b   : > { %v4456_v57 = vsel %vm15990_vm13, %v4416_v58, -inf  ;;  %v4498_v16 = vmax.f32 %v13372_v37, %v4458_v34  ;;  %15991 = vst [vmem:[#allocation61_spill] sm:$0xff] %v13465_v36  ;;  %v4656_v55 = vld [vmem:[#allocation2 + $0x10a] sm:$0xff]  ;;  %v4657_v27 = vld [vmem:[#allocation2 + $0x112] sm:$0xff]  ;;  %vm15995_vm10 = vcmp.eq.s32.totalorder %v15994_v8, 1  ;;  %v4579_v21 = vsel %vm2785_vm11, %v4539_v17, -inf }
 0x38c   : > { %v4496_v56 = vmax.f32 %v13377_v29, %v4456_v57  ;;  %v15992_v58 = vld [vmem:[#allocation152_spill] sm:$0xff]  ;;  %v4577_v34 = vsel %vm15995_vm10, %v4537_v22, -inf  ;;  %v15996_v37 = vld [vmem:[#allocation169_spill] sm:$0xff]  ;;  %4383 = vst [vmem:[#allocation2 + $0x140] sm:$0xff] %v13465_v36  ;;  %v4615_v29 = vmax.f32 %v4495_v61, %v4575_v46  ;;  %v4540_v22 = vld [vmem:[#allocation2 + $0x127] sm:$0xff]  ;;  %v4619_v8 = vmax.f32 %v4499_v53, %v4579_v21  ;;  %v13490_v36 = vpop.f32.mrf.mxu3 }
 0x38d   : > { %vm15993_vm9 = vcmp.eq.s32.totalorder %v15992_v58, 1  ;;  %vm15997_vm6 = vcmp.eq.s32.totalorder %v15996_v37, 1  ;;  %v13480_v62 = vld [vmem:[#allocation2 + $0x156] sm:$0xff]  ;;  %v4617_v57 = vmax.f32 %v4497_v6, %v4577_v34  ;;  %v15998_v37 = vld [vmem:[#allocation135_spill] sm:$0xff]  ;;  %vm16003_vm10 = vcmp.eq.s32.totalorder %v16002_v3, 1  ;;  %16004 = vst [vmem:[#allocation60_spill] sm:$0xff] %v13490_v36 }
 0x38e   : > { %v4576_v60 = vsel %vm15993_vm9, %v4536_v24, -inf  ;;  %v4578_v40 = vsel %vm15997_vm6, %v4538_v49, -inf  ;;  %v4775_v24 = vld [vmem:[#allocation2 + $0xfe] sm:$0xff]  ;;  %4385 = vst [vmem:[#allocation2 + $0x150] sm:$0xff] %v13468_v43  ;;  %vm15999_vm13 = vcmp.eq.s32.totalorder %v15998_v37, 1  ;;  %vm16001_vm9 = vcmp.eq.s32.totalorder %v16000_v13, 1 }
 0x38f   : > { %v4616_v25 = vmax.f32 %v4496_v56, %v4576_v60  ;;  %v4618_v58 = vmax.f32 %v4498_v16, %v4578_v40  ;;  %v4695_v49 = vsel %vm15999_vm13, %v4655_v31, -inf  ;;  %v4696_v17 = vsel %vm16001_vm9, %v4656_v55, -inf  ;;  %v16005_v61 = vld [vmem:[#allocation174_spill] sm:$0xff]  ;;  %v4777_v60 = vld [vmem:[#allocation2 + $0x10e] sm:$0xff]  ;;  %v4778_v53 = vld [vmem:[#allocation2 + $0x116] sm:$0xff] }
 0x390   : > { %v4697_v2 = vsel %vm16003_vm10, %v4657_v27, -inf  ;;  %vm16006_vm6 = vcmp.eq.s32.totalorder %v16005_v61, 1  ;;  %v4735_v46 = vmax.f32 %v4615_v29, %v4695_v49  ;;  %v4779_v34 = vld [vmem:[#allocation2 + $0x11e] sm:$0xff]  ;;  %v13496_v31 = vsel %vm3112_vm8, %v2912_v35, -inf  ;;  %v4420_v55 = vld [vmem:[#allocation2 + $0x129] sm:$0xff] }
 0x391   : > { %v4698_v16 = vsel %vm16006_vm6, %v4658_v28, -inf  ;;  %v4736_v56 = vmax.f32 %v4616_v25, %v4696_v17  ;;  %v4737_v6 = vmax.f32 %v4617_v57, %v4697_v2  ;;  %v4739_v27 = vmax.f32 %v4619_v8, %v13443_v45  ;;  %v16007_v21 = vld [vmem:[#allocation158_spill] sm:$0xff]  ;;  %v4660_v25 = vld [vmem:[#allocation2 + $0x12a] sm:$0xff] }
 0x392   : > { %v4738_v40 = vmax.f32 %v4618_v58, %v4698_v16  ;;  %vm16008_vm13 = vcmp.eq.s32.totalorder %v16007_v21, 1  ;;  %v4460_v28 = vsel %vm2466_vm5, %v4420_v55, -inf  ;;  %v4580_v2 = vsel %vm2786_vm4, %v4540_v22, -inf  ;;  %v16011_v57 = vld [vmem:[#allocation139_spill] sm:$0xff]  ;;  %v16014_v58 = vld [vmem:[#allocation173_spill] sm:$0xff] }
 0x393   : > { %v4815_v36 = vsel %vm16008_vm13, %v4775_v24, -inf  ;;  %vm16012_vm9 = vcmp.eq.s32.totalorder %v16011_v57, 1  ;;  %v16013_v35 = vmax.f32 %v13429_v47, %v13404_v4  ;;  %v4500_v45 = vmax.f32 %v13350_v1, %v4460_v28  ;;  %v16016_v24 = vld [vmem:[#allocation149_spill] sm:$0xff]  ;;  %v4780_v61 = vld [vmem:[#allocation2 + $0x126] sm:$0xff]  ;;  %6315 = vmatmul.bf16.gmra.mxu0 %v13414_v26 }
 0x394   : > { %v4816_v49 = vsel %vm16012_vm9, %v4776_v19, -inf  ;;  %vm16015_vm10 = vcmp.eq.s32.totalorder %v16014_v58, 1  ;;  %vm16017_vm6 = vcmp.eq.s32.totalorder %v16016_v24, 1  ;;  %v4819_v22 = vsel %vm3425_vm12, %v4779_v34, -inf  ;;  %v16048_v26 = vld [vmem:[#allocation127_spill] sm:$0xff]  ;;  %v16076_v58 = vld [vmem:[#allocation157_spill] sm:$0xff] }
 0x395   : > { %v13510_v17 = vmax.f32 %v16013_v35, %v5398_v14  ;;  %v4817_v8 = vsel %vm16015_vm10, %v4777_v60, -inf  ;;  %v4818_v16 = vsel %vm16017_vm6, %v4778_v53, -inf  ;;  %v16019_v19 = vmax.f32 %v13423_v50, %v13427_v38  ;;  %v16020_v14 = vld [vmem:[#allocation150_spill] sm:$0xff]  ;;  %v8143_v35 = vld [vmem:[#allocation2 + $0xe8] sm:$0xff] }
 0x396   : > { %v13525_v4 = vmax.f32 %v4735_v46, %v4815_v36  ;;  %v13527_v47 = vmax.f32 %v4736_v56, %v4816_v49  ;;  %v13529_v1 = vmax.f32 %v4737_v6, %v4817_v8  ;;  %4279 = vmatmul.bf16.gmra.mxu3 %v16020_v14  ;;  %v4620_v60 = vmax.f32 %v4500_v45, %v4580_v2  ;;  %v13545_v46 = vpop.permute.xlu0 %3391 }
 0x397   : > { %v13523_v29 = vmax.f32 %v16019_v19, %v13409_v48  ;;  %v4700_v53 = vsel %vm3106_vm3, %v4660_v25, -inf  ;;  %v13534_v34 = vmax.f32 %v4738_v40, %v4818_v16  ;;  %v13536_v28 = vmax.f32 %v4739_v27, %v4819_v22  ;;  %v13563_v22 = vpop.f32.mrf.mxu3 }
 0x398   : > { %v4973_v48 = vmax.f32 %v15952_v42, %v13525_v4  ;;  %v4975_v36 = vmax.f32 %v13525_v4, %v13529_v1  ;;  %v4740_v56 = vmax.f32 %v4620_v60, %v4700_v53  ;;  %v4820_v6 = vsel %vm15103_vm14, %v4780_v61, -inf  ;;  %16021 = vst [vmem:[#allocation182_spill] sm:$0xff] %v13563_v22 }
 0x399   : > { %v4972_v50 = vmax.f32 %v8143_v35, %v13523_v29  ;;  %v4974_v38 = vmax.f32 %v13523_v29, %v13527_v47  ;;  %v4976_v40 = vmax.f32 %v13527_v47, %v13534_v34  ;;  %v5094_v27 = vmax.f32 %v13412_v39, %v13523_v29 }
 0x39a   : > { %v5017_v25 = vmax.f32 %v4973_v48, %v15953_v23  ;;  %v5019_v45 = vmax.f32 %v4975_v36, %v15952_v42  ;;  %v13557_v8 = vmax.f32 %v4740_v56, %v4820_v6  ;;  %v5095_v61 = vmax.f32 %v13382_v30, %v13525_v4  ;;  %v16023_v30 = vld [vmem:[#allocation138_spill] sm:$0xff] }
 0x39b   : > { %v5016_v2 = vmax.f32 %v4972_v50, %v15957_v7  ;;  %v5018_v49 = vmax.f32 %v4974_v38, %v13357_v44  ;;  %v5020_v16 = vmax.f32 %v4976_v40, %v13523_v29  ;;  %vm3432_vm13 = vcmp.eq.s32.totalorder %v13545_v46, 1  ;;  %v16022_v50 = vld [vmem:[#allocation160_spill] sm:$0xff] }
 0x39c   : > { %v5097_v19 = vmax.f32 %v5017_v25, %v13529_v1  ;;  %v5099_v60 = vmax.f32 %v5019_v45, %v13536_v28  ;;  %v4978_v53 = vmax.f32 %v13534_v34, %v13557_v8  ;;  %v13573_v48 = vmax.f32 %v5094_v27, %v16022_v50  ;;  %v16027_v25 = vld [vmem:[#allocation154_spill] sm:$0xff] }
 0x39d   : > { %v5096_v39 = vmax.f32 %v5016_v2, %v13527_v47  ;;  %v5098_v14 = vmax.f32 %v5018_v49, %v13534_v34  ;;  %v5100_v35 = vmax.f32 %v5020_v16, %v13557_v8  ;;  %v13576_v38 = vmax.f32 %v5095_v61, %v16023_v30  ;;  %v16030_v61 = vld [vmem:[#allocation107_spill] sm:$0xff]  ;;  %v16035_v30 = vld [vmem:[#allocation162_spill] sm:$0xff] }
 0x39e   : > { %v3192_v36 = vmax.f32 %v13387_v41, %v13496_v31  ;;  %v13585_v6 = vmax.f32 %v5097_v19, %v15958_v18  ;;  %v13588_v40 = vmax.f32 %v4978_v53, %v13527_v47  ;;  %5208 = vst [vmem:[#allocation2 + $0xd8] sm:$0xff] %v13573_v48  ;;  %v3472_v2 = vsel %vm3432_vm13, %v13480_v62, -inf  ;;  %v16028_v41 = vld [vmem:[#allocation94_spill] sm:$0xff] }
 0x39f   : > { %16024 = vst [vmem:[#allocation181_spill] sm:$0xff] %v13576_v38  ;;  %v13582_v56 = vmax.f32 %v5096_v39, %v15972_v32  ;;  %v13591_v27 = vmax.f32 %v5098_v14, %v15957_v7  ;;  %vm16029_vm9 = vcmp.eq.s32.totalorder %v16028_v41, 1  ;;  %v13601_v31 = vmax.f32 %v5099_v60, %v15953_v23  ;;  %v13630_v53 = vpop.f32.mrf.mxu3  ;;  %v4781_v41 = vld [vmem:[#allocation2 + $0x12e] sm:$0xff] }
 0x3a0   : > { %16026 = vst [vmem:[#allocation31_spill] sm:$0xff] %v13585_v6  ;;  %v5518_v32 = vsel %vm16029_vm9, %v16027_v25, -inf  ;;  %v3512_v18 = vmax.f32 %v3192_v36, %v3472_v2  ;;  %v13606_v7 = vmax.f32 %v5100_v35, %v13357_v44  ;;  %v7613_v36 = vld [vmem:[#allocation4 + $0x34] sm:$0xf0]  ;;  %v4541_v2 = vld [vmem:[#allocation2 + $0x12f] sm:$0xff]  ;;  %vm16040_vm9 = vcmp.eq.s32.totalorder %v15962_v52, 1 }
 0x3a1   : > { %16025 = vst [vmem:[#allocation156_spill] sm:$0xff] %v13582_v56  ;;  %v5558_v49 = vmax.f32 %v13510_v17, %v5518_v32  ;;  %v5168_v23 = vpack.c.bf16 %v13591_v27, %v13591_v27  ;;  %v16031_v17 = vld [vmem:[#allocation105_spill] sm:$0xff]  ;;  %v7327_v25 = vld [vmem:[#allocation4 + $0x30] sm:$0xf]  ;;  %v4977_v32 = vmax.f32 %v13529_v1, %v13536_v28  ;;  %vm16059_vm14 = vcmp.eq.s32.totalorder %v16007_v21, 1 }
 0x3a2   : > { %5209 = vst [vmem:[#allocation2 + $0xe0] sm:$0xff] %v13576_v38  ;;  %v3630_v62 = vmax.f32 %v13322_v63, %v3512_v18  ;;  %v3632_v45 = vmax.f32 %v3512_v18, %v13418_v20  ;;  %v3752_v16 = vmax.f32 %v13354_v12, %v3512_v18  ;;  %vm16032_vm10 = vcmp.eq.s32.totalorder %v16031_v17, 1  ;;  %v13627_v12 = vpop.f32.mrf.mxu2  ;;  %v13652_v17 = vld [vmem:[#allocation2 + $0xa0] sm:$0xff]  ;;  %v13688_v38 = vld [vmem:[#allocation2 + $0xc8] sm:$0xff] }
 0x3a3   : > { %5210 = vst [vmem:[#allocation2 + $0xe8] sm:$0xff] %v13582_v56  ;;  %v5638_v44 = vsel %vm16032_vm10, %v16030_v61, -inf  ;;  %vm16042_vm10 = vcmp.eq.s32.totalorder %v15987_v51, 1  ;;  %v13677_v52 = vmax.f32 %v4977_v32, %v13525_v4 }
 0x3a4   : > { %5211 = vst [vmem:[#allocation2 + $0xf0] sm:$0xff] %v13585_v6  ;;  %v3674_v39 = vmax.f32 %v3630_v62, %v13268_v0  ;;  %v3676_v19 = vmax.f32 %v3632_v45, %v13322_v63  ;;  %v13623_v14 = vmax.f32 %v3752_v16, %v13312_v33  ;;  %v13625_v60 = vmax.f32 %v5558_v49, %v5638_v44  ;;  %v16036_v45 = vld [vmem:[#allocation45_spill] sm:$0xff]  ;;  %v13654_v44 = vld [vmem:[#allocation2 + $0xb0] sm:$0xff] }
 0x3a5   : > { %5212 = vst [vmem:[#allocation2 + $0xf8] sm:$0xff] %v13591_v27  ;;  %vm16037_vm6 = vcmp.eq.s32.totalorder %v16036_v45, 1  ;;  %v13667_v45 = vsel %vm15102_vm7, %v4781_v41, -inf }
 0x3a6   : > { %5213 = vst [vmem:[#allocation2 + $0x100] sm:$0xff] %v13601_v31  ;;  %v3754_v35 = vmax.f32 %v3674_v39, %v13418_v20  ;;  %v3756_v50 = vmax.f32 %v3676_v19, %v13418_v20  ;;  %4284 = vmatmul.bf16.gmra.mxu3 %v16035_v30  ;;  %v13660_v19 = vsel %vm2787_vm15, %v4541_v2, -inf }
 0x3a7   : > { %16033 = vst [vmem:[#allocation176_spill] sm:$0xff] %v13627_v12  ;;  %v16043_v12 = vld [vmem:[#allocation137_spill] sm:$0xff] }
 0x3a8   : > { %5214 = vst [vmem:[#allocation2 + $0x108] sm:$0xff] %v13606_v7  ;;  %v13637_v33 = vmax.f32 %v3754_v35, %v13280_v54  ;;  %v13640_v63 = vmax.f32 %v3756_v50, %v13268_v0  ;;  %v13648_v0 = vor.u32 %v7613_v36, %v7327_v25 }
 0x3a9   : > { %16034 = vst [vmem:[#allocation32_spill] sm:$0xff] %v13630_v53 }
 0x3aa   : > { %4382 = vst [vmem:[#allocation2 + $0x138] sm:$0xff] %v13623_v14  ;;  %6320 = vmatmul.bf16.gmra.mxu0 %v13648_v0 }
 0x3ab   : > { %5184 = vst [vmem:[#allocation4 + $0x78] sm:$0xf] %v5168_v23  ;;  %v5371_v49 = vld [vmem:[#allocation2 + $0xef] sm:$0xff]  ;;  %v16039_v23 = vld [vmem:[#allocation118_spill] sm:$0xff] }
 0x3ac   : > { %5718 = vst [vmem:[#allocation2 + $0x88] sm:$0xff] %v13625_v60  ;;  %v5251_v18 = vld [vmem:[#allocation2 + $0xf1] sm:$0xff]  ;;  %v5161_v61 = vpack.c.bf16 %v16039_v23, %v16039_v23 }
 0x3ad   : > { %v5252_v62 = vld [vmem:[#allocation2 + $0xf9] sm:$0xff]  ;;  %v5291_v16 = vsel %vm16037_vm6, %v5251_v18, -inf  ;;  %4384 = vst [vmem:[#allocation2 + $0x148] sm:$0xff] %v13637_v33  ;;  %vm16044_vm6 = vcmp.eq.s32.totalorder %v16043_v12, 1  ;;  %v13682_v12 = vpop.f32.mrf.mxu2 }
 0x3ae   : > { %v5372_v54 = vld [vmem:[#allocation2 + $0xf7] sm:$0xff]  ;;  %16038 = vst [vmem:[#allocation146_spill] sm:$0xff] %v13648_v0  ;;  %v5292_v50 = vsel %vm16040_vm9, %v5252_v62, -inf  ;;  %v5331_v30 = vmax.f32 %v13585_v6, %v5291_v16  ;;  %v5373_v36 = vld [vmem:[#allocation2 + $0xff] sm:$0xff]  ;;  %v5411_v2 = vsel %vm16044_vm6, %v5371_v49, -inf  ;;  %vm16045_vm9 = vcmp.eq.s32.totalorder %v15964_v15, 1 }
 0x3af   : > { %v5253_v35 = vld [vmem:[#allocation2 + $0x101] sm:$0xff]  ;;  %v5491_v25 = vld [vmem:[#allocation2 + $0xf2] sm:$0xff]  ;;  %v5332_v39 = vmax.f32 %v13591_v27, %v5292_v50  ;;  %4386 = vst [vmem:[#allocation2 + $0x158] sm:$0xff] %v13640_v63  ;;  %v5412_v51 = vsel %vm16045_vm9, %v5372_v54, -inf  ;;  %vm16049_vm6 = vcmp.eq.s32.totalorder %v16048_v26, 1  ;;  %v13698_v26 = vld [vmem:[#allocation2 + $0xe9] sm:$0xff] }
 0x3b0   : > { %v5293_v23 = vsel %vm16042_vm10, %v5253_v35, -inf  ;;  %v5492_v53 = vld [vmem:[#allocation2 + $0xfa] sm:$0xff]  ;;  %v5493_v22 = vld [vmem:[#allocation2 + $0x102] sm:$0xff]  ;;  %v5451_v62 = vmax.f32 %v5331_v30, %v5411_v2  ;;  %v5611_v16 = vld [vmem:[#allocation2 + $0xee] sm:$0xff]  ;;  %16046 = vst [vmem:[#allocation83_spill] sm:$0xff] %v13682_v12  ;;  %vm16047_vm10 = vcmp.eq.s32.totalorder %v15974_v5, 1 }
 0x3b1   : > { %v5333_v41 = vmax.f32 %v13601_v31, %v5293_v23  ;;  %v5612_v27 = vld [vmem:[#allocation2 + $0xf6] sm:$0xff]  ;;  %v5613_v35 = vld [vmem:[#allocation2 + $0xfe] sm:$0xff]  ;;  %v5413_v49 = vsel %vm16047_vm10, %v5373_v36, -inf  ;;  %v5452_v50 = vmax.f32 %v5332_v39, %v5412_v51  ;;  %v5531_v0 = vsel %vm16049_vm6, %v5491_v25, -inf  ;;  %5177 = vst [vmem:[#allocation4 + $0x40] sm:$0xf] %v5161_v61  ;;  %v13692_v31 = vpop.f32.mrf.mxu3 }
 0x3b2   : > { %v4421_v32 = vld [vmem:[#allocation2 + $0x131] sm:$0xff]  ;;  %v4422_v6 = vld [vmem:[#allocation2 + $0x139] sm:$0xff]  ;;  %16050 = vst [vmem:[#allocation67_spill] sm:$0xff] %v13692_v31  ;;  %v16051_v30 = vld [vmem:[#allocation147_spill] sm:$0xff]  ;;  %vm16053_vm10 = vcmp.eq.s32.totalorder %v15998_v37, 1  ;;  %v5571_v39 = vmax.f32 %v5451_v62, %v5531_v0  ;;  %v5653_v61 = vsel %vm16059_vm14, %v5613_v35, -inf }
 0x3b3   : > { %v5453_v54 = vmax.f32 %v5333_v41, %v5413_v49  ;;  %vm16052_vm9 = vcmp.eq.s32.totalorder %v16051_v30, 1  ;;  %v5533_v5 = vsel %vm16053_vm10, %v5493_v22, -inf  ;;  %16054 = vst [vmem:[#allocation177_spill] sm:$0xff] %v13698_v26  ;;  %v16055_v25 = vld [vmem:[#allocation141_spill] sm:$0xff]  ;;  %v16057_v51 = vld [vmem:[#allocation130_spill] sm:$0xff]  ;;  %v4461_v0 = vsel %vm2467_vm0, %v4421_v32, -inf }
 0x3b4   : > { %v5532_v23 = vsel %vm16052_vm9, %v5492_v53, -inf  ;;  %vm16056_vm6 = vcmp.eq.s32.totalorder %v16055_v25, 1  ;;  %vm16058_vm7 = vcmp.eq.s32.totalorder %v16057_v51, 1  ;;  %v4542_v41 = vld [vmem:[#allocation2 + $0x137] sm:$0xff]  ;;  %v4423_v53 = vld [vmem:[#allocation2 + $0x141] sm:$0xff]  ;;  %v4424_v37 = vld [vmem:[#allocation2 + $0x149] sm:$0xff] }
 0x3b5   : > { %v5572_v36 = vmax.f32 %v5452_v50, %v5532_v23  ;;  %v5651_v2 = vsel %vm16056_vm6, %v5611_v16, -inf  ;;  %v5652_v15 = vsel %vm16058_vm7, %v5612_v27, -inf  ;;  %v5573_v49 = vmax.f32 %v5453_v54, %v5533_v5  ;;  %v16062_v62 = vld [vmem:[#allocation54_spill] sm:$0xff]  ;;  %v13712_v16 = vld [vmem:[#allocation2 + $0xea] sm:$0xff]  ;;  %v16070_v5 = vld [vmem:[#allocation25_spill] sm:$0xff] }
 0x3b6   : > { %v13706_v30 = vmax.f32 %v5571_v39, %v5651_v2  ;;  %vm16063_vm9 = vcmp.eq.s32.totalorder %v16062_v62, 1  ;;  %v4543_v23 = vld [vmem:[#allocation2 + $0x13f] sm:$0xff]  ;;  %16064 = vst [vmem:[#allocation29_spill] sm:$0xff] %v13712_v16  ;;  %v4501_v39 = vmax.f32 %v16070_v5, %v4461_v0  ;;  %v4544_v2 = vld [vmem:[#allocation2 + $0x147] sm:$0xff]  ;;  %v4545_v51 = vld [vmem:[#allocation2 + $0x14f] sm:$0xff]  ;;  %vm16077_vm6 = vcmp.eq.s32.totalorder %v16076_v58, 1 }
 0x3b7   : > { %v4462_v50 = vsel %vm16063_vm9, %v4422_v6, -inf  ;;  %v13714_v25 = vmax.f32 %v5572_v36, %v5652_v15  ;;  %v16066_v27 = vld [vmem:[#allocation62_spill] sm:$0xff]  ;;  %v13725_v6 = vmax.f32 %v5573_v49, %v5653_v61  ;;  %v4425_v31 = vld [vmem:[#allocation2 + $0x151] sm:$0xff]  ;;  %v4582_v61 = vsel %vm16077_vm6, %v4542_v41, -inf }
 0x3b8   : > { %16060 = vst [vmem:[#allocation77_spill] sm:$0xff] %v13706_v30  ;;  %vm16067_vm7 = vcmp.eq.s32.totalorder %v16066_v27, 1  ;;  %v16068_v35 = vld [vmem:[#allocation58_spill] sm:$0xff]  ;;  %v4502_v15 = vmax.f32 %v13623_v14, %v4462_v50  ;;  %v16072_v36 = vld [vmem:[#allocation61_spill] sm:$0xff]  ;;  %v4465_v0 = vsel %vm2471_vm1, %v4425_v31, -inf  ;;  %v16078_v49 = vld [vmem:[#allocation88_spill] sm:$0xff]  ;;  %v4621_v59 = vmax.f32 %v4501_v39, %v13660_v19  ;;  %v13756_v19 = vpop.f32.mrf.mxu2 }
 0x3b9   : > { %16065 = vst [vmem:[#allocation26_spill] sm:$0xff] %v13714_v25  ;;  %v4463_v21 = vsel %vm16067_vm7, %v4423_v53, -inf  ;;  %vm16069_vm14 = vcmp.eq.s32.totalorder %v16068_v35, 1  ;;  %v13721_v12 = vld [vmem:[#allocation2 + $0x107] sm:$0xff]  ;;  %v4426_v16 = vld [vmem:[#allocation2 + $0x159] sm:$0xff]  ;;  %vm16079_vm9 = vcmp.eq.s32.totalorder %v16078_v49, 1 }
 0x3ba   : > { %v4464_v54 = vsel %vm16069_vm14, %v4424_v37, -inf  ;;  %v13723_v32 = vld [vmem:[#allocation2 + $0x106] sm:$0xff]  ;;  %16071 = vst [vmem:[#allocation35_spill] sm:$0xff] %v13725_v6  ;;  %v4503_v56 = vmax.f32 %v16072_v36, %v4463_v21  ;;  %v4546_v26 = vld [vmem:[#allocation2 + $0x157] sm:$0xff]  ;;  %v4583_v18 = vsel %vm16079_vm9, %v4543_v23, -inf  ;;  %v4505_v21 = vmax.f32 %v13468_v43, %v4465_v0 }
 0x3bb   : > { %v4504_v53 = vmax.f32 %v13637_v33, %v4464_v54  ;;  %5731 = vst [vmem:[#allocation2 + $0xf0] sm:$0xff] %v13706_v30  ;;  %v16074_v5 = vld [vmem:[#allocation65_spill] sm:$0xff]  ;;  %v16080_v54 = vld [vmem:[#allocation74_spill] sm:$0xff]  ;;  %v16082_v30 = vld [vmem:[#allocation27_spill] sm:$0xff]  ;;  %v4622_v49 = vmax.f32 %v4502_v15, %v4582_v61 }
 0x3bc   : > { %vm16075_vm10 = vcmp.eq.s32.totalorder %v16074_v5, 1  ;;  %v4661_v14 = vld [vmem:[#allocation2 + $0x132] sm:$0xff]  ;;  %v4662_v50 = vld [vmem:[#allocation2 + $0x13a] sm:$0xff]  ;;  %vm16081_vm7 = vcmp.eq.s32.totalorder %v16080_v54, 1  ;;  %vm16083_vm14 = vcmp.eq.s32.totalorder %v16082_v30, 1  ;;  %v4663_v9 = vld [vmem:[#allocation2 + $0x142] sm:$0xff]  ;;  %v4623_v43 = vmax.f32 %v4503_v56, %v4583_v18 }
 0x3bd   : > { %v4466_v24 = vsel %vm16075_vm10, %v4426_v16, -inf  ;;  %v4584_v36 = vsel %vm16081_vm7, %v4544_v2, -inf  ;;  %v4585_v31 = vsel %vm16083_vm14, %v4545_v51, -inf  ;;  %v4664_v16 = vld [vmem:[#allocation2 + $0x14a] sm:$0xff]  ;;  %v4665_v55 = vld [vmem:[#allocation2 + $0x152] sm:$0xff]  ;;  %5732 = vst [vmem:[#allocation2 + $0xf8] sm:$0xff] %v13714_v25 }
 0x3be   : > { %v4506_v33 = vmax.f32 %v13640_v63, %v4466_v24  ;;  %v16084_v41 = vld [vmem:[#allocation117_spill] sm:$0xff]  ;;  %5733 = vst [vmem:[#allocation2 + $0x100] sm:$0xff] %v13725_v6  ;;  %v16086_v24 = vld [vmem:[#allocation171_spill] sm:$0xff]  ;;  %v4624_v63 = vmax.f32 %v4504_v53, %v4584_v36  ;;  %v4625_v2 = vmax.f32 %v4505_v21, %v4585_v31  ;;  %v16091_v56 = vld [vmem:[#allocation82_spill] sm:$0xff] }
 0x3bf   : > { %vm16085_vm10 = vcmp.eq.s32.totalorder %v16084_v41, 1  ;;  %v4666_v0 = vld [vmem:[#allocation2 + $0x15a] sm:$0xff]  ;;  %4289 = vmatmul.bf16.gmra.mxu3 %v16086_v24  ;;  %v16087_v30 = vld [vmem:[#allocation99_spill] sm:$0xff]  ;;  %16090 = vst [vmem:[#allocation68_spill] sm:$0xff] %v13756_v19  ;;  %vm16092_vm9 = vcmp.eq.s32.totalorder %v16091_v56, 1  ;;  %v16095_v53 = vld [vmem:[#allocation40_spill] sm:$0xff]  ;;  %v13768_v19 = vpop.f32.mrf.mxu3 }
 0x3c0   : > { %v4586_v23 = vsel %vm16085_vm10, %v4546_v26, -inf  ;;  %vm16088_vm6 = vcmp.eq.s32.totalorder %v16087_v30, 1  ;;  %v4782_v58 = vld [vmem:[#allocation2 + $0x136] sm:$0xff]  ;;  %v4783_v25 = vld [vmem:[#allocation2 + $0x13e] sm:$0xff]  ;;  %v4784_v11 = vld [vmem:[#allocation2 + $0x146] sm:$0xff]  ;;  %v16089_v26 = vpack.c.bf16 %v13688_v38, %v13688_v38  ;;  %v4702_v18 = vsel %vm16092_vm9, %v4662_v50, -inf }
 0x3c1   : > { %v4626_v51 = vmax.f32 %v4506_v33, %v4586_v23  ;;  %v4701_v54 = vsel %vm16088_vm6, %v4661_v14, -inf  ;;  %v16093_v39 = vld [vmem:[#allocation115_spill] sm:$0xff]  ;;  %vm16096_vm14 = vcmp.eq.s32.totalorder %v16095_v53, 1  ;;  %v16097_v21 = vld [vmem:[#allocation28_spill] sm:$0xff]  ;;  %v4706_v31 = vsel %vm3112_vm8, %v4666_v0, -inf  ;;  %16099 = vst [vmem:[#allocation75_spill] sm:$0xff] %v13768_v19 }
 0x3c2   : > { %5178 = vst [vmem:[#allocation4 + $0x48] sm:$0xf] %v16089_v26  ;;  %vm16094_vm7 = vcmp.eq.s32.totalorder %v16093_v39, 1  ;;  %v4704_v61 = vsel %vm16096_vm14, %v4664_v16, -inf  ;;  %vm16098_vm10 = vcmp.eq.s32.totalorder %v16097_v21, 1  ;;  %v4785_v33 = vld [vmem:[#allocation2 + $0x14e] sm:$0xff]  ;;  %v4741_v23 = vmax.f32 %v4621_v59, %v4701_v54 }
 0x3c3   : > { %v4703_v15 = vsel %vm16094_vm7, %v4663_v9, -inf  ;;  %v4705_v14 = vsel %vm16098_vm10, %v4665_v55, -inf  ;;  %v4786_v36 = vld [vmem:[#allocation2 + $0x156] sm:$0xff]  ;;  %v4742_v24 = vmax.f32 %v4622_v49, %v4702_v18  ;;  %v4744_v50 = vmax.f32 %v4624_v63, %v4704_v61  ;;  %v16100_v9 = vld [vmem:[#allocation39_spill] sm:$0xff]  ;;  %v7407_v16 = vld [vmem:[#allocation8 + $0x150] sm:$0xf] }
 0x3c4   : > { %v4743_v26 = vmax.f32 %v4623_v43, %v4703_v15  ;;  %v4745_v6 = vmax.f32 %v4625_v2, %v4705_v14  ;;  %v4746_v39 = vmax.f32 %v4626_v51, %v4706_v31  ;;  %vm16101_vm6 = vcmp.eq.s32.totalorder %v16100_v9, 1  ;;  %v7633_v56 = vld [vmem:[#allocation8 + $0x154] sm:$0xf0]  ;;  %v13772_v21 = vld [vmem:[#allocation2 + $0xa8] sm:$0xff]  ;;  %v16102_v55 = vld [vmem:[#allocation98_spill] sm:$0xff] }
 0x3c5   : > { %v4822_v53 = vsel %vm16101_vm6, %v4782_v58, -inf  ;;  %vm16103_vm9 = vcmp.eq.s32.totalorder %v16102_v55, 1  ;;  %vm16105_vm7 = vcmp.eq.s32.totalorder %v16104_v10, 1  ;;  %v16106_v49 = vld [vmem:[#allocation72_spill] sm:$0xff]  ;;  %v4826_v43 = vsel %vm3432_vm13, %v4786_v36, -inf  ;;  %v13785_v61 = vld [vmem:[#allocation2 + $0x98] sm:$0xff] }
 0x3c6   : > { %v4823_v30 = vsel %vm16103_vm9, %v4783_v25, -inf  ;;  %v4824_v59 = vsel %vm16105_vm7, %v4784_v11, -inf  ;;  %vm16107_vm14 = vcmp.eq.s32.totalorder %v16106_v49, 1  ;;  %v13783_v0 = vmax.f32 %v4741_v23, %v13667_v45  ;;  %v7640_v19 = vld [vmem:[#allocation8 + $0x194] sm:$0xf] }
 0x3c7   : > { %v4825_v54 = vsel %vm16107_vm14, %v4785_v33, -inf  ;;  %v4862_v58 = vmax.f32 %v4742_v24, %v4822_v53  ;;  %v4863_v63 = vmax.f32 %v4743_v26, %v4823_v30  ;;  %v4864_v2 = vmax.f32 %v4744_v50, %v4824_v59  ;;  %v13802_v59 = vpop.f32.mrf.mxu2 }
 0x3c8   : > { %v4865_v51 = vmax.f32 %v4745_v6, %v4825_v54  ;;  %v4866_v18 = vmax.f32 %v4746_v39, %v4826_v43  ;;  %v7408_v15 = vor.u32 %v7633_v56, %v7407_v16  ;;  %v4979_v25 = vmax.f32 %v13536_v28, %v13783_v0  ;;  %16108 = vst [vmem:[#allocation63_spill] sm:$0xff] %v13802_v59  ;;  %v5248_v54 = vld [vmem:[#allocation2 + $0xd9] sm:$0xff] }
 0x3c9   : > { %v4980_v14 = vmax.f32 %v13557_v8, %v4862_v58  ;;  %v4981_v33 = vmax.f32 %v13783_v0, %v4863_v63  ;;  %v4982_v45 = vmax.f32 %v4862_v58, %v4864_v2  ;;  %v5101_v43 = vmax.f32 %v13677_v52, %v13783_v0 }
 0x3ca   : > { %v4983_v36 = vmax.f32 %v4863_v63, %v4865_v51  ;;  %v4984_v53 = vmax.f32 %v4864_v2, %v4866_v18  ;;  %v4985_v30 = vmax.f32 %v4865_v51, %v13418_v20  ;;  %v4986_v6 = vmax.f32 %v4866_v18, %v13418_v20  ;;  %6201 = vmatpush.bf16.msrb.mxu2 %v7408_v15 }
 0x3cb   : > { %v5023_v56 = vmax.f32 %v4979_v25, %v13529_v1  ;;  %v5024_v39 = vmax.f32 %v4980_v14, %v13534_v34  ;;  %v5025_v31 = vmax.f32 %v4981_v33, %v13536_v28  ;;  %v5026_v23 = vmax.f32 %v4982_v45, %v13557_v8 }
 0x3cc   : > { %v5027_v24 = vmax.f32 %v4983_v36, %v13783_v0  ;;  %v5028_v26 = vmax.f32 %v4984_v53, %v4862_v58  ;;  %v13800_v50 = vmax.f32 %v4985_v30, %v4863_v63  ;;  %v5030_v16 = vmax.f32 %v4986_v6, %v4864_v2  ;;  %v13808_v36 = vpop.f32.mrf.mxu3  ;;  %v13812_v30 = vld [vmem:[#allocation2 + $0x78] sm:$0xff] }
 0x3cd   : > { %v5102_v15 = vmax.f32 %v13588_v40, %v4862_v58  ;;  %v5103_v25 = vmax.f32 %v5023_v56, %v4863_v63  ;;  %v5104_v14 = vmax.f32 %v5024_v39, %v4864_v2  ;;  %v5105_v11 = vmax.f32 %v5025_v31, %v4865_v51  ;;  %16109 = vst [vmem:[#allocation71_spill] sm:$0xff] %v13808_v36  ;;  %v7399_v2 = vld [vmem:[#allocation8 + $0x140] sm:$0xf]  ;;  %v7631_v51 = vld [vmem:[#allocation8 + $0x144] sm:$0xf0] }
 0x3ce   : > { %v5106_v33 = vmax.f32 %v5026_v23, %v4866_v18  ;;  %v5108_v45 = vmax.f32 %v5028_v26, %v13418_v20  ;;  %v5762_v53 = vmax.f32 %v13625_v60, %v13785_v61  ;;  %v5107_v6 = vmax.f32 %v5027_v24, %v13418_v20  ;;  %v7441_v18 = vld [vmem:[#allocation8 + $0x198] sm:$0xf0]  ;;  %v16110_v56 = vld [vmem:[#allocation42_spill] sm:$0xff]  ;;  %v7433_v26 = vld [vmem:[#allocation8 + $0x188] sm:$0xf0] }
 0x3cf   : > { %v5110_v52 = vmax.f32 %v5030_v16, %v13418_v20  ;;  %v13817_v40 = vmax.f32 %v5101_v43, %v15952_v42  ;;  %v13820_v63 = vmax.f32 %v5102_v15, %v13523_v29  ;;  %vm16111_vm10 = vcmp.eq.s32.totalorder %v16110_v56, 1  ;;  %v7638_v42 = vld [vmem:[#allocation8 + $0x184] sm:$0xf]  ;;  %v5246_v16 = vld [vmem:[#allocation2 + $0xc9] sm:$0xff]  ;;  %v7629_v15 = vld [vmem:[#allocation8 + $0x134] sm:$0xf0]  ;;  %v13885_v36 = vpop.f32.mrf.mxu2 }
 0x3d0   : > { %v5288_v39 = vsel %vm16111_vm10, %v5248_v54, -inf  ;;  %v13825_v31 = vmax.f32 %v5103_v25, %v13525_v4  ;;  %v13828_v23 = vmax.f32 %v5104_v14, %v13527_v47  ;;  %v13831_v24 = vmax.f32 %v5106_v33, %v13534_v34  ;;  %v7391_v47 = vld [vmem:[#allocation8 + $0x130] sm:$0xf]  ;;  %16125 = vst [vmem:[#allocation100_spill] sm:$0xff] %v13885_v36 }
 0x3d1   : > { %v5109_v29 = vmax.f32 %v13800_v50, %v13418_v20  ;;  %v13836_v43 = vmax.f32 %v5105_v11, %v13529_v1  ;;  %v13839_v54 = vmax.f32 %v5108_v45, %v13557_v8  ;;  %v13841_v4 = vmax.f32 %v5110_v52, %v4862_v58  ;;  %5215 = vst [vmem:[#allocation2 + $0x110] sm:$0xff] %v13817_v40  ;;  %v13844_v34 = vld [vmem:[#allocation2 + $0x90] sm:$0xff]  ;;  %v7615_v11 = vld [vmem:[#allocation4 + $0x44] sm:$0xf0]  ;;  %v16114_v45 = vld [vmem:[#allocation106_spill] sm:$0xff] }
 0x3d2   : > { %16112 = vst [vmem:[#allocation70_spill] sm:$0xff] %v13844_v34  ;;  %v16113_v25 = vmax.f32 %v13652_v17, %v13654_v44  ;;  %v7400_v20 = vor.u32 %v7631_v51, %v7399_v2  ;;  %v7444_v1 = vor.u32 %v7640_v19, %v7441_v18  ;;  %v5782_v8 = vmax.f32 %v5762_v53, %v13812_v30  ;;  %v5368_v50 = vld [vmem:[#allocation2 + $0xd7] sm:$0xff]  ;;  %v16116_v19 = vld [vmem:[#allocation47_spill] sm:$0xff] }
 0x3d3   : > { %5216 = vst [vmem:[#allocation2 + $0x118] sm:$0xff] %v13820_v63  ;;  %v5328_v58 = vmax.f32 %v13573_v48, %v5288_v39  ;;  %v13854_v33 = vmax.f32 %v5107_v6, %v13536_v28  ;;  %4294 = vmatmul.bf16.gmra.mxu3 %v16114_v45  ;;  %v16115_v52 = vmax.f32 %v13785_v61, %v13772_v21  ;;  %v5800_v2 = vld [vmem:[#allocation2 + $0xb8] sm:$0xff]  ;;  %vm16117_vm6 = vcmp.eq.s32.totalorder %v16116_v19, 1  ;;  %v5830_v6 = vld [vmem:[#allocation2 + $0x68] sm:$0xff]  ;;  %v13866_v45 = vld [vmem:[#allocation2 + $0xc0] sm:$0xff] }
 0x3d4   : > { %v5785_v14 = vmax.f32 %v16113_v25, %v13844_v34  ;;  %5217 = vst [vmem:[#allocation2 + $0x120] sm:$0xff] %v13825_v31  ;;  %v5286_v53 = vsel %vm16117_vm6, %v5246_v16, -inf  ;;  %6202 = vmatpush.bf16.msrb.mxu2 %v7400_v20  ;;  %6352 = vmatpush.bf16.msrb.mxu1 %v7444_v1  ;;  %v7392_v51 = vor.u32 %v7629_v15, %v7391_v47  ;;  %v5486_v39 = vld [vmem:[#allocation2 + $0xca] sm:$0xff]  ;;  %v7335_v25 = vld [vmem:[#allocation4 + $0x40] sm:$0xf] }
 0x3d5   : > { %v5784_v56 = vmax.f32 %v16115_v52, %v13625_v60  ;;  %5218 = vst [vmem:[#allocation2 + $0x128] sm:$0xff] %v13828_v23  ;;  %v7436_v28 = vor.u32 %v7638_v42, %v7433_v26  ;;  %v5326_v18 = vmax.f32 %v13688_v38, %v5286_v53  ;;  %v13870_v52 = vmax.f32 %v5109_v29, %v13783_v0  ;;  %v7383_v16 = vld [vmem:[#allocation8 + $0x120] sm:$0xf]  ;;  %v7627_v19 = vld [vmem:[#allocation8 + $0x124] sm:$0xf0]  ;;  %v16123_v38 = vld [vmem:[#allocation121_spill] sm:$0xff] }
 0x3d6   : > { %16118 = vst [vmem:[#allocation41_spill] sm:$0xff] %v13866_v45  ;;  %v5817_v59 = vmax.f32 %v5785_v14, %v13866_v45  ;;  %v16119_v20 = vld [vmem:[#allocation110_spill] sm:$0xff]  ;;  %v13876_v26 = vor.u32 %v7615_v11, %v7335_v25  ;;  %vm16124_vm7 = vcmp.eq.s32.totalorder %v16123_v38, 1  ;;  %v5814_v15 = vmax.f32 %v5782_v8, %v13772_v21  ;;  %v13882_v0 = vld [vmem:[#allocation2 + $0xb8] sm:$0xff]  ;;  %v8151_v29 = vld [vmem:[#allocation2 + $0xa8] sm:$0xff] }
 0x3d7   : > { %5219 = vst [vmem:[#allocation2 + $0x130] sm:$0xff] %v13836_v43  ;;  %v16120_v1 = vld [vmem:[#allocation114_spill] sm:$0xff]  ;;  %v5408_v47 = vsel %vm16124_vm7, %v5368_v50, -inf  ;;  %v5766_v53 = vmax.f32 %v8151_v29, %v13882_v0  ;;  %v5816_v11 = vmax.f32 %v5784_v56, %v5800_v2  ;;  %v16126_v25 = vld [vmem:[#allocation119_spill] sm:$0xff]  ;;  %v16129_v56 = vld [vmem:[#allocation48_spill] sm:$0xff] }
 0x3d8   : > { %vm16121_vm9 = vcmp.eq.s32.totalorder %v16120_v1, 1  ;;  %16122 = vst [vmem:[#allocation166_spill] sm:$0xff] %v13876_v26  ;;  %v13887_v45 = vmax.f32 %v5328_v58, %v5408_v47  ;;  %vm16127_vm14 = vcmp.eq.s32.totalorder %v16126_v25, 1  ;;  %6325 = vmatmul.bf16.gmra.mxu0 %v13876_v26  ;;  %v5254_v8 = vld [vmem:[#allocation2 + $0x109] sm:$0xff]  ;;  %6203 = vmatpush.bf16.msrb.mxu2 %v7392_v51  ;;  %v13894_v1 = vmax.f32 %v5814_v15, %v5830_v6  ;;  %v16131_v47 = vld [vmem:[#allocation37_spill] sm:$0xff]  ;;  %v16134_v6 = vld [vmem:[#allocation126_spill] sm:$0xff] }
 0x3d9   : > { %v5406_v42 = vsel %vm16121_vm9, %v16119_v20, -inf  ;;  %5220 = vst [vmem:[#allocation2 + $0x138] sm:$0xff] %v13831_v24  ;;  %v5488_v20 = vld [vmem:[#allocation2 + $0xda] sm:$0xff]  ;;  %v5526_v50 = vsel %vm16127_vm14, %v5486_v39, -inf  ;;  %6353 = vmatpush.bf16.msrb.mxu1 %v7436_v28  ;;  %vm16130_vm10 = vcmp.eq.s32.totalorder %v16129_v56, 1  ;;  %v13902_v39 = vmax.f32 %v5816_v11, %v13812_v30  ;;  %v16136_v11 = vld [vmem:[#allocation152_spill] sm:$0xff] }
 0x3da   : > { %v5446_v14 = vmax.f32 %v5326_v18, %v5406_v42  ;;  %5221 = vst [vmem:[#allocation2 + $0x140] sm:$0xff] %v13854_v33  ;;  %v7384_v18 = vor.u32 %v7627_v19, %v7383_v16  ;;  %v13896_v42 = vpop.f32.mrf.mxu3  ;;  %v5255_v38 = vld [vmem:[#allocation2 + $0x111] sm:$0xff]  ;;  %v5294_v2 = vsel %vm16130_vm10, %v5254_v8, -inf  ;;  %v8152_v28 = vld [vmem:[#allocation2 + $0x80] sm:$0xff]  ;;  %vm16135_vm9 = vcmp.eq.s32.totalorder %v16134_v6, 1 }
 0x3db   : > { %5222 = vst [vmem:[#allocation2 + $0x148] sm:$0xff] %v13839_v54  ;;  %v16132_v29 = vld [vmem:[#allocation109_spill] sm:$0xff]  ;;  %v13907_v16 = vmax.f32 %v5817_v59, %v8152_v28  ;;  %v13911_v19 = vsel %vm16135_vm9, %v5488_v20, -inf  ;;  %v13919_v30 = vmax.f32 %v5766_v53, %v13785_v61  ;;  %vm16137_vm7 = vcmp.eq.s32.totalorder %v16136_v11, 1  ;;  %v16138_v56 = vld [vmem:[#allocation56_spill] sm:$0xff] }
 0x3dc   : > { %16128 = vst [vmem:[#allocation161_spill] sm:$0xff] %v13896_v42  ;;  %v5566_v58 = vmax.f32 %v5446_v14, %v5526_v50  ;;  %vm16133_vm6 = vcmp.eq.s32.totalorder %v16132_v29, 1  ;;  %v5256_v15 = vld [vmem:[#allocation2 + $0x119] sm:$0xff]  ;;  %v5375_v14 = vld [vmem:[#allocation2 + $0x10f] sm:$0xff]  ;;  %v5414_v59 = vsel %vm16137_vm7, %v13721_v12, -inf  ;;  %v5257_v20 = vld [vmem:[#allocation2 + $0x121] sm:$0xff]  ;;  %v5334_v12 = vmax.f32 %v13606_v7, %v5294_v2  ;;  %6204 = vmatpush.bf16.msrb.mxu2 %v7384_v18 }
 0x3dd   : > { %5223 = vst [vmem:[#allocation2 + $0x150] sm:$0xff] %v13870_v52  ;;  %v5646_v51 = vsel %vm16133_vm6, %v16131_v47, -inf  ;;  %v13916_v50 = vld [vmem:[#allocation2 + $0xcf] sm:$0xff]  ;;  %vm16139_vm14 = vcmp.eq.s32.totalorder %v16138_v56, 1  ;;  %v5376_v29 = vld [vmem:[#allocation2 + $0x117] sm:$0xff]  ;;  %vm16140_vm10 = vcmp.eq.s32.totalorder %v16011_v57, 1 }
 0x3de   : > { %5224 = vst [vmem:[#allocation2 + $0x158] sm:$0xff] %v13841_v4  ;;  %v13914_v25 = vmax.f32 %v5566_v58, %v5646_v51  ;;  %v5295_v47 = vsel %vm16139_vm14, %v5255_v38, -inf  ;;  %v13928_v28 = vld [vmem:[#allocation2 + $0xce] sm:$0xff]  ;;  %v13933_v58 = vsel %vm16140_vm10, %v13723_v32, -inf  ;;  %v5377_v11 = vld [vmem:[#allocation2 + $0x11f] sm:$0xff]  ;;  %v5848_v38 = vpack.c.bf16 %v13894_v1, %v13894_v1 }
 0x3df   : > { %v5258_v53 = vld [vmem:[#allocation2 + $0x129] sm:$0xff]  ;;  %v5297_v57 = vsel %vm2465_vm2, %v5257_v20, -inf  ;;  %v16144_v42 = vld [vmem:[#allocation170_spill] sm:$0xff]  ;;  %v5335_v36 = vmax.f32 %v13817_v40, %v5295_v47  ;;  %v16146_v20 = vld [vmem:[#allocation169_spill] sm:$0xff]  ;;  %vm16148_vm7 = vcmp.eq.s32.totalorder %v16062_v62, 1  ;;  %v5417_v3 = vsel %vm2785_vm11, %v5377_v11, -inf }
 0x3e0   : > { %v16141_v51 = vld [vmem:[#allocation52_spill] sm:$0xff]  ;;  %5726 = vst [vmem:[#allocation2 + $0xc8] sm:$0xff] %v13914_v25  ;;  %v5378_v32 = vld [vmem:[#allocation2 + $0x127] sm:$0xff]  ;;  %vm16145_vm9 = vcmp.eq.s32.totalorder %v16144_v42, 1  ;;  %v5298_v1 = vsel %vm2466_vm5, %v5258_v53, -inf  ;;  %vm16147_vm2 = vcmp.eq.s32.totalorder %v16146_v20, 1  ;;  %v13975_v20 = vmax.f32 %v5334_v12, %v5414_v59 }
 0x3e1   : > { %vm16142_vm6 = vcmp.eq.s32.totalorder %v16141_v51, 1  ;;  %v5494_v8 = vld [vmem:[#allocation2 + $0x10a] sm:$0xff]  ;;  %v5415_v51 = vsel %vm16145_vm9, %v5375_v14, -inf  ;;  %v5260_v18 = vld [vmem:[#allocation2 + $0x139] sm:$0xff]  ;;  %v13958_v26 = vsel %vm16147_vm2, %v5376_v29, -inf  ;;  %vm16150_vm5 = vcmp.eq.s32.totalorder %v16000_v13, 1 }
 0x3e2   : > { %v13937_v6 = vsel %vm16142_vm6, %v5256_v15, -inf  ;;  %v5259_v56 = vld [vmem:[#allocation2 + $0x131] sm:$0xff]  ;;  %v5261_v42 = vld [vmem:[#allocation2 + $0x141] sm:$0xff]  ;;  %v5300_v14 = vsel %vm16148_vm7, %v5260_v18, -inf  ;;  %v13968_v22 = vsel %vm16150_vm5, %v5494_v8, -inf  ;;  %v5337_v29 = vmax.f32 %v13825_v31, %v5297_v57  ;;  %v13977_v7 = vpop.f32.mrf.mxu3 }
 0x3e3   : > { %v5299_v2 = vsel %vm2467_vm0, %v5259_v56, -inf  ;;  %v5379_v15 = vld [vmem:[#allocation2 + $0x12f] sm:$0xff]  ;;  %vm16151_vm0 = vcmp.eq.s32.totalorder %v16066_v27, 1  ;;  %v5380_v53 = vld [vmem:[#allocation2 + $0x137] sm:$0xff]  ;;  %v5381_v62 = vld [vmem:[#allocation2 + $0x13f] sm:$0xff]  ;;  %v5418_v18 = vsel %vm2786_vm4, %v5378_v32, -inf  ;;  %v5338_v8 = vmax.f32 %v13828_v23, %v5298_v1 }
 0x3e4   : > { %v5262_v40 = vld [vmem:[#allocation2 + $0x149] sm:$0xff]  ;;  %v5301_v47 = vsel %vm16151_vm0, %v5261_v42, -inf  ;;  %vm16153_vm11 = vcmp.eq.s32.totalorder %v16068_v35, 1  ;;  %v5339_v27 = vmax.f32 %v13836_v43, %v5299_v2  ;;  %v5340_v31 = vmax.f32 %v13831_v24, %v5300_v14  ;;  %v13984_v42 = vpop.f32.mrf.mxu2  ;;  %v5495_v37 = vld [vmem:[#allocation2 + $0x112] sm:$0xff]  ;;  %5864 = vst [vmem:[#allocation4 + $0xc] sm:$0xf] %v5848_v38 }
 0x3e5   : > { %v5263_v34 = vld [vmem:[#allocation2 + $0x151] sm:$0xff]  ;;  %v5264_v11 = vld [vmem:[#allocation2 + $0x159] sm:$0xff]  ;;  %v5302_v13 = vsel %vm16153_vm11, %v5262_v40, -inf  ;;  %v5382_v57 = vld [vmem:[#allocation2 + $0x147] sm:$0xff]  ;;  %16154 = vst [vmem:[#allocation155_spill] sm:$0xff] %v13984_v42  ;;  %vm16155_vm4 = vcmp.eq.s32.totalorder %v16074_v5, 1  ;;  %v5341_v32 = vmax.f32 %v13854_v33, %v5301_v47  ;;  %v13996_v2 = vmax.f32 %v5335_v36, %v5415_v51 }
 0x3e6   : > { %v5303_v59 = vsel %vm2471_vm1, %v5263_v34, -inf  ;;  %v5304_v12 = vsel %vm16155_vm4, %v5264_v11, -inf  ;;  %v5342_v35 = vmax.f32 %v13839_v54, %v5302_v13  ;;  %v5383_v40 = vld [vmem:[#allocation2 + $0x14f] sm:$0xff]  ;;  %v5384_v56 = vld [vmem:[#allocation2 + $0x157] sm:$0xff]  ;;  %v5419_v1 = vsel %vm2787_vm15, %v5379_v15, -inf  ;;  %v16161_v54 = vld [vmem:[#allocation74_spill] sm:$0xff] }
 0x3e7   : > { %v5343_v23 = vmax.f32 %v13870_v52, %v5303_v59  ;;  %v5344_v43 = vmax.f32 %v13841_v4, %v5304_v12  ;;  %v16157_v14 = vld [vmem:[#allocation157_spill] sm:$0xff]  ;;  %v16159_v34 = vld [vmem:[#allocation88_spill] sm:$0xff]  ;;  %vm16162_vm10 = vcmp.eq.s32.totalorder %v16161_v54, 1  ;;  %v5457_v11 = vmax.f32 %v5337_v29, %v5417_v3  ;;  %v5497_v13 = vld [vmem:[#allocation2 + $0x122] sm:$0xff] }
 0x3e8   : > { %vm16158_vm1 = vcmp.eq.s32.totalorder %v16157_v14, 1  ;;  %vm16160_vm14 = vcmp.eq.s32.totalorder %v16159_v34, 1  ;;  %v5422_v47 = vsel %vm16162_vm10, %v5382_v57, -inf  ;;  %v5496_v52 = vld [vmem:[#allocation2 + $0x11a] sm:$0xff]  ;;  %v16163_v4 = vld [vmem:[#allocation184_spill] sm:$0xff]  ;;  %v16164_v59 = vld [vmem:[#allocation27_spill] sm:$0xff]  ;;  %v5458_v15 = vmax.f32 %v5338_v8, %v5418_v18 }
 0x3e9   : > { %v5420_v5 = vsel %vm16158_vm1, %v5380_v53, -inf  ;;  %v5421_v33 = vsel %vm16160_vm14, %v5381_v62, -inf  ;;  %4299 = vmatmul.bf16.gmra.mxu3 %v16163_v4  ;;  %vm16165_vm15 = vcmp.eq.s32.totalorder %v16164_v59, 1  ;;  %vm16166_vm6 = vcmp.eq.s32.totalorder %v16084_v41, 1  ;;  %v5498_v53 = vld [vmem:[#allocation2 + $0x12a] sm:$0xff]  ;;  %v5499_v12 = vld [vmem:[#allocation2 + $0x132] sm:$0xff] }
 0x3ea   : > { %v5423_v51 = vsel %vm16165_vm15, %v5383_v40, -inf  ;;  %v5424_v38 = vsel %vm16166_vm6, %v5384_v56, -inf  ;;  %v5459_v36 = vmax.f32 %v5339_v27, %v5419_v1  ;;  %v5500_v24 = vld [vmem:[#allocation2 + $0x13a] sm:$0xff]  ;;  %v5460_v62 = vmax.f32 %v5340_v31, %v5420_v5  ;;  %v5501_v3 = vld [vmem:[#allocation2 + $0x142] sm:$0xff]  ;;  %v5502_v41 = vld [vmem:[#allocation2 + $0x14a] sm:$0xff]  ;;  %v14035_v59 = vpop.f32.mrf.mxu3 }
 0x3eb   : > { %v14009_v14 = vmax.f32 %v5341_v32, %v5421_v33  ;;  %v14011_v57 = vmax.f32 %v5342_v35, %v5422_v47  ;;  %v16167_v29 = vld [vmem:[#allocation145_spill] sm:$0xff]  ;;  %v14017_v54 = vmax.f32 %v5343_v23, %v5423_v51  ;;  %v14019_v40 = vmax.f32 %v5344_v43, %v5424_v38  ;;  %v16169_v27 = vld [vmem:[#allocation174_spill] sm:$0xff]  ;;  %v16171_v31 = vld [vmem:[#allocation111_spill] sm:$0xff]  ;;  %16178 = vst [vmem:[#allocation178_spill] sm:$0xff] %v14035_v59 }
 0x3ec   : > { %vm16168_vm9 = vcmp.eq.s32.totalorder %v16167_v29, 1  ;;  %v5503_v18 = vld [vmem:[#allocation2 + $0x152] sm:$0xff]  ;;  %v5504_v8 = vld [vmem:[#allocation2 + $0x15a] sm:$0xff]  ;;  %vm16170_vm2 = vcmp.eq.s32.totalorder %v16169_v27, 1  ;;  %vm16172_vm7 = vcmp.eq.s32.totalorder %v16171_v31, 1  ;;  %v5538_v1 = vsel %vm3106_vm3, %v5498_v53, -inf }
 0x3ed   : > { %v14015_v34 = vsel %vm16168_vm9, %v5495_v37, -inf  ;;  %v14023_v56 = vsel %vm16170_vm2, %v5496_v52, -inf  ;;  %v5537_v32 = vsel %vm16172_vm7, %v5497_v13, -inf  ;;  %v16174_v5 = vld [vmem:[#allocation99_spill] sm:$0xff]  ;;  %v16176_v23 = vld [vmem:[#allocation82_spill] sm:$0xff]  ;;  %v5574_v33 = vmax.f32 %v13975_v20, %v13968_v22  ;;  %v5620_v27 = vld [vmem:[#allocation2 + $0x136] sm:$0xff] }
 0x3ee   : > { %vm16175_vm5 = vcmp.eq.s32.totalorder %v16174_v5, 1  ;;  %vm16177_vm0 = vcmp.eq.s32.totalorder %v16176_v23, 1  ;;  %v5617_v47 = vld [vmem:[#allocation2 + $0x11e] sm:$0xff]  ;;  %v5618_v4 = vld [vmem:[#allocation2 + $0x126] sm:$0xff]  ;;  %v5577_v13 = vmax.f32 %v5457_v11, %v5537_v32  ;;  %v5578_v38 = vmax.f32 %v5458_v15, %v5538_v1  ;;  %v5619_v53 = vld [vmem:[#allocation2 + $0x12e] sm:$0xff]  ;;  %v14054_v1 = vpop.f32.mrf.mxu2 }
 0x3ef   : > { %v5539_v37 = vsel %vm16175_vm5, %v5499_v12, -inf  ;;  %v5540_v43 = vsel %vm16177_vm0, %v5500_v24, -inf  ;;  %v16179_v52 = vld [vmem:[#allocation115_spill] sm:$0xff]  ;;  %v5621_v31 = vld [vmem:[#allocation2 + $0x13e] sm:$0xff]  ;;  %v16181_v12 = vld [vmem:[#allocation40_spill] sm:$0xff]  ;;  %v5544_v20 = vsel %vm3112_vm8, %v5504_v8, -inf  ;;  %v16186_v11 = vmax.f32 %v13820_v63, %v13937_v6 }
 0x3f0   : > { %vm16180_vm11 = vcmp.eq.s32.totalorder %v16179_v52, 1  ;;  %v5579_v29 = vmax.f32 %v5459_v36, %v5539_v37  ;;  %vm16182_vm3 = vcmp.eq.s32.totalorder %v16181_v12, 1  ;;  %v16183_v24 = vld [vmem:[#allocation28_spill] sm:$0xff]  ;;  %v5580_v23 = vmax.f32 %v5460_v62, %v5540_v43  ;;  %v5622_v42 = vld [vmem:[#allocation2 + $0x146] sm:$0xff]  ;;  %v7625_v62 = vld [vmem:[#allocation8 + $0x114] sm:$0xf0] }
 0x3f1   : > { %v5541_v51 = vsel %vm16180_vm11, %v5501_v3, -inf  ;;  %v5542_v35 = vsel %vm16182_vm3, %v5502_v41, -inf  ;;  %vm16184_vm4 = vcmp.eq.s32.totalorder %v16183_v24, 1  ;;  %v7471_v59 = vld [vmem:[#allocation8 + $0x1d0] sm:$0xf]  ;;  %v14049_v15 = vmax.f32 %v16186_v11, %v13958_v26  ;;  %v16188_v12 = vld [vmem:[#allocation78_spill] sm:$0xff] }
 0x3f2   : > { %v5543_v5 = vsel %vm16184_vm4, %v5503_v18, -inf  ;;  %v5581_v36 = vmax.f32 %v14009_v14, %v5541_v51  ;;  %v5582_v3 = vmax.f32 %v14011_v57, %v5542_v35  ;;  %v5615_v32 = vld [vmem:[#allocation2 + $0x10e] sm:$0xff]  ;;  %v7649_v18 = vld [vmem:[#allocation8 + $0x1d4] sm:$0xf0]  ;;  %v5657_v52 = vsel %vm3425_vm12, %v5617_v47, -inf  ;;  %v14087_v11 = vpop.f32.mrf.mxu3 }
 0x3f3   : > { %v5583_v41 = vmax.f32 %v14017_v54, %v5543_v5  ;;  %v7375_v8 = vld [vmem:[#allocation8 + $0x110] sm:$0xf]  ;;  %vm16189_vm8 = vcmp.eq.s32.totalorder %v16188_v12, 1  ;;  %v14063_v14 = vmax.f32 %v5574_v33, %v13933_v58  ;;  %v16192_v57 = vpack.c.bf16 %v13902_v39, %v13902_v39  ;;  %v5624_v54 = vld [vmem:[#allocation2 + $0x156] sm:$0xff]  ;;  %v7606_v5 = vld [vmem:[#allocation4 + $0x4] sm:$0xf] }
 0x3f4   : > { %v5623_v37 = vld [vmem:[#allocation2 + $0x14e] sm:$0xff]  ;;  %v5658_v63 = vsel %vm16189_vm8, %v5618_v4, -inf  ;;  %vm16193_vm14 = vcmp.eq.s32.totalorder %v16100_v9, 1  ;;  %v5697_v35 = vmax.f32 %v5577_v13, %v5657_v52  ;;  %v16194_v4 = vpack.c.bf16 %v13907_v16, %v13907_v16  ;;  %v7463_v9 = vld [vmem:[#allocation8 + $0x1c0] sm:$0xf]  ;;  %v16202_v43 = vld [vmem:[#allocation177_spill] sm:$0xff] }
 0x3f5   : > { %v16190_v26 = vld [vmem:[#allocation80_spill] sm:$0xff]  ;;  %5866 = vst [vmem:[#allocation4 + $0x1c] sm:$0xf] %v16192_v57  ;;  %v5660_v51 = vsel %vm16193_vm14, %v5620_v27, -inf  ;;  %v5698_v24 = vmax.f32 %v5578_v38, %v5658_v63  ;;  %v7305_v22 = vld [vmem:[#allocation4 + $0x8] sm:$0xf0]  ;;  %v5575_v58 = vmax.f32 %v13996_v2, %v14015_v34  ;;  %v5584_v33 = vmax.f32 %v14019_v40, %v5544_v20 }
 0x3f6   : > { %vm16191_vm1 = vcmp.eq.s32.totalorder %v16190_v26, 1  ;;  %5867 = vst [vmem:[#allocation4 + $0x24] sm:$0xf] %v16194_v4  ;;  %vm16195_vm12 = vcmp.eq.s32.totalorder %v16102_v55, 1  ;;  %v7647_v13 = vld [vmem:[#allocation8 + $0x1c4] sm:$0xf0]  ;;  %v5576_v38 = vmax.f32 %v14049_v15, %v14023_v56  ;;  %v7472_v27 = vor.u32 %v7649_v18, %v7471_v59 }
 0x3f7   : > { %v5659_v6 = vsel %vm16191_vm1, %v5619_v53, -inf  ;;  %v5661_v39 = vsel %vm16195_vm12, %v5621_v31, -inf  ;;  %v5700_v53 = vmax.f32 %v5580_v23, %v5660_v51  ;;  %5734 = vst [vmem:[#allocation2 + $0x108] sm:$0xff] %v14063_v14  ;;  %vm16196_vm10 = vcmp.eq.s32.totalorder %v16104_v10, 1  ;;  %v7367_v2 = vld [vmem:[#allocation8 + $0x100] sm:$0xf] }
 0x3f8   : > { %v5699_v47 = vmax.f32 %v5579_v29, %v5659_v6  ;;  %v5662_v16 = vsel %vm16196_vm10, %v5622_v42, -inf  ;;  %v5701_v29 = vmax.f32 %v5581_v36, %v5661_v39  ;;  %5737 = vst [vmem:[#allocation2 + $0x120] sm:$0xff] %v5697_v35  ;;  %v7623_v34 = vld [vmem:[#allocation8 + $0x104] sm:$0xf0]  ;;  %v5616_v40 = vld [vmem:[#allocation2 + $0x116] sm:$0xff]  ;;  %vm16197_vm15 = vcmp.eq.s32.totalorder %v16106_v49, 1  ;;  %6250 = vmatpush.bf16.msrb.mxu3 %v7472_v27 }
 0x3f9   : > { %v5663_v55 = vsel %vm16197_vm15, %v5623_v37, -inf  ;;  %v5702_v31 = vmax.f32 %v5582_v3, %v5662_v16  ;;  %5738 = vst [vmem:[#allocation2 + $0x128] sm:$0xff] %v5698_v24  ;;  %v14085_v20 = vor.u32 %v7606_v5, %v7305_v22  ;;  %v7376_v23 = vor.u32 %v7625_v62, %v7375_v8  ;;  %v5608_v56 = vld [vmem:[#allocation2 + $0xd6] sm:$0xff]  ;;  %v7455_v18 = vld [vmem:[#allocation8 + $0x1b0] sm:$0xf]  ;;  %v16203_v52 = vld [vmem:[#allocation46_spill] sm:$0xff]  ;;  %v14116_v24 = vpop.f32.mrf.mxu2 }
 0x3fa   : > { %v16198_v15 = vld [vmem:[#allocation173_spill] sm:$0xff]  ;;  %v5664_v42 = vsel %vm3432_vm13, %v5624_v54, -inf  ;;  %v5703_v59 = vmax.f32 %v5583_v41, %v5663_v55  ;;  %5739 = vst [vmem:[#allocation2 + $0x130] sm:$0xff] %v5699_v47  ;;  %v7464_v36 = vor.u32 %v7647_v13, %v7463_v9  ;;  %v7368_v3 = vor.u32 %v7623_v34, %v7367_v2  ;;  %v16205_v63 = vld [vmem:[#allocation116_spill] sm:$0xff]  ;;  %v5370_v54 = vld [vmem:[#allocation2 + $0xe7] sm:$0xff]  ;;  %v14133_v34 = vpop.f32.mrf.mxu3 }
 0x3fb   : > { %vm16199_vm6 = vcmp.eq.s32.totalorder %v16198_v15, 1  ;;  %v5704_v49 = vmax.f32 %v5584_v33, %v5664_v42  ;;  %5740 = vst [vmem:[#allocation2 + $0x138] sm:$0xff] %v5700_v53  ;;  %6354 = vmatmul.bf16.vlgmr.msrb.gmra.mxu1 %v14085_v20  ;;  %6205 = vmatpush.bf16.msrb.mxu2 %v7376_v23  ;;  %v7645_v8 = vld [vmem:[#allocation8 + $0x1b4] sm:$0xf0]  ;;  %v5818_v62 = vmax.f32 %v13919_v30, %v13914_v25  ;;  %vm16204_vm13 = vcmp.eq.s32.totalorder %v16203_v52, 1  ;;  %v16207_v57 = vld [vmem:[#allocation148_spill] sm:$0xff] }
 0x3fc   : > { %v5655_v10 = vsel %vm16199_vm6, %v5615_v32, -inf  ;;  %v16200_v37 = vld [vmem:[#allocation149_spill] sm:$0xff]  ;;  %5741 = vst [vmem:[#allocation2 + $0x140] sm:$0xff] %v5701_v29  ;;  %v5768_v41 = vmax.f32 %v13882_v0, %v13914_v25  ;;  %v5290_v12 = vsel %vm16204_vm13, %v16202_v43, -inf  ;;  %vm16206_vm2 = vcmp.eq.s32.totalorder %v16205_v63, 1  ;;  %4304 = vmatmul.bf16.gmra.mxu3 %v16207_v57  ;;  %v16209_v39 = vld [vmem:[#allocation156_spill] sm:$0xff] }
 0x3fd   : > { %vm16201_vm9 = vcmp.eq.s32.totalorder %v16200_v37, 1  ;;  %v14098_v46 = vmax.f32 %v5575_v58, %v5655_v10  ;;  %v5648_v26 = vsel %vm16206_vm2, %v5608_v56, -inf  ;;  %5742 = vst [vmem:[#allocation2 + $0x148] sm:$0xff] %v5702_v31  ;;  %v5836_v30 = vmax.f32 %v5818_v62, %v13625_v60  ;;  %6251 = vmatpush.bf16.msrb.mxu3 %v7464_v36  ;;  %v7447_v5 = vld [vmem:[#allocation8 + $0x1a0] sm:$0xf]  ;;  %v8153_v58 = vld [vmem:[#allocation2 + $0xd0] sm:$0xff] }
 0x3fe   : > { %v5656_v32 = vsel %vm16201_vm9, %v5616_v40, -inf  ;;  %v16208_v51 = vmax.f32 %v13887_v45, %v13911_v19  ;;  %5743 = vst [vmem:[#allocation2 + $0x150] sm:$0xff] %v5703_v59  ;;  %v7456_v47 = vor.u32 %v7645_v8, %v7455_v18  ;;  %v7643_v22 = vld [vmem:[#allocation8 + $0x1a4] sm:$0xf0]  ;;  %v5163_v60 = vpack.c.bf16 %v8153_v58, %v8153_v58  ;;  %v5247_v33 = vld [vmem:[#allocation2 + $0xd1] sm:$0xff]  ;;  %v14124_v13 = vld [vmem:[#allocation2 + $0xc0] sm:$0xff] }
 0x3ff   : > { %v14107_v6 = vmax.f32 %v5576_v38, %v5656_v32  ;;  %5744 = vst [vmem:[#allocation2 + $0x158] sm:$0xff] %v5704_v49  ;;  %6206 = vmatpush.bf16.msrb.mxu2 %v7368_v3  ;;  %v5852_v4 = vpack.c.bf16 %v5836_v30, %v5836_v30  ;;  %v5330_v53 = vmax.f32 %v16209_v39, %v5290_v12  ;;  %v16210_v19 = vld [vmem:[#allocation43_spill] sm:$0xff]  ;;  %v16212_v16 = vld [vmem:[#allocation128_spill] sm:$0xff]  ;;  %v16214_v27 = vld [vmem:[#allocation122_spill] sm:$0xff] }
 0x400   : > { %v14114_v35 = vmax.f32 %v16208_v51, %v5648_v26  ;;  %5735 = vst [vmem:[#allocation2 + $0x110] sm:$0xff] %v14098_v46  ;;  %v5164_v45 = vpack.c.bf16 %v13573_v48, %v13573_v48  ;;  %vm16211_vm7 = vcmp.eq.s32.totalorder %v16210_v19, 1  ;;  %v5788_v38 = vmax.f32 %v5768_v41, %v13772_v21  ;;  %v5487_v48 = vld [vmem:[#allocation2 + $0xd2] sm:$0xff]  ;;  %v16216_v55 = vld [vmem:[#allocation23_spill] sm:$0xff]  ;;  %v5369_v49 = vld [vmem:[#allocation2 + $0xdf] sm:$0xff] }
 0x401   : > { %v5287_v9 = vsel %vm16211_vm7, %v5247_v33, -inf  ;;  %vm16213_vm5 = vcmp.eq.s32.totalorder %v16212_v16, 1  ;;  %5736 = vst [vmem:[#allocation2 + $0x118] sm:$0xff] %v14107_v6  ;;  %vm16215_vm0 = vcmp.eq.s32.totalorder %v16214_v27, 1  ;;  %6252 = vmatpush.bf16.msrb.mxu3 %v7456_v47  ;;  %v7448_v31 = vor.u32 %v7643_v22, %v7447_v5  ;;  %v16217_v56 = vld [vmem:[#allocation181_spill] sm:$0xff]  ;;  %v14154_v51 = vpop.f32.mrf.mxu2  ;;  %v16229_v16 = vld [vmem:[#allocation31_spill] sm:$0xff] }
 0x402   : > { %v5410_v29 = vsel %vm16213_vm5, %v5370_v54, -inf  ;;  %v5407_v2 = vsel %vm16215_vm0, %v13916_v50, -inf  ;;  %v5327_v40 = vmax.f32 %v8153_v58, %v5287_v9  ;;  %6207 = vmatmul.bf16.vlgmr.msrb.gmra.mxu2 %v16216_v55  ;;  %5868 = vst [vmem:[#allocation4 + $0x2c] sm:$0xf] %v5852_v4  ;;  %v5820_v23 = vmax.f32 %v5788_v38, %v14114_v35  ;;  %v7439_v10 = vld [vmem:[#allocation8 + $0x190] sm:$0xf]  ;;  %v14160_v22 = vpop.f32.mrf.mxu3 }
 0x403   : > { %v5165_v15 = vpack.c.bf16 %v16217_v56, %v16217_v56  ;;  %5179 = vst [vmem:[#allocation4 + $0x50] sm:$0xf] %v5163_v60  ;;  %v7641_v42 = vld [vmem:[#allocation8 + $0x194] sm:$0xf0]  ;;  %v5767_v50 = vmax.f32 %v13654_v44, %v14124_v13  ;;  %v5450_v36 = vmax.f32 %v5330_v53, %v5410_v29  ;;  %v5609_v8 = vld [vmem:[#allocation2 + $0xde] sm:$0xff]  ;;  %v5610_v54 = vld [vmem:[#allocation2 + $0xe6] sm:$0xff]  ;;  %v5167_v29 = vpack.c.bf16 %v16229_v16, %v16229_v16 }
 0x404   : > { %v5447_v59 = vmax.f32 %v5327_v40, %v5407_v2  ;;  %5180 = vst [vmem:[#allocation4 + $0x58] sm:$0xf] %v5164_v45  ;;  %v16218_v3 = vld [vmem:[#allocation113_spill] sm:$0xff]  ;;  %v5838_v62 = vmax.f32 %v5820_v23, %v13785_v61  ;;  %v7440_v52 = vor.u32 %v7641_v42, %v7439_v10  ;;  %v7608_v47 = vld [vmem:[#allocation4 + $0x14] sm:$0xf]  ;;  %v16227_v53 = vld [vmem:[#allocation70_spill] sm:$0xff]  ;;  %v5770_v40 = vmax.f32 %v13914_v25, %v14114_v35 }
 0x405   : > { %vm16219_vm11 = vcmp.eq.s32.totalorder %v16218_v3, 1  ;;  %5728 = vst [vmem:[#allocation2 + $0xd8] sm:$0xff] %v14114_v35  ;;  %v7313_v32 = vld [vmem:[#allocation4 + $0x18] sm:$0xf0]  ;;  %6253 = vmatpush.bf16.msrb.mxu3 %v7448_v31  ;;  %v5787_v61 = vmax.f32 %v5767_v50, %v13652_v17  ;;  %v16225_v17 = vld [vmem:[#allocation123_spill] sm:$0xff]  ;;  %v8154_v31 = vld [vmem:[#allocation2 + $0xe0] sm:$0xff] }
 0x406   : > { %v5527_v18 = vsel %vm16219_vm11, %v5487_v48, -inf  ;;  %v16220_v41 = vld [vmem:[#allocation125_spill] sm:$0xff]  ;;  %v5854_v44 = vpack.c.bf16 %v5838_v62, %v5838_v62  ;;  %5181 = vst [vmem:[#allocation4 + $0x60] sm:$0xf] %v5165_v15  ;;  %v14158_v5 = vor.u32 %v7608_v47, %v7313_v32  ;;  %vm16226_vm8 = vcmp.eq.s32.totalorder %v16225_v17, 1  ;;  %v16228_v38 = vld [vmem:[#allocation95_spill] sm:$0xff] }
 0x407   : > { %v5567_v37 = vmax.f32 %v5447_v59, %v5527_v18  ;;  %vm16221_vm3 = vcmp.eq.s32.totalorder %v16220_v41, 1  ;;  %v16222_v12 = vld [vmem:[#allocation29_spill] sm:$0xff]  ;;  %v5650_v58 = vsel %vm16226_vm8, %v5610_v54, -inf  ;;  %v5249_v27 = vld [vmem:[#allocation2 + $0xe1] sm:$0xff]  ;;  %v5790_v56 = vmax.f32 %v5770_v40, %v13882_v0  ;;  %5183 = vst [vmem:[#allocation4 + $0x70] sm:$0xf] %v5167_v29 }
 0x408   : > { %v5647_v43 = vsel %vm16221_vm3, %v13928_v28, -inf  ;;  %v16223_v63 = vld [vmem:[#allocation133_spill] sm:$0xff]  ;;  %5870 = vst [vmem:[#allocation4 + $0x3c] sm:$0xf] %v5854_v44  ;;  %v5166_v28 = vpack.c.bf16 %v16209_v39, %v16209_v39  ;;  %v5489_v2 = vld [vmem:[#allocation2 + $0xe2] sm:$0xff]  ;;  %v16232_v10 = vld [vmem:[#allocation24_spill] sm:$0xff] }
 0x409   : > { %vm16224_vm4 = vcmp.eq.s32.totalorder %v16223_v63, 1  ;;  %v14151_v30 = vmax.f32 %v5567_v37, %v5647_v43  ;;  %6254 = vmatpush.bf16.msrb.mxu3 %v7440_v52  ;;  %v16230_v48 = vld [vmem:[#allocation50_spill] sm:$0xff]  ;;  %v14182_v15 = vpop.f32.mrf.mxu2  ;;  %v16233_v42 = vld [vmem:[#allocation129_spill] sm:$0xff]  ;;  %v7639_v3 = vld [vmem:[#allocation8 + $0x184] sm:$0xf0] }
 0x40a   : > { %v5530_v26 = vsel %vm16224_vm4, %v16222_v12, -inf  ;;  %5182 = vst [vmem:[#allocation4 + $0x68] sm:$0xf] %v5166_v28  ;;  %v7343_v60 = vld [vmem:[#allocation4 + $0x50] sm:$0xf]  ;;  %vm16231_vm1 = vcmp.eq.s32.totalorder %v16230_v48, 1  ;;  %v14187_v50 = vpop.f32.mrf.mxu3 }
 0x40b   : > { %v5570_v57 = vmax.f32 %v5450_v36, %v5530_v26  ;;  %5727 = vst [vmem:[#allocation2 + $0xd0] sm:$0xff] %v14151_v30  ;;  %v5819_v4 = vmax.f32 %v5787_v61, %v14151_v30  ;;  %6359 = vmatmul.bf16.gmra.mxu1 %v14158_v5  ;;  %v7617_v33 = vld [vmem:[#allocation4 + $0x54] sm:$0xf0]  ;;  %v5289_v55 = vsel %vm16231_vm1, %v5249_v27, -inf  ;;  %vm16234_vm14 = vcmp.eq.s32.totalorder %v16233_v42, 1  ;;  %v16236_v43 = vld [vmem:[#allocation120_spill] sm:$0xff] }
 0x40c   : > { %v14170_v19 = vor.u32 %v7617_v33, %v7343_v60  ;;  %4309 = vmatmul.bf16.gmra.mxu3 %v16228_v38  ;;  %v5329_v23 = vmax.f32 %v8154_v31, %v5289_v55  ;;  %v5409_v59 = vsel %vm16234_vm14, %v5369_v49, -inf  ;;  %v7431_v36 = vld [vmem:[#allocation8 + $0x180] sm:$0xf]  ;;  %v16235_v37 = vld [vmem:[#allocation41_spill] sm:$0xff]  ;;  %vm16237_vm12 = vcmp.eq.s32.totalorder %v16236_v43, 1  ;;  %v16238_v26 = vld [vmem:[#allocation132_spill] sm:$0xff] }
 0x40d   : > { %v5837_v45 = vmax.f32 %v5819_v4, %v16227_v53  ;;  %v14168_v39 = vmax.f32 %v5570_v57, %v5650_v58  ;;  %v7432_v18 = vor.u32 %v7639_v3, %v7431_v36  ;;  %v5769_v32 = vmax.f32 %v16235_v37, %v14151_v30  ;;  %v7610_v63 = vld [vmem:[#allocation4 + $0x24] sm:$0xf]  ;;  %v7321_v49 = vld [vmem:[#allocation4 + $0x28] sm:$0xf0]  ;;  %v8155_v54 = vld [vmem:[#allocation2 + $0xb0] sm:$0xff] }
 0x40e   : > { %6330 = vmatmul.bf16.gmra.mxu0 %v14170_v19  ;;  %v5449_v62 = vmax.f32 %v5329_v23, %v5409_v59  ;;  %v5529_v52 = vsel %vm16237_vm12, %v5489_v2, -inf  ;;  %vm16239_vm10 = vcmp.eq.s32.totalorder %v16238_v26, 1  ;;  %v14199_v4 = vor.u32 %v7610_v63, %v7321_v49  ;;  %v8156_v60 = vld [vmem:[#allocation2 + $0xa0] sm:$0xff]  ;;  %v16240_v2 = vld [vmem:[#allocation64_spill] sm:$0xff]  ;;  %v16241_v40 = vld [vmem:[#allocation77_spill] sm:$0xff] }
 0x40f   : > { %v5853_v9 = vpack.c.bf16 %v5837_v45, %v5837_v45  ;;  %5730 = vst [vmem:[#allocation2 + $0xe8] sm:$0xff] %v14168_v39  ;;  %v5822_v41 = vmax.f32 %v5790_v56, %v14168_v39  ;;  %6255 = vmatpush.bf16.msrb.mxu3 %v7432_v18  ;;  %v5649_v61 = vsel %vm16239_vm10, %v5609_v8, -inf  ;;  %v5789_v47 = vmax.f32 %v5769_v32, %v8155_v54  ;;  %v16242_v55 = vld [vmem:[#allocation26_spill] sm:$0xff]  ;;  %v7359_v37 = vld [vmem:[#allocation4 + $0x70] sm:$0xf]  ;;  %v16244_v49 = vld [vmem:[#allocation35_spill] sm:$0xff] }
 0x410   : > { %v5569_v44 = vmax.f32 %v5449_v62, %v5529_v52  ;;  %v5772_v16 = vmax.f32 %v14114_v35, %v14168_v39  ;;  %v7621_v62 = vld [vmem:[#allocation4 + $0x74] sm:$0xf0]  ;;  %v16243_v63 = vld [vmem:[#allocation146_spill] sm:$0xff] }
 0x411   : > { %5869 = vst [vmem:[#allocation4 + $0x34] sm:$0xf] %v5853_v9  ;;  %v5840_v12 = vmax.f32 %v5822_v41, %v13772_v21  ;;  %v7619_v17 = vld [vmem:[#allocation4 + $0x64] sm:$0xf0]  ;;  %v7351_v21 = vld [vmem:[#allocation4 + $0x60] sm:$0xf]  ;;  %v14204_v53 = vpop.f32.mrf.mxu2  ;;  %v14226_v32 = vor.u32 %v7621_v62, %v7359_v37 }
 0x412   : > { %6212 = vmatmul.bf16.gmra.mxu2 %v16232_v10  ;;  %v14197_v57 = vmax.f32 %v5569_v44, %v5649_v61  ;;  %v14206_v8 = vor.u32 %v7619_v17, %v7351_v21  ;;  %v14208_v45 = vpop.f32.mrf.mxu3  ;;  %v5792_v27 = vmax.f32 %v5772_v16, %v13914_v25  ;;  %v7329_v10 = vld [vmem:[#allocation4 + $0x38] sm:$0xf0]  ;;  %v5776_v16 = vmax.f32 %v16242_v55, %v14063_v14 }
 0x413   : > { %v5856_v28 = vpack.c.bf16 %v5840_v12, %v5840_v12 }
 0x414   : > { %5729 = vst [vmem:[#allocation2 + $0xe0] sm:$0xff] %v14197_v57  ;;  %v5821_v58 = vmax.f32 %v5789_v47, %v14197_v57  ;;  %v5771_v9 = vmax.f32 %v14151_v30, %v14197_v57  ;;  %v5824_v31 = vmax.f32 %v5792_v27, %v16242_v55  ;;  %v5773_v41 = vmax.f32 %v14197_v57, %v16241_v40 }
 0x415   : > { %5872 = vst [vmem:[#allocation4 + $0x4c] sm:$0xf] %v5856_v28 }
 0x416   : > { %v5839_v33 = vmax.f32 %v5821_v58, %v8156_v60  ;;  %v5791_v29 = vmax.f32 %v5771_v9, %v14124_v13  ;;  %v5842_v56 = vmax.f32 %v5824_v31, %v13882_v0  ;;  %v5774_v0 = vmax.f32 %v14168_v39, %v16242_v55  ;;  %v8157_v60 = vld [vmem:[#allocation2 + $0xf0] sm:$0xff] }
 0x417   : > { %v5793_v44 = vmax.f32 %v5773_v41, %v14151_v30 }
 0x418   : > { %v5855_v38 = vpack.c.bf16 %v5839_v33, %v5839_v33  ;;  %v5823_v48 = vmax.f32 %v5791_v29, %v16241_v40  ;;  %v5858_v36 = vpack.c.bf16 %v5842_v56, %v5842_v56  ;;  %v7612_v3 = vld [vmem:[#allocation4 + $0x34] sm:$0xf]  ;;  %v5794_v12 = vmax.f32 %v5774_v0, %v14114_v35 }
 0x419   : > { %v7332_v18 = vor.u32 %v7612_v3, %v7329_v10  ;;  %v5825_v26 = vmax.f32 %v5793_v44, %v16244_v49  ;;  %v5775_v33 = vmax.f32 %v8157_v60, %v16244_v49  ;;  %v5796_v29 = vmax.f32 %v5776_v16, %v14168_v39 }
 0x41a   : > { %5871 = vst [vmem:[#allocation4 + $0x44] sm:$0xf] %v5855_v38  ;;  %v5841_v23 = vmax.f32 %v5823_v48, %v8155_v54  ;;  %v14224_v42 = vpop.f32.mrf.mxu3  ;;  %v5826_v61 = vmax.f32 %v5794_v12, %v14063_v14 }
 0x41b   : > { %6364 = vmatmul.bf16.gmra.mxu1 %v14199_v4  ;;  %5874 = vst [vmem:[#allocation4 + $0x5c] sm:$0xf] %v5858_v36  ;;  %v5828_v40 = vmax.f32 %v5796_v29, %v14107_v6 }
 0x41c   : > { %6256 = vmatmul.bf16.vlgmr.msrb.gmra.mxu3 %v14085_v20  ;;  %v14222_v20 = vpop.f32.mrf.mxu2  ;;  %v5857_v59 = vpack.c.bf16 %v5841_v23, %v5841_v23  ;;  %v5844_v54 = vmax.f32 %v5826_v61, %v13914_v25  ;;  %v7337_v47 = vld [vmem:[#allocation4 + $0x48] sm:$0xf0]  ;;  %v5795_v25 = vmax.f32 %v5775_v33, %v14197_v57 }
 0x41d   : > { %v5846_v14 = vmax.f32 %v5828_v40, %v14114_v35  ;;  %v6306_v35 = vpop.f32.mrf.mxu0 }
 0x41e   : > { %6335 = vmatmul.bf16.gmra.mxu0 %v14206_v8  ;;  %5873 = vst [vmem:[#allocation4 + $0x54] sm:$0xf] %v5857_v59  ;;  %v5860_v17 = vpack.c.bf16 %v5844_v54, %v5844_v54 }
 0x41f   : > { %v5862_v55 = vpack.c.bf16 %v5846_v14, %v5846_v14 }
 0x420   : > { %5876 = vst [vmem:[#allocation4 + $0x6c] sm:$0xf] %v5860_v17 }
 0x421   : > { %v7614_v58 = vld [vmem:[#allocation4 + $0x44] sm:$0xf]  ;;  %5878 = vst [vmem:[#allocation4 + $0x7c] sm:$0xf] %v5862_v55 }
 0x422   : > { %6217 = vmatmul.bf16.gmra.mxu2 %v16240_v2  ;;  %v14236_v52 = vpop.f32.mrf.mxu3  ;;  %v7340_v21 = vor.u32 %v7614_v58, %v7337_v47  ;;  %v16245_v2 = vld [vmem:[#allocation166_spill] sm:$0xff] }
 0x424   : > { %v14234_v43 = vpop.f32.mrf.mxu2 }
 0x425   : > { %v7616_v57 = vld [vmem:[#allocation4 + $0x54] sm:$0xf] }
 0x427   : > { %v7353_v6 = vld [vmem:[#allocation4 + $0x68] sm:$0xf0] }
 0x428   : > { %v7361_v37 = vld [vmem:[#allocation4 + $0x78] sm:$0xf0] }
 0x42a   : > { %v4275_v38 = vpop.f32.mrf.mxu3 }
 0x42b   : > { %6369 = vmatmul.bf16.gmra.mxu1 %v7332_v18 }
 0x42c   : > { %6261 = vmatmul.bf16.gmra.mxu3 %v14158_v5  ;;  %v5843_v5 = vmax.f32 %v5825_v26, %v14124_v13  ;;  %v14246_v9 = vpop.f32.mrf.mxu2  ;;  %v5827_v13 = vmax.f32 %v5795_v25, %v14098_v46 }
 0x42e   : > { %6340 = vmatmul.bf16.gmra.mxu0 %v14226_v32  ;;  %v5859_v28 = vpack.c.bf16 %v5843_v5, %v5843_v5  ;;  %v5845_v27 = vmax.f32 %v5827_v13, %v14151_v30  ;;  %v4276_v5 = vadd.f32 %v4275_v38, %v14154_v51 }
 0x430   : > { %5875 = vst [vmem:[#allocation4 + $0x64] sm:$0xf] %v5859_v28  ;;  %v5861_v48 = vpack.c.bf16 %v5845_v27, %v5845_v27 }
 0x432   : > { %6222 = vmatmul.bf16.gmra.mxu2 %v16243_v63  ;;  %v4277_v23 = vpop.f32.mrf.mxu3  ;;  %5877 = vst [vmem:[#allocation4 + $0x74] sm:$0xf] %v5861_v48 }
 0x433   : > { %v4278_v33 = vadd.f32 %v4277_v23, %v14182_v15 }
 0x434   : > { %v14257_v31 = vpop.f32.mrf.mxu2 }
 0x437   : > { %v7618_v10 = vld [vmem:[#allocation4 + $0x64] sm:$0xf] }
 0x438   : > { %v7356_v36 = vor.u32 %v7618_v10, %v7353_v6 }
 0x439   : > { %v7620_v41 = vld [vmem:[#allocation4 + $0x74] sm:$0xf] }
 0x43a   : > { %v4280_v30 = vpop.f32.mrf.mxu3  ;;  %v7364_v0 = vor.u32 %v7620_v41, %v7361_v37 }
 0x43b   : > { %6374 = vmatmul.bf16.gmra.mxu1 %v7340_v21  ;;  %v4281_v48 = vadd.f32 %v4280_v30, %v14204_v53 }
 0x43c   : > { %6266 = vmatmul.bf16.gmra.mxu3 %v14199_v4  ;;  %v7345_v4 = vld [vmem:[#allocation4 + $0x58] sm:$0xf0]  ;;  %v14260_v46 = vpop.f32.mrf.mxu2 }
 0x43d   : > { %v7348_v56 = vor.u32 %v7616_v57, %v7345_v4 }
 0x442   : > { %6227 = vmatmul.bf16.gmra.mxu2 %v16245_v2  ;;  %v4282_v59 = vpop.f32.mrf.mxu3 }
 0x443   : > { %v4283_v53 = vadd.f32 %v4282_v59, %v14222_v20 }
 0x444   : > { %v14263_v39 = vpop.f32.mrf.mxu2 }
 0x44a   : > { %v14268_v62 = vpop.f32.mrf.mxu3 }
 0x44b   : > { %6379 = vmatmul.bf16.gmra.mxu1 %v7348_v56 }
 0x44c   : > { %6271 = vmatmul.bf16.gmra.mxu3 %v7332_v18  ;;  %v14265_v3 = vpop.f32.mrf.mxu2  ;;  %v6308_v18 = vpop.f32.mrf.mxu0 }
 0x452   : > { %6232 = vmatmul.bf16.gmra.mxu2 %v14170_v19  ;;  %v14272_v44 = vpop.f32.mrf.mxu3 }
 0x454   : > { %v14270_v19 = vpop.f32.mrf.mxu2  ;;  %v6311_v12 = vpop.f32.mrf.mxu0 }
 0x45a   : > { %v14282_v49 = vpop.f32.mrf.mxu3 }
 0x45b   : > { %6384 = vmatmul.bf16.gmra.mxu1 %v7356_v36 }
 0x45c   : > { %6276 = vmatmul.bf16.gmra.mxu3 %v7340_v21  ;;  %v14275_v63 = vpop.f32.mrf.mxu2  ;;  %v6313_v26 = vpop.f32.mrf.mxu0 }
 0x462   : > { %6237 = vmatmul.bf16.gmra.mxu2 %v14206_v8  ;;  %v14280_v8 = vld [vmem:[%s14562_s5] sm:$0x3]  ;;  %v14289_v17 = vpop.f32.mrf.mxu3 }
 0x463   : > { %v14286_v47 = vperm.slane %v14280_v8, 1 }
 0x464   : > { %v14291_v21 = vpop.f32.mrf.mxu2  ;;  %v6316_v13 = vpop.f32.mrf.mxu0 }
 0x46a   : > { %v14295_v29 = vpop.f32.mrf.mxu3 }
 0x46b   : > { %6389 = vmatmul.bf16.gmra.mxu1 %v7364_v0 }
 0x46c   : > { %6281 = vmatmul.bf16.gmra.mxu3 %v7348_v56  ;;  %v14298_v55 = vpop.f32.mrf.mxu2  ;;  %v6318_v57 = vpop.f32.mrf.mxu0 }
 0x472   : > { %6242 = vmatmul.bf16.gmra.mxu2 %v14226_v32  ;;  %v14301_v6 = vpop.f32.mrf.mxu3 }
 0x478   : > { %v6355_v61 = vpop.f32.mrf.mxu1 }
 0x479   : > { %v6356_v54 = vadd.f32 %v6355_v61, %v6306_v35 }
 0x47b   : > { %v6396_v28 = vadd.f32 %v6356_v54, %v4276_v5  ;;  %v14305_v5 = vpop.f32.mrf.mxu2  ;;  %v6321_v54 = vpop.f32.mrf.mxu0 }
 0x47c   : > { %6286 = vmatmul.bf16.gmra.mxu3 %v7356_v36 }
 0x47d   : > { %v6498_v32 = vadd.f32 %v14286_v47, %v6396_v28  ;;  %v14311_v28 = vpop.f32.mrf.mxu3 }
 0x47f   : > { %v6530_v58 = vsub.f32 0.0, %v6498_v32 }
 0x480   : > { %v6357_v60 = vpop.f32.mrf.mxu1 }
 0x481   : > { %v6563_v16 = vmul.f32 1.442695, %v6530_v58  ;;  %v6358_v25 = vadd.f32 %v6357_v60, %v6308_v18 }
 0x483   : > { %7934 = vpow2.f32 %v6563_v16  ;;  %v6398_v51 = vadd.f32 %v6358_v25, %v4278_v33 }
 0x485   : > { %v6500_v38 = vadd.f32 %v14286_v47, %v6398_v51 }
 0x487   : > { %v6532_v27 = vsub.f32 0.0, %v6500_v38 }
 0x488   : > { %v6360_v2 = vpop.f32.mrf.mxu1 }
 0x489   : > { %v7935_v40 = vpop.eup %7934  ;;  %v6567_v14 = vmul.f32 1.442695, %v6532_v27  ;;  %v6361_v4 = vadd.f32 %v6360_v2, %v6311_v12  ;;  %v14317_v2 = vpop.f32.mrf.mxu2 }
 0x48a   : > { %v6626_v15 = vadd.f32 1.0, %v7935_v40  ;;  %v14319_v40 = vpop.f32.mrf.mxu3 }
 0x48b   : > { %7936 = vpow2.f32 %v6567_v14  ;;  %v6400_v23 = vadd.f32 %v6361_v4, %v4281_v48  ;;  %v6323_v14 = vpop.f32.mrf.mxu0 }
 0x48c   : > { %7938 = vrcp.f32 %v6626_v15  ;;  %6291 = vmatmul.bf16.gmra.mxu3 %v7364_v0 }
 0x48d   : > { %v6502_v56 = vadd.f32 %v14286_v47, %v6400_v23 }
 0x48f   : > { %v6534_v10 = vsub.f32 0.0, %v6502_v56 }
 0x490   : > { %v6362_v36 = vpop.f32.mrf.mxu1 }
 0x491   : > { %v7937_v35 = vpop.eup %7936  ;;  %v6571_v30 = vmul.f32 1.442695, %v6534_v10  ;;  %v6363_v18 = vadd.f32 %v6362_v36, %v6313_v26 }
 0x492   : > { %v7939_v37 = vpop.eup %7938  ;;  %v6628_v41 = vadd.f32 1.0, %v7937_v35 }
 0x493   : > { %v6690_v12 = vmul.f32 %v7939_v37, %v6498_v32  ;;  %7940 = vpow2.f32 %v6571_v30  ;;  %v6402_v61 = vadd.f32 %v6363_v18, %v4283_v53  ;;  %v4286_v32 = vadd.f32 %v14268_v62, %v14234_v43  ;;  %v14325_v53 = vpop.f32.mrf.mxu3  ;;  %v14327_v18 = vpop.f32.mrf.mxu2 }
 0x494   : > { %7942 = vrcp.f32 %v6628_v41  ;;  %v4288_v62 = vadd.f32 %v14272_v44, %v14246_v9  ;;  %v4291_v9 = vadd.f32 %v14282_v49, %v14257_v31  ;;  %v4293_v31 = vadd.f32 %v14289_v17, %v14260_v46 }
 0x495   : > { %6722 = vst [vmem:[%s14307_s20 + $0x8] sm:$0xff] %v6690_v12  ;;  %v6504_v0 = vadd.f32 %v14286_v47, %v6402_v61  ;;  %v6326_v12 = vpop.f32.mrf.mxu0  ;;  %v4296_v17 = vadd.f32 %v14295_v29, %v14263_v39  ;;  %v4298_v29 = vadd.f32 %v14301_v6, %v14265_v3 }
 0x497   : > { %v6536_v20 = vsub.f32 0.0, %v6504_v0 }
 0x498   : > { %v6365_v59 = vpop.f32.mrf.mxu1 }
 0x499   : > { %v7941_v26 = vpop.eup %7940  ;;  %v6575_v58 = vmul.f32 1.442695, %v6536_v20  ;;  %v6366_v60 = vadd.f32 %v6365_v59, %v6316_v13 }
 0x49a   : > { %v7943_v33 = vpop.eup %7942  ;;  %v6630_v16 = vadd.f32 1.0, %v7941_v26 }
 0x49b   : > { %v6692_v25 = vmul.f32 %v7943_v33, %v6500_v38  ;;  %7944 = vpow2.f32 %v6575_v58  ;;  %v6404_v51 = vadd.f32 %v6366_v60, %v4286_v32  ;;  %v14333_v32 = vpop.f32.mrf.mxu3 }
 0x49c   : > { %7946 = vrcp.f32 %v6630_v16 }
 0x49d   : > { %6724 = vst [vmem:[%s14307_s20 + $0x18] sm:$0xff] %v6692_v25  ;;  %v6506_v27 = vadd.f32 %v14286_v47, %v6404_v51  ;;  %v14337_v25 = vpop.f32.mrf.mxu2 }
 0x49f   : > { %v6538_v48 = vsub.f32 0.0, %v6506_v27 }
 0x4a0   : > { %v6367_v4 = vpop.f32.mrf.mxu1 }
 0x4a1   : > { %v7945_v43 = vpop.eup %7944  ;;  %v6579_v13 = vmul.f32 1.442695, %v6538_v48  ;;  %v6368_v38 = vadd.f32 %v6367_v4, %v6318_v57  ;;  %v6328_v4 = vpop.f32.mrf.mxu0 }
 0x4a2   : > { %v7947_v15 = vpop.eup %7946  ;;  %v6632_v23 = vadd.f32 1.0, %v7945_v43 }
 0x4a3   : > { %v6694_v10 = vmul.f32 %v7947_v15, %v6502_v56  ;;  %7948 = vpow2.f32 %v6579_v13  ;;  %v6406_v36 = vadd.f32 %v6368_v38, %v4288_v62  ;;  %v14341_v62 = vpop.f32.mrf.mxu3 }
 0x4a4   : > { %7950 = vrcp.f32 %v6632_v23 }
 0x4a5   : > { %6726 = vst [vmem:[%s14307_s20 + $0x28] sm:$0xff] %v6694_v10  ;;  %v6508_v35 = vadd.f32 %v14286_v47, %v6406_v36 }
 0x4a7   : > { %v6540_v30 = vsub.f32 0.0, %v6508_v35 }
 0x4a8   : > { %v6370_v37 = vpop.f32.mrf.mxu1 }
 0x4a9   : > { %v7949_v41 = vpop.eup %7948  ;;  %v6583_v44 = vmul.f32 1.442695, %v6540_v30  ;;  %v6371_v57 = vadd.f32 %v6370_v37, %v6321_v54  ;;  %v14345_v30 = vpop.f32.mrf.mxu2 }
 0x4aa   : > { %v7951_v56 = vpop.eup %7950  ;;  %v6634_v61 = vadd.f32 1.0, %v7949_v41  ;;  %v6331_v41 = vpop.f32.mrf.mxu0 }
 0x4ab   : > { %v6696_v20 = vmul.f32 %v7951_v56, %v6504_v0  ;;  %7952 = vpow2.f32 %v6583_v44  ;;  %v6408_v59 = vadd.f32 %v6371_v57, %v4291_v9  ;;  %v14349_v9 = vpop.f32.mrf.mxu3 }
 0x4ac   : > { %7954 = vrcp.f32 %v6634_v61 }
 0x4ad   : > { %6728 = vst [vmem:[%s14307_s20 + $0x38] sm:$0xff] %v6696_v20  ;;  %v6510_v26 = vadd.f32 %v14286_v47, %v6408_v59 }
 0x4af   : > { %v6542_v58 = vsub.f32 0.0, %v6510_v26 }
 0x4b0   : > { %v6372_v60 = vpop.f32.mrf.mxu1 }
 0x4b1   : > { %v7953_v33 = vpop.eup %7952  ;;  %v6587_v49 = vmul.f32 1.442695, %v6542_v58  ;;  %v6373_v54 = vadd.f32 %v6372_v60, %v6323_v14  ;;  %v14357_v60 = vpop.f32.mrf.mxu2 }
 0x4b2   : > { %v7955_v16 = vpop.eup %7954  ;;  %v6636_v0 = vadd.f32 1.0, %v7953_v33 }
 0x4b3   : > { %v6698_v51 = vmul.f32 %v7955_v16, %v6506_v27  ;;  %7956 = vpow2.f32 %v6587_v49  ;;  %v6410_v48 = vadd.f32 %v6373_v54, %v4293_v31  ;;  %v6257_v33 = vpop.f32.mrf.mxu3  ;;  %v16246_v31 = vld [vmem:[#allocation151_spill] sm:$0xff]  ;;  %v16247_v49 = vld [vmem:[#allocation60_spill] sm:$0xff]  ;;  %v6333_v16 = vpop.f32.mrf.mxu0 }
 0x4b4   : > { %7958 = vrcp.f32 %v6636_v0  ;;  %v4178_v54 = vadd.f32 %v16247_v49, %v16246_v31  ;;  %v6258_v6 = vadd.f32 %v6257_v33, %v14327_v18 }
 0x4b5   : > { %6730 = vst [vmem:[%s14307_s20 + $0x48] sm:$0xff] %v6698_v51  ;;  %v6512_v43 = vadd.f32 %v14286_v47, %v6410_v48  ;;  %v4301_v48 = vadd.f32 %v14311_v28, %v14270_v19  ;;  %v16248_v19 = vld [vmem:[#allocation86_spill] sm:$0xff] }
 0x4b6   : > { %v16249_v28 = vld [vmem:[#allocation182_spill] sm:$0xff] }
 0x4b7   : > { %v6544_v13 = vsub.f32 0.0, %v6512_v43 }
 0x4b8   : > { %v6375_v38 = vpop.f32.mrf.mxu1 }
 0x4b9   : > { %v7957_v46 = vpop.eup %7956  ;;  %v6591_v14 = vmul.f32 1.442695, %v6544_v13  ;;  %v6376_v15 = vadd.f32 %v6375_v38, %v6326_v12  ;;  %v6395_v38 = vadd.f32 %v6258_v6, %v4178_v54  ;;  %v16251_v6 = vld [vmem:[#allocation32_spill] sm:$0xff] }
 0x4ba   : > { %v7959_v23 = vpop.eup %7958  ;;  %v6638_v27 = vadd.f32 1.0, %v7957_v46 }
 0x4bb   : > { %v6700_v10 = vmul.f32 %v7959_v23, %v6508_v35  ;;  %7960 = vpow2.f32 %v6591_v14  ;;  %v6412_v36 = vadd.f32 %v6376_v15, %v4296_v17 }
 0x4bc   : > { %7962 = vrcp.f32 %v6638_v27  ;;  %v6259_v27 = vpop.f32.mrf.mxu3 }
 0x4bd   : > { %6732 = vst [vmem:[%s14307_s20 + $0x58] sm:$0xff] %v6700_v10  ;;  %v6514_v37 = vadd.f32 %v14286_v47, %v6412_v36  ;;  %v4180_v10 = vadd.f32 %v16249_v28, %v16248_v19 }
 0x4bf   : > { %v6546_v44 = vsub.f32 0.0, %v6514_v37 }
 0x4c0   : > { %v6377_v57 = vpop.f32.mrf.mxu1 }
 0x4c1   : > { %v7961_v39 = vpop.eup %7960  ;;  %v6595_v56 = vmul.f32 1.442695, %v6546_v44  ;;  %v6378_v35 = vadd.f32 %v6377_v57, %v6328_v4  ;;  %v4303_v44 = vadd.f32 %v14319_v40, %v14275_v63  ;;  %v14382_v57 = vpop.f32.mrf.mxu2 }
 0x4c2   : > { %v7963_v12 = vpop.eup %7962  ;;  %v6640_v61 = vadd.f32 1.0, %v7961_v39 }
 0x4c3   : > { %v6702_v20 = vmul.f32 %v7963_v12, %v6510_v26  ;;  %7964 = vpow2.f32 %v6595_v56  ;;  %v6414_v59 = vadd.f32 %v6378_v35, %v4298_v29  ;;  %v14364_v26 = vperm.slane %v14280_v8, 0 }
 0x4c4   : > { %7966 = vrcp.f32 %v6640_v61  ;;  %v6262_v49 = vpop.f32.mrf.mxu3 }
 0x4c5   : > { %6734 = vst [vmem:[%s14307_s20 + $0x68] sm:$0xff] %v6702_v20  ;;  %v14355_v58 = vadd.f32 %v14286_v47, %v6414_v59  ;;  %v14369_v18 = vadd.f32 %v14364_v26, %v6395_v38  ;;  %v6336_v20 = vpop.f32.mrf.mxu0 }
 0x4c7   : > { %v6548_v3 = vsub.f32 0.0, %v14355_v58  ;;  %v6529_v23 = vsub.f32 0.0, %v14369_v18 }
 0x4c8   : > { %v6380_v0 = vpop.f32.mrf.mxu1 }
 0x4c9   : > { %v7965_v51 = vpop.eup %7964  ;;  %v6599_v4 = vmul.f32 1.442695, %v6548_v3  ;;  %v6381_v13 = vadd.f32 %v6380_v0, %v6331_v41  ;;  %v6561_v41 = vmul.f32 1.442695, %v6529_v23  ;;  %v16250_v3 = vld [vmem:[#allocation168_spill] sm:$0xff]  ;;  %v14398_v23 = vpop.f32.mrf.mxu2 }
 0x4ca   : > { %v7967_v46 = vpop.eup %7966  ;;  %v6642_v17 = vadd.f32 1.0, %v7965_v51  ;;  %v6263_v51 = vadd.f32 %v6262_v49, %v14345_v30 }
 0x4cb   : > { %v6704_v14 = vmul.f32 %v7967_v46, %v6512_v43  ;;  %7968 = vpow2.f32 %v6599_v4  ;;  %v6416_v15 = vadd.f32 %v6381_v13, %v4301_v48  ;;  %v6260_v43 = vadd.f32 %v6259_v27, %v14337_v25 }
 0x4cc   : > { %7970 = vrcp.f32 %v6642_v17  ;;  %v4306_v48 = vadd.f32 %v14325_v53, %v14291_v21 }
 0x4cd   : > { %6736 = vst [vmem:[%s14307_s20 + $0x78] sm:$0xff] %v6704_v14  ;;  %v14373_v8 = vadd.f32 %v14286_v47, %v6416_v15  ;;  %7972 = vpow2.f32 %v6561_v41  ;;  %v6397_v12 = vadd.f32 %v6260_v43, %v4180_v10  ;;  %v6338_v21 = vpop.f32.mrf.mxu0 }
 0x4cf   : > { %v6550_v36 = vsub.f32 0.0, %v14373_v8  ;;  %v14385_v25 = vadd.f32 %v14364_v26, %v6397_v12  ;;  %v4308_v12 = vadd.f32 %v14333_v32, %v14298_v55 }
 0x4d0   : > { %v6382_v39 = vpop.f32.mrf.mxu1 }
 0x4d1   : > { %v7969_v29 = vpop.eup %7968  ;;  %v6603_v56 = vmul.f32 1.442695, %v6550_v36  ;;  %v6383_v35 = vadd.f32 %v6382_v39, %v6333_v16  ;;  %v6531_v40 = vsub.f32 0.0, %v14385_v25  ;;  %v4183_v16 = vadd.f32 %v16251_v6, %v16250_v3  ;;  %v6264_v36 = vpop.f32.mrf.mxu3 }
 0x4d2   : > { %v7971_v61 = vpop.eup %7970  ;;  %v6644_v59 = vadd.f32 1.0, %v7969_v29  ;;  %v16252_v29 = vld [vmem:[#allocation36_spill] sm:$0xff] }
 0x4d3   : > { %v6706_v33 = vmul.f32 %v7971_v61, %v6514_v37  ;;  %7974 = vpow2.f32 %v6603_v56  ;;  %v6418_v31 = vadd.f32 %v6383_v35, %v4303_v44  ;;  %v7973_v54 = vpop.eup %7972  ;;  %v6565_v37 = vmul.f32 1.442695, %v6531_v40  ;;  %v16253_v56 = vld [vmem:[#allocation67_spill] sm:$0xff] }
 0x4d4   : > { %7976 = vrcp.f32 %v6644_v59  ;;  %v6625_v4 = vadd.f32 1.0, %v7973_v54  ;;  %v6399_v14 = vadd.f32 %v6263_v51, %v4183_v16  ;;  %v4185_v35 = vadd.f32 %v16253_v56, %v16252_v29  ;;  %v14418_v16 = vpop.f32.mrf.mxu2 }
 0x4d5   : > { %6738 = vst [vmem:[%s14307_s20 + $0x88] sm:$0xff] %v6706_v33  ;;  %v14389_v63 = vadd.f32 %v14286_v47, %v6418_v31  ;;  %7978 = vpow2.f32 %v6565_v37 }
 0x4d6   : > { %7980 = vrcp.f32 %v6625_v4  ;;  %v14402_v28 = vadd.f32 %v14364_v26, %v6399_v14 }
 0x4d7   : > { %v6552_v0 = vsub.f32 0.0, %v14389_v63 }
 0x4d8   : > { %v6385_v13 = vpop.f32.mrf.mxu1  ;;  %v6533_v10 = vsub.f32 0.0, %v14402_v28 }
 0x4d9   : > { %v7975_v38 = vpop.eup %7974  ;;  %v6607_v46 = vmul.f32 1.442695, %v6552_v0  ;;  %v6386_v17 = vadd.f32 %v6385_v13, %v6336_v20  ;;  %v6267_v37 = vpop.f32.mrf.mxu3 }
 0x4da   : > { %v7977_v15 = vpop.eup %7976  ;;  %v6646_v27 = vadd.f32 1.0, %v7975_v38  ;;  %v6569_v44 = vmul.f32 1.442695, %v6533_v10  ;;  %v6268_v38 = vadd.f32 %v6267_v37, %v14382_v57 }
 0x4db   : > { %v6708_v19 = vmul.f32 %v7977_v15, %v14355_v58  ;;  %7982 = vpow2.f32 %v6607_v46  ;;  %v6420_v30 = vadd.f32 %v6386_v17, %v4306_v48  ;;  %v7979_v41 = vpop.eup %7978  ;;  %v6265_v58 = vadd.f32 %v6264_v36, %v14357_v60  ;;  %v16254_v48 = vld [vmem:[#allocation81_spill] sm:$0xff] }
 0x4dc   : > { %7984 = vrcp.f32 %v6646_v27  ;;  %v7981_v39 = vpop.eup %7980  ;;  %v6627_v61 = vadd.f32 1.0, %v7979_v41  ;;  %v4311_v17 = vadd.f32 %v14341_v62, %v14305_v5 }
 0x4dd   : > { %6740 = vst [vmem:[%s14307_s20 + $0x98] sm:$0xff] %v6708_v19  ;;  %v14406_v53 = vadd.f32 %v14286_v47, %v6420_v30  ;;  %v6689_v33 = vmul.f32 %v7981_v39, %v14369_v18  ;;  %7986 = vpow2.f32 %v6569_v44  ;;  %v6401_v60 = vadd.f32 %v6265_v58, %v4185_v35  ;;  %v6341_v18 = vpop.f32.mrf.mxu0  ;;  %v6225_v58 = vpop.f32.mrf.mxu2 }
 0x4de   : > { %7988 = vrcp.f32 %v6627_v61  ;;  %v16257_v61 = vld [vmem:[#allocation71_spill] sm:$0xff] }
 0x4df   : > { %v6554_v43 = vsub.f32 0.0, %v14406_v53  ;;  %6721 = vst [vmem:[%s14307_s20] sm:$0xff] %v6689_v33  ;;  %v14421_v55 = vadd.f32 %v14364_v26, %v6401_v60  ;;  %v4313_v33 = vadd.f32 %v14349_v9, %v14317_v2 }
 0x4e0   : > { %v6387_v20 = vpop.f32.mrf.mxu1 }
 0x4e1   : > { %v7983_v59 = vpop.eup %7982  ;;  %v6611_v31 = vmul.f32 1.442695, %v6554_v43  ;;  %v6388_v40 = vadd.f32 %v6387_v20, %v6338_v21  ;;  %v6535_v0 = vsub.f32 0.0, %v14421_v55  ;;  %v6269_v39 = vpop.f32.mrf.mxu3 }
 0x4e2   : > { %v7985_v49 = vpop.eup %7984  ;;  %v6648_v54 = vadd.f32 1.0, %v7983_v59 }
 0x4e3   : > { %v6710_v3 = vmul.f32 %v7985_v49, %v14373_v8  ;;  %7990 = vpow2.f32 %v6611_v31  ;;  %v6422_v6 = vadd.f32 %v6388_v40, %v4308_v12  ;;  %v7987_v51 = vpop.eup %7986  ;;  %v16255_v8 = vld [vmem:[#allocation75_spill] sm:$0xff]  ;;  %v6573_v15 = vmul.f32 1.442695, %v6535_v0  ;;  %v16256_v12 = vld [vmem:[#allocation90_spill] sm:$0xff] }
 0x4e4   : > { %7992 = vrcp.f32 %v6648_v54  ;;  %v4188_v4 = vadd.f32 %v16255_v8, %v16254_v48  ;;  %v7989_v46 = vpop.eup %7988  ;;  %v6629_v14 = vadd.f32 1.0, %v7987_v51  ;;  %v4190_v20 = vadd.f32 %v16257_v61, %v16256_v12 }
 0x4e5   : > { %6742 = vst [vmem:[%s14307_s20 + $0xa8] sm:$0xff] %v6710_v3  ;;  %v14425_v32 = vadd.f32 %v14286_v47, %v6422_v6  ;;  %v6691_v30 = vmul.f32 %v7989_v46, %v14385_v25  ;;  %v6343_v59 = vpop.f32.mrf.mxu0 }
 0x4e6   : > { %v6403_v36 = vadd.f32 %v6268_v38, %v4188_v4  ;;  %7994 = vrcp.f32 %v6629_v14  ;;  %v16258_v4 = vld [vmem:[#allocation30_spill] sm:$0xff] }
 0x4e7   : > { %v6556_v13 = vsub.f32 0.0, %v14425_v32  ;;  %6723 = vst [vmem:[%s14307_s20 + $0x10] sm:$0xff] %v6691_v30 }
 0x4e8   : > { %v6390_v27 = vpop.f32.mrf.mxu1  ;;  %v14438_v5 = vadd.f32 %v14364_v26, %v6403_v36 }
 0x4e9   : > { %v7991_v19 = vpop.eup %7990  ;;  %v6615_v21 = vmul.f32 1.442695, %v6556_v13  ;;  %v6391_v10 = vadd.f32 %v6390_v27, %v6341_v18  ;;  %v6272_v48 = vpop.f32.mrf.mxu3  ;;  %v16259_v13 = vld [vmem:[#allocation161_spill] sm:$0xff] }
 0x4ea   : > { %v7993_v41 = vpop.eup %7992  ;;  %v6650_v43 = vadd.f32 1.0, %v7991_v19  ;;  %v6537_v25 = vsub.f32 0.0, %v14438_v5  ;;  %v4193_v38 = vadd.f32 %v16259_v13, %v16258_v4  ;;  %v6273_v46 = vadd.f32 %v6272_v48, %v14418_v16  ;;  %v16263_v13 = vld [vmem:[#allocation83_spill] sm:$0xff] }
 0x4eb   : > { %v6712_v44 = vmul.f32 %v7993_v41, %v14389_v63  ;;  %7996 = vpow2.f32 %v6615_v21  ;;  %v6424_v57 = vadd.f32 %v6391_v10, %v4311_v17  ;;  %v6270_v63 = vadd.f32 %v6269_v39, %v14398_v23  ;;  %v6228_v17 = vpop.f32.mrf.mxu2 }
 0x4ec   : > { %7998 = vrcp.f32 %v6650_v43  ;;  %v6577_v56 = vmul.f32 1.442695, %v6537_v25  ;;  %v7995_v35 = vpop.eup %7994  ;;  %v6407_v30 = vadd.f32 %v6273_v46, %v4193_v38  ;;  %v4200_v38 = vadd.f32 %v14087_v11, %v16263_v13 }
 0x4ed   : > { %6744 = vst [vmem:[%s14307_s20 + $0xb8] sm:$0xff] %v6712_v44  ;;  %8000 = vpow2.f32 %v6573_v15  ;;  %v14442_v62 = vadd.f32 %v14286_v47, %v6424_v57  ;;  %v6693_v49 = vmul.f32 %v7995_v35, %v14402_v28  ;;  %v6405_v23 = vadd.f32 %v6270_v63, %v4190_v20  ;;  %v16260_v57 = vld [vmem:[#allocation66_spill] sm:$0xff] }
 0x4ee   : > { %8002 = vpow2.f32 %v6577_v56  ;;  %v6509_v36 = vadd.f32 %v14364_v26, %v6407_v30  ;;  %v4195_v25 = vadd.f32 %v13977_v7, %v16260_v57 }
 0x4ef   : > { %v6558_v29 = vsub.f32 0.0, %v14442_v62  ;;  %6725 = vst [vmem:[%s14307_s20 + $0x20] sm:$0xff] %v6693_v49  ;;  %v14455_v2 = vadd.f32 %v14364_v26, %v6405_v23  ;;  %v16262_v49 = vld [vmem:[#allocation178_spill] sm:$0xff] }
 0x4f0   : > { %v6392_v31 = vpop.f32.mrf.mxu1  ;;  %v6541_v43 = vsub.f32 0.0, %v6509_v36 }
 0x4f1   : > { %v7997_v40 = vpop.eup %7996  ;;  %v6619_v54 = vmul.f32 1.442695, %v6558_v29  ;;  %v6393_v60 = vadd.f32 %v6392_v31, %v6343_v59  ;;  %v6539_v28 = vsub.f32 0.0, %v14455_v2  ;;  %v6274_v44 = vpop.f32.mrf.mxu3 }
 0x4f2   : > { %v7999_v3 = vpop.eup %7998  ;;  %v6652_v6 = vadd.f32 1.0, %v7997_v40  ;;  %v6585_v39 = vmul.f32 1.442695, %v6541_v43  ;;  %v6275_v29 = vadd.f32 %v6274_v44, %v6225_v58 }
 0x4f3   : > { %v8001_v18 = vpop.eup %8000  ;;  %v6714_v0 = vmul.f32 %v7999_v3, %v14406_v53  ;;  %8004 = vpow2.f32 %v6619_v54  ;;  %v6426_v37 = vadd.f32 %v6393_v60, %v4313_v33  ;;  %v6581_v19 = vmul.f32 1.442695, %v6539_v28  ;;  %v6230_v61 = vpop.f32.mrf.mxu2 }
 0x4f4   : > { %8006 = vrcp.f32 %v6652_v6  ;;  %v6631_v51 = vadd.f32 1.0, %v8001_v18  ;;  %v8003_v8 = vpop.eup %8002  ;;  %v6409_v35 = vadd.f32 %v6275_v29, %v4195_v25 }
 0x4f5   : > { %6746 = vst [vmem:[%s14307_s20 + $0xc8] sm:$0xff] %v6714_v0  ;;  %v6528_v9 = vadd.f32 %v14286_v47, %v6426_v37  ;;  %v6633_v14 = vadd.f32 1.0, %v8003_v8 }
 0x4f6   : > { %8008 = vrcp.f32 %v6631_v51  ;;  %v6511_v33 = vadd.f32 %v14364_v26, %v6409_v35 }
 0x4f7   : > { %v6560_v53 = vsub.f32 0.0, %v6528_v9  ;;  %8010 = vrcp.f32 %v6633_v14 }
 0x4f8   : > { %v6543_v31 = vsub.f32 0.0, %v6511_v33 }
 0x4f9   : > { %v8005_v15 = vpop.eup %8004  ;;  %v6623_v27 = vmul.f32 1.442695, %v6560_v53  ;;  %v6277_v58 = vpop.f32.mrf.mxu3 }
 0x4fa   : > { %v8007_v47 = vpop.eup %8006  ;;  %v6654_v21 = vadd.f32 1.0, %v8005_v15  ;;  %v6589_v60 = vmul.f32 1.442695, %v6543_v31  ;;  %v6278_v3 = vadd.f32 %v6277_v58, %v6228_v17  ;;  %v16266_v58 = vld [vmem:[#allocation100_spill] sm:$0xff] }
 0x4fb   : > { %v6716_v10 = vmul.f32 %v8007_v47, %v14425_v32  ;;  %8012 = vpow2.f32 %v6623_v27  ;;  %v6233_v51 = vpop.f32.mrf.mxu2 }
 0x4fc   : > { %v8009_v41 = vpop.eup %8008  ;;  %8014 = vrcp.f32 %v6654_v21  ;;  %v16264_v21 = vld [vmem:[#allocation68_spill] sm:$0xff] }
 0x4fd   : > { %6748 = vst [vmem:[%s14307_s20 + $0xd8] sm:$0xff] %v6716_v10  ;;  %v6695_v16 = vmul.f32 %v8009_v41, %v14421_v55  ;;  %8016 = vpow2.f32 %v6581_v19  ;;  %v8011_v32 = vpop.eup %8010  ;;  %v4203_v11 = vadd.f32 %v14133_v34, %v16264_v21 }
 0x4fe   : > { %v6697_v63 = vmul.f32 %v8011_v32, %v14438_v5  ;;  %8018 = vpow2.f32 %v6585_v39  ;;  %v16261_v5 = vld [vmem:[#allocation176_spill] sm:$0xff]  ;;  %v16265_v32 = vld [vmem:[#allocation63_spill] sm:$0xff] }
 0x4ff   : > { %6727 = vst [vmem:[%s14307_s20 + $0x30] sm:$0xff] %v6695_v16  ;;  %v4198_v54 = vadd.f32 %v16262_v49, %v16261_v5 }
 0x500   : > { %6729 = vst [vmem:[%s14307_s20 + $0x40] sm:$0xff] %v6697_v63 }
 0x501   : > { %v8013_v56 = vpop.eup %8012  ;;  %v6279_v8 = vpop.f32.mrf.mxu3 }
 0x502   : > { %v8015_v12 = vpop.eup %8014  ;;  %v6656_v55 = vadd.f32 1.0, %v8013_v56  ;;  %v6280_v46 = vadd.f32 %v6279_v8, %v6230_v61  ;;  %v4205_v56 = vadd.f32 %v14160_v22, %v16265_v32 }
 0x503   : > { %v8017_v20 = vpop.eup %8016  ;;  %v6718_v59 = vmul.f32 %v8015_v12, %v14442_v62  ;;  %v6411_v62 = vadd.f32 %v6278_v3, %v4198_v54  ;;  %v6235_v19 = vpop.f32.mrf.mxu2 }
 0x504   : > { %8020 = vrcp.f32 %v6656_v55  ;;  %v6635_v7 = vadd.f32 1.0, %v8017_v20  ;;  %v8019_v40 = vpop.eup %8018  ;;  %v6413_v15 = vadd.f32 %v6280_v46, %v4200_v38 }
 0x505   : > { %6750 = vst [vmem:[%s14307_s20 + $0xe8] sm:$0xff] %v6718_v59  ;;  %v6637_v6 = vadd.f32 1.0, %v8019_v40  ;;  %v6513_v0 = vadd.f32 %v14364_v26, %v6411_v62  ;;  %v4208_v40 = vadd.f32 %v14187_v50, %v16266_v58 }
 0x506   : > { %8022 = vrcp.f32 %v6635_v7  ;;  %v6515_v27 = vadd.f32 %v14364_v26, %v6413_v15 }
 0x507   : > { %8024 = vpow2.f32 %v6589_v60  ;;  %v6545_v48 = vsub.f32 0.0, %v6513_v0 }
 0x508   : > { %8026 = vrcp.f32 %v6637_v6 }
 0x509   : > { %v6593_v53 = vmul.f32 1.442695, %v6545_v48  ;;  %v6282_v30 = vpop.f32.mrf.mxu3 }
 0x50a   : > { %v8021_v23 = vpop.eup %8020  ;;  %v6283_v41 = vadd.f32 %v6282_v30, %v6233_v51 }
 0x50b   : > { %v6720_v18 = vmul.f32 %v8021_v23, %v6528_v9  ;;  %8028 = vpow2.f32 %v6593_v53  ;;  %v6238_v12 = vpop.f32.mrf.mxu2 }
 0x50c   : > { %v8023_v37 = vpop.eup %8022 }
 0x50d   : > { %6752 = vst [vmem:[%s14307_s20 + $0xf8] sm:$0xff] %v6720_v18  ;;  %v6699_v28 = vmul.f32 %v8023_v37, %v14455_v2  ;;  %v8025_v4 = vpop.eup %8024  ;;  %v6547_v2 = vsub.f32 0.0, %v6515_v27  ;;  %v16267_v37 = vld [vmem:[#allocation155_spill] sm:$0xff] }
 0x50e   : > { %v8027_v17 = vpop.eup %8026  ;;  %v6639_v14 = vadd.f32 1.0, %v8025_v4  ;;  %v4210_v51 = vadd.f32 %v14208_v45, %v16267_v37 }
 0x50f   : > { %6731 = vst [vmem:[%s14307_s20 + $0x50] sm:$0xff] %v6699_v28  ;;  %v6701_v9 = vmul.f32 %v8027_v17, %v6509_v36  ;;  %v6597_v10 = vmul.f32 1.442695, %v6547_v2  ;;  %v6415_v36 = vadd.f32 %v6283_v41, %v4203_v11 }
 0x510   : > { %8030 = vrcp.f32 %v6639_v14 }
 0x511   : > { %6733 = vst [vmem:[%s14307_s20 + $0x60] sm:$0xff] %v6701_v9  ;;  %v8029_v47 = vpop.eup %8028  ;;  %8032 = vpow2.f32 %v6597_v10  ;;  %v6517_v57 = vadd.f32 %v14364_v26, %v6415_v36  ;;  %v6284_v39 = vpop.f32.mrf.mxu3  ;;  %v4213_v9 = vadd.f32 %v14224_v42, %v14054_v1 }
 0x512   : > { %v6641_v43 = vadd.f32 1.0, %v8029_v47  ;;  %v6285_v34 = vadd.f32 %v6284_v39, %v6235_v19 }
 0x513   : > { %v6549_v25 = vsub.f32 0.0, %v6517_v57  ;;  %v6240_v6 = vpop.f32.mrf.mxu2 }
 0x514   : > { %8034 = vrcp.f32 %v6641_v43  ;;  %v6417_v20 = vadd.f32 %v6285_v34, %v4205_v56 }
 0x515   : > { %v6601_v63 = vmul.f32 1.442695, %v6549_v25 }
 0x516   : > { %v8031_v16 = vpop.eup %8030  ;;  %v6519_v59 = vadd.f32 %v14364_v26, %v6417_v20 }
 0x517   : > { %v6703_v44 = vmul.f32 %v8031_v16, %v6511_v33  ;;  %v8033_v29 = vpop.eup %8032  ;;  %8036 = vpow2.f32 %v6601_v63  ;;  %v4215_v16 = vadd.f32 %v14236_v52, %v14116_v24 }
 0x518   : > { %v6643_v61 = vadd.f32 1.0, %v8033_v29  ;;  %v6551_v33 = vsub.f32 0.0, %v6519_v59 }
 0x519   : > { %6735 = vst [vmem:[%s14307_s20 + $0x70] sm:$0xff] %v6703_v44  ;;  %v6287_v7 = vpop.f32.mrf.mxu3 }
 0x51a   : > { %v8035_v35 = vpop.eup %8034  ;;  %8038 = vrcp.f32 %v6643_v61  ;;  %v6605_v22 = vmul.f32 1.442695, %v6551_v33  ;;  %v6288_v5 = vadd.f32 %v6287_v7, %v6238_v12 }
 0x51b   : > { %v6705_v55 = vmul.f32 %v8035_v35, %v6513_v0  ;;  %v6243_v53 = vpop.f32.mrf.mxu2 }
 0x51c   : > { %8040 = vpow2.f32 %v6605_v22  ;;  %v6419_v3 = vadd.f32 %v6288_v5, %v4208_v40 }
 0x51d   : > { %6737 = vst [vmem:[%s14307_s20 + $0x80] sm:$0xff] %v6705_v55  ;;  %v8037_v31 = vpop.eup %8036 }
 0x51e   : > { %v6645_v54 = vadd.f32 1.0, %v8037_v31  ;;  %v6521_v62 = vadd.f32 %v14364_v26, %v6419_v3 }
 0x520   : > { %v8039_v49 = vpop.eup %8038  ;;  %8042 = vrcp.f32 %v6645_v54  ;;  %v6553_v23 = vsub.f32 0.0, %v6521_v62 }
 0x521   : > { %v6707_v60 = vmul.f32 %v8039_v49, %v6515_v27  ;;  %v6289_v18 = vpop.f32.mrf.mxu3 }
 0x522   : > { %v8041_v0 = vpop.eup %8040  ;;  %v6609_v50 = vmul.f32 1.442695, %v6553_v23  ;;  %v6290_v28 = vadd.f32 %v6289_v18, %v6240_v6 }
 0x523   : > { %6739 = vst [vmem:[%s14307_s20 + $0x90] sm:$0xff] %v6707_v60  ;;  %v6647_v8 = vadd.f32 1.0, %v8041_v0  ;;  %v6245_v11 = vpop.f32.mrf.mxu2 }
 0x524   : > { %8044 = vpow2.f32 %v6609_v50  ;;  %v6421_v13 = vadd.f32 %v6290_v28, %v4210_v51 }
 0x525   : > { %8046 = vrcp.f32 %v6647_v8 }
 0x526   : > { %v8043_v48 = vpop.eup %8042  ;;  %v6523_v38 = vadd.f32 %v14364_v26, %v6421_v13 }
 0x527   : > { %v6709_v4 = vmul.f32 %v8043_v48, %v6517_v57 }
 0x528   : > { %v6555_v46 = vsub.f32 0.0, %v6523_v38 }
 0x529   : > { %6741 = vst [vmem:[%s14307_s20 + $0xa0] sm:$0xff] %v6709_v4  ;;  %v6292_v17 = vpop.f32.mrf.mxu3 }
 0x52a   : > { %v8045_v14 = vpop.eup %8044  ;;  %v6613_v45 = vmul.f32 1.442695, %v6555_v46  ;;  %v6293_v15 = vadd.f32 %v6292_v17, %v6243_v53 }
 0x52b   : > { %v8047_v27 = vpop.eup %8046  ;;  %v6649_v2 = vadd.f32 1.0, %v8045_v14 }
 0x52c   : > { %v6711_v19 = vmul.f32 %v8047_v27, %v6519_v59  ;;  %8048 = vpow2.f32 %v6613_v45  ;;  %v6423_v30 = vadd.f32 %v6293_v15, %v4213_v9 }
 0x52d   : > { %8050 = vrcp.f32 %v6649_v2 }
 0x52e   : > { %6743 = vst [vmem:[%s14307_s20 + $0xb0] sm:$0xff] %v6711_v19  ;;  %v6525_v47 = vadd.f32 %v14364_v26, %v6423_v30 }
 0x530   : > { %v6557_v21 = vsub.f32 0.0, %v6525_v47 }
 0x531   : > { %v6294_v10 = vpop.f32.mrf.mxu3 }
 0x532   : > { %v8049_v41 = vpop.eup %8048  ;;  %v6617_v1 = vmul.f32 1.442695, %v6557_v21  ;;  %v6295_v42 = vadd.f32 %v6294_v10, %v6245_v11 }
 0x533   : > { %v8051_v43 = vpop.eup %8050  ;;  %v6651_v44 = vadd.f32 1.0, %v8049_v41 }
 0x534   : > { %v6713_v36 = vmul.f32 %v8051_v43, %v6521_v62  ;;  %8052 = vpow2.f32 %v6617_v1  ;;  %v6425_v57 = vadd.f32 %v6295_v42, %v4215_v16 }
 0x535   : > { %8054 = vrcp.f32 %v6651_v44 }
 0x536   : > { %6745 = vst [vmem:[%s14307_s20 + $0xc0] sm:$0xff] %v6713_v36  ;;  %v6527_v25 = vadd.f32 %v14364_v26, %v6425_v57 }
 0x538   : > { %v6559_v39 = vsub.f32 0.0, %v6527_v25 }
 0x53a   : > { %v8053_v29 = vpop.eup %8052  ;;  %v6621_v32 = vmul.f32 1.442695, %v6559_v39 }
 0x53b   : > { %v8055_v56 = vpop.eup %8054  ;;  %v6653_v24 = vadd.f32 1.0, %v8053_v29 }
 0x53c   : > { %v6715_v52 = vmul.f32 %v8055_v56, %v6523_v38  ;;  %8056 = vpow2.f32 %v6621_v32 }
 0x53d   : > { %8058 = vrcp.f32 %v6653_v24 }
 0x53e   : > { %6747 = vst [vmem:[%s14307_s20 + $0xd0] sm:$0xff] %v6715_v52 }
 0x542   : > { %v8057_v63 = vpop.eup %8056 }
 0x543   : > { %v8059_v34 = vpop.eup %8058  ;;  %v6655_v35 = vadd.f32 1.0, %v8057_v63 }
 0x544   : > { %v6717_v26 = vmul.f32 %v8059_v34, %v6525_v47 }
 0x545   : > { %8060 = vrcp.f32 %v6655_v35 }
 0x546   : > { %6749 = vst [vmem:[%s14307_s20 + $0xe0] sm:$0xff] %v6717_v26 }
 0x54b   : > { %v8061_v12 = vpop.eup %8060 }
 0x54c   : > { %v6719_v61 = vmul.f32 %v8061_v12, %v6527_v25 }
 0x54e   : > { %6751 = vst [vmem:[%s14307_s20 + $0xf0] sm:$0xff] %v6719_v61 }
 0x54f   : > { %8245 = shalt.err (!%p8242_p5)
}
 0x550   : > { %s8327_s17 = smov 256   ;;  %s8328_s20 = smov 16  }
 0x551   : > { %7681 = dma.vmem_to_hbm [thread:$0]  (%p8455_p3), %s6770_s21, 4096, %s6772_s25, %s6754_s24, %s8327_s17, %s8327_s17, %s8328_s20  }
 0x552 PF: > { %s16271_s29 = sld [smem:[#allocation17_spill]] }
 0x553   : > { %s16272_s11 = sld [smem:[#allocation14_spill]] }
 0x558   : > { %p7698_p7 = scmp.ge.s32.totalorder %s16271_s29, 2 }
 0x559   : > { %s6786_s13 = sand.u32 1, %s16272_s11  }
 0x55a   : > { %p7692_p9 = pnand %p7698_p7, %p8423_p6  ;;  %s6787_s15 = scalar_lea.sflag [#allocation7], %s6786_s13 }
 0x55c   : > { %p7693_p10 = pneg %p7692_p9 }
 0x55e   : > { %8287 = dma.done.wait (%p7693_p10), %s6787_s15, 4096  }
 0x55f   : > { %8289 = vsyncadd (%p7693_p10), %s6787_s15, 4294963200  ;;  %s23_s28 = sadd.s32 1, %s16271_s29   ;;  %s16274_s24 = sld [smem:[#allocation16_spill]] }
 0x560   : > { %p20_p1 = scmp.ge.s32.totalorder %s23_s28, 6   ;;  %s16275_s26 = sld [smem:[#allocation19_spill]] }
 0x561   : > { %s16276_s16 = sld [smem:[#allocation21_spill]]  ;;  %s16277_s21 = smov %s8296_s22 }
 0x562   : > { %s16278_s22 = smov %s8300_s23  ;;  %s16279_s23 = smov %s8468_s4 }
 0x563   : > { %s16280_s25 = smov %s8316_s27  ;;  %22 = sbr.rel (!%p20_p1) target bundleno = 11 (0xb), region = 93 }
 0x567   : > { %s16281_s27 = smov %s16276_s16 }
 0x568   :  { %6793 = vsyncpa [#allocation6], 1 }
 0x569   :  { %6795 = vsyncpa [#allocation6 + $0x1], 1 }
 0x56a   :  { %6796 = vsyncpa [#allocation9], 1 }
 0x56b   :  { %6797 = vsyncpa [#allocation7], 1 }
 0x56c   :  { %6799 = vsyncpa [#allocation7 + $0x1], 1 }

</bundles_post_ra>
